<compile_context>
chip_gen: v7x
topology: tpu7x:2x2x1
jax: 0.10.0
libtpu: 0.0.40
codegen_flags: <defaults>
</compile_context>

<pallas_src>
import math
import functools

import jax
import jax.numpy as jnp
from jax import lax
from jax.experimental import pallas as pl
from jax.experimental.pallas import tpu as pltpu


# ----------------------------- kernel helpers ------------------------------

def _layernorm(x, g, b, eps):
    # x: (R, D), g/b: (1, D)   (biased variance, matching torch.nn.LayerNorm)
    mu = jnp.mean(x, axis=-1, keepdims=True)
    var = jnp.mean((x - mu) ** 2, axis=-1, keepdims=True)
    return (x - mu) * lax.rsqrt(var + eps) * g + b


def _gelu(x):
    # tanh-approx GELU (EUP-friendly).
    # TODO(synk): FFN source not provided; activation assumed to be GELU.
    c = math.sqrt(2.0 / math.pi)
    return 0.5 * x * (1.0 + jnp.tanh(c * (x + 0.044715 * x * x * x)))


# --------------------------------- kernel ----------------------------------

def self_attention_kernel(
    x_ref,                       # (bb, N, D)  f32
    ln1_g_ref, ln1_b_ref,        # (1, D)      f32
    wqkv_ref, bqkv_ref,          # (D, 3D) bf16, (1, 3D) f32   (fused Q|K|V)
    wo_ref, bo_ref,              # (D, D)  bf16, (1, D)  f32
    ln2_g_ref, ln2_b_ref,        # (1, D)      f32
    w1_ref, b1_ref,              # (nc, D, fc) bf16, (nc, 1, fc) f32
    w2_ref, b2_ref,              # (nc, fc, D) bf16, (1, D) f32
    o_ref,                       # (bb, N, D)  f32
    ctx_ref,                     # (bb, N, D)  bf16 VMEM scratch
    *, num_heads,
):
    f32, bf16 = jnp.float32, jnp.bfloat16
    bb, N, D = x_ref.shape
    hd = D // num_heads
    rows = bb * N
    scale = 1.0 / math.sqrt(hd)

    # Flatten batch*seq rows so LN / projections / FFN use the full MXU M dimension.
    x = x_ref[...].reshape(rows, D)

    # ---- 1) pre-attention LayerNorm (eps = 1e-6 per module spec) ----
    xn_b = _layernorm(x, ln1_g_ref[...], ln1_b_ref[...], eps=1e-6).astype(bf16)

    # ---- 2) fused QKV projection: one K=D MXU push, 3D output lanes ----
    qkv = jnp.dot(xn_b, wqkv_ref[...], preferred_element_type=f32) + bqkv_ref[...]
    # 1/sqrt(hd) folded into q once (O(rows*D)).
    q = (qkv[:, 0:D] * scale).astype(bf16).reshape(bb, N, D)
    k = qkv[:, D:2 * D].astype(bf16).reshape(bb, N, D)
    v = qkv[:, 2 * D:3 * D].astype(bf16).reshape(bb, N, D)

    # ---- 3) per-head attention; each head writes its context into its lane
    #         slice of the VMEM scratch -> single K=D output projection after ----
    # TODO(synk): for large N add a query-tile grid axis (flash-style online softmax)
    # and repack heads off the lane dim if the bundle dump shows per-head relayouts.
    for h in range(num_heads):
        lo = h * hd
        qh = q[:, :, lo:lo + hd]             # (bb, N, hd) bf16
        kh = k[:, :, lo:lo + hd]
        vh = v[:, :, lo:lo + hd]
        # Batched contraction over the last dim of both operands (no transpose).
        s = jnp.einsum("bqd,bkd->bqk", qh, kh, preferred_element_type=f32)
        s = s - jnp.max(s, axis=-1, keepdims=True)
        p = jnp.exp(s)                                              # f32 softmax
        inv_l = pl.reciprocal(jnp.sum(p, axis=-1, keepdims=True), approx=True)
        # PV matmul on unnormalized p; normalize the small (bb,N,hd) result.
        ctx_h = jnp.einsum("bqk,bkd->bqd", p.astype(bf16), vh,
                           preferred_element_type=f32) * inv_l
        ctx_ref[:, :, lo:lo + hd] = ctx_h.astype(bf16)

    # Single K=D output projection (replaces per-head K=hd accumulation).
    ctx = ctx_ref[...].reshape(rows, D)
    context = jnp.dot(ctx, wo_ref[...], preferred_element_type=f32) + bo_ref[...]

    # ---- 4) dropout (identity, inference) + residual ----
    out = context + x

    # ---- 5) FFN: LN -> Linear(D,4D) -> GELU -> Linear(4D,D) -> residual ----
    # TODO(synk): FFN-internal LayerNorm eps unknown; torch default 1e-5 assumed.
    on_b = _layernorm(out, ln2_g_ref[...], ln2_b_ref[...], eps=1e-5).astype(bf16)
    n_chunks = w1_ref.shape[0]

    def ffn_chunk_body(c, y):
        # Dynamic index on the leading (chunk) axis only -> clean ref loads.
        h1 = _gelu(jnp.dot(on_b, w1_ref[c], preferred_element_type=f32) + b1_ref[c])
        return y + jnp.dot(h1.astype(bf16), w2_ref[c], preferred_element_type=f32)

    y = lax.fori_loop(0, n_chunks, ffn_chunk_body, jnp.zeros((rows, D), f32),
                      unroll=bool(n_chunks <= 2))
    y = y + b2_ref[...]

    o_ref[...] = (y + out).reshape(bb, N, D).astype(o_ref.dtype)


# -------------------------------- wrapper ----------------------------------

def _vmem_limit_bytes(frac=0.7):
    # Per-generation VMEM limit: fraction of physical capacity
    # (v5e/v6e: 128 MiB -> ~89 MiB; v7x: 64 MiB -> ~44 MiB).
    cap = 64 * 1024 * 1024
    try:
        info = pltpu.get_tpu_info()
        cap = int(getattr(info, "vmem_capacity_bytes", cap))
    except Exception:
        pass
    return int(cap * frac)


def _pick_batch_block(B, N, target_rows=256, max_bb=8):
    # Largest divisor of B (<= max_bb) keeping bb*N near the MXU-friendly row count.
    bb = 1
    for cand in range(1, min(B, max_bb) + 1):
        if B % cand == 0 and cand * N <= max(N, target_rows):
            bb = cand
    return bb


def self_attention_forward(x, params, num_heads=8, need_attn=False):
    """x: (B, N, D) float32.  Returns (ffn_out, attn) with attn=None (need_attn=False)."""
    B, N, D = x.shape
    assert D % num_heads == 0, "in_dim must be divisible by num_heads"
    bf16 = jnp.bfloat16
    hidden = params["w1"].shape[1]

    # Fused QKV weights; all matmul weights pre-cast to bf16 (f32 accumulation in-kernel).
    wqkv = jnp.concatenate([params["wq"], params["wk"], params["wv"]], axis=1).astype(bf16)
    bqkv = jnp.concatenate([params["bq"], params["bk"], params["bv"]], axis=1)

    # FFN hidden chunking baked into a leading chunk axis of the weights.
    ffn_chunk = 512 if hidden % 512 == 0 else hidden
    n_chunks = hidden // ffn_chunk
    w1c = params["w1"].reshape(D, n_chunks, ffn_chunk).transpose(1, 0, 2).astype(bf16)
    b1c = params["b1"].reshape(1, n_chunks, ffn_chunk).transpose(1, 0, 2)
    w2c = params["w2"].reshape(n_chunks, ffn_chunk, D).astype(bf16)

    param_list = [
        params["ln1_g"], params["ln1_b"],
        wqkv, bqkv,
        params["wo"].astype(bf16), params["bo"],
        params["ln2_g"], params["ln2_b"],
        w1c, b1c, w2c, params["b2"],
    ]

    bb = _pick_batch_block(B, N)
    grid = (B // bb,)
    kernel = functools.partial(self_attention_kernel, num_heads=num_heads)

    # Advisory cost estimate for XLA's scheduler.
    flops = (2 * B * N * D * 3 * D          # fused QKV
             + 4 * B * N * N * D            # scores + PV over all heads
             + 2 * B * N * D * D            # output projection
             + 4 * B * N * D * hidden)      # two FFN matmuls
    transcendentals = B * num_heads * N * N + B * N * hidden + 4 * B * N
    param_bytes = sum(int(p.size) * p.dtype.itemsize for p in param_list)
    bytes_accessed = 2 * B * N * D * 4 + param_bytes
    cost = pl.CostEstimate(flops=int(flops), transcendentals=int(transcendentals),
                           bytes_accessed=int(bytes_accessed))

    def run(weight_pipeline_mode):
        def const_spec(p):
            nd = p.ndim
            kwargs = {}
            if weight_pipeline_mode is not None:
                kwargs["pipeline_mode"] = weight_pipeline_mode
            return pl.BlockSpec(p.shape, lambda i, _nd=nd: (0,) * _nd, **kwargs)

        return pl.pallas_call(
            kernel,
            out_shape=jax.ShapeDtypeStruct((B, N, D), x.dtype),
            grid_spec=pltpu.PrefetchScalarGridSpec(
                num_scalar_prefetch=0,
                grid=grid,
                in_specs=[pl.BlockSpec((bb, N, D), lambda i: (i, 0, 0))]
                         + [const_spec(p) for p in param_list],
                out_specs=pl.BlockSpec((bb, N, D), lambda i: (i, 0, 0)),
                scratch_shapes=[pltpu.VMEM((bb, N, D), bf16)],
            ),
            compiler_params=pltpu.CompilerParams(
                dimension_semantics=("parallel",),
                vmem_limit_bytes=_vmem_limit_bytes(),
            ),
            cost_estimate=cost,
        )(x, *param_list)

    try:
        # Single-buffer the grid-invariant weight/bias blocks (halves resident weight VMEM).
        out = run(pl.Buffered(1))
    except Exception:
        # TODO(synk): pipeline_mode single-buffering not available on this JAX build;
        # falling back to default double-buffered weight blocks.
        out = run(None)

    # TODO(synk): need_attn=True path (returning per-head attention weights) not wired
    # out of the kernel; the reference call uses need_attn=False -> attn is None.
    return out, None


# --------------------------------- driver ----------------------------------

def _init_params(key, D, scale=4):
    H = D * scale
    ks = jax.random.split(key, 8)
    std = 0.02
    return {
        "ln1_g": jnp.ones((1, D), jnp.float32),
        "ln1_b": jnp.zeros((1, D), jnp.float32),
        "wq": std * jax.random.normal(ks[0], (D, D), jnp.float32),
        "bq": jnp.zeros((1, D), jnp.float32),
        "wk": std * jax.random.normal(ks[1], (D, D), jnp.float32),
        "bk": jnp.zeros((1, D), jnp.float32),
        "wv": std * jax.random.normal(ks[2], (D, D), jnp.float32),
        "bv": jnp.zeros((1, D), jnp.float32),
        "wo": std * jax.random.normal(ks[3], (D, D), jnp.float32),
        "bo": jnp.zeros((1, D), jnp.float32),
        "ln2_g": jnp.ones((1, D), jnp.float32),
        "ln2_b": jnp.zeros((1, D), jnp.float32),
        "w1": std * jax.random.normal(ks[4], (D, H), jnp.float32),
        "b1": jnp.zeros((1, H), jnp.float32),
        "w2": std * jax.random.normal(ks[5], (H, D), jnp.float32),
        "b2": jnp.zeros((1, D), jnp.float32),
    }


if __name__ == "__main__":
    # Lane-dense small shapes: D = 128 (one full lane tile), head_dim = 16.
    B, N, D = 2, 16, 128        # batch, seq, in_dim
    num_heads = 8

    key = jax.random.PRNGKey(0)
    kx, kp = jax.random.split(key)
    x = jax.random.normal(kx, (B, N, D), jnp.float32)
    params = _init_params(kp, D)

    out, attn = self_attention_forward(x, params, num_heads=num_heads, need_attn=False)
    out = jax.block_until_ready(out)
    assert out.shape == (B, N, D) and bool(jnp.all(jnp.isfinite(out)))
    print("KERNEL_OK")
</pallas_src>

<mosaic_0001>
module attributes {stable_mosaic.version = 11 : i64} {
  func.func @self_attention_kernel(%arg0: i32, %arg1: memref<2x16x128xf32, #tpu.memory_space<vmem>>, %arg2: memref<1x128xf32, #tpu.memory_space<vmem>>, %arg3: memref<1x128xf32, #tpu.memory_space<vmem>>, %arg4: memref<128x384xbf16, #tpu.memory_space<vmem>>, %arg5: memref<1x384xf32, #tpu.memory_space<vmem>>, %arg6: memref<128x128xbf16, #tpu.memory_space<vmem>>, %arg7: memref<1x128xf32, #tpu.memory_space<vmem>>, %arg8: memref<1x128xf32, #tpu.memory_space<vmem>>, %arg9: memref<1x128xf32, #tpu.memory_space<vmem>>, %arg10: memref<1x128x512xbf16, #tpu.memory_space<vmem>>, %arg11: memref<1x1x512xf32, #tpu.memory_space<vmem>>, %arg12: memref<1x512x128xbf16, #tpu.memory_space<vmem>>, %arg13: memref<1x128xf32, #tpu.memory_space<vmem>>, %arg14: memref<2x16x128xf32, #tpu.memory_space<vmem>>, %arg15: memref<2x16x128xbf16, #tpu.memory_space<vmem>>) attributes {dimension_semantics = [#tpu.dimension_semantics<parallel>], iteration_bounds = array<i64: 1>, scalar_prefetch = 0 : i64, scratch_operands = 1 : i64, tpu.core_type = #tpu.core_type<tc>, window_params = [{transform_indices = @transform_0, window_bounds = array<i64: 2, 16, 128>}, {pipeline_mode = #tpu.pipeline_mode<synchronous>, transform_indices = @transform_1, window_bounds = array<i64: 1, 128>}, {pipeline_mode = #tpu.pipeline_mode<synchronous>, transform_indices = @transform_2, window_bounds = array<i64: 1, 128>}, {pipeline_mode = #tpu.pipeline_mode<synchronous>, transform_indices = @transform_3, window_bounds = array<i64: 128, 384>}, {pipeline_mode = #tpu.pipeline_mode<synchronous>, transform_indices = @transform_4, window_bounds = array<i64: 1, 384>}, {pipeline_mode = #tpu.pipeline_mode<synchronous>, transform_indices = @transform_5, window_bounds = array<i64: 128, 128>}, {pipeline_mode = #tpu.pipeline_mode<synchronous>, transform_indices = @transform_6, window_bounds = array<i64: 1, 128>}, {pipeline_mode = #tpu.pipeline_mode<synchronous>, transform_indices = @transform_7, window_bounds = array<i64: 1, 128>}, {pipeline_mode = #tpu.pipeline_mode<synchronous>, transform_indices = @transform_8, window_bounds = array<i64: 1, 128>}, {pipeline_mode = #tpu.pipeline_mode<synchronous>, transform_indices = @transform_9, window_bounds = array<i64: 1, 128, 512>}, {pipeline_mode = #tpu.pipeline_mode<synchronous>, transform_indices = @transform_10, window_bounds = array<i64: 1, 1, 512>}, {pipeline_mode = #tpu.pipeline_mode<synchronous>, transform_indices = @transform_11, window_bounds = array<i64: 1, 512, 128>}, {pipeline_mode = #tpu.pipeline_mode<synchronous>, transform_indices = @transform_12, window_bounds = array<i64: 1, 128>}, {transform_indices = @transform_13, window_bounds = array<i64: 2, 16, 128>}]} {
    %c0 = arith.constant 0 : index
    %c0_0 = arith.constant 0 : index
    %c0_1 = arith.constant 0 : index
    %0 = vector.load %arg1[%c0, %c0_0, %c0_1] : memref<2x16x128xf32, #tpu.memory_space<vmem>>, vector<2x16x128xf32>
    %1 = vector.shape_cast %0 : vector<2x16x128xf32> to vector<32x128xf32>
    %c0_2 = arith.constant 0 : index
    %c0_3 = arith.constant 0 : index
    %2 = vector.load %arg2[%c0_2, %c0_3] : memref<1x128xf32, #tpu.memory_space<vmem>>, vector<1x128xf32>
    %c0_4 = arith.constant 0 : index
    %c0_5 = arith.constant 0 : index
    %3 = vector.load %arg3[%c0_4, %c0_5] : memref<1x128xf32, #tpu.memory_space<vmem>>, vector<1x128xf32>
    %cst = arith.constant dense<0.000000e+00> : vector<32xf32>
    %4 = vector.multi_reduction <add>, %1, %cst [1] : vector<32x128xf32> to vector<32xf32>
    %5 = vector.shape_cast %4 : vector<32xf32> to vector<32x1xf32>
    %cst_6 = arith.constant 1.280000e+02 : f32
    %6 = vector.broadcast %cst_6 : f32 to vector<32x1xf32>
    %7 = arith.divf %5, %6 : vector<32x1xf32>
    %8 = vector.broadcast %7 : vector<32x1xf32> to vector<32x128xf32>
    %9 = arith.subf %1, %8 : vector<32x128xf32>
    %10 = arith.mulf %9, %9 : vector<32x128xf32>
    %cst_7 = arith.constant dense<0.000000e+00> : vector<32xf32>
    %11 = vector.multi_reduction <add>, %10, %cst_7 [1] : vector<32x128xf32> to vector<32xf32>
    %12 = vector.shape_cast %11 : vector<32xf32> to vector<32x1xf32>
    %cst_8 = arith.constant 1.280000e+02 : f32
    %13 = vector.broadcast %cst_8 : f32 to vector<32x1xf32>
    %14 = arith.divf %12, %13 : vector<32x1xf32>
    %15 = vector.broadcast %7 : vector<32x1xf32> to vector<32x128xf32>
    %16 = arith.subf %1, %15 : vector<32x128xf32>
    %cst_9 = arith.constant 9.99999997E-7 : f32
    %17 = vector.broadcast %cst_9 : f32 to vector<32x1xf32>
    %18 = arith.addf %14, %17 : vector<32x1xf32>
    %19 = math.rsqrt %18 : vector<32x1xf32>
    %20 = vector.broadcast %19 : vector<32x1xf32> to vector<32x128xf32>
    %21 = arith.mulf %16, %20 : vector<32x128xf32>
    %22 = vector.broadcast %2 : vector<1x128xf32> to vector<32x128xf32>
    %23 = arith.mulf %21, %22 : vector<32x128xf32>
    %24 = vector.broadcast %3 : vector<1x128xf32> to vector<32x128xf32>
    %25 = arith.addf %23, %24 : vector<32x128xf32>
    %26 = arith.truncf %25 : vector<32x128xf32> to vector<32x128xbf16>
    %c0_10 = arith.constant 0 : index
    %c0_11 = arith.constant 0 : index
    %27 = vector.load %arg4[%c0_10, %c0_11] : memref<128x384xbf16, #tpu.memory_space<vmem>>, vector<128x384xbf16>
    %cst_12 = arith.constant dense<0.000000e+00> : vector<32x384xf32>
    %28 = tpu.matmul %26, %27, %cst_12 {dimension_numbers = #tpu.dot_dimension_numbers<[1], [0], [0], [1], [0, 0, 1, 1], [], []>} : vector<32x128xbf16>, vector<128x384xbf16>, vector<32x384xf32> -> vector<32x384xf32>
    %c0_13 = arith.constant 0 : index
    %c0_14 = arith.constant 0 : index
    %29 = vector.load %arg5[%c0_13, %c0_14] : memref<1x384xf32, #tpu.memory_space<vmem>>, vector<1x384xf32>
    %30 = vector.broadcast %29 : vector<1x384xf32> to vector<32x384xf32>
    %31 = arith.addf %28, %30 : vector<32x384xf32>
    %32 = vector.extract_strided_slice %31 {offsets = [0, 0], sizes = [32, 128], strides = [1, 1]} : vector<32x384xf32> to vector<32x128xf32>
    %cst_15 = arith.constant 2.500000e-01 : f32
    %33 = vector.broadcast %cst_15 : f32 to vector<32x128xf32>
    %34 = arith.mulf %32, %33 : vector<32x128xf32>
    %35 = arith.truncf %34 : vector<32x128xf32> to vector<32x128xbf16>
    %36 = vector.shape_cast %35 : vector<32x128xbf16> to vector<2x16x128xbf16>
    %37 = vector.extract_strided_slice %31 {offsets = [0, 128], sizes = [32, 128], strides = [1, 1]} : vector<32x384xf32> to vector<32x128xf32>
    %38 = arith.truncf %37 : vector<32x128xf32> to vector<32x128xbf16>
    %39 = vector.shape_cast %38 : vector<32x128xbf16> to vector<2x16x128xbf16>
    %40 = vector.extract_strided_slice %31 {offsets = [0, 256], sizes = [32, 128], strides = [1, 1]} : vector<32x384xf32> to vector<32x128xf32>
    %41 = arith.truncf %40 : vector<32x128xf32> to vector<32x128xbf16>
    %42 = vector.shape_cast %41 : vector<32x128xbf16> to vector<2x16x128xbf16>
    %43 = vector.extract_strided_slice %36 {offsets = [0, 0, 0], sizes = [2, 16, 16], strides = [1, 1, 1]} : vector<2x16x128xbf16> to vector<2x16x16xbf16>
    %44 = vector.extract_strided_slice %39 {offsets = [0, 0, 0], sizes = [2, 16, 16], strides = [1, 1, 1]} : vector<2x16x128xbf16> to vector<2x16x16xbf16>
    %45 = vector.extract_strided_slice %42 {offsets = [0, 0, 0], sizes = [2, 16, 16], strides = [1, 1, 1]} : vector<2x16x128xbf16> to vector<2x16x16xbf16>
    "tpu.trace_start"() <{level = 10 : i32, message = "bqd,bkd->bqk"}> : () -> ()
    %cst_16 = arith.constant dense<0.000000e+00> : vector<2x16x16xf32>
    %46 = tpu.matmul %43, %44, %cst_16 {dimension_numbers = #tpu.dot_dimension_numbers<[2], [2], [1], [1], [0, 0, 0, 1, 1, 1], [0], [0]>} : vector<2x16x16xbf16>, vector<2x16x16xbf16>, vector<2x16x16xf32> -> vector<2x16x16xf32>
    "tpu.trace_stop"() : () -> ()
    %cst_17 = arith.constant dense<0xFF800000> : vector<2x16xf32>
    %47 = vector.multi_reduction <maximumf>, %46, %cst_17 [2] : vector<2x16x16xf32> to vector<2x16xf32>
    %48 = vector.shape_cast %47 : vector<2x16xf32> to vector<2x16x1xf32>
    %49 = vector.broadcast %48 : vector<2x16x1xf32> to vector<2x16x16xf32>
    %50 = arith.subf %46, %49 : vector<2x16x16xf32>
    %51 = math.exp %50 : vector<2x16x16xf32>
    %cst_18 = arith.constant dense<0.000000e+00> : vector<2x16xf32>
    %52 = vector.multi_reduction <add>, %51, %cst_18 [2] : vector<2x16x16xf32> to vector<2x16xf32>
    %53 = vector.shape_cast %52 : vector<2x16xf32> to vector<2x16x1xf32>
    %54 = tpu.reciprocal %53 {approx = true} : vector<2x16x1xf32> -> vector<2x16x1xf32>
    %55 = arith.truncf %51 : vector<2x16x16xf32> to vector<2x16x16xbf16>
    "tpu.trace_start"() <{level = 10 : i32, message = "bqk,bkd->bqd"}> : () -> ()
    %cst_19 = arith.constant dense<0.000000e+00> : vector<2x16x16xf32>
    %56 = tpu.matmul %55, %45, %cst_19 {dimension_numbers = #tpu.dot_dimension_numbers<[2], [1], [1], [2], [0, 0, 0, 1, 1, 2], [0], [0]>} : vector<2x16x16xbf16>, vector<2x16x16xbf16>, vector<2x16x16xf32> -> vector<2x16x16xf32>
    "tpu.trace_stop"() : () -> ()
    %57 = vector.broadcast %54 : vector<2x16x1xf32> to vector<2x16x16xf32>
    %58 = arith.mulf %56, %57 : vector<2x16x16xf32>
    %59 = arith.truncf %58 : vector<2x16x16xf32> to vector<2x16x16xbf16>
    %c0_20 = arith.constant 0 : index
    %c0_21 = arith.constant 0 : index
    %c0_22 = arith.constant 0 : index
    %60 = vector.load %arg15[%c0_20, %c0_21, %c0_22] : memref<2x16x128xbf16, #tpu.memory_space<vmem>>, vector<2x16x16xbf16>
    tpu.vector_store %arg15[%c0_20, %c0_21, %c0_22], %59 {strides = array<i32>} : memref<2x16x128xbf16, #tpu.memory_space<vmem>>, vector<2x16x16xbf16>,
    %61 = vector.extract_strided_slice %36 {offsets = [0, 0, 16], sizes = [2, 16, 16], strides = [1, 1, 1]} : vector<2x16x128xbf16> to vector<2x16x16xbf16>
    %62 = vector.extract_strided_slice %39 {offsets = [0, 0, 16], sizes = [2, 16, 16], strides = [1, 1, 1]} : vector<2x16x128xbf16> to vector<2x16x16xbf16>
    %63 = vector.extract_strided_slice %42 {offsets = [0, 0, 16], sizes = [2, 16, 16], strides = [1, 1, 1]} : vector<2x16x128xbf16> to vector<2x16x16xbf16>
    "tpu.trace_start"() <{level = 10 : i32, message = "bqd,bkd->bqk"}> : () -> ()
    %cst_23 = arith.constant dense<0.000000e+00> : vector<2x16x16xf32>
    %64 = tpu.matmul %61, %62, %cst_23 {dimension_numbers = #tpu.dot_dimension_numbers<[2], [2], [1], [1], [0, 0, 0, 1, 1, 1], [0], [0]>} : vector<2x16x16xbf16>, vector<2x16x16xbf16>, vector<2x16x16xf32> -> vector<2x16x16xf32>
    "tpu.trace_stop"() : () -> ()
    %cst_24 = arith.constant dense<0xFF800000> : vector<2x16xf32>
    %65 = vector.multi_reduction <maximumf>, %64, %cst_24 [2] : vector<2x16x16xf32> to vector<2x16xf32>
    %66 = vector.shape_cast %65 : vector<2x16xf32> to vector<2x16x1xf32>
    %67 = vector.broadcast %66 : vector<2x16x1xf32> to vector<2x16x16xf32>
    %68 = arith.subf %64, %67 : vector<2x16x16xf32>
    %69 = math.exp %68 : vector<2x16x16xf32>
    %cst_25 = arith.constant dense<0.000000e+00> : vector<2x16xf32>
    %70 = vector.multi_reduction <add>, %69, %cst_25 [2] : vector<2x16x16xf32> to vector<2x16xf32>
    %71 = vector.shape_cast %70 : vector<2x16xf32> to vector<2x16x1xf32>
    %72 = tpu.reciprocal %71 {approx = true} : vector<2x16x1xf32> -> vector<2x16x1xf32>
    %73 = arith.truncf %69 : vector<2x16x16xf32> to vector<2x16x16xbf16>
    "tpu.trace_start"() <{level = 10 : i32, message = "bqk,bkd->bqd"}> : () -> ()
    %cst_26 = arith.constant dense<0.000000e+00> : vector<2x16x16xf32>
    %74 = tpu.matmul %73, %63, %cst_26 {dimension_numbers = #tpu.dot_dimension_numbers<[2], [1], [1], [2], [0, 0, 0, 1, 1, 2], [0], [0]>} : vector<2x16x16xbf16>, vector<2x16x16xbf16>, vector<2x16x16xf32> -> vector<2x16x16xf32>
    "tpu.trace_stop"() : () -> ()
    %75 = vector.broadcast %72 : vector<2x16x1xf32> to vector<2x16x16xf32>
    %76 = arith.mulf %74, %75 : vector<2x16x16xf32>
    %77 = arith.truncf %76 : vector<2x16x16xf32> to vector<2x16x16xbf16>
    %c0_27 = arith.constant 0 : index
    %c0_28 = arith.constant 0 : index
    %c16 = arith.constant 16 : index
    %78 = vector.load %arg15[%c0_27, %c0_28, %c16] : memref<2x16x128xbf16, #tpu.memory_space<vmem>>, vector<2x16x16xbf16>
    tpu.vector_store %arg15[%c0_27, %c0_28, %c16], %77 {strides = array<i32>} : memref<2x16x128xbf16, #tpu.memory_space<vmem>>, vector<2x16x16xbf16>,
    %79 = vector.extract_strided_slice %36 {offsets = [0, 0, 32], sizes = [2, 16, 16], strides = [1, 1, 1]} : vector<2x16x128xbf16> to vector<2x16x16xbf16>
    %80 = vector.extract_strided_slice %39 {offsets = [0, 0, 32], sizes = [2, 16, 16], strides = [1, 1, 1]} : vector<2x16x128xbf16> to vector<2x16x16xbf16>
    %81 = vector.extract_strided_slice %42 {offsets = [0, 0, 32], sizes = [2, 16, 16], strides = [1, 1, 1]} : vector<2x16x128xbf16> to vector<2x16x16xbf16>
    "tpu.trace_start"() <{level = 10 : i32, message = "bqd,bkd->bqk"}> : () -> ()
    %cst_29 = arith.constant dense<0.000000e+00> : vector<2x16x16xf32>
    %82 = tpu.matmul %79, %80, %cst_29 {dimension_numbers = #tpu.dot_dimension_numbers<[2], [2], [1], [1], [0, 0, 0, 1, 1, 1], [0], [0]>} : vector<2x16x16xbf16>, vector<2x16x16xbf16>, vector<2x16x16xf32> -> vector<2x16x16xf32>
    "tpu.trace_stop"() : () -> ()
    %cst_30 = arith.constant dense<0xFF800000> : vector<2x16xf32>
    %83 = vector.multi_reduction <maximumf>, %82, %cst_30 [2] : vector<2x16x16xf32> to vector<2x16xf32>
    %84 = vector.shape_cast %83 : vector<2x16xf32> to vector<2x16x1xf32>
    %85 = vector.broadcast %84 : vector<2x16x1xf32> to vector<2x16x16xf32>
    %86 = arith.subf %82, %85 : vector<2x16x16xf32>
    %87 = math.exp %86 : vector<2x16x16xf32>
    %cst_31 = arith.constant dense<0.000000e+00> : vector<2x16xf32>
    %88 = vector.multi_reduction <add>, %87, %cst_31 [2] : vector<2x16x16xf32> to vector<2x16xf32>
    %89 = vector.shape_cast %88 : vector<2x16xf32> to vector<2x16x1xf32>
    %90 = tpu.reciprocal %89 {approx = true} : vector<2x16x1xf32> -> vector<2x16x1xf32>
    %91 = arith.truncf %87 : vector<2x16x16xf32> to vector<2x16x16xbf16>
    "tpu.trace_start"() <{level = 10 : i32, message = "bqk,bkd->bqd"}> : () -> ()
    %cst_32 = arith.constant dense<0.000000e+00> : vector<2x16x16xf32>
    %92 = tpu.matmul %91, %81, %cst_32 {dimension_numbers = #tpu.dot_dimension_numbers<[2], [1], [1], [2], [0, 0, 0, 1, 1, 2], [0], [0]>} : vector<2x16x16xbf16>, vector<2x16x16xbf16>, vector<2x16x16xf32> -> vector<2x16x16xf32>
    "tpu.trace_stop"() : () -> ()
    %93 = vector.broadcast %90 : vector<2x16x1xf32> to vector<2x16x16xf32>
    %94 = arith.mulf %92, %93 : vector<2x16x16xf32>
    %95 = arith.truncf %94 : vector<2x16x16xf32> to vector<2x16x16xbf16>
    %c0_33 = arith.constant 0 : index
    %c0_34 = arith.constant 0 : index
    %c32 = arith.constant 32 : index
    %96 = vector.load %arg15[%c0_33, %c0_34, %c32] : memref<2x16x128xbf16, #tpu.memory_space<vmem>>, vector<2x16x16xbf16>
    tpu.vector_store %arg15[%c0_33, %c0_34, %c32], %95 {strides = array<i32>} : memref<2x16x128xbf16, #tpu.memory_space<vmem>>, vector<2x16x16xbf16>,
    %97 = vector.extract_strided_slice %36 {offsets = [0, 0, 48], sizes = [2, 16, 16], strides = [1, 1, 1]} : vector<2x16x128xbf16> to vector<2x16x16xbf16>
    %98 = vector.extract_strided_slice %39 {offsets = [0, 0, 48], sizes = [2, 16, 16], strides = [1, 1, 1]} : vector<2x16x128xbf16> to vector<2x16x16xbf16>
    %99 = vector.extract_strided_slice %42 {offsets = [0, 0, 48], sizes = [2, 16, 16], strides = [1, 1, 1]} : vector<2x16x128xbf16> to vector<2x16x16xbf16>
    "tpu.trace_start"() <{level = 10 : i32, message = "bqd,bkd->bqk"}> : () -> ()
    %cst_35 = arith.constant dense<0.000000e+00> : vector<2x16x16xf32>
    %100 = tpu.matmul %97, %98, %cst_35 {dimension_numbers = #tpu.dot_dimension_numbers<[2], [2], [1], [1], [0, 0, 0, 1, 1, 1], [0], [0]>} : vector<2x16x16xbf16>, vector<2x16x16xbf16>, vector<2x16x16xf32> -> vector<2x16x16xf32>
    "tpu.trace_stop"() : () -> ()
    %cst_36 = arith.constant dense<0xFF800000> : vector<2x16xf32>
    %101 = vector.multi_reduction <maximumf>, %100, %cst_36 [2] : vector<2x16x16xf32> to vector<2x16xf32>
    %102 = vector.shape_cast %101 : vector<2x16xf32> to vector<2x16x1xf32>
    %103 = vector.broadcast %102 : vector<2x16x1xf32> to vector<2x16x16xf32>
    %104 = arith.subf %100, %103 : vector<2x16x16xf32>
    %105 = math.exp %104 : vector<2x16x16xf32>
    %cst_37 = arith.constant dense<0.000000e+00> : vector<2x16xf32>
    %106 = vector.multi_reduction <add>, %105, %cst_37 [2] : vector<2x16x16xf32> to vector<2x16xf32>
    %107 = vector.shape_cast %106 : vector<2x16xf32> to vector<2x16x1xf32>
    %108 = tpu.reciprocal %107 {approx = true} : vector<2x16x1xf32> -> vector<2x16x1xf32>
    %109 = arith.truncf %105 : vector<2x16x16xf32> to vector<2x16x16xbf16>
    "tpu.trace_start"() <{level = 10 : i32, message = "bqk,bkd->bqd"}> : () -> ()
    %cst_38 = arith.constant dense<0.000000e+00> : vector<2x16x16xf32>
    %110 = tpu.matmul %109, %99, %cst_38 {dimension_numbers = #tpu.dot_dimension_numbers<[2], [1], [1], [2], [0, 0, 0, 1, 1, 2], [0], [0]>} : vector<2x16x16xbf16>, vector<2x16x16xbf16>, vector<2x16x16xf32> -> vector<2x16x16xf32>
    "tpu.trace_stop"() : () -> ()
    %111 = vector.broadcast %108 : vector<2x16x1xf32> to vector<2x16x16xf32>
    %112 = arith.mulf %110, %111 : vector<2x16x16xf32>
    %113 = arith.truncf %112 : vector<2x16x16xf32> to vector<2x16x16xbf16>
    %c0_39 = arith.constant 0 : index
    %c0_40 = arith.constant 0 : index
    %c48 = arith.constant 48 : index
    %114 = vector.load %arg15[%c0_39, %c0_40, %c48] : memref<2x16x128xbf16, #tpu.memory_space<vmem>>, vector<2x16x16xbf16>
    tpu.vector_store %arg15[%c0_39, %c0_40, %c48], %113 {strides = array<i32>} : memref<2x16x128xbf16, #tpu.memory_space<vmem>>, vector<2x16x16xbf16>,
    %115 = vector.extract_strided_slice %36 {offsets = [0, 0, 64], sizes = [2, 16, 16], strides = [1, 1, 1]} : vector<2x16x128xbf16> to vector<2x16x16xbf16>
    %116 = vector.extract_strided_slice %39 {offsets = [0, 0, 64], sizes = [2, 16, 16], strides = [1, 1, 1]} : vector<2x16x128xbf16> to vector<2x16x16xbf16>
    %117 = vector.extract_strided_slice %42 {offsets = [0, 0, 64], sizes = [2, 16, 16], strides = [1, 1, 1]} : vector<2x16x128xbf16> to vector<2x16x16xbf16>
    "tpu.trace_start"() <{level = 10 : i32, message = "bqd,bkd->bqk"}> : () -> ()
    %cst_41 = arith.constant dense<0.000000e+00> : vector<2x16x16xf32>
    %118 = tpu.matmul %115, %116, %cst_41 {dimension_numbers = #tpu.dot_dimension_numbers<[2], [2], [1], [1], [0, 0, 0, 1, 1, 1], [0], [0]>} : vector<2x16x16xbf16>, vector<2x16x16xbf16>, vector<2x16x16xf32> -> vector<2x16x16xf32>
    "tpu.trace_stop"() : () -> ()
    %cst_42 = arith.constant dense<0xFF800000> : vector<2x16xf32>
    %119 = vector.multi_reduction <maximumf>, %118, %cst_42 [2] : vector<2x16x16xf32> to vector<2x16xf32>
    %120 = vector.shape_cast %119 : vector<2x16xf32> to vector<2x16x1xf32>
    %121 = vector.broadcast %120 : vector<2x16x1xf32> to vector<2x16x16xf32>
    %122 = arith.subf %118, %121 : vector<2x16x16xf32>
    %123 = math.exp %122 : vector<2x16x16xf32>
    %cst_43 = arith.constant dense<0.000000e+00> : vector<2x16xf32>
    %124 = vector.multi_reduction <add>, %123, %cst_43 [2] : vector<2x16x16xf32> to vector<2x16xf32>
    %125 = vector.shape_cast %124 : vector<2x16xf32> to vector<2x16x1xf32>
    %126 = tpu.reciprocal %125 {approx = true} : vector<2x16x1xf32> -> vector<2x16x1xf32>
    %127 = arith.truncf %123 : vector<2x16x16xf32> to vector<2x16x16xbf16>
    "tpu.trace_start"() <{level = 10 : i32, message = "bqk,bkd->bqd"}> : () -> ()
    %cst_44 = arith.constant dense<0.000000e+00> : vector<2x16x16xf32>
    %128 = tpu.matmul %127, %117, %cst_44 {dimension_numbers = #tpu.dot_dimension_numbers<[2], [1], [1], [2], [0, 0, 0, 1, 1, 2], [0], [0]>} : vector<2x16x16xbf16>, vector<2x16x16xbf16>, vector<2x16x16xf32> -> vector<2x16x16xf32>
    "tpu.trace_stop"() : () -> ()
    %129 = vector.broadcast %126 : vector<2x16x1xf32> to vector<2x16x16xf32>
    %130 = arith.mulf %128, %129 : vector<2x16x16xf32>
    %131 = arith.truncf %130 : vector<2x16x16xf32> to vector<2x16x16xbf16>
    %c0_45 = arith.constant 0 : index
    %c0_46 = arith.constant 0 : index
    %c64 = arith.constant 64 : index
    %132 = vector.load %arg15[%c0_45, %c0_46, %c64] : memref<2x16x128xbf16, #tpu.memory_space<vmem>>, vector<2x16x16xbf16>
    tpu.vector_store %arg15[%c0_45, %c0_46, %c64], %131 {strides = array<i32>} : memref<2x16x128xbf16, #tpu.memory_space<vmem>>, vector<2x16x16xbf16>,
    %133 = vector.extract_strided_slice %36 {offsets = [0, 0, 80], sizes = [2, 16, 16], strides = [1, 1, 1]} : vector<2x16x128xbf16> to vector<2x16x16xbf16>
    %134 = vector.extract_strided_slice %39 {offsets = [0, 0, 80], sizes = [2, 16, 16], strides = [1, 1, 1]} : vector<2x16x128xbf16> to vector<2x16x16xbf16>
    %135 = vector.extract_strided_slice %42 {offsets = [0, 0, 80], sizes = [2, 16, 16], strides = [1, 1, 1]} : vector<2x16x128xbf16> to vector<2x16x16xbf16>
    "tpu.trace_start"() <{level = 10 : i32, message = "bqd,bkd->bqk"}> : () -> ()
    %cst_47 = arith.constant dense<0.000000e+00> : vector<2x16x16xf32>
    %136 = tpu.matmul %133, %134, %cst_47 {dimension_numbers = #tpu.dot_dimension_numbers<[2], [2], [1], [1], [0, 0, 0, 1, 1, 1], [0], [0]>} : vector<2x16x16xbf16>, vector<2x16x16xbf16>, vector<2x16x16xf32> -> vector<2x16x16xf32>
    "tpu.trace_stop"() : () -> ()
    %cst_48 = arith.constant dense<0xFF800000> : vector<2x16xf32>
    %137 = vector.multi_reduction <maximumf>, %136, %cst_48 [2] : vector<2x16x16xf32> to vector<2x16xf32>
    %138 = vector.shape_cast %137 : vector<2x16xf32> to vector<2x16x1xf32>
    %139 = vector.broadcast %138 : vector<2x16x1xf32> to vector<2x16x16xf32>
    %140 = arith.subf %136, %139 : vector<2x16x16xf32>
    %141 = math.exp %140 : vector<2x16x16xf32>
    %cst_49 = arith.constant dense<0.000000e+00> : vector<2x16xf32>
    %142 = vector.multi_reduction <add>, %141, %cst_49 [2] : vector<2x16x16xf32> to vector<2x16xf32>
    %143 = vector.shape_cast %142 : vector<2x16xf32> to vector<2x16x1xf32>
    %144 = tpu.reciprocal %143 {approx = true} : vector<2x16x1xf32> -> vector<2x16x1xf32>
    %145 = arith.truncf %141 : vector<2x16x16xf32> to vector<2x16x16xbf16>
    "tpu.trace_start"() <{level = 10 : i32, message = "bqk,bkd->bqd"}> : () -> ()
    %cst_50 = arith.constant dense<0.000000e+00> : vector<2x16x16xf32>
    %146 = tpu.matmul %145, %135, %cst_50 {dimension_numbers = #tpu.dot_dimension_numbers<[2], [1], [1], [2], [0, 0, 0, 1, 1, 2], [0], [0]>} : vector<2x16x16xbf16>, vector<2x16x16xbf16>, vector<2x16x16xf32> -> vector<2x16x16xf32>
    "tpu.trace_stop"() : () -> ()
    %147 = vector.broadcast %144 : vector<2x16x1xf32> to vector<2x16x16xf32>
    %148 = arith.mulf %146, %147 : vector<2x16x16xf32>
    %149 = arith.truncf %148 : vector<2x16x16xf32> to vector<2x16x16xbf16>
    %c0_51 = arith.constant 0 : index
    %c0_52 = arith.constant 0 : index
    %c80 = arith.constant 80 : index
    %150 = vector.load %arg15[%c0_51, %c0_52, %c80] : memref<2x16x128xbf16, #tpu.memory_space<vmem>>, vector<2x16x16xbf16>
    tpu.vector_store %arg15[%c0_51, %c0_52, %c80], %149 {strides = array<i32>} : memref<2x16x128xbf16, #tpu.memory_space<vmem>>, vector<2x16x16xbf16>,
    %151 = vector.extract_strided_slice %36 {offsets = [0, 0, 96], sizes = [2, 16, 16], strides = [1, 1, 1]} : vector<2x16x128xbf16> to vector<2x16x16xbf16>
    %152 = vector.extract_strided_slice %39 {offsets = [0, 0, 96], sizes = [2, 16, 16], strides = [1, 1, 1]} : vector<2x16x128xbf16> to vector<2x16x16xbf16>
    %153 = vector.extract_strided_slice %42 {offsets = [0, 0, 96], sizes = [2, 16, 16], strides = [1, 1, 1]} : vector<2x16x128xbf16> to vector<2x16x16xbf16>
    "tpu.trace_start"() <{level = 10 : i32, message = "bqd,bkd->bqk"}> : () -> ()
    %cst_53 = arith.constant dense<0.000000e+00> : vector<2x16x16xf32>
    %154 = tpu.matmul %151, %152, %cst_53 {dimension_numbers = #tpu.dot_dimension_numbers<[2], [2], [1], [1], [0, 0, 0, 1, 1, 1], [0], [0]>} : vector<2x16x16xbf16>, vector<2x16x16xbf16>, vector<2x16x16xf32> -> vector<2x16x16xf32>
    "tpu.trace_stop"() : () -> ()
    %cst_54 = arith.constant dense<0xFF800000> : vector<2x16xf32>
    %155 = vector.multi_reduction <maximumf>, %154, %cst_54 [2] : vector<2x16x16xf32> to vector<2x16xf32>
    %156 = vector.shape_cast %155 : vector<2x16xf32> to vector<2x16x1xf32>
    %157 = vector.broadcast %156 : vector<2x16x1xf32> to vector<2x16x16xf32>
    %158 = arith.subf %154, %157 : vector<2x16x16xf32>
    %159 = math.exp %158 : vector<2x16x16xf32>
    %cst_55 = arith.constant dense<0.000000e+00> : vector<2x16xf32>
    %160 = vector.multi_reduction <add>, %159, %cst_55 [2] : vector<2x16x16xf32> to vector<2x16xf32>
    %161 = vector.shape_cast %160 : vector<2x16xf32> to vector<2x16x1xf32>
    %162 = tpu.reciprocal %161 {approx = true} : vector<2x16x1xf32> -> vector<2x16x1xf32>
    %163 = arith.truncf %159 : vector<2x16x16xf32> to vector<2x16x16xbf16>
    "tpu.trace_start"() <{level = 10 : i32, message = "bqk,bkd->bqd"}> : () -> ()
    %cst_56 = arith.constant dense<0.000000e+00> : vector<2x16x16xf32>
    %164 = tpu.matmul %163, %153, %cst_56 {dimension_numbers = #tpu.dot_dimension_numbers<[2], [1], [1], [2], [0, 0, 0, 1, 1, 2], [0], [0]>} : vector<2x16x16xbf16>, vector<2x16x16xbf16>, vector<2x16x16xf32> -> vector<2x16x16xf32>
    "tpu.trace_stop"() : () -> ()
    %165 = vector.broadcast %162 : vector<2x16x1xf32> to vector<2x16x16xf32>
    %166 = arith.mulf %164, %165 : vector<2x16x16xf32>
    %167 = arith.truncf %166 : vector<2x16x16xf32> to vector<2x16x16xbf16>
    %c0_57 = arith.constant 0 : index
    %c0_58 = arith.constant 0 : index
    %c96 = arith.constant 96 : index
    %168 = vector.load %arg15[%c0_57, %c0_58, %c96] : memref<2x16x128xbf16, #tpu.memory_space<vmem>>, vector<2x16x16xbf16>
    tpu.vector_store %arg15[%c0_57, %c0_58, %c96], %167 {strides = array<i32>} : memref<2x16x128xbf16, #tpu.memory_space<vmem>>, vector<2x16x16xbf16>,
    %169 = vector.extract_strided_slice %36 {offsets = [0, 0, 112], sizes = [2, 16, 16], strides = [1, 1, 1]} : vector<2x16x128xbf16> to vector<2x16x16xbf16>
    %170 = vector.extract_strided_slice %39 {offsets = [0, 0, 112], sizes = [2, 16, 16], strides = [1, 1, 1]} : vector<2x16x128xbf16> to vector<2x16x16xbf16>
    %171 = vector.extract_strided_slice %42 {offsets = [0, 0, 112], sizes = [2, 16, 16], strides = [1, 1, 1]} : vector<2x16x128xbf16> to vector<2x16x16xbf16>
    "tpu.trace_start"() <{level = 10 : i32, message = "bqd,bkd->bqk"}> : () -> ()
    %cst_59 = arith.constant dense<0.000000e+00> : vector<2x16x16xf32>
    %172 = tpu.matmul %169, %170, %cst_59 {dimension_numbers = #tpu.dot_dimension_numbers<[2], [2], [1], [1], [0, 0, 0, 1, 1, 1], [0], [0]>} : vector<2x16x16xbf16>, vector<2x16x16xbf16>, vector<2x16x16xf32> -> vector<2x16x16xf32>
    "tpu.trace_stop"() : () -> ()
    %cst_60 = arith.constant dense<0xFF800000> : vector<2x16xf32>
    %173 = vector.multi_reduction <maximumf>, %172, %cst_60 [2] : vector<2x16x16xf32> to vector<2x16xf32>
    %174 = vector.shape_cast %173 : vector<2x16xf32> to vector<2x16x1xf32>
    %175 = vector.broadcast %174 : vector<2x16x1xf32> to vector<2x16x16xf32>
    %176 = arith.subf %172, %175 : vector<2x16x16xf32>
    %177 = math.exp %176 : vector<2x16x16xf32>
    %cst_61 = arith.constant dense<0.000000e+00> : vector<2x16xf32>
    %178 = vector.multi_reduction <add>, %177, %cst_61 [2] : vector<2x16x16xf32> to vector<2x16xf32>
    %179 = vector.shape_cast %178 : vector<2x16xf32> to vector<2x16x1xf32>
    %180 = tpu.reciprocal %179 {approx = true} : vector<2x16x1xf32> -> vector<2x16x1xf32>
    %181 = arith.truncf %177 : vector<2x16x16xf32> to vector<2x16x16xbf16>
    "tpu.trace_start"() <{level = 10 : i32, message = "bqk,bkd->bqd"}> : () -> ()
    %cst_62 = arith.constant dense<0.000000e+00> : vector<2x16x16xf32>
    %182 = tpu.matmul %181, %171, %cst_62 {dimension_numbers = #tpu.dot_dimension_numbers<[2], [1], [1], [2], [0, 0, 0, 1, 1, 2], [0], [0]>} : vector<2x16x16xbf16>, vector<2x16x16xbf16>, vector<2x16x16xf32> -> vector<2x16x16xf32>
    "tpu.trace_stop"() : () -> ()
    %183 = vector.broadcast %180 : vector<2x16x1xf32> to vector<2x16x16xf32>
    %184 = arith.mulf %182, %183 : vector<2x16x16xf32>
    %185 = arith.truncf %184 : vector<2x16x16xf32> to vector<2x16x16xbf16>
    %c0_63 = arith.constant 0 : index
    %c0_64 = arith.constant 0 : index
    %c112 = arith.constant 112 : index
    %186 = vector.load %arg15[%c0_63, %c0_64, %c112] : memref<2x16x128xbf16, #tpu.memory_space<vmem>>, vector<2x16x16xbf16>
    tpu.vector_store %arg15[%c0_63, %c0_64, %c112], %185 {strides = array<i32>} : memref<2x16x128xbf16, #tpu.memory_space<vmem>>, vector<2x16x16xbf16>,
    %c0_65 = arith.constant 0 : index
    %c0_66 = arith.constant 0 : index
    %c0_67 = arith.constant 0 : index
    %187 = vector.load %arg15[%c0_65, %c0_66, %c0_67] : memref<2x16x128xbf16, #tpu.memory_space<vmem>>, vector<2x16x128xbf16>
    %188 = vector.shape_cast %187 : vector<2x16x128xbf16> to vector<32x128xbf16>
    %c0_68 = arith.constant 0 : index
    %c0_69 = arith.constant 0 : index
    %189 = vector.load %arg6[%c0_68, %c0_69] : memref<128x128xbf16, #tpu.memory_space<vmem>>, vector<128x128xbf16>
    %cst_70 = arith.constant dense<0.000000e+00> : vector<32x128xf32>
    %190 = tpu.matmul %188, %189, %cst_70 {dimension_numbers = #tpu.dot_dimension_numbers<[1], [0], [0], [1], [0, 0, 1, 1], [], []>} : vector<32x128xbf16>, vector<128x128xbf16>, vector<32x128xf32> -> vector<32x128xf32>
    %c0_71 = arith.constant 0 : index
    %c0_72 = arith.constant 0 : index
    %191 = vector.load %arg7[%c0_71, %c0_72] : memref<1x128xf32, #tpu.memory_space<vmem>>, vector<1x128xf32>
    %192 = vector.broadcast %191 : vector<1x128xf32> to vector<32x128xf32>
    %193 = arith.addf %190, %192 : vector<32x128xf32>
    %194 = arith.addf %193, %1 : vector<32x128xf32>
    %c0_73 = arith.constant 0 : index
    %c0_74 = arith.constant 0 : index
    %195 = vector.load %arg8[%c0_73, %c0_74] : memref<1x128xf32, #tpu.memory_space<vmem>>, vector<1x128xf32>
    %c0_75 = arith.constant 0 : index
    %c0_76 = arith.constant 0 : index
    %196 = vector.load %arg9[%c0_75, %c0_76] : memref<1x128xf32, #tpu.memory_space<vmem>>, vector<1x128xf32>
    %cst_77 = arith.constant dense<0.000000e+00> : vector<32xf32>
    %197 = vector.multi_reduction <add>, %194, %cst_77 [1] : vector<32x128xf32> to vector<32xf32>
    %198 = vector.shape_cast %197 : vector<32xf32> to vector<32x1xf32>
    %cst_78 = arith.constant 1.280000e+02 : f32
    %199 = vector.broadcast %cst_78 : f32 to vector<32x1xf32>
    %200 = arith.divf %198, %199 : vector<32x1xf32>
    %201 = vector.broadcast %200 : vector<32x1xf32> to vector<32x128xf32>
    %202 = arith.subf %194, %201 : vector<32x128xf32>
    %203 = arith.mulf %202, %202 : vector<32x128xf32>
    %cst_79 = arith.constant dense<0.000000e+00> : vector<32xf32>
    %204 = vector.multi_reduction <add>, %203, %cst_79 [1] : vector<32x128xf32> to vector<32xf32>
    %205 = vector.shape_cast %204 : vector<32xf32> to vector<32x1xf32>
    %cst_80 = arith.constant 1.280000e+02 : f32
    %206 = vector.broadcast %cst_80 : f32 to vector<32x1xf32>
    %207 = arith.divf %205, %206 : vector<32x1xf32>
    %208 = vector.broadcast %200 : vector<32x1xf32> to vector<32x128xf32>
    %209 = arith.subf %194, %208 : vector<32x128xf32>
    %cst_81 = arith.constant 9.99999974E-6 : f32
    %210 = vector.broadcast %cst_81 : f32 to vector<32x1xf32>
    %211 = arith.addf %207, %210 : vector<32x1xf32>
    %212 = math.rsqrt %211 : vector<32x1xf32>
    %213 = vector.broadcast %212 : vector<32x1xf32> to vector<32x128xf32>
    %214 = arith.mulf %209, %213 : vector<32x128xf32>
    %215 = vector.broadcast %195 : vector<1x128xf32> to vector<32x128xf32>
    %216 = arith.mulf %214, %215 : vector<32x128xf32>
    %217 = vector.broadcast %196 : vector<1x128xf32> to vector<32x128xf32>
    %218 = arith.addf %216, %217 : vector<32x128xf32>
    %219 = arith.truncf %218 : vector<32x128xf32> to vector<32x128xbf16>
    %cst_82 = arith.constant 0.000000e+00 : f32
    %220 = vector.broadcast %cst_82 : f32 to vector<32x128xf32>
    %c0_i32 = arith.constant 0 : i32
    %221 = arith.index_cast %c0_i32 : i32 to index
    %c0_83 = arith.constant 0 : index
    %c0_84 = arith.constant 0 : index
    %222 = vector.load %arg10[%221, %c0_83, %c0_84] : memref<1x128x512xbf16, #tpu.memory_space<vmem>>, vector<1x128x512xbf16>
    %223 = vector.shape_cast %222 : vector<1x128x512xbf16> to vector<128x512xbf16>
    %cst_85 = arith.constant dense<0.000000e+00> : vector<32x512xf32>
    %224 = tpu.matmul %219, %223, %cst_85 {dimension_numbers = #tpu.dot_dimension_numbers<[1], [0], [0], [1], [0, 0, 1, 1], [], []>} : vector<32x128xbf16>, vector<128x512xbf16>, vector<32x512xf32> -> vector<32x512xf32>
    %225 = arith.index_cast %c0_i32 : i32 to index
    %c0_86 = arith.constant 0 : index
    %c0_87 = arith.constant 0 : index
    %226 = vector.load %arg11[%225, %c0_86, %c0_87] : memref<1x1x512xf32, #tpu.memory_space<vmem>>, vector<1x1x512xf32>
    %227 = vector.shape_cast %226 : vector<1x1x512xf32> to vector<1x512xf32>
    %228 = vector.broadcast %227 : vector<1x512xf32> to vector<32x512xf32>
    %229 = arith.addf %224, %228 : vector<32x512xf32>
    %cst_88 = arith.constant 5.000000e-01 : f32
    %230 = vector.broadcast %cst_88 : f32 to vector<32x512xf32>
    %231 = arith.mulf %230, %229 : vector<32x512xf32>
    %cst_89 = arith.constant 4.471500e-02 : f32
    %232 = vector.broadcast %cst_89 : f32 to vector<32x512xf32>
    %233 = arith.mulf %232, %229 : vector<32x512xf32>
    %234 = arith.mulf %233, %229 : vector<32x512xf32>
    %235 = arith.mulf %234, %229 : vector<32x512xf32>
    %236 = arith.addf %229, %235 : vector<32x512xf32>
    %cst_90 = arith.constant 0.797884583 : f32
    %237 = vector.broadcast %cst_90 : f32 to vector<32x512xf32>
    %238 = arith.mulf %237, %236 : vector<32x512xf32>
    %239 = math.tanh %238 : vector<32x512xf32>
    %cst_91 = arith.constant 1.000000e+00 : f32
    %240 = vector.broadcast %cst_91 : f32 to vector<32x512xf32>
    %241 = arith.addf %240, %239 : vector<32x512xf32>
    %242 = arith.mulf %231, %241 : vector<32x512xf32>
    %243 = arith.truncf %242 : vector<32x512xf32> to vector<32x512xbf16>
    %244 = arith.index_cast %c0_i32 : i32 to index
    %c0_92 = arith.constant 0 : index
    %c0_93 = arith.constant 0 : index
    %245 = vector.load %arg12[%244, %c0_92, %c0_93] : memref<1x512x128xbf16, #tpu.memory_space<vmem>>, vector<1x512x128xbf16>
    %246 = vector.shape_cast %245 : vector<1x512x128xbf16> to vector<512x128xbf16>
    %cst_94 = arith.constant dense<0.000000e+00> : vector<32x128xf32>
    %247 = tpu.matmul %243, %246, %cst_94 {dimension_numbers = #tpu.dot_dimension_numbers<[1], [0], [0], [1], [0, 0, 1, 1], [], []>} : vector<32x512xbf16>, vector<512x128xbf16>, vector<32x128xf32> -> vector<32x128xf32>
    %248 = arith.addf %220, %247 : vector<32x128xf32>
    %c1_i32 = arith.constant 1 : i32
    %c0_95 = arith.constant 0 : index
    %c0_96 = arith.constant 0 : index
    %249 = vector.load %arg13[%c0_95, %c0_96] : memref<1x128xf32, #tpu.memory_space<vmem>>, vector<1x128xf32>
    %250 = vector.broadcast %249 : vector<1x128xf32> to vector<32x128xf32>
    %251 = arith.addf %248, %250 : vector<32x128xf32>
    %252 = arith.addf %251, %194 : vector<32x128xf32>
    %253 = vector.shape_cast %252 : vector<32x128xf32> to vector<2x16x128xf32>
    %c0_97 = arith.constant 0 : index
    %c0_98 = arith.constant 0 : index
    %c0_99 = arith.constant 0 : index
    %254 = vector.load %arg14[%c0_97, %c0_98, %c0_99] : memref<2x16x128xf32, #tpu.memory_space<vmem>>, vector<2x16x128xf32>
    tpu.vector_store %arg14[%c0_97, %c0_98, %c0_99], %253 {strides = array<i32>} : memref<2x16x128xf32, #tpu.memory_space<vmem>>, vector<2x16x128xf32>,
    return
  }
  func.func @transform_0(%arg0: i32) -> (i32, i32, i32) {
    %c0_i32 = arith.constant 0 : i32
    %c0_i32_0 = arith.constant 0 : i32
    %c0_i32_1 = arith.constant 0 : i32
    return %arg0, %c0_i32, %c0_i32_0 : i32, i32, i32
  }
  func.func @transform_1(%arg0: i32) -> (i32, i32) {
    %c0_i32 = arith.constant 0 : i32
    %c0_i32_0 = arith.constant 0 : i32
    %c0_i32_1 = arith.constant 0 : i32
    return %c0_i32, %c0_i32_0 : i32, i32
  }
  func.func @transform_2(%arg0: i32) -> (i32, i32) {
    %c0_i32 = arith.constant 0 : i32
    %c0_i32_0 = arith.constant 0 : i32
    %c0_i32_1 = arith.constant 0 : i32
    return %c0_i32, %c0_i32_0 : i32, i32
  }
  func.func @transform_3(%arg0: i32) -> (i32, i32) {
    %c0_i32 = arith.constant 0 : i32
    %c0_i32_0 = arith.constant 0 : i32
    %c0_i32_1 = arith.constant 0 : i32
    return %c0_i32, %c0_i32_0 : i32, i32
  }
  func.func @transform_4(%arg0: i32) -> (i32, i32) {
    %c0_i32 = arith.constant 0 : i32
    %c0_i32_0 = arith.constant 0 : i32
    %c0_i32_1 = arith.constant 0 : i32
    return %c0_i32, %c0_i32_0 : i32, i32
  }
  func.func @transform_5(%arg0: i32) -> (i32, i32) {
    %c0_i32 = arith.constant 0 : i32
    %c0_i32_0 = arith.constant 0 : i32
    %c0_i32_1 = arith.constant 0 : i32
    return %c0_i32, %c0_i32_0 : i32, i32
  }
  func.func @transform_6(%arg0: i32) -> (i32, i32) {
    %c0_i32 = arith.constant 0 : i32
    %c0_i32_0 = arith.constant 0 : i32
    %c0_i32_1 = arith.constant 0 : i32
    return %c0_i32, %c0_i32_0 : i32, i32
  }
  func.func @transform_7(%arg0: i32) -> (i32, i32) {
    %c0_i32 = arith.constant 0 : i32
    %c0_i32_0 = arith.constant 0 : i32
    %c0_i32_1 = arith.constant 0 : i32
    return %c0_i32, %c0_i32_0 : i32, i32
  }
  func.func @transform_8(%arg0: i32) -> (i32, i32) {
    %c0_i32 = arith.constant 0 : i32
    %c0_i32_0 = arith.constant 0 : i32
    %c0_i32_1 = arith.constant 0 : i32
    return %c0_i32, %c0_i32_0 : i32, i32
  }
  func.func @transform_9(%arg0: i32) -> (i32, i32, i32) {
    %c0_i32 = arith.constant 0 : i32
    %c0_i32_0 = arith.constant 0 : i32
    %c0_i32_1 = arith.constant 0 : i32
    %c0_i32_2 = arith.constant 0 : i32
    return %c0_i32, %c0_i32_0, %c0_i32_1 : i32, i32, i32
  }
  func.func @transform_10(%arg0: i32) -> (i32, i32, i32) {
    %c0_i32 = arith.constant 0 : i32
    %c0_i32_0 = arith.constant 0 : i32
    %c0_i32_1 = arith.constant 0 : i32
    %c0_i32_2 = arith.constant 0 : i32
    return %c0_i32, %c0_i32_0, %c0_i32_1 : i32, i32, i32
  }
  func.func @transform_11(%arg0: i32) -> (i32, i32, i32) {
    %c0_i32 = arith.constant 0 : i32
    %c0_i32_0 = arith.constant 0 : i32
    %c0_i32_1 = arith.constant 0 : i32
    %c0_i32_2 = arith.constant 0 : i32
    return %c0_i32, %c0_i32_0, %c0_i32_1 : i32, i32, i32
  }
  func.func @transform_12(%arg0: i32) -> (i32, i32) {
    %c0_i32 = arith.constant 0 : i32
    %c0_i32_0 = arith.constant 0 : i32
    %c0_i32_1 = arith.constant 0 : i32
    return %c0_i32, %c0_i32_0 : i32, i32
  }
  func.func @transform_13(%arg0: i32) -> (i32, i32, i32) {
    %c0_i32 = arith.constant 0 : i32
    %c0_i32_0 = arith.constant 0 : i32
    %c0_i32_1 = arith.constant 0 : i32
    return %arg0, %c0_i32, %c0_i32_0 : i32, i32, i32
  }
}

module attributes {stable_mosaic.version = 11 : i64} {
  func.func @self_attention_kernel(%arg0: i32, %arg1: memref<2x16x128xf32, #tpu.memory_space<vmem>>, %arg2: memref<1x128xf32, #tpu.memory_space<vmem>>, %arg3: memref<1x128xf32, #tpu.memory_space<vmem>>, %arg4: memref<128x384xbf16, #tpu.memory_space<vmem>>, %arg5: memref<1x384xf32, #tpu.memory_space<vmem>>, %arg6: memref<128x128xbf16, #tpu.memory_space<vmem>>, %arg7: memref<1x128xf32, #tpu.memory_space<vmem>>, %arg8: memref<1x128xf32, #tpu.memory_space<vmem>>, %arg9: memref<1x128xf32, #tpu.memory_space<vmem>>, %arg10: memref<1x128x512xbf16, #tpu.memory_space<vmem>>, %arg11: memref<1x1x512xf32, #tpu.memory_space<vmem>>, %arg12: memref<1x512x128xbf16, #tpu.memory_space<vmem>>, %arg13: memref<1x128xf32, #tpu.memory_space<vmem>>, %arg14: memref<2x16x128xf32, #tpu.memory_space<vmem>>, %arg15: memref<2x16x128xbf16, #tpu.memory_space<vmem>>) attributes {dimension_semantics = [#tpu.dimension_semantics<parallel>], iteration_bounds = array<i64: 1>, scalar_prefetch = 0 : i64, scratch_operands = 1 : i64, tpu.core_type = #tpu.core_type<tc>, window_params = [{transform_indices = @transform_0, window_bounds = array<i64: 2, 16, 128>}, {pipeline_mode = #tpu.pipeline_mode<synchronous>, transform_indices = @transform_1, window_bounds = array<i64: 1, 128>}, {pipeline_mode = #tpu.pipeline_mode<synchronous>, transform_indices = @transform_2, window_bounds = array<i64: 1, 128>}, {pipeline_mode = #tpu.pipeline_mode<synchronous>, transform_indices = @transform_3, window_bounds = array<i64: 128, 384>}, {pipeline_mode = #tpu.pipeline_mode<synchronous>, transform_indices = @transform_4, window_bounds = array<i64: 1, 384>}, {pipeline_mode = #tpu.pipeline_mode<synchronous>, transform_indices = @transform_5, window_bounds = array<i64: 128, 128>}, {pipeline_mode = #tpu.pipeline_mode<synchronous>, transform_indices = @transform_6, window_bounds = array<i64: 1, 128>}, {pipeline_mode = #tpu.pipeline_mode<synchronous>, transform_indices = @transform_7, window_bounds = array<i64: 1, 128>}, {pipeline_mode = #tpu.pipeline_mode<synchronous>, transform_indices = @transform_8, window_bounds = array<i64: 1, 128>}, {pipeline_mode = #tpu.pipeline_mode<synchronous>, transform_indices = @transform_9, window_bounds = array<i64: 1, 128, 512>}, {pipeline_mode = #tpu.pipeline_mode<synchronous>, transform_indices = @transform_10, window_bounds = array<i64: 1, 1, 512>}, {pipeline_mode = #tpu.pipeline_mode<synchronous>, transform_indices = @transform_11, window_bounds = array<i64: 1, 512, 128>}, {pipeline_mode = #tpu.pipeline_mode<synchronous>, transform_indices = @transform_12, window_bounds = array<i64: 1, 128>}, {transform_indices = @transform_13, window_bounds = array<i64: 2, 16, 128>}]} {
    %c0 = arith.constant 0 : index
    %c0_0 = arith.constant 0 : index
    %c0_1 = arith.constant 0 : index
    %0 = vector.load %arg1[%c0, %c0_0, %c0_1] : memref<2x16x128xf32, #tpu.memory_space<vmem>>, vector<2x16x128xf32>
    %1 = vector.shape_cast %0 : vector<2x16x128xf32> to vector<32x128xf32>
    %c0_2 = arith.constant 0 : index
    %c0_3 = arith.constant 0 : index
    %2 = vector.load %arg2[%c0_2, %c0_3] : memref<1x128xf32, #tpu.memory_space<vmem>>, vector<1x128xf32>
    %c0_4 = arith.constant 0 : index
    %c0_5 = arith.constant 0 : index
    %3 = vector.load %arg3[%c0_4, %c0_5] : memref<1x128xf32, #tpu.memory_space<vmem>>, vector<1x128xf32>
    %cst = arith.constant dense<0.000000e+00> : vector<32xf32>
    %4 = vector.multi_reduction <add>, %1, %cst [1] : vector<32x128xf32> to vector<32xf32>
    %5 = vector.shape_cast %4 : vector<32xf32> to vector<32x1xf32>
    %cst_6 = arith.constant 1.280000e+02 : f32
    %6 = vector.broadcast %cst_6 : f32 to vector<32x1xf32>
    %7 = arith.divf %5, %6 : vector<32x1xf32>
    %8 = vector.broadcast %7 : vector<32x1xf32> to vector<32x128xf32>
    %9 = arith.subf %1, %8 : vector<32x128xf32>
    %10 = arith.mulf %9, %9 : vector<32x128xf32>
    %cst_7 = arith.constant dense<0.000000e+00> : vector<32xf32>
    %11 = vector.multi_reduction <add>, %10, %cst_7 [1] : vector<32x128xf32> to vector<32xf32>
    %12 = vector.shape_cast %11 : vector<32xf32> to vector<32x1xf32>
    %cst_8 = arith.constant 1.280000e+02 : f32
    %13 = vector.broadcast %cst_8 : f32 to vector<32x1xf32>
    %14 = arith.divf %12, %13 : vector<32x1xf32>
    %15 = vector.broadcast %7 : vector<32x1xf32> to vector<32x128xf32>
    %16 = arith.subf %1, %15 : vector<32x128xf32>
    %cst_9 = arith.constant 9.99999997E-7 : f32
    %17 = vector.broadcast %cst_9 : f32 to vector<32x1xf32>
    %18 = arith.addf %14, %17 : vector<32x1xf32>
    %19 = math.rsqrt %18 : vector<32x1xf32>
    %20 = vector.broadcast %19 : vector<32x1xf32> to vector<32x128xf32>
    %21 = arith.mulf %16, %20 : vector<32x128xf32>
    %22 = vector.broadcast %2 : vector<1x128xf32> to vector<32x128xf32>
    %23 = arith.mulf %21, %22 : vector<32x128xf32>
    %24 = vector.broadcast %3 : vector<1x128xf32> to vector<32x128xf32>
    %25 = arith.addf %23, %24 : vector<32x128xf32>
    %26 = arith.truncf %25 : vector<32x128xf32> to vector<32x128xbf16>
    %c0_10 = arith.constant 0 : index
    %c0_11 = arith.constant 0 : index
    %27 = vector.load %arg4[%c0_10, %c0_11] : memref<128x384xbf16, #tpu.memory_space<vmem>>, vector<128x384xbf16>
    %cst_12 = arith.constant dense<0.000000e+00> : vector<32x384xf32>
    %28 = tpu.matmul %26, %27, %cst_12 {dimension_numbers = #tpu.dot_dimension_numbers<[1], [0], [0], [1], [0, 0, 1, 1], [], []>} : vector<32x128xbf16>, vector<128x384xbf16>, vector<32x384xf32> -> vector<32x384xf32>
    %c0_13 = arith.constant 0 : index
    %c0_14 = arith.constant 0 : index
    %29 = vector.load %arg5[%c0_13, %c0_14] : memref<1x384xf32, #tpu.memory_space<vmem>>, vector<1x384xf32>
    %30 = vector.broadcast %29 : vector<1x384xf32> to vector<32x384xf32>
    %31 = arith.addf %28, %30 : vector<32x384xf32>
    %32 = vector.extract_strided_slice %31 {offsets = [0, 0], sizes = [32, 128], strides = [1, 1]} : vector<32x384xf32> to vector<32x128xf32>
    %cst_15 = arith.constant 2.500000e-01 : f32
    %33 = vector.broadcast %cst_15 : f32 to vector<32x128xf32>
    %34 = arith.mulf %32, %33 : vector<32x128xf32>
    %35 = arith.truncf %34 : vector<32x128xf32> to vector<32x128xbf16>
    %36 = vector.shape_cast %35 : vector<32x128xbf16> to vector<2x16x128xbf16>
    %37 = vector.extract_strided_slice %31 {offsets = [0, 128], sizes = [32, 128], strides = [1, 1]} : vector<32x384xf32> to vector<32x128xf32>
    %38 = arith.truncf %37 : vector<32x128xf32> to vector<32x128xbf16>
    %39 = vector.shape_cast %38 : vector<32x128xbf16> to vector<2x16x128xbf16>
    %40 = vector.extract_strided_slice %31 {offsets = [0, 256], sizes = [32, 128], strides = [1, 1]} : vector<32x384xf32> to vector<32x128xf32>
    %41 = arith.truncf %40 : vector<32x128xf32> to vector<32x128xbf16>
    %42 = vector.shape_cast %41 : vector<32x128xbf16> to vector<2x16x128xbf16>
    %43 = vector.extract_strided_slice %36 {offsets = [0, 0, 0], sizes = [2, 16, 16], strides = [1, 1, 1]} : vector<2x16x128xbf16> to vector<2x16x16xbf16>
    %44 = vector.extract_strided_slice %39 {offsets = [0, 0, 0], sizes = [2, 16, 16], strides = [1, 1, 1]} : vector<2x16x128xbf16> to vector<2x16x16xbf16>
    %45 = vector.extract_strided_slice %42 {offsets = [0, 0, 0], sizes = [2, 16, 16], strides = [1, 1, 1]} : vector<2x16x128xbf16> to vector<2x16x16xbf16>
    "tpu.trace_start"() <{level = 10 : i32, message = "bqd,bkd->bqk"}> : () -> ()
    %cst_16 = arith.constant dense<0.000000e+00> : vector<2x16x16xf32>
    %46 = tpu.matmul %43, %44, %cst_16 {dimension_numbers = #tpu.dot_dimension_numbers<[2], [2], [1], [1], [0, 0, 0, 1, 1, 1], [0], [0]>} : vector<2x16x16xbf16>, vector<2x16x16xbf16>, vector<2x16x16xf32> -> vector<2x16x16xf32>
    "tpu.trace_stop"() : () -> ()
    %cst_17 = arith.constant dense<0xFF800000> : vector<2x16xf32>
    %47 = vector.multi_reduction <maximumf>, %46, %cst_17 [2] : vector<2x16x16xf32> to vector<2x16xf32>
    %48 = vector.shape_cast %47 : vector<2x16xf32> to vector<2x16x1xf32>
    %49 = vector.broadcast %48 : vector<2x16x1xf32> to vector<2x16x16xf32>
    %50 = arith.subf %46, %49 : vector<2x16x16xf32>
    %51 = math.exp %50 : vector<2x16x16xf32>
    %cst_18 = arith.constant dense<0.000000e+00> : vector<2x16xf32>
    %52 = vector.multi_reduction <add>, %51, %cst_18 [2] : vector<2x16x16xf32> to vector<2x16xf32>
    %53 = vector.shape_cast %52 : vector<2x16xf32> to vector<2x16x1xf32>
    %54 = tpu.reciprocal %53 {approx = true} : vector<2x16x1xf32> -> vector<2x16x1xf32>
    %55 = arith.truncf %51 : vector<2x16x16xf32> to vector<2x16x16xbf16>
    "tpu.trace_start"() <{level = 10 : i32, message = "bqk,bkd->bqd"}> : () -> ()
    %cst_19 = arith.constant dense<0.000000e+00> : vector<2x16x16xf32>
    %56 = tpu.matmul %55, %45, %cst_19 {dimension_numbers = #tpu.dot_dimension_numbers<[2], [1], [1], [2], [0, 0, 0, 1, 1, 2], [0], [0]>} : vector<2x16x16xbf16>, vector<2x16x16xbf16>, vector<2x16x16xf32> -> vector<2x16x16xf32>
    "tpu.trace_stop"() : () -> ()
    %57 = vector.broadcast %54 : vector<2x16x1xf32> to vector<2x16x16xf32>
    %58 = arith.mulf %56, %57 : vector<2x16x16xf32>
    %59 = arith.truncf %58 : vector<2x16x16xf32> to vector<2x16x16xbf16>
    %c0_20 = arith.constant 0 : index
    %c0_21 = arith.constant 0 : index
    %c0_22 = arith.constant 0 : index
    %60 = vector.load %arg15[%c0_20, %c0_21, %c0_22] : memref<2x16x128xbf16, #tpu.memory_space<vmem>>, vector<2x16x16xbf16>
    tpu.vector_store %arg15[%c0_20, %c0_21, %c0_22], %59 {strides = array<i32>} : memref<2x16x128xbf16, #tpu.memory_space<vmem>>, vector<2x16x16xbf16>,
    %61 = vector.extract_strided_slice %36 {offsets = [0, 0, 16], sizes = [2, 16, 16], strides = [1, 1, 1]} : vector<2x16x128xbf16> to vector<2x16x16xbf16>
    %62 = vector.extract_strided_slice %39 {offsets = [0, 0, 16], sizes = [2, 16, 16], strides = [1, 1, 1]} : vector<2x16x128xbf16> to vector<2x16x16xbf16>
    %63 = vector.extract_strided_slice %42 {offsets = [0, 0, 16], sizes = [2, 16, 16], strides = [1, 1, 1]} : vector<2x16x128xbf16> to vector<2x16x16xbf16>
    "tpu.trace_start"() <{level = 10 : i32, message = "bqd,bkd->bqk"}> : () -> ()
    %cst_23 = arith.constant dense<0.000000e+00> : vector<2x16x16xf32>
    %64 = tpu.matmul %61, %62, %cst_23 {dimension_numbers = #tpu.dot_dimension_numbers<[2], [2], [1], [1], [0, 0, 0, 1, 1, 1], [0], [0]>} : vector<2x16x16xbf16>, vector<2x16x16xbf16>, vector<2x16x16xf32> -> vector<2x16x16xf32>
    "tpu.trace_stop"() : () -> ()
    %cst_24 = arith.constant dense<0xFF800000> : vector<2x16xf32>
    %65 = vector.multi_reduction <maximumf>, %64, %cst_24 [2] : vector<2x16x16xf32> to vector<2x16xf32>
    %66 = vector.shape_cast %65 : vector<2x16xf32> to vector<2x16x1xf32>
    %67 = vector.broadcast %66 : vector<2x16x1xf32> to vector<2x16x16xf32>
    %68 = arith.subf %64, %67 : vector<2x16x16xf32>
    %69 = math.exp %68 : vector<2x16x16xf32>
    %cst_25 = arith.constant dense<0.000000e+00> : vector<2x16xf32>
    %70 = vector.multi_reduction <add>, %69, %cst_25 [2] : vector<2x16x16xf32> to vector<2x16xf32>
    %71 = vector.shape_cast %70 : vector<2x16xf32> to vector<2x16x1xf32>
    %72 = tpu.reciprocal %71 {approx = true} : vector<2x16x1xf32> -> vector<2x16x1xf32>
    %73 = arith.truncf %69 : vector<2x16x16xf32> to vector<2x16x16xbf16>
    "tpu.trace_start"() <{level = 10 : i32, message = "bqk,bkd->bqd"}> : () -> ()
    %cst_26 = arith.constant dense<0.000000e+00> : vector<2x16x16xf32>
    %74 = tpu.matmul %73, %63, %cst_26 {dimension_numbers = #tpu.dot_dimension_numbers<[2], [1], [1], [2], [0, 0, 0, 1, 1, 2], [0], [0]>} : vector<2x16x16xbf16>, vector<2x16x16xbf16>, vector<2x16x16xf32> -> vector<2x16x16xf32>
    "tpu.trace_stop"() : () -> ()
    %75 = vector.broadcast %72 : vector<2x16x1xf32> to vector<2x16x16xf32>
    %76 = arith.mulf %74, %75 : vector<2x16x16xf32>
    %77 = arith.truncf %76 : vector<2x16x16xf32> to vector<2x16x16xbf16>
    %c0_27 = arith.constant 0 : index
    %c0_28 = arith.constant 0 : index
    %c16 = arith.constant 16 : index
    %78 = vector.load %arg15[%c0_27, %c0_28, %c16] : memref<2x16x128xbf16, #tpu.memory_space<vmem>>, vector<2x16x16xbf16>
    tpu.vector_store %arg15[%c0_27, %c0_28, %c16], %77 {strides = array<i32>} : memref<2x16x128xbf16, #tpu.memory_space<vmem>>, vector<2x16x16xbf16>,
    %79 = vector.extract_strided_slice %36 {offsets = [0, 0, 32], sizes = [2, 16, 16], strides = [1, 1, 1]} : vector<2x16x128xbf16> to vector<2x16x16xbf16>
    %80 = vector.extract_strided_slice %39 {offsets = [0, 0, 32], sizes = [2, 16, 16], strides = [1, 1, 1]} : vector<2x16x128xbf16> to vector<2x16x16xbf16>
    %81 = vector.extract_strided_slice %42 {offsets = [0, 0, 32], sizes = [2, 16, 16], strides = [1, 1, 1]} : vector<2x16x128xbf16> to vector<2x16x16xbf16>
    "tpu.trace_start"() <{level = 10 : i32, message = "bqd,bkd->bqk"}> : () -> ()
    %cst_29 = arith.constant dense<0.000000e+00> : vector<2x16x16xf32>
    %82 = tpu.matmul %79, %80, %cst_29 {dimension_numbers = #tpu.dot_dimension_numbers<[2], [2], [1], [1], [0, 0, 0, 1, 1, 1], [0], [0]>} : vector<2x16x16xbf16>, vector<2x16x16xbf16>, vector<2x16x16xf32> -> vector<2x16x16xf32>
    "tpu.trace_stop"() : () -> ()
    %cst_30 = arith.constant dense<0xFF800000> : vector<2x16xf32>
    %83 = vector.multi_reduction <maximumf>, %82, %cst_30 [2] : vector<2x16x16xf32> to vector<2x16xf32>
    %84 = vector.shape_cast %83 : vector<2x16xf32> to vector<2x16x1xf32>
    %85 = vector.broadcast %84 : vector<2x16x1xf32> to vector<2x16x16xf32>
    %86 = arith.subf %82, %85 : vector<2x16x16xf32>
    %87 = math.exp %86 : vector<2x16x16xf32>
    %cst_31 = arith.constant dense<0.000000e+00> : vector<2x16xf32>
    %88 = vector.multi_reduction <add>, %87, %cst_31 [2] : vector<2x16x16xf32> to vector<2x16xf32>
    %89 = vector.shape_cast %88 : vector<2x16xf32> to vector<2x16x1xf32>
    %90 = tpu.reciprocal %89 {approx = true} : vector<2x16x1xf32> -> vector<2x16x1xf32>
    %91 = arith.truncf %87 : vector<2x16x16xf32> to vector<2x16x16xbf16>
    "tpu.trace_start"() <{level = 10 : i32, message = "bqk,bkd->bqd"}> : () -> ()
    %cst_32 = arith.constant dense<0.000000e+00> : vector<2x16x16xf32>
    %92 = tpu.matmul %91, %81, %cst_32 {dimension_numbers = #tpu.dot_dimension_numbers<[2], [1], [1], [2], [0, 0, 0, 1, 1, 2], [0], [0]>} : vector<2x16x16xbf16>, vector<2x16x16xbf16>, vector<2x16x16xf32> -> vector<2x16x16xf32>
    "tpu.trace_stop"() : () -> ()
    %93 = vector.broadcast %90 : vector<2x16x1xf32> to vector<2x16x16xf32>
    %94 = arith.mulf %92, %93 : vector<2x16x16xf32>
    %95 = arith.truncf %94 : vector<2x16x16xf32> to vector<2x16x16xbf16>
    %c0_33 = arith.constant 0 : index
    %c0_34 = arith.constant 0 : index
    %c32 = arith.constant 32 : index
    %96 = vector.load %arg15[%c0_33, %c0_34, %c32] : memref<2x16x128xbf16, #tpu.memory_space<vmem>>, vector<2x16x16xbf16>
    tpu.vector_store %arg15[%c0_33, %c0_34, %c32], %95 {strides = array<i32>} : memref<2x16x128xbf16, #tpu.memory_space<vmem>>, vector<2x16x16xbf16>,
    %97 = vector.extract_strided_slice %36 {offsets = [0, 0, 48], sizes = [2, 16, 16], strides = [1, 1, 1]} : vector<2x16x128xbf16> to vector<2x16x16xbf16>
    %98 = vector.extract_strided_slice %39 {offsets = [0, 0, 48], sizes = [2, 16, 16], strides = [1, 1, 1]} : vector<2x16x128xbf16> to vector<2x16x16xbf16>
    %99 = vector.extract_strided_slice %42 {offsets = [0, 0, 48], sizes = [2, 16, 16], strides = [1, 1, 1]} : vector<2x16x128xbf16> to vector<2x16x16xbf16>
    "tpu.trace_start"() <{level = 10 : i32, message = "bqd,bkd->bqk"}> : () -> ()
    %cst_35 = arith.constant dense<0.000000e+00> : vector<2x16x16xf32>
    %100 = tpu.matmul %97, %98, %cst_35 {dimension_numbers = #tpu.dot_dimension_numbers<[2], [2], [1], [1], [0, 0, 0, 1, 1, 1], [0], [0]>} : vector<2x16x16xbf16>, vector<2x16x16xbf16>, vector<2x16x16xf32> -> vector<2x16x16xf32>
    "tpu.trace_stop"() : () -> ()
    %cst_36 = arith.constant dense<0xFF800000> : vector<2x16xf32>
    %101 = vector.multi_reduction <maximumf>, %100, %cst_36 [2] : vector<2x16x16xf32> to vector<2x16xf32>
    %102 = vector.shape_cast %101 : vector<2x16xf32> to vector<2x16x1xf32>
    %103 = vector.broadcast %102 : vector<2x16x1xf32> to vector<2x16x16xf32>
    %104 = arith.subf %100, %103 : vector<2x16x16xf32>
    %105 = math.exp %104 : vector<2x16x16xf32>
    %cst_37 = arith.constant dense<0.000000e+00> : vector<2x16xf32>
    %106 = vector.multi_reduction <add>, %105, %cst_37 [2] : vector<2x16x16xf32> to vector<2x16xf32>
    %107 = vector.shape_cast %106 : vector<2x16xf32> to vector<2x16x1xf32>
    %108 = tpu.reciprocal %107 {approx = true} : vector<2x16x1xf32> -> vector<2x16x1xf32>
    %109 = arith.truncf %105 : vector<2x16x16xf32> to vector<2x16x16xbf16>
    "tpu.trace_start"() <{level = 10 : i32, message = "bqk,bkd->bqd"}> : () -> ()
    %cst_38 = arith.constant dense<0.000000e+00> : vector<2x16x16xf32>
    %110 = tpu.matmul %109, %99, %cst_38 {dimension_numbers = #tpu.dot_dimension_numbers<[2], [1], [1], [2], [0, 0, 0, 1, 1, 2], [0], [0]>} : vector<2x16x16xbf16>, vector<2x16x16xbf16>, vector<2x16x16xf32> -> vector<2x16x16xf32>
    "tpu.trace_stop"() : () -> ()
    %111 = vector.broadcast %108 : vector<2x16x1xf32> to vector<2x16x16xf32>
    %112 = arith.mulf %110, %111 : vector<2x16x16xf32>
    %113 = arith.truncf %112 : vector<2x16x16xf32> to vector<2x16x16xbf16>
    %c0_39 = arith.constant 0 : index
    %c0_40 = arith.constant 0 : index
    %c48 = arith.constant 48 : index
    %114 = vector.load %arg15[%c0_39, %c0_40, %c48] : memref<2x16x128xbf16, #tpu.memory_space<vmem>>, vector<2x16x16xbf16>
    tpu.vector_store %arg15[%c0_39, %c0_40, %c48], %113 {strides = array<i32>} : memref<2x16x128xbf16, #tpu.memory_space<vmem>>, vector<2x16x16xbf16>,
    %115 = vector.extract_strided_slice %36 {offsets = [0, 0, 64], sizes = [2, 16, 16], strides = [1, 1, 1]} : vector<2x16x128xbf16> to vector<2x16x16xbf16>
    %116 = vector.extract_strided_slice %39 {offsets = [0, 0, 64], sizes = [2, 16, 16], strides = [1, 1, 1]} : vector<2x16x128xbf16> to vector<2x16x16xbf16>
    %117 = vector.extract_strided_slice %42 {offsets = [0, 0, 64], sizes = [2, 16, 16], strides = [1, 1, 1]} : vector<2x16x128xbf16> to vector<2x16x16xbf16>
    "tpu.trace_start"() <{level = 10 : i32, message = "bqd,bkd->bqk"}> : () -> ()
    %cst_41 = arith.constant dense<0.000000e+00> : vector<2x16x16xf32>
    %118 = tpu.matmul %115, %116, %cst_41 {dimension_numbers = #tpu.dot_dimension_numbers<[2], [2], [1], [1], [0, 0, 0, 1, 1, 1], [0], [0]>} : vector<2x16x16xbf16>, vector<2x16x16xbf16>, vector<2x16x16xf32> -> vector<2x16x16xf32>
    "tpu.trace_stop"() : () -> ()
    %cst_42 = arith.constant dense<0xFF800000> : vector<2x16xf32>
    %119 = vector.multi_reduction <maximumf>, %118, %cst_42 [2] : vector<2x16x16xf32> to vector<2x16xf32>
    %120 = vector.shape_cast %119 : vector<2x16xf32> to vector<2x16x1xf32>
    %121 = vector.broadcast %120 : vector<2x16x1xf32> to vector<2x16x16xf32>
    %122 = arith.subf %118, %121 : vector<2x16x16xf32>
    %123 = math.exp %122 : vector<2x16x16xf32>
    %cst_43 = arith.constant dense<0.000000e+00> : vector<2x16xf32>
    %124 = vector.multi_reduction <add>, %123, %cst_43 [2] : vector<2x16x16xf32> to vector<2x16xf32>
    %125 = vector.shape_cast %124 : vector<2x16xf32> to vector<2x16x1xf32>
    %126 = tpu.reciprocal %125 {approx = true} : vector<2x16x1xf32> -> vector<2x16x1xf32>
    %127 = arith.truncf %123 : vector<2x16x16xf32> to vector<2x16x16xbf16>
    "tpu.trace_start"() <{level = 10 : i32, message = "bqk,bkd->bqd"}> : () -> ()
    %cst_44 = arith.constant dense<0.000000e+00> : vector<2x16x16xf32>
    %128 = tpu.matmul %127, %117, %cst_44 {dimension_numbers = #tpu.dot_dimension_numbers<[2], [1], [1], [2], [0, 0, 0, 1, 1, 2], [0], [0]>} : vector<2x16x16xbf16>, vector<2x16x16xbf16>, vector<2x16x16xf32> -> vector<2x16x16xf32>
    "tpu.trace_stop"() : () -> ()
    %129 = vector.broadcast %126 : vector<2x16x1xf32> to vector<2x16x16xf32>
    %130 = arith.mulf %128, %129 : vector<2x16x16xf32>
    %131 = arith.truncf %130 : vector<2x16x16xf32> to vector<2x16x16xbf16>
    %c0_45 = arith.constant 0 : index
    %c0_46 = arith.constant 0 : index
    %c64 = arith.constant 64 : index
    %132 = vector.load %arg15[%c0_45, %c0_46, %c64] : memref<2x16x128xbf16, #tpu.memory_space<vmem>>, vector<2x16x16xbf16>
    tpu.vector_store %arg15[%c0_45, %c0_46, %c64], %131 {strides = array<i32>} : memref<2x16x128xbf16, #tpu.memory_space<vmem>>, vector<2x16x16xbf16>,
    %133 = vector.extract_strided_slice %36 {offsets = [0, 0, 80], sizes = [2, 16, 16], strides = [1, 1, 1]} : vector<2x16x128xbf16> to vector<2x16x16xbf16>
    %134 = vector.extract_strided_slice %39 {offsets = [0, 0, 80], sizes = [2, 16, 16], strides = [1, 1, 1]} : vector<2x16x128xbf16> to vector<2x16x16xbf16>
    %135 = vector.extract_strided_slice %42 {offsets = [0, 0, 80], sizes = [2, 16, 16], strides = [1, 1, 1]} : vector<2x16x128xbf16> to vector<2x16x16xbf16>
    "tpu.trace_start"() <{level = 10 : i32, message = "bqd,bkd->bqk"}> : () -> ()
    %cst_47 = arith.constant dense<0.000000e+00> : vector<2x16x16xf32>
    %136 = tpu.matmul %133, %134, %cst_47 {dimension_numbers = #tpu.dot_dimension_numbers<[2], [2], [1], [1], [0, 0, 0, 1, 1, 1], [0], [0]>} : vector<2x16x16xbf16>, vector<2x16x16xbf16>, vector<2x16x16xf32> -> vector<2x16x16xf32>
    "tpu.trace_stop"() : () -> ()
    %cst_48 = arith.constant dense<0xFF800000> : vector<2x16xf32>
    %137 = vector.multi_reduction <maximumf>, %136, %cst_48 [2] : vector<2x16x16xf32> to vector<2x16xf32>
    %138 = vector.shape_cast %137 : vector<2x16xf32> to vector<2x16x1xf32>
    %139 = vector.broadcast %138 : vector<2x16x1xf32> to vector<2x16x16xf32>
    %140 = arith.subf %136, %139 : vector<2x16x16xf32>
    %141 = math.exp %140 : vector<2x16x16xf32>
    %cst_49 = arith.constant dense<0.000000e+00> : vector<2x16xf32>
    %142 = vector.multi_reduction <add>, %141, %cst_49 [2] : vector<2x16x16xf32> to vector<2x16xf32>
    %143 = vector.shape_cast %142 : vector<2x16xf32> to vector<2x16x1xf32>
    %144 = tpu.reciprocal %143 {approx = true} : vector<2x16x1xf32> -> vector<2x16x1xf32>
    %145 = arith.truncf %141 : vector<2x16x16xf32> to vector<2x16x16xbf16>
    "tpu.trace_start"() <{level = 10 : i32, message = "bqk,bkd->bqd"}> : () -> ()
    %cst_50 = arith.constant dense<0.000000e+00> : vector<2x16x16xf32>
    %146 = tpu.matmul %145, %135, %cst_50 {dimension_numbers = #tpu.dot_dimension_numbers<[2], [1], [1], [2], [0, 0, 0, 1, 1, 2], [0], [0]>} : vector<2x16x16xbf16>, vector<2x16x16xbf16>, vector<2x16x16xf32> -> vector<2x16x16xf32>
    "tpu.trace_stop"() : () -> ()
    %147 = vector.broadcast %144 : vector<2x16x1xf32> to vector<2x16x16xf32>
    %148 = arith.mulf %146, %147 : vector<2x16x16xf32>
    %149 = arith.truncf %148 : vector<2x16x16xf32> to vector<2x16x16xbf16>
    %c0_51 = arith.constant 0 : index
    %c0_52 = arith.constant 0 : index
    %c80 = arith.constant 80 : index
    %150 = vector.load %arg15[%c0_51, %c0_52, %c80] : memref<2x16x128xbf16, #tpu.memory_space<vmem>>, vector<2x16x16xbf16>
    tpu.vector_store %arg15[%c0_51, %c0_52, %c80], %149 {strides = array<i32>} : memref<2x16x128xbf16, #tpu.memory_space<vmem>>, vector<2x16x16xbf16>,
    %151 = vector.extract_strided_slice %36 {offsets = [0, 0, 96], sizes = [2, 16, 16], strides = [1, 1, 1]} : vector<2x16x128xbf16> to vector<2x16x16xbf16>
    %152 = vector.extract_strided_slice %39 {offsets = [0, 0, 96], sizes = [2, 16, 16], strides = [1, 1, 1]} : vector<2x16x128xbf16> to vector<2x16x16xbf16>
    %153 = vector.extract_strided_slice %42 {offsets = [0, 0, 96], sizes = [2, 16, 16], strides = [1, 1, 1]} : vector<2x16x128xbf16> to vector<2x16x16xbf16>
    "tpu.trace_start"() <{level = 10 : i32, message = "bqd,bkd->bqk"}> : () -> ()
    %cst_53 = arith.constant dense<0.000000e+00> : vector<2x16x16xf32>
    %154 = tpu.matmul %151, %152, %cst_53 {dimension_numbers = #tpu.dot_dimension_numbers<[2], [2], [1], [1], [0, 0, 0, 1, 1, 1], [0], [0]>} : vector<2x16x16xbf16>, vector<2x16x16xbf16>, vector<2x16x16xf32> -> vector<2x16x16xf32>
    "tpu.trace_stop"() : () -> ()
    %cst_54 = arith.constant dense<0xFF800000> : vector<2x16xf32>
    %155 = vector.multi_reduction <maximumf>, %154, %cst_54 [2] : vector<2x16x16xf32> to vector<2x16xf32>
    %156 = vector.shape_cast %155 : vector<2x16xf32> to vector<2x16x1xf32>
    %157 = vector.broadcast %156 : vector<2x16x1xf32> to vector<2x16x16xf32>
    %158 = arith.subf %154, %157 : vector<2x16x16xf32>
    %159 = math.exp %158 : vector<2x16x16xf32>
    %cst_55 = arith.constant dense<0.000000e+00> : vector<2x16xf32>
    %160 = vector.multi_reduction <add>, %159, %cst_55 [2] : vector<2x16x16xf32> to vector<2x16xf32>
    %161 = vector.shape_cast %160 : vector<2x16xf32> to vector<2x16x1xf32>
    %162 = tpu.reciprocal %161 {approx = true} : vector<2x16x1xf32> -> vector<2x16x1xf32>
    %163 = arith.truncf %159 : vector<2x16x16xf32> to vector<2x16x16xbf16>
    "tpu.trace_start"() <{level = 10 : i32, message = "bqk,bkd->bqd"}> : () -> ()
    %cst_56 = arith.constant dense<0.000000e+00> : vector<2x16x16xf32>
    %164 = tpu.matmul %163, %153, %cst_56 {dimension_numbers = #tpu.dot_dimension_numbers<[2], [1], [1], [2], [0, 0, 0, 1, 1, 2], [0], [0]>} : vector<2x16x16xbf16>, vector<2x16x16xbf16>, vector<2x16x16xf32> -> vector<2x16x16xf32>
    "tpu.trace_stop"() : () -> ()
    %165 = vector.broadcast %162 : vector<2x16x1xf32> to vector<2x16x16xf32>
    %166 = arith.mulf %164, %165 : vector<2x16x16xf32>
    %167 = arith.truncf %166 : vector<2x16x16xf32> to vector<2x16x16xbf16>
    %c0_57 = arith.constant 0 : index
    %c0_58 = arith.constant 0 : index
    %c96 = arith.constant 96 : index
    %168 = vector.load %arg15[%c0_57, %c0_58, %c96] : memref<2x16x128xbf16, #tpu.memory_space<vmem>>, vector<2x16x16xbf16>
    tpu.vector_store %arg15[%c0_57, %c0_58, %c96], %167 {strides = array<i32>} : memref<2x16x128xbf16, #tpu.memory_space<vmem>>, vector<2x16x16xbf16>,
    %169 = vector.extract_strided_slice %36 {offsets = [0, 0, 112], sizes = [2, 16, 16], strides = [1, 1, 1]} : vector<2x16x128xbf16> to vector<2x16x16xbf16>
    %170 = vector.extract_strided_slice %39 {offsets = [0, 0, 112], sizes = [2, 16, 16], strides = [1, 1, 1]} : vector<2x16x128xbf16> to vector<2x16x16xbf16>
    %171 = vector.extract_strided_slice %42 {offsets = [0, 0, 112], sizes = [2, 16, 16], strides = [1, 1, 1]} : vector<2x16x128xbf16> to vector<2x16x16xbf16>
    "tpu.trace_start"() <{level = 10 : i32, message = "bqd,bkd->bqk"}> : () -> ()
    %cst_59 = arith.constant dense<0.000000e+00> : vector<2x16x16xf32>
    %172 = tpu.matmul %169, %170, %cst_59 {dimension_numbers = #tpu.dot_dimension_numbers<[2], [2], [1], [1], [0, 0, 0, 1, 1, 1], [0], [0]>} : vector<2x16x16xbf16>, vector<2x16x16xbf16>, vector<2x16x16xf32> -> vector<2x16x16xf32>
    "tpu.trace_stop"() : () -> ()
    %cst_60 = arith.constant dense<0xFF800000> : vector<2x16xf32>
    %173 = vector.multi_reduction <maximumf>, %172, %cst_60 [2] : vector<2x16x16xf32> to vector<2x16xf32>
    %174 = vector.shape_cast %173 : vector<2x16xf32> to vector<2x16x1xf32>
    %175 = vector.broadcast %174 : vector<2x16x1xf32> to vector<2x16x16xf32>
    %176 = arith.subf %172, %175 : vector<2x16x16xf32>
    %177 = math.exp %176 : vector<2x16x16xf32>
    %cst_61 = arith.constant dense<0.000000e+00> : vector<2x16xf32>
    %178 = vector.multi_reduction <add>, %177, %cst_61 [2] : vector<2x16x16xf32> to vector<2x16xf32>
    %179 = vector.shape_cast %178 : vector<2x16xf32> to vector<2x16x1xf32>
    %180 = tpu.reciprocal %179 {approx = true} : vector<2x16x1xf32> -> vector<2x16x1xf32>
    %181 = arith.truncf %177 : vector<2x16x16xf32> to vector<2x16x16xbf16>
    "tpu.trace_start"() <{level = 10 : i32, message = "bqk,bkd->bqd"}> : () -> ()
    %cst_62 = arith.constant dense<0.000000e+00> : vector<2x16x16xf32>
    %182 = tpu.matmul %181, %171, %cst_62 {dimension_numbers = #tpu.dot_dimension_numbers<[2], [1], [1], [2], [0, 0, 0, 1, 1, 2], [0], [0]>} : vector<2x16x16xbf16>, vector<2x16x16xbf16>, vector<2x16x16xf32> -> vector<2x16x16xf32>
    "tpu.trace_stop"() : () -> ()
    %183 = vector.broadcast %180 : vector<2x16x1xf32> to vector<2x16x16xf32>
    %184 = arith.mulf %182, %183 : vector<2x16x16xf32>
    %185 = arith.truncf %184 : vector<2x16x16xf32> to vector<2x16x16xbf16>
    %c0_63 = arith.constant 0 : index
    %c0_64 = arith.constant 0 : index
    %c112 = arith.constant 112 : index
    %186 = vector.load %arg15[%c0_63, %c0_64, %c112] : memref<2x16x128xbf16, #tpu.memory_space<vmem>>, vector<2x16x16xbf16>
    tpu.vector_store %arg15[%c0_63, %c0_64, %c112], %185 {strides = array<i32>} : memref<2x16x128xbf16, #tpu.memory_space<vmem>>, vector<2x16x16xbf16>,
    %c0_65 = arith.constant 0 : index
    %c0_66 = arith.constant 0 : index
    %c0_67 = arith.constant 0 : index
    %187 = vector.load %arg15[%c0_65, %c0_66, %c0_67] : memref<2x16x128xbf16, #tpu.memory_space<vmem>>, vector<2x16x128xbf16>
    %188 = vector.shape_cast %187 : vector<2x16x128xbf16> to vector<32x128xbf16>
    %c0_68 = arith.constant 0 : index
    %c0_69 = arith.constant 0 : index
    %189 = vector.load %arg6[%c0_68, %c0_69] : memref<128x128xbf16, #tpu.memory_space<vmem>>, vector<128x128xbf16>
    %cst_70 = arith.constant dense<0.000000e+00> : vector<32x128xf32>
    %190 = tpu.matmul %188, %189, %cst_70 {dimension_numbers = #tpu.dot_dimension_numbers<[1], [0], [0], [1], [0, 0, 1, 1], [], []>} : vector<32x128xbf16>, vector<128x128xbf16>, vector<32x128xf32> -> vector<32x128xf32>
    %c0_71 = arith.constant 0 : index
    %c0_72 = arith.constant 0 : index
    %191 = vector.load %arg7[%c0_71, %c0_72] : memref<1x128xf32, #tpu.memory_space<vmem>>, vector<1x128xf32>
    %192 = vector.broadcast %191 : vector<1x128xf32> to vector<32x128xf32>
    %193 = arith.addf %190, %192 : vector<32x128xf32>
    %194 = arith.addf %193, %1 : vector<32x128xf32>
    %c0_73 = arith.constant 0 : index
    %c0_74 = arith.constant 0 : index
    %195 = vector.load %arg8[%c0_73, %c0_74] : memref<1x128xf32, #tpu.memory_space<vmem>>, vector<1x128xf32>
    %c0_75 = arith.constant 0 : index
    %c0_76 = arith.constant 0 : index
    %196 = vector.load %arg9[%c0_75, %c0_76] : memref<1x128xf32, #tpu.memory_space<vmem>>, vector<1x128xf32>
    %cst_77 = arith.constant dense<0.000000e+00> : vector<32xf32>
    %197 = vector.multi_reduction <add>, %194, %cst_77 [1] : vector<32x128xf32> to vector<32xf32>
    %198 = vector.shape_cast %197 : vector<32xf32> to vector<32x1xf32>
    %cst_78 = arith.constant 1.280000e+02 : f32
    %199 = vector.broadcast %cst_78 : f32 to vector<32x1xf32>
    %200 = arith.divf %198, %199 : vector<32x1xf32>
    %201 = vector.broadcast %200 : vector<32x1xf32> to vector<32x128xf32>
    %202 = arith.subf %194, %201 : vector<32x128xf32>
    %203 = arith.mulf %202, %202 : vector<32x128xf32>
    %cst_79 = arith.constant dense<0.000000e+00> : vector<32xf32>
    %204 = vector.multi_reduction <add>, %203, %cst_79 [1] : vector<32x128xf32> to vector<32xf32>
    %205 = vector.shape_cast %204 : vector<32xf32> to vector<32x1xf32>
    %cst_80 = arith.constant 1.280000e+02 : f32
    %206 = vector.broadcast %cst_80 : f32 to vector<32x1xf32>
    %207 = arith.divf %205, %206 : vector<32x1xf32>
    %208 = vector.broadcast %200 : vector<32x1xf32> to vector<32x128xf32>
    %209 = arith.subf %194, %208 : vector<32x128xf32>
    %cst_81 = arith.constant 9.99999974E-6 : f32
    %210 = vector.broadcast %cst_81 : f32 to vector<32x1xf32>
    %211 = arith.addf %207, %210 : vector<32x1xf32>
    %212 = math.rsqrt %211 : vector<32x1xf32>
    %213 = vector.broadcast %212 : vector<32x1xf32> to vector<32x128xf32>
    %214 = arith.mulf %209, %213 : vector<32x128xf32>
    %215 = vector.broadcast %195 : vector<1x128xf32> to vector<32x128xf32>
    %216 = arith.mulf %214, %215 : vector<32x128xf32>
    %217 = vector.broadcast %196 : vector<1x128xf32> to vector<32x128xf32>
    %218 = arith.addf %216, %217 : vector<32x128xf32>
    %219 = arith.truncf %218 : vector<32x128xf32> to vector<32x128xbf16>
    %cst_82 = arith.constant 0.000000e+00 : f32
    %220 = vector.broadcast %cst_82 : f32 to vector<32x128xf32>
    %c0_i32 = arith.constant 0 : i32
    %221 = arith.index_cast %c0_i32 : i32 to index
    %c0_83 = arith.constant 0 : index
    %c0_84 = arith.constant 0 : index
    %222 = vector.load %arg10[%221, %c0_83, %c0_84] : memref<1x128x512xbf16, #tpu.memory_space<vmem>>, vector<1x128x512xbf16>
    %223 = vector.shape_cast %222 : vector<1x128x512xbf16> to vector<128x512xbf16>
    %cst_85 = arith.constant dense<0.000000e+00> : vector<32x512xf32>
    %224 = tpu.matmul %219, %223, %cst_85 {dimension_numbers = #tpu.dot_dimension_numbers<[1], [0], [0], [1], [0, 0, 1, 1], [], []>} : vector<32x128xbf16>, vector<128x512xbf16>, vector<32x512xf32> -> vector<32x512xf32>
    %225 = arith.index_cast %c0_i32 : i32 to index
    %c0_86 = arith.constant 0 : index
    %c0_87 = arith.constant 0 : index
    %226 = vector.load %arg11[%225, %c0_86, %c0_87] : memref<1x1x512xf32, #tpu.memory_space<vmem>>, vector<1x1x512xf32>
    %227 = vector.shape_cast %226 : vector<1x1x512xf32> to vector<1x512xf32>
    %228 = vector.broadcast %227 : vector<1x512xf32> to vector<32x512xf32>
    %229 = arith.addf %224, %228 : vector<32x512xf32>
    %cst_88 = arith.constant 5.000000e-01 : f32
    %230 = vector.broadcast %cst_88 : f32 to vector<32x512xf32>
    %231 = arith.mulf %230, %229 : vector<32x512xf32>
    %cst_89 = arith.constant 4.471500e-02 : f32
    %232 = vector.broadcast %cst_89 : f32 to vector<32x512xf32>
    %233 = arith.mulf %232, %229 : vector<32x512xf32>
    %234 = arith.mulf %233, %229 : vector<32x512xf32>
    %235 = arith.mulf %234, %229 : vector<32x512xf32>
    %236 = arith.addf %229, %235 : vector<32x512xf32>
    %cst_90 = arith.constant 0.797884583 : f32
    %237 = vector.broadcast %cst_90 : f32 to vector<32x512xf32>
    %238 = arith.mulf %237, %236 : vector<32x512xf32>
    %239 = math.tanh %238 : vector<32x512xf32>
    %cst_91 = arith.constant 1.000000e+00 : f32
    %240 = vector.broadcast %cst_91 : f32 to vector<32x512xf32>
    %241 = arith.addf %240, %239 : vector<32x512xf32>
    %242 = arith.mulf %231, %241 : vector<32x512xf32>
    %243 = arith.truncf %242 : vector<32x512xf32> to vector<32x512xbf16>
    %244 = arith.index_cast %c0_i32 : i32 to index
    %c0_92 = arith.constant 0 : index
    %c0_93 = arith.constant 0 : index
    %245 = vector.load %arg12[%244, %c0_92, %c0_93] : memref<1x512x128xbf16, #tpu.memory_space<vmem>>, vector<1x512x128xbf16>
    %246 = vector.shape_cast %245 : vector<1x512x128xbf16> to vector<512x128xbf16>
    %cst_94 = arith.constant dense<0.000000e+00> : vector<32x128xf32>
    %247 = tpu.matmul %243, %246, %cst_94 {dimension_numbers = #tpu.dot_dimension_numbers<[1], [0], [0], [1], [0, 0, 1, 1], [], []>} : vector<32x512xbf16>, vector<512x128xbf16>, vector<32x128xf32> -> vector<32x128xf32>
    %248 = arith.addf %220, %247 : vector<32x128xf32>
    %c1_i32 = arith.constant 1 : i32
    %c0_95 = arith.constant 0 : index
    %c0_96 = arith.constant 0 : index
    %249 = vector.load %arg13[%c0_95, %c0_96] : memref<1x128xf32, #tpu.memory_space<vmem>>, vector<1x128xf32>
    %250 = vector.broadcast %249 : vector<1x128xf32> to vector<32x128xf32>
    %251 = arith.addf %248, %250 : vector<32x128xf32>
    %252 = arith.addf %251, %194 : vector<32x128xf32>
    %253 = vector.shape_cast %252 : vector<32x128xf32> to vector<2x16x128xf32>
    %c0_97 = arith.constant 0 : index
    %c0_98 = arith.constant 0 : index
    %c0_99 = arith.constant 0 : index
    %254 = vector.load %arg14[%c0_97, %c0_98, %c0_99] : memref<2x16x128xf32, #tpu.memory_space<vmem>>, vector<2x16x128xf32>
    tpu.vector_store %arg14[%c0_97, %c0_98, %c0_99], %253 {strides = array<i32>} : memref<2x16x128xf32, #tpu.memory_space<vmem>>, vector<2x16x128xf32>,
    return
  }
  func.func @transform_0(%arg0: i32) -> (i32, i32, i32) {
    %c0_i32 = arith.constant 0 : i32
    %c0_i32_0 = arith.constant 0 : i32
    %c0_i32_1 = arith.constant 0 : i32
    return %arg0, %c0_i32, %c0_i32_0 : i32, i32, i32
  }
  func.func @transform_1(%arg0: i32) -> (i32, i32) {
    %c0_i32 = arith.constant 0 : i32
    %c0_i32_0 = arith.constant 0 : i32
    %c0_i32_1 = arith.constant 0 : i32
    return %c0_i32, %c0_i32_0 : i32, i32
  }
  func.func @transform_2(%arg0: i32) -> (i32, i32) {
    %c0_i32 = arith.constant 0 : i32
    %c0_i32_0 = arith.constant 0 : i32
    %c0_i32_1 = arith.constant 0 : i32
    return %c0_i32, %c0_i32_0 : i32, i32
  }
  func.func @transform_3(%arg0: i32) -> (i32, i32) {
    %c0_i32 = arith.constant 0 : i32
    %c0_i32_0 = arith.constant 0 : i32
    %c0_i32_1 = arith.constant 0 : i32
    return %c0_i32, %c0_i32_0 : i32, i32
  }
  func.func @transform_4(%arg0: i32) -> (i32, i32) {
    %c0_i32 = arith.constant 0 : i32
    %c0_i32_0 = arith.constant 0 : i32
    %c0_i32_1 = arith.constant 0 : i32
    return %c0_i32, %c0_i32_0 : i32, i32
  }
  func.func @transform_5(%arg0: i32) -> (i32, i32) {
    %c0_i32 = arith.constant 0 : i32
    %c0_i32_0 = arith.constant 0 : i32
    %c0_i32_1 = arith.constant 0 : i32
    return %c0_i32, %c0_i32_0 : i32, i32
  }
  func.func @transform_6(%arg0: i32) -> (i32, i32) {
    %c0_i32 = arith.constant 0 : i32
    %c0_i32_0 = arith.constant 0 : i32
    %c0_i32_1 = arith.constant 0 : i32
    return %c0_i32, %c0_i32_0 : i32, i32
  }
  func.func @transform_7(%arg0: i32) -> (i32, i32) {
    %c0_i32 = arith.constant 0 : i32
    %c0_i32_0 = arith.constant 0 : i32
    %c0_i32_1 = arith.constant 0 : i32
    return %c0_i32, %c0_i32_0 : i32, i32
  }
  func.func @transform_8(%arg0: i32) -> (i32, i32) {
    %c0_i32 = arith.constant 0 : i32
    %c0_i32_0 = arith.constant 0 : i32
    %c0_i32_1 = arith.constant 0 : i32
    return %c0_i32, %c0_i32_0 : i32, i32
  }
  func.func @transform_9(%arg0: i32) -> (i32, i32, i32) {
    %c0_i32 = arith.constant 0 : i32
    %c0_i32_0 = arith.constant 0 : i32
    %c0_i32_1 = arith.constant 0 : i32
    %c0_i32_2 = arith.constant 0 : i32
    return %c0_i32, %c0_i32_0, %c0_i32_1 : i32, i32, i32
  }
  func.func @transform_10(%arg0: i32) -> (i32, i32, i32) {
    %c0_i32 = arith.constant 0 : i32
    %c0_i32_0 = arith.constant 0 : i32
    %c0_i32_1 = arith.constant 0 : i32
    %c0_i32_2 = arith.constant 0 : i32
    return %c0_i32, %c0_i32_0, %c0_i32_1 : i32, i32, i32
  }
  func.func @transform_11(%arg0: i32) -> (i32, i32, i32) {
    %c0_i32 = arith.constant 0 : i32
    %c0_i32_0 = arith.constant 0 : i32
    %c0_i32_1 = arith.constant 0 : i32
    %c0_i32_2 = arith.constant 0 : i32
    return %c0_i32, %c0_i32_0, %c0_i32_1 : i32, i32, i32
  }
  func.func @transform_12(%arg0: i32) -> (i32, i32) {
    %c0_i32 = arith.constant 0 : i32
    %c0_i32_0 = arith.constant 0 : i32
    %c0_i32_1 = arith.constant 0 : i32
    return %c0_i32, %c0_i32_0 : i32, i32
  }
  func.func @transform_13(%arg0: i32) -> (i32, i32, i32) {
    %c0_i32 = arith.constant 0 : i32
    %c0_i32_0 = arith.constant 0 : i32
    %c0_i32_1 = arith.constant 0 : i32
    return %arg0, %c0_i32, %c0_i32_0 : i32, i32, i32
  }
}

</mosaic_0001>

<bundles_post_ra>
// kernel: tpu_custom_call.1
= control target key start
LH: loop header
LB: loop body
LE: loop exit
PB: predicated region body
PF: predicated region fallthrough
CT: control target
= control target key end

     0   :  { %18 = vsyncpa [#allocation4], 0  ;;  %s5572_s0 = inlined_call_operand.hbm [shape: f32[2,16,128], index: 0, kind: input, shape index: {}]   ;;  %s5573_s1 = inlined_call_operand.hbm [shape: f32[1,128], index: 1, kind: input, shape index: {}]   ;;  %s5574_s2 = inlined_call_operand.hbm [shape: f32[1,128], index: 2, kind: input, shape index: {}]   ;;  %s5575_s3 = inlined_call_operand.hbm [shape: bf16[128,384], index: 3, kind: input, shape index: {}]   ;;  %s5576_s4 = inlined_call_operand.vmem [shape: f32[1,384], index: 4, kind: input, shape index: {}]   ;;  %s5577_s5 = inlined_call_operand.hbm [shape: bf16[128,128], index: 5, kind: input, shape index: {}]   ;;  %s5578_s6 = inlined_call_operand.vmem [shape: f32[1,128], index: 6, kind: input, shape index: {}]   ;;  %s5579_s7 = inlined_call_operand.vmem [shape: f32[1,128], index: 7, kind: input, shape index: {}]   ;;  %s5580_s8 = inlined_call_operand.vmem [shape: f32[1,128], index: 8, kind: input, shape index: {}]   ;;  %s5581_s9 = inlined_call_operand.hbm [shape: bf16[1,128,512], index: 9, kind: input, shape index: {}]   ;;  %s5582_s10 = inlined_call_operand.vmem [shape: f32[1,1,512], index: 10, kind: input, shape index: {}]   ;;  %s5583_s11 = inlined_call_operand.hbm [shape: bf16[1,512,128], index: 11, kind: input, shape index: {}]   ;;  %s5584_s12 = inlined_call_operand.vmem [shape: f32[1,128], index: 12, kind: input, shape index: {}]   ;;  %s5585_s13 = inlined_call_operand.hbm [shape: f32[2,16,128], index: 13, kind: output, shape index: {}]  }
   0x1   :  { %19 = vsyncpa [#allocation7], 0 }
   0x2   :  { %20 = vsyncpa [#allocation10], 0 }
   0x3   :  { %21 = vsyncpa [#allocation13], 0 }
   0x4   :  { %22 = vsyncpa [#allocation5], 0  ;;  %s4594_s25 = smov [#allocation6]   ;;  %s4595_s27 = smov [#allocation9]  }
   0x5   :  { %s41_s26 = sshll.u32 %s4594_s25, 4  ;;  %s60_s28 = sshll.u32 %s4595_s27, 4  ;;  %s42_s26 = int_to_ptr.vmem [resolvable:$true] %s41_s26  ;;  %s4688_s28 = int_to_ptr.vmem [resolvable:$true] %s60_s28 }
   0x6   :  { %s4408_s14 = scalar_lea.hbm %s5573_s1, 16 }
   0x7   :  { %p4409_p0 = scmp.ne.s32.totalorder %s5573_s1, %s4408_s14  ;;  %p4412_p1 = scmp.lt.u32.totalorder %s4408_s14, %s5573_s1 }
   0x9   :  { %p4414_p2 = pnand %p4412_p1, %p4409_p0 }
   0xb   :  { %4417 = shalt.err (!%p4414_p2)
}
   0xc   :  { %s4418_s19 = scalar_lea.vmem %s42_s26, 16  ;;  %s4422_s20 = scalar_lea.vmem %s42_s26, 32 }
   0xd   :  { %p4419_p3 = scmp.ne.s32.totalorder %s42_s26, %s4418_s19  ;;  %p4423_p4 = scmp.lt.s32.totalorder %s42_s26, %s42_s26 }
   0xe   :  { %p4424_p5 = scmp.lt.s32.totalorder %s4422_s20, %s4418_s19 }
  0x10   :  { %p4425_p6 = por %p4424_p5, %p4423_p4 }
  0x12   :  { %p4426_p7 = pnand %p4425_p6, %p4419_p3 }
  0x14   :  { %4429 = shalt.err (!%p4426_p7)
}
  0x15   :  { %44 = dma.hbm_to_vmem [thread:$0]  %s5573_s1, 16, %s42_s26, [#allocation7]  }
  0x16   :  { %s4430_s25 = scalar_lea.hbm %s5575_s3, 3072 }
  0x17   :  { %p4431_p8 = scmp.ne.s32.totalorder %s5575_s3, %s4430_s25  ;;  %p4434_p9 = scmp.lt.u32.totalorder %s4430_s25, %s5575_s3 }
  0x19   :  { %p4436_p10 = pnand %p4434_p9, %p4431_p8 }
  0x1b   :  { %4439 = shalt.err (!%p4436_p10)
}
  0x1c   :  { %s4440_s15 = scalar_lea.vmem %s4688_s28, 3072  ;;  %p4445_p12 = scmp.lt.s32.totalorder %s4688_s28, %s4688_s28 }
  0x1d   :  { %p4441_p11 = scmp.ne.s32.totalorder %s4688_s28, %s4440_s15  ;;  %p4446_p13 = scmp.lt.s32.totalorder %s4440_s15, %s4440_s15 }
  0x1f   :  { %p4447_p0 = por %p4446_p13, %p4445_p12 }
  0x21   :  { %p4448_p1 = pnand %p4447_p0, %p4441_p11 }
  0x23   :  { %4451 = shalt.err (!%p4448_p1)
}
  0x24   :  { %s4596_s1 = smov 192   ;;  %s4597_s26 = smov 12  }
  0x25   :  { %66 = dma.hbm_to_vmem [thread:$0]  %s5575_s3, 3072, %s4688_s28, [#allocation10], %s4596_s1, %s4596_s1, %s4597_s26  }
  0x26   :  { %s4598_s18 = smov [#allocation12]   ;;  %s4452_s22 = scalar_lea.hbm %s5581_s9, 4096 }
  0x27   :  { %s92_s19 = sshll.u32 %s4598_s18, 4  ;;  %p4453_p2 = scmp.ne.s32.totalorder %s5581_s9, %s4452_s22  ;;  %s93_s19 = int_to_ptr.vmem [resolvable:$true] %s92_s19 }
  0x28   :  { %p4456_p3 = scmp.lt.u32.totalorder %s4452_s22, %s5581_s9 }
  0x2a   :  { %p4458_p4 = pnand %p4456_p3, %p4453_p2 }
  0x2c   :  { %4461 = shalt.err (!%p4458_p4)
}
  0x2d   :  { %s4462_s29 = scalar_lea.vmem %s93_s19, 4096  ;;  %p4467_p6 = scmp.lt.s32.totalorder %s93_s19, %s93_s19 }
  0x2e   :  { %p4463_p5 = scmp.ne.s32.totalorder %s93_s19, %s4462_s29  ;;  %p4468_p7 = scmp.lt.s32.totalorder %s4462_s29, %s4462_s29 }
  0x30   :  { %p4469_p8 = por %p4468_p7, %p4467_p6 }
  0x32   :  { %p4470_p9 = pnand %p4469_p8, %p4463_p5 }
  0x34   :  { %4473 = shalt.err (!%p4470_p9)
}
  0x35   :  { %s4599_s3 = smov 256   ;;  %s4600_s28 = smov 16  }
  0x36   :  { %98 = dma.hbm_to_vmem [thread:$0]  %s5581_s9, 4096, %s93_s19, [#allocation13], %s4599_s3, %s4599_s3, %s4600_s28  }
  0x37   :  { %s4601_s15 = smov [#allocation3]   ;;  %s4474_s17 = scalar_lea.hbm %s5572_s0, 512 }
  0x38   :  { %s28_s1 = sshll.u32 %s4601_s15, 4  ;;  %p4475_p10 = scmp.ne.s32.totalorder %s5572_s0, %s4474_s17  ;;  %s29_s1 = int_to_ptr.vmem [resolvable:$true] %s28_s1 }
  0x39   :  { %p4478_p11 = scmp.lt.u32.totalorder %s4474_s17, %s5572_s0 }
  0x3b   :  { %p4480_p12 = pnand %p4478_p11, %p4475_p10 }
  0x3d   :  { %4483 = shalt.err (!%p4480_p12)
}
  0x3e   :  { %s4484_s23 = scalar_lea.vmem %s29_s1, 512  ;;  %p4489_p0 = scmp.lt.s32.totalorder %s29_s1, %s29_s1 }
  0x3f   :  { %p4485_p13 = scmp.ne.s32.totalorder %s29_s1, %s4484_s23  ;;  %p4490_p1 = scmp.lt.s32.totalorder %s4484_s23, %s4484_s23 }
  0x41   :  { %p4491_p2 = por %p4490_p1, %p4489_p0 }
  0x43   :  { %p4492_p3 = pnand %p4491_p2, %p4485_p13 }
  0x45   :  { %4495 = shalt.err (!%p4492_p3)
}
  0x46   :  { %s4602_s9 = smov 128   ;;  %s4603_s19 = smov 8  }
  0x47   :  { %34 = dma.hbm_to_vmem [thread:$0]  %s5572_s0, 512, %s29_s1, [#allocation4], %s4602_s9, %s4602_s9, %s4603_s19  }
  0x48   :  { %s4604_s27 = smov [#allocation8]   ;;  %s4605_s3 = smov [#allocation11]  }
  0x49   :  { %s51_s29 = sshll.u32 %s4604_s27, 4  ;;  %s74_s30 = sshll.u32 %s4605_s3, 4  ;;  %s52_s29 = int_to_ptr.vmem [resolvable:$true] %s51_s29  ;;  %s4747_s30 = int_to_ptr.vmem [resolvable:$true] %s74_s30 }
  0x4a   :  { %s4496_s26 = scalar_lea.hbm %s5574_s2, 16 }
  0x4b   :  { %p4497_p4 = scmp.ne.s32.totalorder %s5574_s2, %s4496_s26  ;;  %p4500_p5 = scmp.lt.u32.totalorder %s4496_s26, %s5574_s2 }
  0x4d   :  { %p4502_p6 = pnand %p4500_p5, %p4497_p4 }
  0x4f   :  { %4505 = shalt.err (!%p4502_p6)
}
  0x50   :  { %s4506_s0 = scalar_lea.vmem %s52_s29, 16  ;;  %s4510_s1 = scalar_lea.vmem %s52_s29, 32 }
  0x51   :  { %p4507_p7 = scmp.ne.s32.totalorder %s52_s29, %s4506_s0  ;;  %p4511_p8 = scmp.lt.s32.totalorder %s52_s29, %s52_s29 }
  0x52   :  { %p4512_p9 = scmp.lt.s32.totalorder %s4510_s1, %s4506_s0 }
  0x54   :  { %p4513_p10 = por %p4512_p9, %p4511_p8 }
  0x56   :  { %p4514_p11 = pnand %p4513_p10, %p4507_p7 }
  0x58   :  { %4517 = shalt.err (!%p4514_p11)
}
  0x59   :  { %54 = dma.hbm_to_vmem [thread:$0]  %s5574_s2, 16, %s52_s29, [#allocation7]  }
  0x5a   :  { %s4518_s25 = scalar_lea.hbm %s5577_s5, 1024 }
  0x5b   :  { %p4519_p12 = scmp.ne.s32.totalorder %s5577_s5, %s4518_s25  ;;  %p4522_p13 = scmp.lt.u32.totalorder %s4518_s25, %s5577_s5 }
  0x5d   :  { %p4524_p0 = pnand %p4522_p13, %p4519_p12 }
  0x5f   :  { %4527 = shalt.err (!%p4524_p0)
}
  0x60   :  { %s4528_s26 = scalar_lea.vmem %s4747_s30, 1024  ;;  %p4533_p2 = scmp.lt.s32.totalorder %s4747_s30, %s4747_s30 }
  0x61   :  { %p4529_p1 = scmp.ne.s32.totalorder %s4747_s30, %s4528_s26  ;;  %p4534_p3 = scmp.lt.s32.totalorder %s4528_s26, %s4528_s26 }
  0x63   :  { %p4535_p4 = por %p4534_p3, %p4533_p2 }
  0x65   :  { %p4536_p5 = pnand %p4535_p4, %p4529_p1 }
  0x67   :  { %4539 = shalt.err (!%p4536_p5)
}
  0x68   :  { %s4606_s2 = smov 64   ;;  %s4607_s29 = smov 4  }
  0x69   :  { %80 = dma.hbm_to_vmem [thread:$0]  %s5577_s5, 1024, %s4747_s30, [#allocation10], %s4606_s2, %s4606_s2, %s4607_s29  }
  0x6a   :  { %s4608_s18 = smov [#allocation14]   ;;  %s4540_s21 = scalar_lea.hbm %s5583_s11, 4096 }
  0x6b   :  { %s106_s20 = sshll.u32 %s4608_s18, 4  ;;  %p4541_p6 = scmp.ne.s32.totalorder %s5583_s11, %s4540_s21  ;;  %s107_s20 = int_to_ptr.vmem [resolvable:$true] %s106_s20 }
  0x6c   :  { %p4544_p7 = scmp.lt.u32.totalorder %s4540_s21, %s5583_s11 }
  0x6e   :  { %p4546_p8 = pnand %p4544_p7, %p4541_p6 }
  0x70   :  { %4549 = shalt.err (!%p4546_p8)
}
  0x71   :  { %s4550_s27 = scalar_lea.vmem %s107_s20, 4096  ;;  %p4555_p10 = scmp.lt.s32.totalorder %s107_s20, %s107_s20 }
  0x72   :  { %p4551_p9 = scmp.ne.s32.totalorder %s107_s20, %s4550_s27  ;;  %p4556_p11 = scmp.lt.s32.totalorder %s4550_s27, %s4550_s27 }
  0x74   :  { %p4557_p12 = por %p4556_p11, %p4555_p10 }
  0x76   :  { %p4558_p13 = pnand %p4557_p12, %p4551_p9 }
  0x78   :  { %4561 = shalt.err (!%p4558_p13)
}
  0x79   :  { %112 = dma.hbm_to_vmem [thread:$0]  %s5583_s11, 4096, %s107_s20, [#allocation13], %s4606_s2, %s4606_s2, %s4607_s29  }
  0x7a   :  { %4584 = dma.done.wait [#allocation4], 512  }
  0x7b   :  { %4585 = vsyncadd [#allocation4], 4294966784 }
  0x7c   :  { %4586 = dma.done.wait [#allocation7], 32  }
  0x7d   :  { %4587 = vsyncadd [#allocation7], 4294967264 }
  0x7e   :  { %4588 = dma.done.wait [#allocation10], 4096  }
  0x7f   :  { %4589 = vsyncadd [#allocation10], 4294963200 }
  0x80   :  { %4590 = dma.done.wait [#allocation13], 8192  }
  0x81   :  { %4591 = vsyncadd [#allocation13], 4294959104  ;;  %v137_v0 = vld [vmem:[#allocation3] sm:$0xff]  ;;  %v139_v1 = vld [vmem:[#allocation3 + $0x10] sm:$0xff]  ;;  %v5589_v39 = vmov 0   ;;  %vm4611_vm0 = vmmov 0  }
  0x82   :  { %v138_v2 = vld [vmem:[#allocation3 + $0x8] sm:$0xff]  ;;  %143 = vadd.xlane.f32.xlu0 %v137_v0  ;;  %147 = vadd.xlane.f32.xlu1 %v139_v1  ;;  %v140_v3 = vld [vmem:[#allocation3 + $0x18] sm:$0xff]  ;;  %v4110_v5 = vld [vmem:[#allocation9] ss:$12 sps:$4 sm:$0xff]   ;;  %vm499_vm1 = vcmask 130048   ;;  %s4613_s14 = smov 96  }
  0x83   :  { %v4108_v4 = vld [vmem:[#allocation9 + $0x4] ss:$12 sps:$4 sm:$0xff]   ;;  %v4111_v6 = vld [vmem:[#allocation9 + $0x1c] ss:$12 sps:$4 sm:$0xff]   ;;  %v4115_v25 = vld [vmem:[#allocation9 + $0x34] ss:$12 sps:$4 sm:$0xff]   ;;  %419 = vmatprep.mubr.bf16.mxu0 %v5589_v39 }
  0x84   :  { %v4113_v7 = vld [vmem:[#allocation9 + $0x8] ss:$12 sps:$4 sm:$0xff]   ;;  %387 = vmatprep.subr.bf16.mxu0 %v4108_v4  ;;  %v4114_v24 = vld [vmem:[#allocation9 + $0x18] ss:$12 sps:$4 sm:$0xff]   ;;  %v4117_v26 = vld [vmem:[#allocation9 + $0x20] ss:$12 sps:$4 sm:$0xff]  }
  0x85   :  { %388 = vmatpush1.bf16.msra.mxu0 %v4110_v5  ;;  %3852 = vmatprep.subr.bf16.mxu1 %v4113_v7  ;;  %v4118_v27 = vld [vmem:[#allocation9 + $0x30] ss:$12 sps:$4 sm:$0xff]   ;;  %v4119_v28 = vld [vmem:[#allocation9 + $0x4c] ss:$12 sps:$4 sm:$0xff]   ;;  %v4122_v30 = vld [vmem:[#allocation9 + $0x48] ss:$12 sps:$4 sm:$0xff]  }
  0x86   :  { %145 = vadd.xlane.f32.xlu0 %v138_v2  ;;  %149 = vadd.xlane.f32.xlu1 %v140_v3  ;;  %v4121_v29 = vld [vmem:[#allocation9 + $0x38] ss:$12 sps:$4 sm:$0xff]   ;;  %v4125_v32 = vld [vmem:[#allocation9 + $0x50] ss:$12 sps:$4 sm:$0xff]   ;;  %v4126_v33 = vld [vmem:[#allocation9 + $0x60] ss:$12 sps:$4 sm:$0xff]  }
  0x87   :  { %389 = vmatprep.subr.bf16.mxu0 %v4111_v6  ;;  %3853 = vmatpush3.bf16.msra.mxu1 %v4113_v7  ;;  %v4123_v31 = vld [vmem:[#allocation9 + $0x64] ss:$12 sps:$4 sm:$0xff]   ;;  %v4127_v34 = vld [vmem:[#allocation9 + $0x7c] ss:$12 sps:$4 sm:$0xff]   ;;  %v4131_v37 = vld [vmem:[#allocation9 + $0x94] ss:$12 sps:$4 sm:$0xff]  }
  0x88   :  { %3854 = vmatprep.subr.bf16.mxu1 %v4117_v26  ;;  %v4129_v35 = vld [vmem:[#allocation9 + $0x68] ss:$12 sps:$4 sm:$0xff]   ;;  %v4130_v36 = vld [vmem:[#allocation9 + $0x78] ss:$12 sps:$4 sm:$0xff]   ;;  %v4133_v38 = vld [vmem:[#allocation9 + $0x80] ss:$12 sps:$4 sm:$0xff]  }
  0x89   :  { %390 = vmatpush1.bf16.msra.mxu0 %v4114_v24  ;;  %v4134_v40 = vld [vmem:[#allocation9 + $0x90] ss:$12 sps:$4 sm:$0xff]   ;;  %v4135_v41 = vld [vmem:[#allocation9 + $0xac] ss:$12 sps:$4 sm:$0xff]   ;;  %v4138_v43 = vld [vmem:[#allocation9 + $0xa8] ss:$12 sps:$4 sm:$0xff]  }
  0x8a   :  { %391 = vmatprep.subr.bf16.mxu0 %v4115_v25  ;;  %v4137_v42 = vld [vmem:[#allocation9 + $0x98] ss:$12 sps:$4 sm:$0xff]   ;;  %v4139_v44 = vld [vmem:[#allocation9 + $0xb0] ss:$12 sps:$4 sm:$0xff]   ;;  %s4614_s15 = smov 80   ;;  %s4615_s26 = smov 48  }
  0x8b   :  { %3855 = vmatpush3.bf16.msra.mxu1 %v4117_v26  ;;  %v3578_v59 = vld [vmem:[#allocation6] ss:$0 sm:$0xff]  ;;  %s4616_s29 = smov 32   ;;  %vm990_vm2 = vcmask 261248   ;;  %vm1245_vm3 = vcmask 392448   ;;  %vm1500_vm4 = vcmask 523648  }
  0x8c   :  { %3856 = vmatprep.subr.bf16.mxu1 %v4121_v29  ;;  %vm1755_vm5 = vcmask 654848   ;;  %vm2010_vm6 = vcmask 786048   ;;  %vm2265_vm7 = vcmask 917248   ;;  %vm2520_vm8 = vcmask 1048448  }
  0x8d   :  { %392 = vmatpush1.bf16.msra.mxu0 %v4118_v27 }
  0x8e   :  { %393 = vmatprep.subr.bf16.mxu0 %v4119_v28 }
  0x8f   :  { %3857 = vmatpush3.bf16.msra.mxu1 %v4121_v29 }
  0x90   :  { %3858 = vmatprep.subr.bf16.mxu1 %v4125_v32 }
  0x91   :  { %394 = vmatpush1.bf16.msra.mxu0 %v4122_v30 }
  0x92   :  { %395 = vmatprep.subr.bf16.mxu0 %v4123_v31 }
  0x93   :  { %3859 = vmatpush3.bf16.msra.mxu1 %v4125_v32 }
  0x94   :  { %3860 = vmatprep.subr.bf16.mxu1 %v4129_v35 }
  0x95   :  { %396 = vmatpush1.bf16.msra.mxu0 %v4126_v33 }
  0x96   :  { %397 = vmatprep.subr.bf16.mxu0 %v4127_v34 }
  0x97   :  { %3861 = vmatpush3.bf16.msra.mxu1 %v4129_v35 }
  0x98   :  { %3862 = vmatprep.subr.bf16.mxu1 %v4133_v38 }
  0x99   :  { %398 = vmatpush1.bf16.msra.mxu0 %v4130_v36 }
  0x9a   :  { %399 = vmatprep.subr.bf16.mxu0 %v4131_v37 }
  0x9b   :  { %3863 = vmatpush3.bf16.msra.mxu1 %v4133_v38 }
  0x9c   :  { %3864 = vmatprep.subr.bf16.mxu1 %v4137_v42 }
  0x9d   :  { %400 = vmatpush1.bf16.msra.mxu0 %v4134_v40 }
  0x9e   :  { %401 = vmatprep.subr.bf16.mxu0 %v4135_v41 }
  0x9f   :  { %3865 = vmatpush3.bf16.msra.mxu1 %v4137_v42 }
  0xa0   :  { %3866 = vmatprep.subr.bf16.mxu1 %v4139_v44 }
  0xa1   :  { %402 = vmatpush1.bf16.msra.mxu0 %v4138_v43 }
  0xa3   :  { %3867 = vmatpush3.bf16.msra.mxu1 %v4139_v44 }
 0x10f   :  { %v144_v8 = vpop.xlane.xlu0 %143  ;;  %v148_v9 = vpop.xlane.xlu1 %147 }
 0x110   :  { %v152_v10 = vmul.f32 0.0078125, %v144_v8  ;;  %v154_v11 = vmul.f32 0.0078125, %v148_v9 }
 0x112   :  { %v4794_v12 = vsub.f32 %v137_v0, %v152_v10  ;;  %v4796_v13 = vsub.f32 %v139_v1, %v154_v11  ;;  %v3579_v0 = vld [vmem:[#allocation8] ss:$0 sm:$0xff] }
 0x113   :  { %v146_v14 = vpop.xlane.xlu0 %145  ;;  %v150_v15 = vpop.xlane.xlu1 %149 }
 0x114   :  { %v153_v16 = vmul.f32 0.0078125, %v146_v14  ;;  %v160_v17 = vmul.f32 %v4794_v12, %v4794_v12  ;;  %v155_v18 = vmul.f32 0.0078125, %v150_v15  ;;  %v162_v19 = vmul.f32 %v4796_v13, %v4796_v13 }
 0x115   :  { %v5593_v14 = vmov 0.0  }
 0x116   :  { %164 = vadd.xlane.f32.xlu0 %v160_v17  ;;  %v4802_v20 = vsub.f32 %v138_v2, %v153_v16  ;;  %v4804_v21 = vsub.f32 %v140_v3, %v155_v18  ;;  %3872 = vmatprep.subr.bf16.mxu0 %v5593_v14  ;;  %v242_v17 = vld [vmem:[%s5576_s4] sm:$0x7]  ;;  %s4612_s4 = smov 112  }
 0x117   :  { %3884 = vmatprep.subr.bf16.mxu1 %v5593_v14 }
 0x118   :  { %v161_v22 = vmul.f32 %v4802_v20, %v4802_v20  ;;  %v163_v23 = vmul.f32 %v4804_v21, %v4804_v21 }
 0x11a   :  { %168 = vadd.xlane.f32.xlu0 %v162_v19  ;;  %166 = vadd.xlane.f32.xlu1 %v161_v22 }
 0x11e   :  { %170 = vadd.xlane.f32.xlu1 %v163_v23 }
 0x1a3   :  { %v165_v45 = vpop.xlane.xlu0 %164 }
 0x1a4   :  { %v172_v46 = vmul.f32 0.0078125, %v165_v45 }
 0x1a6   :  { %v176_v47 = vadd.f32 1e-06, %v172_v46 }
 0x1a7   :  { %v167_v48 = vpop.xlane.xlu1 %166  ;;  %v169_v49 = vpop.xlane.xlu0 %168 }
 0x1a8   :  { %4228 = vrsqrt.f32 %v176_v47  ;;  %v173_v50 = vmul.f32 0.0078125, %v167_v48  ;;  %v174_v51 = vmul.f32 0.0078125, %v169_v49 }
 0x1aa   :  { %v177_v52 = vadd.f32 1e-06, %v173_v50  ;;  %v178_v53 = vadd.f32 1e-06, %v174_v51 }
 0x1ab   :  { %v171_v54 = vpop.xlane.xlu1 %170 }
 0x1ac   :  { %4230 = vrsqrt.f32 %v177_v52  ;;  %v175_v55 = vmul.f32 0.0078125, %v171_v54 }
 0x1ad   :  { %4232 = vrsqrt.f32 %v178_v53 }
 0x1ae   :  { %v179_v56 = vadd.f32 1e-06, %v175_v55 }
 0x1b0   :  { %4234 = vrsqrt.f32 %v179_v56 }
 0x1b2   :  { %v4229_v57 = vpop.eup %4228 }
 0x1b3   :  { %v184_v58 = vmul.f32 %v4229_v57, %v4794_v12 }
 0x1b5   :  { %v194_v63 = vmul.f32 %v3578_v59, %v184_v58 }
 0x1b6   :  { %v4231_v60 = vpop.eup %4230 }
 0x1b7   :  { %v4233_v61 = vpop.eup %4232  ;;  %v185_v62 = vmul.f32 %v4231_v60, %v4802_v20  ;;  %v204_v4 = vadd.f32 %v3579_v0, %v194_v63 }
 0x1b8   :  { %v186_v1 = vmul.f32 %v4233_v61, %v4796_v13  ;;  %v244_v13 = vlaneseq }
 0x1b9   :  { %v195_v2 = vmul.f32 %v3578_v59, %v185_v62 }
 0x1ba   :  { %v4235_v3 = vpop.eup %4234  ;;  %v196_v7 = vmul.f32 %v3578_v59, %v186_v1  ;;  %v4822_v15 = vshrl.u32 %v244_v13, 7 }
 0x1bb   :  { %v205_v5 = vadd.f32 %v3579_v0, %v195_v2  ;;  %v187_v6 = vmul.f32 %v4235_v3, %v4804_v21 }
 0x1bc   :  { %v206_v10 = vadd.f32 %v3579_v0, %v196_v7  ;;  %5595 = vst [vmem:[#allocation21_spill] sm:$0xff] %v4822_v15  ;;  %v5588_v16 = vsub.s32 0, %v4822_v15  ;;  %v5586_v18 = vsub.s32 1, %v4822_v15  ;;  %v5587_v20 = vsub.s32 2, %v4822_v15 }
 0x1bd   :  { %v208_v8 = vpack.c.bf16 %v205_v5, %v204_v4  ;;  %v197_v9 = vmul.f32 %v3578_v59, %v187_v6 }
 0x1be   :  { %v247_v19 = vrot.slane %v242_v17, %v5588_v16  ;;  %v251_v22 = vrot.slane %v242_v17, %v5586_v18  ;;  %v255_v28 = vrot.slane %v242_v17, %v5587_v20 }
 0x1bf   :  { %420 = vmatmul.mubr.bf16.vlgmr.msra.gmra.mrb[0].mxu0 %v208_v8  ;;  %3868 = vmatprep.mubr.bf16.mxu1 %v208_v8  ;;  %v207_v11 = vadd.f32 %v3579_v0, %v197_v9 }
 0x1c0   :  { %429 = vmatprep.mubr.bf16.mxu0 %v5589_v39 }
 0x1c1   :  { %v209_v12 = vpack.c.bf16 %v207_v11, %v206_v10 }
 0x1c3   :  { %3869 = vmatmul.mubr.bf16.vlgmr.msra.gmra.mrb[0].mxu1 %v209_v12 }
 0x1c4   :  { %3886 = vmatprep.mubr.msk.bf16.mxu1 %vm4611_vm0, %v5593_v14 }
 0x1c7   :  { %430 = vmatmul.mubr.bf16.gmra.mrb[4].mxu0 %v209_v12 }
 0x1c8   :  { %3874 = vmatprep.mubr.msk.bf16.mxu0 %vm4611_vm0, %v5593_v14 }
 0x292   :  { %v421_v21 = vpop.f32.mrb[0].mxu0 }
 0x293   :  { %v422_v23 = vadd.f32 %v421_v21, %v247_v19  ;;  %v423_v24 = vpop.f32.mrb[1].mxu0 }
 0x294   :  { %v425_v25 = vpop.f32.mrb[2].mxu0  ;;  %v424_v29 = vadd.f32 %v423_v24, %v251_v22 }
 0x295   :  { %v426_v26 = vadd.f32 %v425_v25, %v247_v19  ;;  %v427_v27 = vpop.f32.mrb[3].mxu0  ;;  %v489_v32 = vmul.f32 0.25, %v422_v23 }
 0x296   :  { %v428_v30 = vadd.f32 %v427_v27, %v251_v22  ;;  %v3870_v31 = vpop.f32.mrb[0].mxu1 }
 0x297   :  { %v490_v33 = vmul.f32 0.25, %v426_v26  ;;  %v474_v34 = vpop.f32.mrb[1].mxu1  ;;  %v483_v38 = vadd.f32 %v3870_v31, %v255_v28 }
 0x298   :  { %v4836_v35 = vpack.c.bf16 %v428_v30, %v424_v29  ;;  %v3871_v36 = vpop.f32.mrb[2].mxu1  ;;  %v475_v42 = vadd.f32 %v474_v34, %v255_v28 }
 0x299   :  { %v4838_v37 = vpack.c.bf16 %v490_v33, %v489_v32  ;;  %v486_v40 = vadd.f32 %v3871_v36, %v255_v28  ;;  %v477_v41 = vpop.f32.mrb[3].mxu1 }
 0x29a   :  { %v478_v43 = vadd.f32 %v477_v41, %v255_v28  ;;  %v431_v44 = vpop.f32.mrb[4].mxu0  ;;  %v504_v45 = vsel %vm499_vm1, %v4836_v35, 0 }
 0x29b   :  { %v4842_v46 = vpack.c.bf16 %v486_v40, %v483_v38  ;;  %v432_v47 = vadd.f32 %v431_v44, %v247_v19  ;;  %v433_v48 = vpop.f32.mrb[5].mxu0  ;;  %3873 = vmatpush3.bf16.xpose.msra.mxu0 %v504_v45 }
 0x29c   :  { %v4844_v49 = vpack.c.bf16 %v478_v43, %v475_v42  ;;  %v435_v50 = vpop.f32.mrb[6].mxu0  ;;  %3878 = vmatprep.subr.bf16.mxu0 %v5593_v14  ;;  %v434_v53 = vadd.f32 %v433_v48, %v251_v22 }
 0x29d   :  { %v436_v51 = vadd.f32 %v435_v50, %v247_v19  ;;  %v437_v52 = vpop.f32.mrb[7].mxu0  ;;  %v491_v55 = vmul.f32 0.25, %v432_v47 }
 0x29e   :  { %v438_v54 = vadd.f32 %v437_v52, %v251_v22  ;;  %3885 = vmatpush3.bf16.msra.mxu1 %v4844_v49 }
 0x29f   :  { %v492_v56 = vmul.f32 0.25, %v436_v51  ;;  %3896 = vmatprep.subr.bf16.mxu1 %v5593_v14 }
 0x2a0   :  { %v4849_v57 = vpack.c.bf16 %v438_v54, %v434_v53 }
 0x2a1   :  { %v4851_v58 = vpack.c.bf16 %v492_v56, %v491_v55 }
 0x2a2   :  { %3875 = vmatmul.mubr.msk.bf16.vlgmr.msra.gmra.mrb[8].mxu0 %vm499_vm1, %v4838_v37  ;;  %v551_v59 = vsel %vm499_vm1, %v4849_v57, 0 }
 0x2a3   :  { %3879 = vmatpush3.bf16.xpose.msra.mxu0 %v551_v59  ;;  %3880 = vmatprep.mubr.msk.bf16.mxu0 %vm4611_vm0, %v5593_v14 }
 0x2a4   :  { %3890 = vmatprep.subr.bf16.mxu0 %v5593_v14 }
 0x2aa   :  { %3881 = vmatmul.mubr.msk.bf16.vlgmr.msra.gmra.mrb[12].mxu0 %vm499_vm1, %v4851_v58 }
 0x2ab   :  { %3891 = vmatpush3.bf16.msra.mxu0 %v4842_v46  ;;  %3892 = vmatprep.mubr.msk.bf16.mxu0 %vm4611_vm0, %v5593_v14 }
 0x2ac   :  { %3902 = vmatprep.subr.bf16.mxu0 %v5593_v14 }
 0x375   :  { %v540_v60 = vpop.f32.mrb[8].mxu0 }
 0x376   :  { %v3876_v61 = vpop.f32.mrb[9].mxu0  ;;  %v594_v62 = vsel %vm499_vm1, %v540_v60, -inf }
 0x377   :  { %595 = vmax.xlane.f32.xlu0 %v594_v62  ;;  %v543_v63 = vpop.f32.mrb[10].mxu0 }
 0x378   :  { %v3877_v0 = vpop.f32.mrb[11].mxu0  ;;  %v597_v1 = vsel %vm499_vm1, %v543_v63, -inf }
 0x379   :  { %598 = vmax.xlane.f32.xlu1 %v597_v1 }
 0x37d   :  { %v587_v2 = vpop.f32.mrb[12].mxu0 }
 0x37e   :  { %v3882_v3 = vpop.f32.mrb[13].mxu0  ;;  %v600_v4 = vsel %vm499_vm1, %v587_v2, -inf }
 0x37f   :  { %601 = vmax.xlane.f32.xlu0 %v600_v4  ;;  %v590_v5 = vpop.f32.mrb[14].mxu0 }
 0x380   :  { %v3883_v6 = vpop.f32.mrb[15].mxu0  ;;  %v603_v7 = vsel %vm499_vm1, %v590_v5, -inf }
 0x38a   :  { %789 = vrot.lane.b32.xlu1 %v4849_v57, %s4612_s4 }
 0x395   :  { %736 = vrot.lane.b32.xlu0 %v4836_v35, %s4612_s4 }
 0x3ae   :  { %604 = vmax.xlane.f32.xlu1 %v603_v7 }
 0x3bf   :  { %733 = vrot.lane.b32.xlu1 %v4838_v37, %s4612_s4 }
 0x3c3   :  { %786 = vrot.lane.b32.xlu1 %v4851_v58, %s4612_s4 }
 0x404   :  { %v596_v8 = vpop.xlane.xlu0 %595 }
 0x405   :  { %v606_v9 = vsub.f32 %v540_v60, %v596_v8 }
 0x406   :  { %v599_v10 = vpop.xlane.xlu1 %598 }
 0x407   :  { %v610_v11 = vmul.f32 1.442695, %v606_v9  ;;  %v607_v12 = vsub.f32 %v543_v63, %v599_v10 }
 0x409   :  { %v612_v13 = vmul.f32 1.442695, %v607_v12  ;;  %4236 = vpow2.f32 %v610_v11 }
 0x40a   :  { %v790_v25 = vpop.permute.xlu1 %789 }
 0x40b   :  { %4238 = vpow2.f32 %v612_v13  ;;  %v795_v36 = vsel %vm499_vm1, %v790_v25, 0 }
 0x40c   :  { %v602_v17 = vpop.xlane.xlu0 %601 }
 0x40d   :  { %v608_v26 = vsub.f32 %v587_v2, %v602_v17 }
 0x40f   :  { %v614_v27 = vmul.f32 1.442695, %v608_v26 }
 0x410   :  { %v737_v22 = vpop.permute.xlu0 %736 }
 0x411   :  { %v742_v24 = vsel %vm499_vm1, %v737_v22, 0  ;;  %4240 = vpow2.f32 %v614_v27 }
 0x413   :  { %v4878_v19 = vpop.eup %4236 }
 0x415   :  { %v4880_v21 = vpop.eup %4238 }
 0x416   :  { %v634_v23 = vpack.c.bf16 %v4880_v21, %v4878_v19 }
 0x418   :  { %3887 = vmatmul.mubr.msk.bf16.vlgmr.msra.gmra.mrb[4].mxu1 %vm499_vm1, %v634_v23 }
 0x419   :  { %3897 = vmatpush3.bf16.xpose.msra.mxu1 %v742_v24  ;;  %3898 = vmatprep.mubr.msk.bf16.mxu1 %vm4611_vm0, %v5593_v14 }
 0x41a   :  { %3908 = vmatprep.subr.bf16.mxu1 %v5593_v14 }
 0x41b   :  { %v4892_v32 = vpop.eup %4240 }
 0x43b   :  { %v605_v28 = vpop.xlane.xlu1 %604 }
 0x43c   :  { %v609_v29 = vsub.f32 %v590_v5, %v605_v28 }
 0x43e   :  { %v616_v30 = vmul.f32 1.442695, %v609_v29 }
 0x43f   :  { %v734_v31 = vpop.permute.xlu1 %733 }
 0x440   :  { %4242 = vpow2.f32 %v616_v30  ;;  %3899 = vmatmul.mubr.msk.bf16.vlgmr.msra.gmra.mrb[8].mxu1 %vm499_vm1, %v734_v31 }
 0x441   :  { %3910 = vmatprep.mubr.msk.bf16.mxu1 %vm4611_vm0, %v5593_v14 }
 0x443   :  { %v787_v38 = vpop.permute.xlu1 %786 }
 0x44a   :  { %v4894_v33 = vpop.eup %4242 }
 0x44b   :  { %v635_v34 = vpack.c.bf16 %v4894_v33, %v4892_v32 }
 0x44d   :  { %3893 = vmatmul.mubr.msk.bf16.vlgmr.msra.gmra.mrb[16].mxu0 %vm499_vm1, %v635_v34 }
 0x44e   :  { %3903 = vmatpush3.bf16.xpose.msra.mxu0 %v795_v36  ;;  %3904 = vmatprep.mubr.msk.bf16.mxu0 %vm4611_vm0, %v5593_v14 }
 0x44f   :  { %3914 = vmatprep.subr.bf16.mxu0 %v5593_v14 }
 0x455   :  { %3905 = vmatmul.mubr.msk.bf16.vlgmr.msra.gmra.mrb[20].mxu0 %vm499_vm1, %v787_v38 }
 0x456   :  { %3916 = vmatprep.mubr.msk.bf16.mxu0 %vm4611_vm0, %v5593_v14 }
 0x4eb   :  { %v4906_v40 = vpop.f32.mrb[4].mxu1 }
 0x4ec   :  { %5596 = vst [vmem:[#allocation22_spill] sm:$0xff] %v4906_v40  ;;  %v3888_v41 = vpop.f32.mrb[5].mxu1 }
 0x4ed   :  { %v4908_v42 = vpop.f32.mrb[6].mxu1 }
 0x4ee   :  { %5597 = vst [vmem:[#allocation23_spill] sm:$0xff] %v4908_v42  ;;  %v3889_v43 = vpop.f32.mrb[7].mxu1 }
 0x513   :  { %v778_v44 = vpop.f32.mrb[8].mxu1 }
 0x514   :  { %v3900_v45 = vpop.f32.mrb[9].mxu1  ;;  %v838_v47 = vsel %vm499_vm1, %v778_v44, -inf }
 0x515   :  { %839 = vmax.xlane.f32.xlu0 %v838_v47  ;;  %v781_v48 = vpop.f32.mrb[10].mxu1 }
 0x516   :  { %v3901_v50 = vpop.f32.mrb[11].mxu1  ;;  %v841_v51 = vsel %vm499_vm1, %v781_v48, -inf }
 0x517   :  { %842 = vmax.xlane.f32.xlu1 %v841_v51 }
 0x520   :  { %v4912_v52 = vpop.f32.mrb[16].mxu0 }
 0x521   :  { %5598 = vst [vmem:[#allocation24_spill] sm:$0xff] %v4912_v52  ;;  %v3894_v53 = vpop.f32.mrb[17].mxu0 }
 0x522   :  { %v4914_v54 = vpop.f32.mrb[18].mxu0 }
 0x523   :  { %5599 = vst [vmem:[#allocation25_spill] sm:$0xff] %v4914_v54  ;;  %v3895_v55 = vpop.f32.mrb[19].mxu0 }
 0x528   :  { %929 = vrot.lane.b32.xlu1 %v4842_v46, %s4612_s4  ;;  %v831_v56 = vpop.f32.mrb[20].mxu0 }
 0x529   :  { %v3906_v59 = vpop.f32.mrb[21].mxu0  ;;  %v844_v60 = vsel %vm499_vm1, %v831_v56, -inf }
 0x52a   :  { %845 = vmax.xlane.f32.xlu0 %v844_v60  ;;  %v834_v61 = vpop.f32.mrb[22].mxu0 }
 0x52b   :  { %v3907_v62 = vpop.f32.mrb[23].mxu0  ;;  %v847_v63 = vsel %vm499_vm1, %v834_v61, -inf }
 0x52c   :  { %995 = vrot.lane.b32.xlu1 %v4836_v35, %s4613_s14 }
 0x52e   :  { %848 = vmax.xlane.f32.xlu0 %v847_v63 }
 0x530   :  { %1046 = vrot.lane.b32.xlu1 %v4849_v57, %s4613_s14 }
 0x534   :  { %1044 = vrot.lane.b32.xlu1 %v4851_v58, %s4613_s14 }
 0x544   :  { %881 = vrot.lane.b32.xlu0 %v4844_v49, %s4612_s4 }
 0x548   :  { %993 = vrot.lane.b32.xlu0 %v4838_v37, %s4613_s14 }
 0x5a2   :  { %v840_v0 = vpop.xlane.xlu0 %839 }
 0x5a3   :  { %v850_v1 = vsub.f32 %v778_v44, %v840_v0 }
 0x5a4   :  { %v843_v2 = vpop.xlane.xlu1 %842 }
 0x5a5   :  { %v854_v3 = vmul.f32 1.442695, %v850_v1  ;;  %v851_v4 = vsub.f32 %v781_v48, %v843_v2 }
 0x5a7   :  { %v856_v5 = vmul.f32 1.442695, %v851_v4  ;;  %4244 = vpow2.f32 %v854_v3 }
 0x5a8   :  { %v930_v6 = vpop.permute.xlu1 %929 }
 0x5a9   :  { %4246 = vpow2.f32 %v856_v5  ;;  %3915 = vmatpush3.bf16.msra.mxu0 %v930_v6 }
 0x5aa   :  { %3926 = vmatprep.subr.bf16.mxu0 %v5593_v14 }
 0x5ac   :  { %v996_v24 = vpop.permute.xlu1 %995 }
 0x5ad   :  { %v1001_v25 = vsel %vm499_vm1, %v996_v24, 0 }
 0x5b0   :  { %v1047_v28 = vpop.permute.xlu1 %1046 }
 0x5b1   :  { %v4931_v7 = vpop.eup %4244  ;;  %v1052_v30 = vsel %vm499_vm1, %v1047_v28, 0 }
 0x5b3   :  { %v4933_v8 = vpop.eup %4246 }
 0x5b4   :  { %v878_v9 = vpack.c.bf16 %v4933_v8, %v4931_v7  ;;  %v1045_v34 = vpop.permute.xlu1 %1044 }
 0x5b7   :  { %v846_v10 = vpop.xlane.xlu0 %845 }
 0x5b8   :  { %v852_v11 = vsub.f32 %v831_v56, %v846_v10 }
 0x5ba   :  { %v858_v12 = vmul.f32 1.442695, %v852_v11 }
 0x5bb   :  { %v849_v13 = vpop.xlane.xlu0 %848 }
 0x5bc   :  { %v853_v17 = vsub.f32 %v834_v61, %v849_v13  ;;  %4248 = vpow2.f32 %v858_v12 }
 0x5be   :  { %v860_v22 = vmul.f32 1.442695, %v853_v17 }
 0x5bf   :  { %v882_v23 = vpop.permute.xlu0 %881 }
 0x5c0   :  { %4250 = vpow2.f32 %v860_v22  ;;  %3909 = vmatpush3.bf16.msra.mxu1 %v882_v23 }
 0x5c1   :  { %3920 = vmatprep.subr.bf16.mxu1 %v5593_v14 }
 0x5c3   :  { %3911 = vmatmul.mubr.msk.bf16.vlgmr.msra.gmra.mrb[12].mxu1 %vm499_vm1, %v878_v9  ;;  %v994_v31 = vpop.permute.xlu0 %993 }
 0x5c4   :  { %3922 = vmatprep.mubr.msk.bf16.mxu1 %vm4611_vm0, %v5593_v14 }
 0x5c6   :  { %v4942_v26 = vpop.eup %4248 }
 0x5c9   :  { %3921 = vmatpush3.bf16.xpose.msra.mxu1 %v1001_v25 }
 0x5ca   :  { %v4944_v27 = vpop.eup %4250  ;;  %3932 = vmatprep.subr.bf16.mxu1 %v5593_v14 }
 0x5cb   :  { %v879_v29 = vpack.c.bf16 %v4944_v27, %v4942_v26 }
 0x5cd   :  { %3917 = vmatmul.mubr.msk.bf16.vlgmr.msra.gmra.mrb[24].mxu0 %vm499_vm1, %v879_v29 }
 0x5ce   :  { %3927 = vmatpush3.bf16.xpose.msra.mxu0 %v1052_v30  ;;  %3928 = vmatprep.mubr.msk.bf16.mxu0 %vm4611_vm0, %v5593_v14 }
 0x5cf   :  { %3938 = vmatprep.subr.bf16.mxu0 %v5593_v14 }
 0x5d0   :  { %3923 = vmatmul.mubr.msk.bf16.vlgmr.msra.gmra.mrb[16].mxu1 %vm499_vm1, %v994_v31 }
 0x5d1   :  { %3934 = vmatprep.mubr.msk.bf16.mxu1 %vm4611_vm0, %v5593_v14 }
 0x5d5   :  { %3929 = vmatmul.mubr.msk.bf16.vlgmr.msra.gmra.mrb[28].mxu0 %vm499_vm1, %v1045_v34 }
 0x5d6   :  { %3940 = vmatprep.mubr.msk.bf16.mxu0 %vm4611_vm0, %v5593_v14 }
 0x696   :  { %v4960_v36 = vpop.f32.mrb[12].mxu1 }
 0x697   :  { %v3912_v38 = vpop.f32.mrb[13].mxu1 }
 0x698   :  { %v4962_v41 = vpop.f32.mrb[14].mxu1 }
 0x699   :  { %v3913_v43 = vpop.f32.mrb[15].mxu1 }
 0x6a0   :  { %v4964_v44 = vpop.f32.mrb[24].mxu0 }
 0x6a1   :  { %v3918_v45 = vpop.f32.mrb[25].mxu0 }
 0x6a2   :  { %v4966_v47 = vpop.f32.mrb[26].mxu0 }
 0x6a3   :  { %v3919_v48 = vpop.f32.mrb[27].mxu0  ;;  %v1037_v50 = vpop.f32.mrb[16].mxu1 }
 0x6a4   :  { %v3924_v51 = vpop.f32.mrb[17].mxu1  ;;  %v1095_v53 = vsel %vm499_vm1, %v1037_v50, -inf }
 0x6a5   :  { %1096 = vmax.xlane.f32.xlu0 %v1095_v53  ;;  %v1040_v55 = vpop.f32.mrb[18].mxu1 }
 0x6a6   :  { %v3925_v56 = vpop.f32.mrb[19].mxu1  ;;  %v1098_v59 = vsel %vm499_vm1, %v1040_v55, -inf }
 0x6a7   :  { %1099 = vmax.xlane.f32.xlu1 %v1098_v59 }
 0x6a8   :  { %v1088_v60 = vpop.f32.mrb[28].mxu0 }
 0x6a9   :  { %v3930_v61 = vpop.f32.mrb[29].mxu0  ;;  %v1101_v62 = vsel %vm499_vm1, %v1088_v60, -inf }
 0x6aa   :  { %1102 = vmax.xlane.f32.xlu0 %v1101_v62  ;;  %v1091_v63 = vpop.f32.mrb[30].mxu0 }
 0x6ab   :  { %v3931_v0 = vpop.f32.mrb[31].mxu0  ;;  %v1104_v1 = vsel %vm499_vm1, %v1091_v63, -inf }
 0x6ae   :  { %1105 = vmax.xlane.f32.xlu0 %v1104_v1 }
 0x6b8   :  { %1184 = vrot.lane.b32.xlu1 %v4842_v46, %s4613_s14 }
 0x6bc   :  { %1250 = vrot.lane.b32.xlu1 %v4836_v35, %s4614_s15 }
 0x6c0   :  { %1301 = vrot.lane.b32.xlu1 %v4849_v57, %s4614_s15 }
 0x6c4   :  { %1299 = vrot.lane.b32.xlu1 %v4851_v58, %s4614_s15  ;;  %1137 = vrot.lane.b32.xlu0 %v4844_v49, %s4613_s14 }
 0x6c8   :  { %1248 = vrot.lane.b32.xlu0 %v4838_v37, %s4614_s15 }
 0x732   :  { %v1097_v2 = vpop.xlane.xlu0 %1096 }
 0x733   :  { %v1107_v3 = vsub.f32 %v1037_v50, %v1097_v2 }
 0x734   :  { %v1100_v4 = vpop.xlane.xlu1 %1099 }
 0x735   :  { %v1111_v5 = vmul.f32 1.442695, %v1107_v3  ;;  %v1108_v6 = vsub.f32 %v1040_v55, %v1100_v4 }
 0x737   :  { %v1113_v9 = vmul.f32 1.442695, %v1108_v6  ;;  %v1103_v10 = vpop.xlane.xlu0 %1102  ;;  %4252 = vpow2.f32 %v1111_v5 }
 0x738   :  { %v1109_v11 = vsub.f32 %v1088_v60, %v1103_v10  ;;  %v1185_v12 = vpop.permute.xlu1 %1184 }
 0x739   :  { %4254 = vpow2.f32 %v1113_v9  ;;  %3939 = vmatpush3.bf16.msra.mxu0 %v1185_v12 }
 0x73a   :  { %3950 = vmatprep.subr.bf16.mxu0 %v5593_v14  ;;  %v1115_v13 = vmul.f32 1.442695, %v1109_v11 }
 0x73b   :  { %v1106_v17 = vpop.xlane.xlu0 %1105 }
 0x73c   :  { %v1110_v22 = vsub.f32 %v1091_v63, %v1106_v17  ;;  %4256 = vpow2.f32 %v1115_v13  ;;  %v1251_v29 = vpop.permute.xlu1 %1250 }
 0x73d   :  { %v1256_v31 = vsel %vm499_vm1, %v1251_v29, 0 }
 0x73e   :  { %v1117_v23 = vmul.f32 1.442695, %v1110_v22 }
 0x73f   :  { %v1138_v24 = vpop.permute.xlu0 %1137 }
 0x740   :  { %4258 = vpow2.f32 %v1117_v23  ;;  %3933 = vmatpush3.bf16.msra.mxu1 %v1138_v24  ;;  %v1302_v43 = vpop.permute.xlu1 %1301 }
 0x741   :  { %3944 = vmatprep.subr.bf16.mxu1 %v5593_v14  ;;  %v4986_v25 = vpop.eup %4252  ;;  %v1307_v48 = vsel %vm499_vm1, %v1302_v43, 0 }
 0x743   :  { %v4988_v28 = vpop.eup %4254  ;;  %v1249_v50 = vpop.permute.xlu0 %1248 }
 0x744   :  { %v1135_v30 = vpack.c.bf16 %v4988_v28, %v4986_v25  ;;  %v1300_v51 = vpop.permute.xlu1 %1299 }
 0x746   :  { %3935 = vmatmul.mubr.msk.bf16.vlgmr.msra.gmra.mrb[20].mxu1 %vm499_vm1, %v1135_v30  ;;  %v4996_v34 = vpop.eup %4256 }
 0x747   :  { %3946 = vmatprep.mubr.msk.bf16.mxu1 %vm4611_vm0, %v5593_v14 }
 0x749   :  { %3945 = vmatpush3.bf16.xpose.msra.mxu1 %v1256_v31 }
 0x74a   :  { %v4998_v38 = vpop.eup %4258  ;;  %3956 = vmatprep.subr.bf16.mxu1 %v5593_v14 }
 0x74b   :  { %v1136_v45 = vpack.c.bf16 %v4998_v38, %v4996_v34 }
 0x74d   :  { %3941 = vmatmul.mubr.msk.bf16.vlgmr.msra.gmra.mrb[32].mxu0 %vm499_vm1, %v1136_v45 }
 0x74e   :  { %3951 = vmatpush3.bf16.xpose.msra.mxu0 %v1307_v48  ;;  %3952 = vmatprep.mubr.msk.bf16.mxu0 %vm4611_vm0, %v5593_v14 }
 0x74f   :  { %3962 = vmatprep.subr.bf16.mxu0 %v5593_v14 }
 0x750   :  { %3947 = vmatmul.mubr.msk.bf16.vlgmr.msra.gmra.mrb[24].mxu1 %vm499_vm1, %v1249_v50 }
 0x751   :  { %3958 = vmatprep.mubr.msk.bf16.mxu1 %vm4611_vm0, %v5593_v14 }
 0x755   :  { %3953 = vmatmul.mubr.msk.bf16.vlgmr.msra.gmra.mrb[36].mxu0 %vm499_vm1, %v1300_v51 }
 0x756   :  { %3964 = vmatprep.mubr.msk.bf16.mxu0 %vm4611_vm0, %v5593_v14 }
 0x819   :  { %v5014_v53 = vpop.f32.mrb[20].mxu1 }
 0x81a   :  { %v3936_v55 = vpop.f32.mrb[21].mxu1 }
 0x81b   :  { %v5016_v56 = vpop.f32.mrb[22].mxu1 }
 0x81c   :  { %v3937_v59 = vpop.f32.mrb[23].mxu1 }
 0x820   :  { %v5018_v60 = vpop.f32.mrb[32].mxu0 }
 0x821   :  { %v3942_v61 = vpop.f32.mrb[33].mxu0 }
 0x822   :  { %v5020_v62 = vpop.f32.mrb[34].mxu0 }
 0x823   :  { %v3943_v63 = vpop.f32.mrb[35].mxu0  ;;  %v1292_v0 = vpop.f32.mrb[24].mxu1 }
 0x824   :  { %v3948_v1 = vpop.f32.mrb[25].mxu1  ;;  %v1350_v2 = vsel %vm499_vm1, %v1292_v0, -inf }
 0x825   :  { %1351 = vmax.xlane.f32.xlu0 %v1350_v2  ;;  %v1295_v3 = vpop.f32.mrb[26].mxu1 }
 0x826   :  { %v3949_v4 = vpop.f32.mrb[27].mxu1  ;;  %v1353_v5 = vsel %vm499_vm1, %v1295_v3, -inf }
 0x827   :  { %1354 = vmax.xlane.f32.xlu1 %v1353_v5 }
 0x828   :  { %v1343_v6 = vpop.f32.mrb[36].mxu0 }
 0x829   :  { %v3954_v9 = vpop.f32.mrb[37].mxu0  ;;  %v1356_v10 = vsel %vm499_vm1, %v1343_v6, -inf }
 0x82a   :  { %1357 = vmax.xlane.f32.xlu0 %v1356_v10  ;;  %v1346_v11 = vpop.f32.mrb[38].mxu0 }
 0x82b   :  { %v3955_v12 = vpop.f32.mrb[39].mxu0  ;;  %v1359_v13 = vsel %vm499_vm1, %v1346_v11, -inf }
 0x82e   :  { %1360 = vmax.xlane.f32.xlu0 %v1359_v13 }
 0x838   :  { %1439 = vrot.lane.b32.xlu1 %v4842_v46, %s4614_s15 }
 0x83c   :  { %1505 = vrot.lane.b32.xlu1 %v4836_v35, %s4606_s2 }
 0x840   :  { %1556 = vrot.lane.b32.xlu1 %v4849_v57, %s4606_s2 }
 0x844   :  { %1554 = vrot.lane.b32.xlu1 %v4851_v58, %s4606_s2  ;;  %1392 = vrot.lane.b32.xlu0 %v4844_v49, %s4614_s15 }
 0x848   :  { %1503 = vrot.lane.b32.xlu0 %v4838_v37, %s4606_s2 }
 0x8b2   :  { %v1352_v17 = vpop.xlane.xlu0 %1351 }
 0x8b3   :  { %v1362_v22 = vsub.f32 %v1292_v0, %v1352_v17 }
 0x8b4   :  { %v1355_v23 = vpop.xlane.xlu1 %1354 }
 0x8b5   :  { %v1366_v24 = vmul.f32 1.442695, %v1362_v22  ;;  %v1363_v29 = vsub.f32 %v1295_v3, %v1355_v23 }
 0x8b7   :  { %v1368_v30 = vmul.f32 1.442695, %v1363_v29  ;;  %v1358_v31 = vpop.xlane.xlu0 %1357  ;;  %4260 = vpow2.f32 %v1366_v24 }
 0x8b8   :  { %v1364_v43 = vsub.f32 %v1343_v6, %v1358_v31  ;;  %v1440_v45 = vpop.permute.xlu1 %1439 }
 0x8b9   :  { %4262 = vpow2.f32 %v1368_v30  ;;  %3963 = vmatpush3.bf16.msra.mxu0 %v1440_v45 }
 0x8ba   :  { %3974 = vmatprep.subr.bf16.mxu0 %v5593_v14  ;;  %v1370_v48 = vmul.f32 1.442695, %v1364_v43 }
 0x8bb   :  { %v1361_v50 = vpop.xlane.xlu0 %1360 }
 0x8bc   :  { %v1365_v51 = vsub.f32 %v1346_v11, %v1361_v50  ;;  %4264 = vpow2.f32 %v1370_v48  ;;  %v1506_v0 = vpop.permute.xlu1 %1505 }
 0x8bd   :  { %v1511_v2 = vsel %vm499_vm1, %v1506_v0, 0 }
 0x8be   :  { %v1372_v55 = vmul.f32 1.442695, %v1365_v51 }
 0x8bf   :  { %v1393_v59 = vpop.permute.xlu0 %1392 }
 0x8c0   :  { %4266 = vpow2.f32 %v1372_v55  ;;  %3957 = vmatpush3.bf16.msra.mxu1 %v1393_v59  ;;  %v1557_v5 = vpop.permute.xlu1 %1556 }
 0x8c1   :  { %3968 = vmatprep.subr.bf16.mxu1 %v5593_v14  ;;  %v5040_v61 = vpop.eup %4260  ;;  %v1562_v9 = vsel %vm499_vm1, %v1557_v5, 0 }
 0x8c3   :  { %v5042_v63 = vpop.eup %4262  ;;  %v1504_v10 = vpop.permute.xlu0 %1503 }
 0x8c4   :  { %v1390_v1 = vpack.c.bf16 %v5042_v63, %v5040_v61  ;;  %v1555_v11 = vpop.permute.xlu1 %1554 }
 0x8c6   :  { %3959 = vmatmul.mubr.msk.bf16.vlgmr.msra.gmra.mrb[28].mxu1 %vm499_vm1, %v1390_v1  ;;  %v5050_v3 = vpop.eup %4264 }
 0x8c7   :  { %3970 = vmatprep.mubr.msk.bf16.mxu1 %vm4611_vm0, %v5593_v14 }
 0x8c9   :  { %3969 = vmatpush3.bf16.xpose.msra.mxu1 %v1511_v2 }
 0x8ca   :  { %v5052_v4 = vpop.eup %4266  ;;  %3980 = vmatprep.subr.bf16.mxu1 %v5593_v14 }
 0x8cb   :  { %v1391_v6 = vpack.c.bf16 %v5052_v4, %v5050_v3 }
 0x8cd   :  { %3965 = vmatmul.mubr.msk.bf16.vlgmr.msra.gmra.mrb[40].mxu0 %vm499_vm1, %v1391_v6 }
 0x8ce   :  { %3975 = vmatpush3.bf16.xpose.msra.mxu0 %v1562_v9  ;;  %3976 = vmatprep.mubr.msk.bf16.mxu0 %vm4611_vm0, %v5593_v14 }
 0x8cf   :  { %3986 = vmatprep.subr.bf16.mxu0 %v5593_v14 }
 0x8d0   :  { %3971 = vmatmul.mubr.msk.bf16.vlgmr.msra.gmra.mrb[32].mxu1 %vm499_vm1, %v1504_v10 }
 0x8d1   :  { %3982 = vmatprep.mubr.msk.bf16.mxu1 %vm4611_vm0, %v5593_v14 }
 0x8d5   :  { %3977 = vmatmul.mubr.msk.bf16.vlgmr.msra.gmra.mrb[44].mxu0 %vm499_vm1, %v1555_v11 }
 0x8d6   :  { %3988 = vmatprep.mubr.msk.bf16.mxu0 %vm4611_vm0, %v5593_v14 }
 0x999   :  { %v5068_v12 = vpop.f32.mrb[28].mxu1 }
 0x99a   :  { %v3960_v13 = vpop.f32.mrb[29].mxu1 }
 0x99b   :  { %v5070_v17 = vpop.f32.mrb[30].mxu1 }
 0x99c   :  { %v3961_v22 = vpop.f32.mrb[31].mxu1 }
 0x9a0   :  { %v5072_v23 = vpop.f32.mrb[40].mxu0 }
 0x9a1   :  { %v3966_v24 = vpop.f32.mrb[41].mxu0 }
 0x9a2   :  { %v5074_v29 = vpop.f32.mrb[42].mxu0 }
 0x9a3   :  { %v3967_v30 = vpop.f32.mrb[43].mxu0  ;;  %v1547_v31 = vpop.f32.mrb[32].mxu1 }
 0x9a4   :  { %v3972_v43 = vpop.f32.mrb[33].mxu1  ;;  %v1605_v45 = vsel %vm499_vm1, %v1547_v31, -inf }
 0x9a5   :  { %1606 = vmax.xlane.f32.xlu0 %v1605_v45  ;;  %v1550_v48 = vpop.f32.mrb[34].mxu1 }
 0x9a6   :  { %v3973_v50 = vpop.f32.mrb[35].mxu1  ;;  %v1608_v51 = vsel %vm499_vm1, %v1550_v48, -inf }
 0x9a7   :  { %1609 = vmax.xlane.f32.xlu1 %v1608_v51 }
 0x9a8   :  { %v1598_v55 = vpop.f32.mrb[44].mxu0 }
 0x9a9   :  { %v3978_v59 = vpop.f32.mrb[45].mxu0  ;;  %v1611_v0 = vsel %vm499_vm1, %v1598_v55, -inf }
 0x9aa   :  { %1612 = vmax.xlane.f32.xlu0 %v1611_v0  ;;  %v1601_v1 = vpop.f32.mrb[46].mxu0 }
 0x9ab   :  { %v3979_v2 = vpop.f32.mrb[47].mxu0  ;;  %v1614_v5 = vsel %vm499_vm1, %v1601_v1, -inf }
 0x9ae   :  { %1615 = vmax.xlane.f32.xlu0 %v1614_v5 }
 0x9b8   :  { %1694 = vrot.lane.b32.xlu1 %v4842_v46, %s4606_s2 }
 0x9bc   :  { %1760 = vrot.lane.b32.xlu1 %v4836_v35, %s4615_s26 }
 0x9c0   :  { %1811 = vrot.lane.b32.xlu1 %v4849_v57, %s4615_s26 }
 0x9c4   :  { %1809 = vrot.lane.b32.xlu1 %v4851_v58, %s4615_s26  ;;  %1647 = vrot.lane.b32.xlu0 %v4844_v49, %s4606_s2 }
 0x9c8   :  { %1758 = vrot.lane.b32.xlu0 %v4838_v37, %s4615_s26 }
 0xa32   :  { %v1607_v6 = vpop.xlane.xlu0 %1606 }
 0xa33   :  { %v1617_v9 = vsub.f32 %v1547_v31, %v1607_v6 }
 0xa34   :  { %v1610_v10 = vpop.xlane.xlu1 %1609 }
 0xa35   :  { %v1621_v11 = vmul.f32 1.442695, %v1617_v9  ;;  %v1618_v13 = vsub.f32 %v1550_v48, %v1610_v10 }
 0xa37   :  { %v1623_v22 = vmul.f32 1.442695, %v1618_v13  ;;  %v1613_v24 = vpop.xlane.xlu0 %1612  ;;  %4268 = vpow2.f32 %v1621_v11 }
 0xa38   :  { %v1619_v30 = vsub.f32 %v1598_v55, %v1613_v24  ;;  %v1695_v43 = vpop.permute.xlu1 %1694 }
 0xa39   :  { %4270 = vpow2.f32 %v1623_v22  ;;  %3987 = vmatpush3.bf16.msra.mxu0 %v1695_v43 }
 0xa3a   :  { %3998 = vmatprep.subr.bf16.mxu0 %v5593_v14  ;;  %v1625_v45 = vmul.f32 1.442695, %v1619_v30 }
 0xa3b   :  { %v1616_v50 = vpop.xlane.xlu0 %1615 }
 0xa3c   :  { %v1620_v51 = vsub.f32 %v1601_v1, %v1616_v50  ;;  %4272 = vpow2.f32 %v1625_v45  ;;  %v1761_v55 = vpop.permute.xlu1 %1760 }
 0xa3d   :  { %v1766_v1 = vsel %vm499_vm1, %v1761_v55, 0 }
 0xa3e   :  { %v1627_v59 = vmul.f32 1.442695, %v1620_v51 }
 0xa3f   :  { %v1648_v0 = vpop.permute.xlu0 %1647 }
 0xa40   :  { %4274 = vpow2.f32 %v1627_v59  ;;  %3981 = vmatpush3.bf16.msra.mxu1 %v1648_v0  ;;  %v1812_v9 = vpop.permute.xlu1 %1811 }
 0xa41   :  { %3992 = vmatprep.subr.bf16.mxu1 %v5593_v14  ;;  %v5094_v31 = vpop.eup %4268  ;;  %v1817_v11 = vsel %vm499_vm1, %v1812_v9, 0 }
 0xa43   :  { %v5096_v48 = vpop.eup %4270  ;;  %v1759_v13 = vpop.permute.xlu0 %1758 }
 0xa44   :  { %v1645_v2 = vpack.c.bf16 %v5096_v48, %v5094_v31  ;;  %v1810_v22 = vpop.permute.xlu1 %1809 }
 0xa46   :  { %3983 = vmatmul.mubr.msk.bf16.vlgmr.msra.gmra.mrb[36].mxu1 %vm499_vm1, %v1645_v2  ;;  %v5104_v5 = vpop.eup %4272 }
 0xa47   :  { %3994 = vmatprep.mubr.msk.bf16.mxu1 %vm4611_vm0, %v5593_v14 }
 0xa49   :  { %3993 = vmatpush3.bf16.xpose.msra.mxu1 %v1766_v1 }
 0xa4a   :  { %v5106_v6 = vpop.eup %4274  ;;  %4004 = vmatprep.subr.bf16.mxu1 %v5593_v14 }
 0xa4b   :  { %v1646_v10 = vpack.c.bf16 %v5106_v6, %v5104_v5 }
 0xa4d   :  { %3989 = vmatmul.mubr.msk.bf16.vlgmr.msra.gmra.mrb[48].mxu0 %vm499_vm1, %v1646_v10 }
 0xa4e   :  { %3999 = vmatpush3.bf16.xpose.msra.mxu0 %v1817_v11  ;;  %4000 = vmatprep.mubr.msk.bf16.mxu0 %vm4611_vm0, %v5593_v14 }
 0xa4f   :  { %4010 = vmatprep.subr.bf16.mxu0 %v5593_v14 }
 0xa50   :  { %3995 = vmatmul.mubr.msk.bf16.vlgmr.msra.gmra.mrb[40].mxu1 %vm499_vm1, %v1759_v13 }
 0xa51   :  { %4006 = vmatprep.mubr.msk.bf16.mxu1 %vm4611_vm0, %v5593_v14 }
 0xa55   :  { %4001 = vmatmul.mubr.msk.bf16.vlgmr.msra.gmra.mrb[52].mxu0 %vm499_vm1, %v1810_v22 }
 0xa56   :  { %4012 = vmatprep.mubr.msk.bf16.mxu0 %vm4611_vm0, %v5593_v14 }
 0xb19   :  { %v5122_v24 = vpop.f32.mrb[36].mxu1 }
 0xb1a   :  { %v3984_v30 = vpop.f32.mrb[37].mxu1 }
 0xb1b   :  { %v5124_v43 = vpop.f32.mrb[38].mxu1 }
 0xb1c   :  { %v3985_v45 = vpop.f32.mrb[39].mxu1 }
 0xb20   :  { %v5126_v50 = vpop.f32.mrb[48].mxu0 }
 0xb21   :  { %v3990_v51 = vpop.f32.mrb[49].mxu0 }
 0xb22   :  { %v5128_v59 = vpop.f32.mrb[50].mxu0 }
 0xb23   :  { %v3991_v0 = vpop.f32.mrb[51].mxu0  ;;  %v1802_v55 = vpop.f32.mrb[40].mxu1 }
 0xb24   :  { %v3996_v2 = vpop.f32.mrb[41].mxu1  ;;  %v1860_v1 = vsel %vm499_vm1, %v1802_v55, -inf }
 0xb25   :  { %1861 = vmax.xlane.f32.xlu0 %v1860_v1  ;;  %v1805_v9 = vpop.f32.mrb[42].mxu1 }
 0xb26   :  { %v3997_v10 = vpop.f32.mrb[43].mxu1  ;;  %v1863_v11 = vsel %vm499_vm1, %v1805_v9, -inf }
 0xb27   :  { %1864 = vmax.xlane.f32.xlu1 %v1863_v11 }
 0xb28   :  { %v1853_v13 = vpop.f32.mrb[52].mxu0 }
 0xb29   :  { %v4002_v22 = vpop.f32.mrb[53].mxu0  ;;  %v1866_v30 = vsel %vm499_vm1, %v1853_v13, -inf }
 0xb2a   :  { %1867 = vmax.xlane.f32.xlu0 %v1866_v30  ;;  %v1856_v45 = vpop.f32.mrb[54].mxu0 }
 0xb2b   :  { %v4003_v51 = vpop.f32.mrb[55].mxu0  ;;  %v1869_v18 = vsel %vm499_vm1, %v1856_v45, -inf }
 0xb2e   :  { %1870 = vmax.xlane.f32.xlu0 %v1869_v18 }
 0xb38   :  { %1949 = vrot.lane.b32.xlu1 %v4842_v46, %s4615_s26 }
 0xb3c   :  { %2015 = vrot.lane.b32.xlu1 %v4836_v35, %s4616_s29 }
 0xb40   :  { %2066 = vrot.lane.b32.xlu1 %v4849_v57, %s4616_s29 }
 0xb44   :  { %2064 = vrot.lane.b32.xlu1 %v4851_v58, %s4616_s29  ;;  %1902 = vrot.lane.b32.xlu0 %v4844_v49, %s4615_s26 }
 0xb48   :  { %2013 = vrot.lane.b32.xlu0 %v4838_v37, %s4616_s29 }
 0xbb2   :  { %v1862_v18 = vpop.xlane.xlu0 %1861 }
 0xbb3   :  { %v1872_v0 = vsub.f32 %v1802_v55, %v1862_v18 }
 0xbb4   :  { %v1865_v2 = vpop.xlane.xlu1 %1864 }
 0xbb5   :  { %v1876_v1 = vmul.f32 1.442695, %v1872_v0  ;;  %v1873_v10 = vsub.f32 %v1805_v9, %v1865_v2 }
 0xbb7   :  { %v1878_v11 = vmul.f32 1.442695, %v1873_v10  ;;  %v1868_v22 = vpop.xlane.xlu0 %1867  ;;  %4276 = vpow2.f32 %v1876_v1 }
 0xbb8   :  { %v1874_v30 = vsub.f32 %v1853_v13, %v1868_v22  ;;  %v1950_v51 = vpop.permute.xlu1 %1949 }
 0xbb9   :  { %4278 = vpow2.f32 %v1878_v11  ;;  %4011 = vmatpush3.bf16.msra.mxu0 %v1950_v51 }
 0xbba   :  { %4022 = vmatprep.subr.bf16.mxu0 %v5593_v14  ;;  %v1880_v20 = vmul.f32 1.442695, %v1874_v30 }
 0xbbb   :  { %v1871_v16 = vpop.xlane.xlu0 %1870 }
 0xbbc   :  { %v1875_v39 = vsub.f32 %v1856_v45, %v1871_v16  ;;  %4280 = vpow2.f32 %v1880_v20  ;;  %v2016_v13 = vpop.permute.xlu1 %2015 }
 0xbbe   :  { %v1882_v15 = vmul.f32 1.442695, %v1875_v39  ;;  %v2021_v39 = vsel %vm499_vm1, %v2016_v13, 0 }
 0xbbf   :  { %v1903_v54 = vpop.permute.xlu0 %1902 }
 0xbc0   :  { %4282 = vpow2.f32 %v1882_v15  ;;  %4005 = vmatpush3.bf16.msra.mxu1 %v1903_v54  ;;  %v2067_v20 = vpop.permute.xlu1 %2066 }
 0xbc1   :  { %4016 = vmatprep.subr.bf16.mxu1 %v5593_v14  ;;  %v5148_v55 = vpop.eup %4276  ;;  %v2072_v45 = vsel %vm499_vm1, %v2067_v20, 0 }
 0xbc3   :  { %v5150_v9 = vpop.eup %4278  ;;  %v2014_v0 = vpop.permute.xlu0 %2013 }
 0xbc4   :  { %v1900_v18 = vpack.c.bf16 %v5150_v9, %v5148_v55  ;;  %v2065_v2 = vpop.permute.xlu1 %2064 }
 0xbc6   :  { %4007 = vmatmul.mubr.msk.bf16.vlgmr.msra.gmra.mrb[44].mxu1 %vm499_vm1, %v1900_v18  ;;  %v5158_v16 = vpop.eup %4280 }
 0xbc7   :  { %4018 = vmatprep.mubr.msk.bf16.mxu1 %vm4611_vm0, %v5593_v14 }
 0xbc9   :  { %4017 = vmatpush3.bf16.xpose.msra.mxu1 %v2021_v39 }
 0xbca   :  { %v5160_v15 = vpop.eup %4282  ;;  %4028 = vmatprep.subr.bf16.mxu1 %v5593_v14 }
 0xbcb   :  { %v1901_v54 = vpack.c.bf16 %v5160_v15, %v5158_v16 }
 0xbcd   :  { %4013 = vmatmul.mubr.msk.bf16.vlgmr.msra.gmra.mrb[56].mxu0 %vm499_vm1, %v1901_v54 }
 0xbce   :  { %4023 = vmatpush3.bf16.xpose.msra.mxu0 %v2072_v45  ;;  %4024 = vmatprep.mubr.msk.bf16.mxu0 %vm4611_vm0, %v5593_v14 }
 0xbcf   :  { %4034 = vmatprep.subr.bf16.mxu0 %v5593_v14 }
 0xbd0   :  { %4019 = vmatmul.mubr.msk.bf16.vlgmr.msra.gmra.mrb[48].mxu1 %vm499_vm1, %v2014_v0 }
 0xbd1   :  { %4030 = vmatprep.mubr.msk.bf16.mxu1 %vm4611_vm0, %v5593_v14 }
 0xbd5   :  { %4025 = vmatmul.mubr.msk.bf16.vlgmr.msra.gmra.mrb[60].mxu0 %vm499_vm1, %v2065_v2 }
 0xbd6   :  { %4036 = vmatprep.mubr.msk.bf16.mxu0 %vm4611_vm0, %v5593_v14 }
 0xc99   :  { %v5176_v1 = vpop.f32.mrb[44].mxu1 }
 0xc9a   :  { %v4008_v10 = vpop.f32.mrb[45].mxu1 }
 0xc9b   :  { %v5178_v11 = vpop.f32.mrb[46].mxu1 }
 0xc9c   :  { %v4009_v22 = vpop.f32.mrb[47].mxu1 }
 0xca0   :  { %v5180_v30 = vpop.f32.mrb[56].mxu0 }
 0xca1   :  { %v4014_v51 = vpop.f32.mrb[57].mxu0 }
 0xca2   :  { %v5182_v13 = vpop.f32.mrb[58].mxu0 }
 0xca3   :  { %5600 = vst [vmem:[#allocation26_spill] sm:$0xff] %v5182_v13  ;;  %v4015_v18 = vpop.f32.mrb[59].mxu0  ;;  %v2057_v39 = vpop.f32.mrb[48].mxu1 }
 0xca4   :  { %v4020_v20 = vpop.f32.mrb[49].mxu1  ;;  %v2115_v54 = vsel %vm499_vm1, %v2057_v39, -inf }
 0xca5   :  { %2116 = vmax.xlane.f32.xlu0 %v2115_v54  ;;  %v2060_v45 = vpop.f32.mrb[50].mxu1 }
 0xca6   :  { %v4021_v0 = vpop.f32.mrb[51].mxu1  ;;  %v2118_v2 = vsel %vm499_vm1, %v2060_v45, -inf }
 0xca7   :  { %2119 = vmax.xlane.f32.xlu1 %v2118_v2 }
 0xca8   :  { %v2108_v10 = vpop.f32.mrb[60].mxu0 }
 0xca9   :  { %v4026_v14 = vpop.f32.mrb[61].mxu0  ;;  %v2121_v22 = vsel %vm499_vm1, %v2108_v10, -inf }
 0xcaa   :  { %2122 = vmax.xlane.f32.xlu0 %v2121_v22  ;;  %v2111_v52 = vpop.f32.mrb[62].mxu0 }
 0xcab   :  { %v4027_v51 = vpop.f32.mrb[63].mxu0  ;;  %v2124_v42 = vsel %vm499_vm1, %v2111_v52, -inf }
 0xcae   :  { %2125 = vmax.xlane.f32.xlu0 %v2124_v42 }
 0xcb8   :  { %2204 = vrot.lane.b32.xlu1 %v4842_v46, %s4616_s29 }
 0xcbc   :  { %2270 = vrot.lane.b32.xlu1 %v4836_v35, %s4600_s28 }
 0xcc0   :  { %2321 = vrot.lane.b32.xlu1 %v4849_v57, %s4600_s28  ;;  %v5601_v57 = vmov 0.0  }
 0xcc4   :  { %2319 = vrot.lane.b32.xlu1 %v4851_v58, %s4600_s28  ;;  %2157 = vrot.lane.b32.xlu0 %v4844_v49, %s4616_s29 }
 0xcc8   :  { %2268 = vrot.lane.b32.xlu0 %v4838_v37, %s4600_s28 }
 0xd32   :  { %v2117_v14 = vpop.xlane.xlu0 %2116 }
 0xd33   :  { %v2127_v42 = vsub.f32 %v2057_v39, %v2117_v14 }
 0xd34   :  { %v2120_v18 = vpop.xlane.xlu1 %2119 }
 0xd35   :  { %v2131_v20 = vmul.f32 1.442695, %v2127_v42  ;;  %v2128_v54 = vsub.f32 %v2060_v45, %v2120_v18 }
 0xd37   :  { %v2133_v0 = vmul.f32 1.442695, %v2128_v54  ;;  %v2123_v2 = vpop.xlane.xlu0 %2122  ;;  %4284 = vpow2.f32 %v2131_v20 }
 0xd38   :  { %v2129_v35 = vsub.f32 %v2108_v10, %v2123_v2  ;;  %v2205_v22 = vpop.permute.xlu1 %2204 }
 0xd39   :  { %4286 = vpow2.f32 %v2133_v0  ;;  %4035 = vmatpush3.bf16.msra.mxu0 %v2205_v22 }
 0xd3a   :  { %4046 = vmatprep.subr.bf16.mxu0 %v5601_v57  ;;  %v2135_v58 = vmul.f32 1.442695, %v2129_v35 }
 0xd3b   :  { %v2126_v51 = vpop.xlane.xlu0 %2125 }
 0xd3c   :  { %v2130_v40 = vsub.f32 %v2111_v52, %v2126_v51  ;;  %4288 = vpow2.f32 %v2135_v58  ;;  %v2271_v10 = vpop.permute.xlu1 %2270 }
 0xd3e   :  { %v2137_v13 = vmul.f32 1.442695, %v2130_v40  ;;  %v2276_v40 = vsel %vm499_vm1, %v2271_v10, 0 }
 0xd3f   :  { %v2158_v37 = vpop.permute.xlu0 %2157 }
 0xd40   :  { %4290 = vpow2.f32 %v2137_v13  ;;  %4029 = vmatpush3.bf16.msra.mxu1 %v2158_v37  ;;  %v2322_v42 = vpop.permute.xlu1 %2321 }
 0xd41   :  { %4040 = vmatprep.subr.bf16.mxu1 %v5601_v57  ;;  %v5202_v39 = vpop.eup %4284  ;;  %v2327_v20 = vsel %vm499_vm1, %v2322_v42, 0 }
 0xd43   :  { %v5204_v45 = vpop.eup %4286  ;;  %v2269_v54 = vpop.permute.xlu0 %2268 }
 0xd44   :  { %v2155_v14 = vpack.c.bf16 %v5204_v45, %v5202_v39  ;;  %v2320_v0 = vpop.permute.xlu1 %2319 }
 0xd46   :  { %4031 = vmatmul.mubr.msk.bf16.vlgmr.msra.gmra.mrb[52].mxu1 %vm499_vm1, %v2155_v14  ;;  %v5212_v52 = vpop.eup %4288 }
 0xd47   :  { %4042 = vmatprep.mubr.msk.bf16.mxu1 %vm4611_vm0, %v5601_v57 }
 0xd49   :  { %4041 = vmatpush3.bf16.xpose.msra.mxu1 %v2276_v40 }
 0xd4a   :  { %v5214_v13 = vpop.eup %4290  ;;  %4052 = vmatprep.subr.bf16.mxu1 %v5601_v57 }
 0xd4b   :  { %v2156_v18 = vpack.c.bf16 %v5214_v13, %v5212_v52 }
 0xd4d   :  { %4037 = vmatmul.mubr.msk.bf16.vlgmr.msra.gmra.mrb[64].mxu0 %vm499_vm1, %v2156_v18 }
 0xd4e   :  { %4047 = vmatpush3.bf16.xpose.msra.mxu0 %v2327_v20  ;;  %4048 = vmatprep.mubr.msk.bf16.mxu0 %vm4611_vm0, %v5601_v57 }
 0xd4f   :  { %4058 = vmatprep.subr.bf16.mxu0 %v5601_v57 }
 0xd50   :  { %4043 = vmatmul.mubr.msk.bf16.vlgmr.msra.gmra.mrb[56].mxu1 %vm499_vm1, %v2269_v54 }
 0xd51   :  { %4054 = vmatprep.mubr.msk.bf16.mxu1 %vm4611_vm0, %v5601_v57 }
 0xd55   :  { %4049 = vmatmul.mubr.msk.bf16.vlgmr.msra.gmra.mrb[68].mxu0 %vm499_vm1, %v2320_v0 }
 0xd56   :  { %4060 = vmatprep.mubr.msk.bf16.mxu0 %vm4611_vm0, %v5601_v57 }
 0xe19   :  { %v5230_v2 = vpop.f32.mrb[52].mxu1 }
 0xe1a   :  { %v4032_v35 = vpop.f32.mrb[53].mxu1 }
 0xe1b   :  { %v5232_v22 = vpop.f32.mrb[54].mxu1 }
 0xe1c   :  { %v4033_v58 = vpop.f32.mrb[55].mxu1 }
 0xe20   :  { %v5234_v51 = vpop.f32.mrb[64].mxu0 }
 0xe21   :  { %v4038_v37 = vpop.f32.mrb[65].mxu0 }
 0xe22   :  { %v5236_v10 = vpop.f32.mrb[66].mxu0 }
 0xe23   :  { %v4039_v14 = vpop.f32.mrb[67].mxu0  ;;  %v5238_v40 = vpop.f32.mrb[56].mxu1 }
 0xe24   :  { %v4044_v42 = vpop.f32.mrb[57].mxu1  ;;  %v2370_v18 = vsel %vm499_vm1, %v5238_v40, -inf }
 0xe25   :  { %2371 = vmax.xlane.f32.xlu0 %v2370_v18  ;;  %v5242_v57 = vpop.f32.mrb[58].mxu1  ;;  %v862_v18 = vsel %vm499_vm1, %v4931_v7, 0.0  ;;  %v1119_v7 = vsel %vm499_vm1, %v4986_v25, 0.0  ;;  %v1632_v25 = vsel %vm499_vm1, %v5096_v48, 0.0  ;;  %v1884_v48 = vsel %vm499_vm1, %v5148_v55, 0.0 }
 0xe26   :  { %v4045_v20 = vpop.f32.mrb[59].mxu1  ;;  %v2373_v54 = vsel %vm499_vm1, %v5242_v57, -inf  ;;  %v2145_v55 = vsel %vm499_vm1, %v5212_v52, 0.0 }
 0xe27   :  { %2374 = vmax.xlane.f32.xlu1 %v2373_v54  ;;  %v871_v20 = vsel %vm499_vm1, %v4944_v27, 0.0  ;;  %v865_v54 = vsel %vm499_vm1, %v4933_v8, 0.0  ;;  %v1377_v8 = vsel %vm499_vm1, %v5042_v63, 0.0  ;;  %v1125_v27 = vsel %vm499_vm1, %v4996_v34, 0.0 }
 0xe28   :  { %v5246_v0 = vpop.f32.mrb[68].mxu0  ;;  %v1638_v34 = vsel %vm499_vm1, %v5106_v6, 0.0  ;;  %v1629_v63 = vsel %vm499_vm1, %v5094_v31, 0.0  ;;  %v2142_v31 = vsel %vm499_vm1, %v5204_v45, 0.0  ;;  %v1890_v6 = vsel %vm499_vm1, %v5158_v16, 0.0 }
 0xe29   :  { %v4050_v35 = vpop.f32.mrb[69].mxu0  ;;  %v2376_v58 = vsel %vm499_vm1, %v5246_v0, -inf }
 0xe2a   :  { %2377 = vmax.xlane.f32.xlu0 %v2376_v58  ;;  %v5250_v37 = vpop.f32.mrb[70].mxu0  ;;  %v1122_v35 = vsel %vm499_vm1, %v4988_v28, 0.0  ;;  %v1374_v28 = vsel %vm499_vm1, %v5040_v61, 0.0  ;;  %v1887_v61 = vsel %vm499_vm1, %v5150_v9, 0.0  ;;  %v2139_v9 = vsel %vm499_vm1, %v5202_v39, 0.0 }
 0xe2b   :  { %v4051_v14 = vpop.f32.mrb[71].mxu0  ;;  %v2379_v42 = vsel %vm499_vm1, %v5250_v37, -inf }
 0xe2e   :  { %2380 = vmax.xlane.f32.xlu0 %v2379_v42 }
 0xe38   :  { %2459 = vrot.lane.b32.xlu1 %v4842_v46, %s4600_s28  ;;  %v868_v46 = vsel %vm499_vm1, %v4942_v26, 0.0  ;;  %v1383_v26 = vsel %vm499_vm1, %v5052_v4, 0.0  ;;  %v1635_v4 = vsel %vm499_vm1, %v5104_v5, 0.0  ;;  %v2148_v5 = vsel %vm499_vm1, %v5214_v13, 0.0 }
 0xe44   :  { %2412 = vrot.lane.b32.xlu0 %v4844_v49, %s4600_s28  ;;  %v1128_v49 = vsel %vm499_vm1, %v4998_v38, 0.0  ;;  %v1380_v38 = vsel %vm499_vm1, %v5050_v3, 0.0  ;;  %v1893_v3 = vsel %vm499_vm1, %v5160_v15, 0.0 }
 0xe5c   :  { %863 = vadd.xlane.f32.xlu1 %v862_v18 }
 0xe60   :  { %872 = vadd.xlane.f32.xlu1 %v871_v20 }
 0xe63   :  { %866 = vadd.xlane.f32.xlu0 %v865_v54 }
 0xe64   :  { %1123 = vadd.xlane.f32.xlu1 %v1122_v35 }
 0xe67   :  { %869 = vadd.xlane.f32.xlu0 %v868_v46 }
 0xe68   :  { %1129 = vadd.xlane.f32.xlu1 %v1128_v49 }
 0xe6b   :  { %1120 = vadd.xlane.f32.xlu0 %v1119_v7 }
 0xe6c   :  { %1378 = vadd.xlane.f32.xlu1 %v1377_v8 }
 0xe6f   :  { %1126 = vadd.xlane.f32.xlu0 %v1125_v27 }
 0xe70   :  { %1384 = vadd.xlane.f32.xlu1 %v1383_v26  ;;  %v618_v26 = vsel %vm499_vm1, %v4878_v19, 0.0  ;;  %v627_v19 = vsel %vm499_vm1, %v4894_v33, 0.0 }
 0xe73   :  { %1375 = vadd.xlane.f32.xlu0 %v1374_v28 }
 0xe74   :  { %1633 = vadd.xlane.f32.xlu1 %v1632_v25 }
 0xe77   :  { %1381 = vadd.xlane.f32.xlu0 %v1380_v38  ;;  %v5602_v38 = vmov 0  }
 0xe78   :  { %1639 = vadd.xlane.f32.xlu1 %v1638_v34  ;;  %v624_v34 = vsel %vm499_vm1, %v4892_v32, 0.0 }
 0xe7b   :  { %1630 = vadd.xlane.f32.xlu0 %v1629_v63  ;;  %v621_v63 = vsel %vm499_vm1, %v4880_v21, 0.0 }
 0xe7c   :  { %1888 = vadd.xlane.f32.xlu1 %v1887_v61 }
 0xe7f   :  { %1636 = vadd.xlane.f32.xlu0 %v1635_v4 }
 0xe80   :  { %1894 = vadd.xlane.f32.xlu1 %v1893_v3 }
 0xe83   :  { %1885 = vadd.xlane.f32.xlu0 %v1884_v48 }
 0xe84   :  { %2143 = vadd.xlane.f32.xlu1 %v2142_v31 }
 0xe87   :  { %1891 = vadd.xlane.f32.xlu0 %v1890_v6 }
 0xe88   :  { %2149 = vadd.xlane.f32.xlu1 %v2148_v5 }
 0xe8b   :  { %2140 = vadd.xlane.f32.xlu0 %v2139_v9 }
 0xe8f   :  { %2146 = vadd.xlane.f32.xlu0 %v2145_v55 }
 0xeb2   :  { %v2372_v15 = vpop.xlane.xlu0 %2371 }
 0xeb3   :  { %v2382_v45 = vsub.f32 %v5238_v40, %v2372_v15 }
 0xeb4   :  { %v2375_v58 = vpop.xlane.xlu1 %2374 }
 0xeb5   :  { %v2386_v14 = vmul.f32 1.442695, %v2382_v45  ;;  %v2383_v16 = vsub.f32 %v5242_v57, %v2375_v58 }
 0xeb7   :  { %4292 = vpow2.f32 %v2386_v14  ;;  %v2388_v42 = vmul.f32 1.442695, %v2383_v16  ;;  %v2378_v18 = vpop.xlane.xlu0 %2377 }
 0xeb8   :  { %v2384_v13 = vsub.f32 %v5246_v0, %v2378_v18  ;;  %v2460_v20 = vpop.permute.xlu1 %2459 }
 0xeb9   :  { %4294 = vpow2.f32 %v2388_v42  ;;  %4059 = vmatpush3.bf16.msra.mxu0 %v2460_v20 }
 0xeba   :  { %v2390_v39 = vmul.f32 1.442695, %v2384_v13 }
 0xebb   :  { %v2381_v54 = vpop.xlane.xlu0 %2380 }
 0xebc   :  { %4296 = vpow2.f32 %v2390_v39  ;;  %v2385_v52 = vsub.f32 %v5250_v37, %v2381_v54 }
 0xebe   :  { %v2392_v35 = vmul.f32 1.442695, %v2385_v52 }
 0xebf   :  { %v2413_v46 = vpop.permute.xlu0 %2412 }
 0xec0   :  { %4298 = vpow2.f32 %v2392_v35  ;;  %4053 = vmatpush3.bf16.msra.mxu1 %v2413_v46 }
 0xec1   :  { %v4293_v40 = vpop.eup %4292 }
 0xec2   :  { %v2394_v57 = vsel %vm499_vm1, %v4293_v40, 0.0 }
 0xec3   :  { %v4295_v49 = vpop.eup %4294  ;;  %2395 = vadd.xlane.f32.xlu0 %v2394_v57 }
 0xec4   :  { %v2397_v7 = vsel %vm499_vm1, %v4295_v49, 0.0  ;;  %v2410_v0 = vpack.c.bf16 %v4295_v49, %v4293_v40 }
 0xec5   :  { %2398 = vadd.xlane.f32.xlu1 %v2397_v7 }
 0xec6   :  { %v4297_v8 = vpop.eup %4296  ;;  %4055 = vmatmul.mubr.msk.bf16.vlgmr.msra.gmra.mrb[60].mxu1 %vm499_vm1, %v2410_v0 }
 0xec7   :  { %v2400_v27 = vsel %vm499_vm1, %v4297_v8, 0.0 }
 0xec8   :  { %2401 = vadd.xlane.f32.xlu0 %v2400_v27 }
 0xeca   :  { %v4299_v37 = vpop.eup %4298 }
 0xecb   :  { %v2403_v28 = vsel %vm499_vm1, %v4299_v37, 0.0  ;;  %v2411_v25 = vpack.c.bf16 %v4299_v37, %v4297_v8 }
 0xecc   :  { %619 = vadd.xlane.f32.xlu0 %v618_v26  ;;  %2404 = vadd.xlane.f32.xlu1 %v2403_v28 }
 0xecd   :  { %4061 = vmatmul.mubr.msk.bf16.vlgmr.msra.gmra.mrb[72].mxu0 %vm499_vm1, %v2411_v25 }
 0xece   :  { %2963 = vmatprep.mubr.bf16.mxu0 %v5602_v38 }
 0xed0   :  { %625 = vadd.xlane.f32.xlu0 %v624_v34  ;;  %622 = vadd.xlane.f32.xlu1 %v621_v63 }
 0xed4   :  { %628 = vadd.xlane.f32.xlu1 %v627_v19 }
 0xee9   :  { %v864_v61 = vpop.xlane.xlu1 %863 }
 0xeea   :  { %4300 = vrcp.f32 %v864_v61 }
 0xeed   :  { %v873_v4 = vpop.xlane.xlu1 %872 }
 0xef0   :  { %v867_v3 = vpop.xlane.xlu0 %866 }
 0xef1   :  { %4302 = vrcp.f32 %v867_v3  ;;  %v1124_v48 = vpop.xlane.xlu1 %1123 }
 0xef2   :  { %4304 = vrcp.f32 %v873_v4 }
 0xef4   :  { %v870_v31 = vpop.xlane.xlu0 %869  ;;  %v4301_v5 = vpop.eup %4300 }
 0xef5   :  { %4306 = vrcp.f32 %v870_v31  ;;  %v1130_v6 = vpop.xlane.xlu1 %1129  ;;  %v976_v33 = vmul.f32 %v4301_v5, %v4960_v36 }
 0xef6   :  { %4308 = vrcp.f32 %v1124_v48 }
 0xef8   :  { %v1121_v32 = vpop.xlane.xlu0 %1120 }
 0xef9   :  { %4310 = vrcp.f32 %v1121_v32  ;;  %v1379_v21 = vpop.xlane.xlu1 %1378 }
 0xefa   :  { %4312 = vrcp.f32 %v1130_v6 }
 0xefb   :  { %v4303_v9 = vpop.eup %4302 }
 0xefc   :  { %v1127_v55 = vpop.xlane.xlu0 %1126  ;;  %v977_v15 = vmul.f32 %v4303_v9, %v4962_v41  ;;  %v4305_v45 = vpop.eup %4304 }
 0xefd   :  { %4314 = vrcp.f32 %v1127_v55  ;;  %v1385_v58 = vpop.xlane.xlu1 %1384  ;;  %v979_v13 = vmul.f32 %v4305_v45, %v4966_v47 }
 0xefe   :  { %v980_v14 = vpack.c.bf16 %v977_v15, %v976_v33  ;;  %4316 = vrcp.f32 %v1379_v21 }
 0xeff   :  { %v4307_v16 = vpop.eup %4306 }
 0xf00   :  { %984 = vrot.lane.b32.xlu0 %v980_v14, %s4600_s28  ;;  %v1376_v42 = vpop.xlane.xlu0 %1375  ;;  %v978_v18 = vmul.f32 %v4307_v16, %v4964_v44  ;;  %v4309_v20 = vpop.eup %4308 }
 0xf01   :  { %4318 = vrcp.f32 %v1376_v42  ;;  %v1634_v39 = vpop.xlane.xlu1 %1633  ;;  %v1232_v35 = vmul.f32 %v4309_v20, %v5016_v56 }
 0xf02   :  { %v981_v54 = vpack.c.bf16 %v979_v13, %v978_v18  ;;  %4320 = vrcp.f32 %v1385_v58 }
 0xf03   :  { %v4311_v36 = vpop.eup %4310 }
 0xf04   :  { %986 = vrot.lane.b32.xlu1 %v981_v54, %s4600_s28  ;;  %v1382_v41 = vpop.xlane.xlu0 %1381  ;;  %v1231_v52 = vmul.f32 %v4311_v36, %v5014_v53  ;;  %v4313_v46 = vpop.eup %4312 }
 0xf05   :  { %4322 = vrcp.f32 %v1382_v41  ;;  %v1640_v40 = vpop.xlane.xlu1 %1639  ;;  %v1234_v7 = vmul.f32 %v4313_v46, %v5020_v62  ;;  %v4140_v41 = vld [vmem:[#allocation11] sm:$0xff]  }
 0xf06   :  { %v1235_v57 = vpack.c.bf16 %v1232_v35, %v1231_v52  ;;  %4324 = vrcp.f32 %v1634_v39  ;;  %v4141_v52 = vld [vmem:[#allocation11 + $0x8] sm:$0xff]   ;;  %4064 = vmatprep.subr.bf16.mxu1 %v4140_v41 }
 0xf07   :  { %v4315_v44 = vpop.eup %4314  ;;  %4065 = vmatpush3.bf16.msra.mxu1 %v4140_v41 }
 0xf08   :  { %1239 = vrot.lane.b32.xlu1 %v1235_v57, %s4616_s29  ;;  %v1631_v47 = vpop.xlane.xlu0 %1630  ;;  %v1233_v49 = vmul.f32 %v4315_v44, %v5018_v60  ;;  %v4317_v0 = vpop.eup %4316  ;;  %4066 = vmatprep.subr.bf16.mxu1 %v4141_v52 }
 0xf09   :  { %4326 = vrcp.f32 %v1631_v47  ;;  %v1889_v8 = vpop.xlane.xlu1 %1888  ;;  %v1487_v26 = vmul.f32 %v4317_v0, %v5070_v17 }
 0xf0a   :  { %v1236_v27 = vpack.c.bf16 %v1234_v7, %v1233_v49  ;;  %4328 = vrcp.f32 %v1640_v40  ;;  %v4142_v40 = vld [vmem:[#allocation11 + $0x10] sm:$0xff]  }
 0xf0b   :  { %v4319_v53 = vpop.eup %4318  ;;  %4067 = vmatpush3.bf16.msra.mxu1 %v4141_v52 }
 0xf0c   :  { %1241 = vrot.lane.b32.xlu1 %v1236_v27, %s4616_s29  ;;  %v1637_v56 = vpop.xlane.xlu0 %1636  ;;  %v1486_v37 = vmul.f32 %v4319_v53, %v5068_v12  ;;  %v4321_v28 = vpop.eup %4320  ;;  %4068 = vmatprep.subr.bf16.mxu1 %v4142_v40  ;;  %v5604_v53 = vld [vmem:[#allocation22_spill] sm:$0xff] }
 0xf0d   :  { %4330 = vrcp.f32 %v1637_v56  ;;  %v1895_v25 = vpop.xlane.xlu1 %1894  ;;  %v1489_v19 = vmul.f32 %v4321_v28, %v5074_v29 }
 0xf0e   :  { %v1490_v34 = vpack.c.bf16 %v1487_v26, %v1486_v37  ;;  %4332 = vrcp.f32 %v1889_v8  ;;  %v5605_v37 = vld [vmem:[#allocation23_spill] sm:$0xff] }
 0xf0f   :  { %v4323_v60 = vpop.eup %4322  ;;  %4069 = vmatpush3.bf16.msra.mxu1 %v4142_v40 }
 0xf10   :  { %1494 = vrot.lane.b32.xlu0 %v1490_v34, %s4615_s26  ;;  %v1886_v62 = vpop.xlane.xlu0 %1885  ;;  %v1488_v63 = vmul.f32 %v4323_v60, %v5072_v23  ;;  %v4325_v61 = vpop.eup %4324  ;;  %v5606_v60 = vld [vmem:[#allocation24_spill] sm:$0xff] }
 0xf11   :  { %4334 = vrcp.f32 %v1886_v62  ;;  %v2144_v4 = vpop.xlane.xlu1 %2143  ;;  %v1742_v31 = vmul.f32 %v4325_v61, %v5124_v43 }
 0xf12   :  { %v1491_v3 = vpack.c.bf16 %v1489_v19, %v1488_v63  ;;  %4336 = vrcp.f32 %v1895_v25  ;;  %v5607_v63 = vld [vmem:[#allocation25_spill] sm:$0xff] }
 0xf13   :  { %v4327_v12 = vpop.eup %4326 }
 0xf14   :  { %1496 = vrot.lane.b32.xlu1 %v1491_v3, %s4615_s26  ;;  %v1892_v17 = vpop.xlane.xlu0 %1891  ;;  %v1741_v48 = vmul.f32 %v4327_v12, %v5122_v24  ;;  %v4329_v6 = vpop.eup %4328 }
 0xf15   :  { %4338 = vrcp.f32 %v1892_v17  ;;  %v2150_v23 = vpop.xlane.xlu1 %2149  ;;  %v1744_v9 = vmul.f32 %v4329_v6, %v5128_v59  ;;  %v5603_v59 = vld [vmem:[#allocation26_spill] sm:$0xff] }
 0xf16   :  { %v1745_v32 = vpack.c.bf16 %v1742_v31, %v1741_v48  ;;  %4340 = vrcp.f32 %v2144_v4 }
 0xf17   :  { %v4331_v5 = vpop.eup %4330 }
 0xf18   :  { %1749 = vrot.lane.b32.xlu0 %v1745_v32, %s4606_s2  ;;  %v2141_v29 = vpop.xlane.xlu0 %2140  ;;  %v1743_v21 = vmul.f32 %v4331_v5, %v5126_v50  ;;  %v4333_v55 = vpop.eup %4332 }
 0xf19   :  { %4342 = vrcp.f32 %v2141_v29  ;;  %v1997_v45 = vmul.f32 %v4333_v55, %v5178_v11 }
 0xf1a   :  { %v1746_v33 = vpack.c.bf16 %v1744_v9, %v1743_v21  ;;  %4344 = vrcp.f32 %v2150_v23  ;;  %v4145_v23 = vld [vmem:[#allocation11 + $0x28] sm:$0xff]   ;;  %v4146_v9 = vld [vmem:[#allocation11 + $0x30] sm:$0xff]  }
 0xf1b   :  { %v4335_v15 = vpop.eup %4334 }
 0xf1c   :  { %1751 = vrot.lane.b32.xlu1 %v1746_v33, %s4606_s2  ;;  %v2147_v24 = vpop.xlane.xlu0 %2146  ;;  %v1996_v43 = vmul.f32 %v4335_v15, %v5176_v1  ;;  %v4337_v58 = vpop.eup %4336 }
 0xf1d   :  { %4346 = vrcp.f32 %v2147_v24  ;;  %v1999_v42 = vmul.f32 %v4337_v58, %v5603_v59 }
 0xf1e   :  { %v2000_v14 = vpack.c.bf16 %v1997_v45, %v1996_v43  ;;  %v4147_v45 = vld [vmem:[#allocation11 + $0x38] sm:$0xff]  }
 0xf1f   :  { %v4339_v16 = vpop.eup %4338 }
 0xf20   :  { %2004 = vrot.lane.b32.xlu0 %v2000_v14, %s4614_s15  ;;  %v1998_v50 = vmul.f32 %v4339_v16, %v5180_v30  ;;  %v4341_v18 = vpop.eup %4340 }
 0xf21   :  { %v2252_v1 = vmul.f32 %v4341_v18, %v5232_v22  ;;  %v4144_v22 = vld [vmem:[#allocation11 + $0x20] sm:$0xff]  }
 0xf22   :  { %v2001_v13 = vpack.c.bf16 %v1999_v42, %v1998_v50 }
 0xf23   :  { %v4343_v20 = vpop.eup %4342 }
 0xf24   :  { %2006 = vrot.lane.b32.xlu1 %v2001_v13, %s4614_s15  ;;  %v2251_v39 = vmul.f32 %v4343_v20, %v5230_v2  ;;  %v4345_v11 = vpop.eup %4344  ;;  %v4143_v2 = vld [vmem:[#allocation11 + $0x18] sm:$0xff]  }
 0xf25   :  { %v2254_v35 = vmul.f32 %v4345_v11, %v5236_v10  ;;  %4070 = vmatprep.subr.bf16.mxu1 %v4143_v2 }
 0xf26   :  { %v2255_v54 = vpack.c.bf16 %v2252_v1, %v2251_v39  ;;  %4071 = vmatpush3.bf16.msra.mxu1 %v4143_v2 }
 0xf27   :  { %v4347_v36 = vpop.eup %4346  ;;  %4072 = vmatprep.subr.bf16.mxu1 %v4144_v22 }
 0xf28   :  { %2259 = vrot.lane.b32.xlu0 %v2255_v54, %s4613_s14  ;;  %v2253_v30 = vmul.f32 %v4347_v36, %v5234_v51 }
 0xf2a   :  { %v2256_v46 = vpack.c.bf16 %v2254_v35, %v2253_v30  ;;  %4073 = vmatpush3.bf16.msra.mxu1 %v4144_v22 }
 0xf2b   :  { %4074 = vmatprep.subr.bf16.mxu1 %v4145_v23 }
 0xf2c   :  { %2261 = vrot.lane.b32.xlu1 %v2256_v46, %s4613_s14  ;;  %v3636_v46 = vld [vmem:[%s5578_s6] ss:$0 sm:$0xff] }
 0xf2e   :  { %4075 = vmatpush3.bf16.msra.mxu1 %v4145_v23 }
 0xf2f   :  { %4076 = vmatprep.subr.bf16.mxu1 %v4146_v9 }
 0xf32   :  { %4077 = vmatpush3.bf16.msra.mxu1 %v4146_v9 }
 0xf33   :  { %4078 = vmatprep.subr.bf16.mxu1 %v4147_v45 }
 0xf36   :  { %4079 = vmatpush3.bf16.msra.mxu1 %v4147_v45  ;;  %v4163_v45 = vld [vmem:[#allocation12 + $0x48] ss:$16 sps:$4 sm:$0xff]  }
 0xf50   :  { %v2396_v57 = vpop.xlane.xlu0 %2395 }
 0xf52   :  { %v2399_v51 = vpop.xlane.xlu1 %2398 }
 0xf55   :  { %v2402_v44 = vpop.xlane.xlu0 %2401 }
 0xf59   :  { %v2405_v10 = vpop.xlane.xlu1 %2404  ;;  %v620_v47 = vpop.xlane.xlu0 %619 }
 0xf5a   :  { %4348 = vrcp.f32 %v620_v47 }
 0xf5d   :  { %v623_v49 = vpop.xlane.xlu1 %622  ;;  %v626_v7 = vpop.xlane.xlu0 %625 }
 0xf5e   :  { %4350 = vrcp.f32 %v623_v49 }
 0xf5f   :  { %4352 = vrcp.f32 %v626_v7  ;;  %v4405_v7 = vld [vmem:[#allocation3 + $0x8] sm:$0xff] }
 0xf61   :  { %v629_v0 = vpop.xlane.xlu1 %628 }
 0xf62   :  { %4354 = vrcp.f32 %v629_v0 }
 0xf63   :  { %4356 = vrcp.f32 %v2396_v57 }
 0xf64   :  { %v4349_v8 = vpop.eup %4348  ;;  %4358 = vrcp.f32 %v2399_v51 }
 0xf65   :  { %v724_v56 = vmul.f32 %v4349_v8, %v5604_v53  ;;  %4360 = vrcp.f32 %v2402_v44  ;;  %v4406_v8 = vld [vmem:[#allocation3 + $0x10] sm:$0xff] }
 0xf66   :  { %4362 = vrcp.f32 %v2405_v10  ;;  %v4404_v10 = vld [vmem:[#allocation3] sm:$0xff] }
 0xf68   :  { %v4351_v27 = vpop.eup %4350 }
 0xf69   :  { %v725_v26 = vmul.f32 %v4351_v27, %v5605_v37  ;;  %v4353_v28 = vpop.eup %4352 }
 0xf6a   :  { %v726_v62 = vmul.f32 %v4353_v28, %v5606_v60  ;;  %v4150_v28 = vld [vmem:[#allocation12 + $0x4] ss:$16 sps:$4 sm:$0xff]  }
 0xf6b   :  { %v728_v25 = vpack.c.bf16 %v725_v26, %v724_v56  ;;  %v4407_v56 = vld [vmem:[#allocation3 + $0x18] sm:$0xff]  ;;  %v4148_v26 = vld [vmem:[#allocation12] ss:$16 sps:$4 sm:$0xff]   ;;  %2931 = vmatprep.subr.bf16.mxu0 %v4150_v28 }
 0xf6c   :  { %v4355_v34 = vpop.eup %4354  ;;  %v4156_v60 = vld [vmem:[#allocation12 + $0x24] ss:$16 sps:$4 sm:$0xff]   ;;  %2932 = vmatpush1.bf16.msra.mxu0 %v4148_v26 }
 0xf6d   :  { %v727_v19 = vmul.f32 %v4355_v34, %v5607_v63  ;;  %730 = vst.msk [vmem:[#allocation2] sm:$0xff] %vm499_vm1, %v728_v25  ;;  %v4357_v55 = vpop.eup %4356  ;;  %v4151_v25 = vld [vmem:[#allocation12 + $0x8] ss:$16 sps:$4 sm:$0xff]   ;;  %v4153_v34 = vld [vmem:[#allocation12 + $0xc] ss:$16 sps:$4 sm:$0xff]   ;;  %2933 = vmatprep.subr.bf16.mxu0 %v4156_v60 }
 0xf6e   :  { %v4359_v24 = vpop.eup %4358  ;;  %2984 = vmatprep.subr.bf16.mxu1 %v4153_v34  ;;  %v4154_v63 = vld [vmem:[#allocation12 + $0x20] ss:$16 sps:$4 sm:$0xff]  }
 0xf6f   :  { %v729_v61 = vpack.c.bf16 %v727_v19, %v726_v62  ;;  %v4361_v18 = vpop.eup %4360  ;;  %v4159_v62 = vld [vmem:[#allocation12 + $0x2c] ss:$16 sps:$4 sm:$0xff]   ;;  %v4157_v19 = vld [vmem:[#allocation12 + $0x28] ss:$16 sps:$4 sm:$0xff]  }
 0xf70   :  { %v4363_v20 = vpop.eup %4362  ;;  %2934 = vmatpush1.bf16.msra.mxu0 %v4154_v63 }
 0xf71   :  { %731 = vst.msk [vmem:[#allocation2 + $0x8] sm:$0xff] %vm499_vm1, %v729_v61 }
 0xf72   :  { %v985_v4 = vpop.permute.xlu0 %984 }
 0xf73   :  { %991 = vst.msk [vmem:[#allocation2] sm:$0xff] %vm990_vm2, %v985_v4 }
 0xf76   :  { %v987_v3 = vpop.permute.xlu1 %986 }
 0xf77   :  { %992 = vst.msk [vmem:[#allocation2 + $0x8] sm:$0xff] %vm990_vm2, %v987_v3 }
 0xf7a   :  { %v1240_v12 = vpop.permute.xlu1 %1239 }
 0xf7b   :  { %1246 = vst.msk [vmem:[#allocation2] sm:$0xff] %vm1245_vm3, %v1240_v12 }
 0xf7e   :  { %v1242_v17 = vpop.permute.xlu1 %1241 }
 0xf7f   :  { %1247 = vst.msk [vmem:[#allocation2 + $0x8] sm:$0xff] %vm1245_vm3, %v1242_v17 }
 0xf82   :  { %v1495_v48 = vpop.permute.xlu0 %1494 }
 0xf83   :  { %1501 = vst.msk [vmem:[#allocation2] sm:$0xff] %vm1500_vm4, %v1495_v48 }
 0xf86   :  { %v1497_v31 = vpop.permute.xlu1 %1496 }
 0xf87   :  { %1502 = vst.msk [vmem:[#allocation2 + $0x8] sm:$0xff] %vm1500_vm4, %v1497_v31 }
 0xf8a   :  { %v1750_v6 = vpop.permute.xlu0 %1749 }
 0xf8b   :  { %1756 = vst.msk [vmem:[#allocation2] sm:$0xff] %vm1755_vm5, %v1750_v6 }
 0xf8e   :  { %v1752_v32 = vpop.permute.xlu1 %1751 }
 0xf8f   :  { %1757 = vst.msk [vmem:[#allocation2 + $0x8] sm:$0xff] %vm1755_vm5, %v1752_v32 }
 0xf92   :  { %v2005_v5 = vpop.permute.xlu0 %2004 }
 0xf93   :  { %2011 = vst.msk [vmem:[#allocation2] sm:$0xff] %vm2010_vm6, %v2005_v5 }
 0xf96   :  { %v2007_v29 = vpop.permute.xlu1 %2006 }
 0xf97   :  { %2012 = vst.msk [vmem:[#allocation2 + $0x8] sm:$0xff] %vm2010_vm6, %v2007_v29 }
 0xf99   :  { %v2452_v21 = vpop.f32.mrb[60].mxu1 }
 0xf9a   :  { %v4056_v33 = vpop.f32.mrb[61].mxu1  ;;  %v2260_v15 = vpop.permute.xlu0 %2259  ;;  %v2506_v58 = vmul.f32 %v4357_v55, %v2452_v21 }
 0xf9b   :  { %2266 = vst.msk [vmem:[#allocation2] sm:$0xff] %vm2265_vm7, %v2260_v15  ;;  %v2455_v43 = vpop.f32.mrb[62].mxu1  ;;  %v4162_v15 = vld [vmem:[#allocation12 + $0x44] ss:$16 sps:$4 sm:$0xff]  }
 0xf9c   :  { %v2507_v14 = vmul.f32 %v4359_v24, %v2455_v43  ;;  %v4057_v16 = vpop.f32.mrb[63].mxu1  ;;  %v4165_v24 = vld [vmem:[#allocation12 + $0x4c] ss:$16 sps:$4 sm:$0xff]   ;;  %v4160_v43 = vld [vmem:[#allocation12 + $0x40] ss:$16 sps:$4 sm:$0xff]   ;;  %2935 = vmatprep.subr.bf16.mxu0 %v4162_v15 }
 0xf9d   :  { %2936 = vmatpush1.bf16.msra.mxu0 %v4160_v43  ;;  %v4166_v16 = vld [vmem:[#allocation12 + $0x60] ss:$16 sps:$4 sm:$0xff]   ;;  %v4201_v43 = vld [vmem:[#allocation14 + $0xc8] sm:$0xff]  }
 0xf9e   :  { %v2510_v50 = vpack.c.bf16 %v2507_v14, %v2506_v58  ;;  %v2262_v59 = vpop.permute.xlu1 %2261  ;;  %v4168_v58 = vld [vmem:[#allocation12 + $0x64] ss:$16 sps:$4 sm:$0xff]   ;;  %v4171_v14 = vld [vmem:[#allocation12 + $0x6c] ss:$16 sps:$4 sm:$0xff]  }
 0xf9f   :  { %2267 = vst.msk [vmem:[#allocation2 + $0x8] sm:$0xff] %vm2265_vm7, %v2262_v59  ;;  %2937 = vmatprep.subr.bf16.mxu0 %v4168_v58  ;;  %v4174_v59 = vld [vmem:[#allocation12 + $0x84] ss:$16 sps:$4 sm:$0xff]   ;;  %v4203_v58 = vld [vmem:[#allocation14 + $0x88] sm:$0xff]  }
 0xfa0   :  { %2514 = vrot.lane.b32.xlu0 %v2510_v50, %s4612_s4  ;;  %v2499_v42 = vpop.f32.mrb[72].mxu0  ;;  %v4169_v50 = vld [vmem:[#allocation12 + $0x68] ss:$16 sps:$4 sm:$0xff]   ;;  %v4197_v15 = vld [vmem:[#allocation14 + $0xc0] sm:$0xff]  }
 0xfa1   :  { %v4062_v13 = vpop.f32.mrb[73].mxu0  ;;  %v2508_v1 = vmul.f32 %v4361_v18, %v2499_v42  ;;  %2938 = vmatpush1.bf16.msra.mxu0 %v4166_v16  ;;  %v4177_v42 = vld [vmem:[#allocation12 + $0x8c] ss:$16 sps:$4 sm:$0xff]   ;;  %v4172_v18 = vld [vmem:[#allocation12 + $0x80] ss:$16 sps:$4 sm:$0xff]  }
 0xfa2   :  { %v2502_v39 = vpop.f32.mrb[74].mxu0  ;;  %v4175_v13 = vld [vmem:[#allocation12 + $0x88] ss:$16 sps:$4 sm:$0xff]   ;;  %2939 = vmatprep.subr.bf16.mxu0 %v4174_v59  ;;  %v4206_v16 = vld [vmem:[#allocation14 + $0x10] sm:$0xff]  }
 0xfa3   :  { %v2509_v11 = vmul.f32 %v4363_v20, %v2502_v39  ;;  %v4063_v54 = vpop.f32.mrb[75].mxu0  ;;  %v4180_v20 = vld [vmem:[#allocation12 + $0xa4] ss:$16 sps:$4 sm:$0xff]   ;;  %v4183_v39 = vld [vmem:[#allocation12 + $0xac] ss:$16 sps:$4 sm:$0xff]  }
 0xfa4   :  { %v4186_v54 = vld [vmem:[#allocation12 + $0xc4] ss:$16 sps:$4 sm:$0xff]   ;;  %v4208_v59 = vld [vmem:[#allocation14 + $0x58] sm:$0xff]  }
 0xfa5   :  { %v2511_v36 = vpack.c.bf16 %v2509_v11, %v2508_v1  ;;  %2940 = vmatpush1.bf16.msra.mxu0 %v4172_v18  ;;  %v4178_v1 = vld [vmem:[#allocation12 + $0xa0] ss:$16 sps:$4 sm:$0xff]   ;;  %v4181_v11 = vld [vmem:[#allocation12 + $0xa8] ss:$16 sps:$4 sm:$0xff]  }
 0xfa6   :  { %2941 = vmatprep.subr.bf16.mxu0 %v4180_v20  ;;  %v4210_v18 = vld [vmem:[#allocation14 + $0x18] sm:$0xff]   ;;  %v4212_v20 = vld [vmem:[#allocation14 + $0x60] sm:$0xff]  }
 0xfa7   :  { %2516 = vrot.lane.b32.xlu1 %v2511_v36, %s4612_s4  ;;  %v4189_v36 = vld [vmem:[#allocation12 + $0xcc] ss:$16 sps:$4 sm:$0xff]  }
 0xfa9   :  { %2942 = vmatpush1.bf16.msra.mxu0 %v4178_v1  ;;  %v4214_v1 = vld [vmem:[#allocation14 + $0x20] sm:$0xff]  }
 0xfaa   :  { %2943 = vmatprep.subr.bf16.mxu0 %v4186_v54  ;;  %v4216_v54 = vld [vmem:[#allocation14 + $0x68] sm:$0xff]  }
0x1012   :  { %v2515_v41 = vpop.permute.xlu0 %2514 }
0x1013   :  { %2521 = vst.msk [vmem:[#allocation2] sm:$0xff] %vm2520_vm8, %v2515_v41  ;;  %v4184_v41 = vld [vmem:[#allocation12 + $0xc0] ss:$16 sps:$4 sm:$0xff]  }
0x1014   :  { %2944 = vmatpush1.bf16.msra.mxu0 %v4184_v41  ;;  %v4218_v41 = vld [vmem:[#allocation14 + $0x28] sm:$0xff]  }
0x1019   :  { %v2517_v52 = vpop.permute.xlu1 %2516 }
0x101a   :  { %2522 = vst.msk [vmem:[#allocation2 + $0x8] sm:$0xff] %vm2520_vm8, %v2517_v52  ;;  %v2523_v30 = vld [vmem:[#allocation2] sm:$0xff]  ;;  %v4187_v52 = vld [vmem:[#allocation12 + $0xc8] ss:$16 sps:$4 sm:$0xff]  }
0x101b   :  { %4080 = vmatprep.mubr.bf16.mxu1 %v2523_v30  ;;  %v4192_v30 = vld [vmem:[#allocation12 + $0xe4] ss:$16 sps:$4 sm:$0xff]  }
0x101c   :  { %2945 = vmatprep.subr.bf16.mxu0 %v4192_v30  ;;  %v4220_v30 = vld [vmem:[#allocation14 + $0x70] sm:$0xff]  }
0x1021   :  { %v2524_v35 = vld [vmem:[#allocation2 + $0x8] sm:$0xff] }
0x1022   :  { %4081 = vmatmul.mubr.bf16.vlgmr.msra.gmra.mrb[64].mxu1 %v2524_v35  ;;  %v4195_v35 = vld [vmem:[#allocation12 + $0xec] ss:$16 sps:$4 sm:$0xff]  }
0x1023   :  { %3016 = vmatprep.mubr.bf16.mxu1 %v5602_v38  ;;  %2985 = vmatpush1.bf16.msra.mxu1 %v4151_v25  ;;  %v3645_v25 = vld [vmem:[%s5579_s7] ss:$0 sm:$0xff] }
0x1024   :  { %2986 = vmatprep.subr.bf16.mxu1 %v4159_v62 }
0x1027   :  { %2987 = vmatpush1.bf16.msra.mxu1 %v4157_v19 }
0x1028   :  { %2988 = vmatprep.subr.bf16.mxu1 %v4165_v24  ;;  %v4199_v24 = vld [vmem:[#allocation14 + $0x80] sm:$0xff]  }
0x102b   :  { %2989 = vmatpush1.bf16.msra.mxu1 %v4163_v45  ;;  %v4202_v45 = vld [vmem:[#allocation14 + $0x8] sm:$0xff]  }
0x102c   :  { %2990 = vmatprep.subr.bf16.mxu1 %v4171_v14  ;;  %v4205_v14 = vld [vmem:[#allocation14 + $0xd0] sm:$0xff]  }
0x102f   :  { %2991 = vmatpush1.bf16.msra.mxu1 %v4169_v50  ;;  %v4207_v50 = vld [vmem:[#allocation14 + $0x90] sm:$0xff]  }
0x1030   :  { %2992 = vmatprep.subr.bf16.mxu1 %v4177_v42  ;;  %v4209_v42 = vld [vmem:[#allocation14 + $0xd8] sm:$0xff]  }
0x1033   :  { %2993 = vmatpush1.bf16.msra.mxu1 %v4175_v13  ;;  %v4211_v13 = vld [vmem:[#allocation14 + $0x98] sm:$0xff]  }
0x1034   :  { %2994 = vmatprep.subr.bf16.mxu1 %v4183_v39  ;;  %v4213_v39 = vld [vmem:[#allocation14 + $0xe0] sm:$0xff]  }
0x1037   :  { %2995 = vmatpush1.bf16.msra.mxu1 %v4181_v11  ;;  %v4215_v11 = vld [vmem:[#allocation14 + $0xa0] sm:$0xff]  }
0x1038   :  { %2996 = vmatprep.subr.bf16.mxu1 %v4189_v36  ;;  %v4217_v36 = vld [vmem:[#allocation14 + $0xe8] sm:$0xff]  }
0x103b   :  { %2997 = vmatpush1.bf16.msra.mxu1 %v4187_v52  ;;  %v4219_v52 = vld [vmem:[#allocation14 + $0xa8] sm:$0xff]  }
0x103c   :  { %2998 = vmatprep.subr.bf16.mxu1 %v4195_v35  ;;  %v4221_v35 = vld [vmem:[#allocation14 + $0xf0] sm:$0xff]  }
0x10f5   :  { %v4082_v40 = vpop.f32.mrb[64].mxu1 }
0x10f6   :  { %v2630_v2 = vpop.f32.mrb[65].mxu1  ;;  %v2639_v44 = vadd.f32 %v4082_v40, %v3636_v46  ;;  %v4193_v40 = vld [vmem:[#allocation12 + $0xe8] ss:$16 sps:$4 sm:$0xff]  }
0x10f7   :  { %v2631_v22 = vadd.f32 %v3636_v46, %v2630_v2  ;;  %v4083_v57 = vpop.f32.mrb[66].mxu1  ;;  %2999 = vmatpush1.bf16.msra.mxu1 %v4193_v40  ;;  %v4223_v40 = vld [vmem:[#allocation14 + $0xb0] sm:$0xff]  }
0x10f8   :  { %v2633_v51 = vpop.f32.mrb[67].mxu1  ;;  %v5380_v27 = vadd.f32 %v4406_v8, %v2639_v44  ;;  %v2642_v53 = vadd.f32 %v4083_v57, %v3636_v46  ;;  %3824 = vmatprep.subr.bf16.mxu1 %v4197_v15 }
0x10f9   :  { %v5375_v47 = vadd.f32 %v4404_v10, %v2631_v22  ;;  %v2634_v49 = vadd.f32 %v3636_v46, %v2633_v51  ;;  %v4190_v46 = vld [vmem:[#allocation12 + $0xe0] ss:$16 sps:$4 sm:$0xff]  }
0x10fa   :  { %v5384_v37 = vadd.f32 %v4407_v56, %v2642_v53  ;;  %2946 = vmatpush1.bf16.msra.mxu0 %v4190_v46  ;;  %v4222_v46 = vld [vmem:[#allocation14 + $0x30] sm:$0xff]  }
0x10fb   :  { %v5377_v0 = vadd.f32 %v4405_v7, %v2634_v49  ;;  %2651 = vadd.xlane.f32.xlu0 %v5375_v47 }
0x10fd   :  { %2653 = vadd.xlane.f32.xlu1 %v5377_v0 }
0x10ff   :  { %2655 = vadd.xlane.f32.xlu0 %v5380_v27 }
0x1103   :  { %2657 = vadd.xlane.f32.xlu0 %v5384_v37 }
0x1188   :  { %v2652_v61 = vpop.xlane.xlu0 %2651 }
0x1189   :  { %v2659_v4 = vmul.f32 0.0078125, %v2652_v61  ;;  %v3646_v61 = vld [vmem:[%s5580_s8] ss:$0 sm:$0xff] }
0x118a   :  { %v2654_v3 = vpop.xlane.xlu1 %2653 }
0x118b   :  { %v5388_v12 = vsub.f32 %v5375_v47, %v2659_v4  ;;  %v2660_v17 = vmul.f32 0.0078125, %v2654_v3 }
0x118c   :  { %v2656_v48 = vpop.xlane.xlu0 %2655 }
0x118d   :  { %v5391_v31 = vsub.f32 %v5377_v0, %v2660_v17  ;;  %v2661_v6 = vmul.f32 0.0078125, %v2656_v48  ;;  %v2667_v32 = vmul.f32 %v5388_v12, %v5388_v12 }
0x118f   :  { %v5396_v5 = vsub.f32 %v5380_v27, %v2661_v6  ;;  %2671 = vadd.xlane.f32.xlu0 %v2667_v32  ;;  %v2668_v23 = vmul.f32 %v5391_v31, %v5391_v31 }
0x1190   :  { %v2658_v29 = vpop.xlane.xlu0 %2657 }
0x1191   :  { %v2662_v21 = vmul.f32 0.0078125, %v2658_v29  ;;  %2673 = vadd.xlane.f32.xlu1 %v2668_v23  ;;  %v2669_v9 = vmul.f32 %v5396_v5, %v5396_v5 }
0x1193   :  { %v5403_v55 = vsub.f32 %v5384_v37, %v2662_v21  ;;  %2675 = vadd.xlane.f32.xlu0 %v2669_v9 }
0x1195   :  { %v2670_v33 = vmul.f32 %v5403_v55, %v5403_v55 }
0x1197   :  { %2677 = vadd.xlane.f32.xlu1 %v2670_v33  ;;  %v4196_v33 = vld [vmem:[#allocation14 + $0x40] sm:$0xff]  }
0x1198   :  { %3796 = vmatprep.subr.bf16.mxu0 %v4196_v33 }
0x121c   :  { %v2672_v2 = vpop.xlane.xlu0 %2671 }
0x121d   :  { %v2679_v22 = vmul.f32 0.0078125, %v2672_v2  ;;  %v4224_v2 = vld [vmem:[#allocation14 + $0x78] sm:$0xff]  }
0x121e   :  { %v2674_v57 = vpop.xlane.xlu1 %2673 }
0x121f   :  { %v2683_v51 = vadd.f32 1e-05, %v2679_v22  ;;  %v2680_v44 = vmul.f32 0.0078125, %v2674_v57  ;;  %v4225_v22 = vld [vmem:[#allocation14 + $0xf8] sm:$0xff]  }
0x1220   :  { %v2676_v10 = vpop.xlane.xlu0 %2675  ;;  %v4226_v57 = vld [vmem:[#allocation14 + $0x38] sm:$0xff]  }
0x1221   :  { %4364 = vrsqrt.f32 %v2683_v51  ;;  %v2684_v49 = vadd.f32 1e-05, %v2680_v44  ;;  %v2681_v7 = vmul.f32 0.0078125, %v2676_v10  ;;  %v4227_v51 = vld [vmem:[#allocation14 + $0xb8] sm:$0xff]   ;;  %v2749_v44 = vld [vmem:[%s5582_s10] sm:$0xf] }
0x1222   :  { %v5608_v10 = vld [vmem:[#allocation21_spill] sm:$0xff] }
0x1223   :  { %4366 = vrsqrt.f32 %v2684_v49  ;;  %v2685_v8 = vadd.f32 1e-05, %v2681_v7  ;;  %v5609_v49 = vsub.s32 0, %v5608_v10 }
0x1224   :  { %v2678_v53 = vpop.xlane.xlu1 %2677 }
0x1225   :  { %4368 = vrsqrt.f32 %v2685_v8  ;;  %v2682_v56 = vmul.f32 0.0078125, %v2678_v53  ;;  %v5424_v7 = vrot.slane %v2749_v44, %v5609_v49  ;;  %v5610_v8 = vsub.s32 2, %v5608_v10 }
0x1227   :  { %v2686_v26 = vadd.f32 1e-05, %v2682_v56  ;;  %v5428_v53 = vrot.slane %v2749_v44, %v5610_v8  ;;  %v2765_v56 = vsub.s32 3, %v5608_v10 }
0x1229   :  { %4370 = vrsqrt.f32 %v2686_v26 }
0x122b   :  { %v4365_v28 = vpop.eup %4364 }
0x122c   :  { %v2691_v34 = vmul.f32 %v4365_v28, %v5388_v12 }
0x122d   :  { %v4367_v60 = vpop.eup %4366 }
0x122e   :  { %v2692_v62 = vmul.f32 %v4367_v60, %v5391_v31  ;;  %v2701_v63 = vmul.f32 %v3645_v25, %v2691_v34 }
0x122f   :  { %v4369_v19 = vpop.eup %4368 }
0x1230   :  { %v2702_v4 = vmul.f32 %v3645_v25, %v2692_v62  ;;  %v2711_v3 = vadd.f32 %v3646_v61, %v2701_v63  ;;  %v2693_v48 = vmul.f32 %v4369_v19, %v5396_v5  ;;  %v4198_v5 = vld [vmem:[#allocation14] sm:$0xff]  }
0x1232   :  { %v2712_v17 = vadd.f32 %v3646_v61, %v2702_v4  ;;  %v2703_v12 = vmul.f32 %v3645_v25, %v2693_v48 }
0x1233   :  { %v4371_v6 = vpop.eup %4370 }
0x1234   :  { %v2715_v32 = vpack.c.bf16 %v2712_v17, %v2711_v3  ;;  %v2694_v23 = vmul.f32 %v4371_v6, %v5403_v55  ;;  %v2713_v21 = vadd.f32 %v3646_v61, %v2703_v12  ;;  %v4200_v55 = vld [vmem:[#allocation14 + $0x48] sm:$0xff]  }
0x1236   :  { %2964 = vmatmul.mubr.bf16.vlgmr.msra.gmra.mrb[76].mxu0 %v2715_v32  ;;  %3017 = vmatmul.mubr.bf16.vlgmr.msra.gmra.mrb[68].mxu1 %v2715_v32  ;;  %v2704_v29 = vmul.f32 %v3645_v25, %v2694_v23  ;;  %v5611_v25 = vsub.s32 1, %v5608_v10 }
0x1237   :  { %2973 = vmatprep.mubr.bf16.mxu0 %v5602_v38  ;;  %3026 = vmatprep.mubr.bf16.mxu1 %v5602_v38  ;;  %v4204_v38 = vld [vmem:[#allocation14 + $0x50] sm:$0xff]  }
0x1238   :  { %v2714_v31 = vadd.f32 %v3646_v61, %v2704_v29  ;;  %3797 = vmatpush3.bf16.msra.mxu0 %v4198_v5  ;;  %3825 = vmatpush3.bf16.msra.mxu1 %v4199_v24  ;;  %v5433_v34 = vrot.slane %v2749_v44, %v5611_v25  ;;  %v5437_v61 = vrot.slane %v2749_v44, %v2765_v56 }
0x1239   :  { %3798 = vmatprep.subr.bf16.mxu0 %v4200_v55  ;;  %3826 = vmatprep.subr.bf16.mxu1 %v4201_v43 }
0x123a   :  { %v2716_v9 = vpack.c.bf16 %v2714_v31, %v2713_v21 }
0x123c   :  { %3799 = vmatpush3.bf16.msra.mxu0 %v4202_v45  ;;  %3827 = vmatpush3.bf16.msra.mxu1 %v4203_v58 }
0x123d   :  { %3800 = vmatprep.subr.bf16.mxu0 %v4204_v38  ;;  %3828 = vmatprep.subr.bf16.mxu1 %v4205_v14 }
0x123e   :  { %2974 = vmatmul.mubr.bf16.gmra.mrb[80].mxu0 %v2716_v9  ;;  %3027 = vmatmul.mubr.bf16.gmra.mrb[72].mxu1 %v2716_v9 }
0x1240   :  { %3801 = vmatpush3.bf16.msra.mxu0 %v4206_v16  ;;  %3829 = vmatpush3.bf16.msra.mxu1 %v4207_v50 }
0x1241   :  { %3802 = vmatprep.subr.bf16.mxu0 %v4208_v59  ;;  %3830 = vmatprep.subr.bf16.mxu1 %v4209_v42 }
0x1244   :  { %3803 = vmatpush3.bf16.msra.mxu0 %v4210_v18  ;;  %3831 = vmatpush3.bf16.msra.mxu1 %v4211_v13 }
0x1245   :  { %3804 = vmatprep.subr.bf16.mxu0 %v4212_v20  ;;  %3832 = vmatprep.subr.bf16.mxu1 %v4213_v39 }
0x1248   :  { %3805 = vmatpush3.bf16.msra.mxu0 %v4214_v1  ;;  %3833 = vmatpush3.bf16.msra.mxu1 %v4215_v11 }
0x1249   :  { %3806 = vmatprep.subr.bf16.mxu0 %v4216_v54  ;;  %3834 = vmatprep.subr.bf16.mxu1 %v4217_v36 }
0x124c   :  { %3807 = vmatpush3.bf16.msra.mxu0 %v4218_v41  ;;  %3835 = vmatpush3.bf16.msra.mxu1 %v4219_v52 }
0x124d   :  { %3808 = vmatprep.subr.bf16.mxu0 %v4220_v30  ;;  %3836 = vmatprep.subr.bf16.mxu1 %v4221_v35 }
0x1250   :  { %3809 = vmatpush3.bf16.msra.mxu0 %v4222_v46  ;;  %3837 = vmatpush3.bf16.msra.mxu1 %v4223_v40 }
0x1251   :  { %3810 = vmatprep.subr.bf16.mxu0 %v4224_v2  ;;  %3838 = vmatprep.subr.bf16.mxu1 %v4225_v22 }
0x1254   :  { %3811 = vmatpush3.bf16.msra.mxu0 %v4226_v57  ;;  %3839 = vmatpush3.bf16.msra.mxu1 %v4227_v51 }
0x1309   :  { %v2965_v26 = vpop.f32.mrb[76].mxu0  ;;  %v3018_v28 = vpop.f32.mrb[68].mxu1 }
0x130a   :  { %v2966_v60 = vadd.f32 %v2965_v26, %v5424_v7  ;;  %v3019_v62 = vadd.f32 %v3018_v28, %v5428_v53  ;;  %v2967_v63 = vpop.f32.mrb[77].mxu0  ;;  %v3020_v19 = vpop.f32.mrb[69].mxu1 }
0x130b   :  { %v2969_v4 = vpop.f32.mrb[78].mxu0  ;;  %v3022_v3 = vpop.f32.mrb[70].mxu1  ;;  %v5440_v6 = vadd.f32 %v2967_v63, %v5433_v34  ;;  %v5450_v33 = vadd.f32 %v3020_v19, %v5437_v61 }
0x130c   :  { %v3053_v17 = vmul.f32 0.044715, %v2966_v60  ;;  %v3055_v48 = vmul.f32 0.044715, %v3019_v62  ;;  %v2970_v32 = vadd.f32 %v2969_v4, %v5424_v7  ;;  %v5444_v23 = vadd.f32 %v3022_v3, %v5428_v53  ;;  %v2971_v12 = vpop.f32.mrb[79].mxu0  ;;  %v3024_v29 = vpop.f32.mrb[71].mxu1 }
0x130d   :  { %v5447_v9 = vadd.f32 %v2971_v12, %v5433_v34  ;;  %v5453_v5 = vadd.f32 %v3024_v29, %v5437_v61  ;;  %v5455_v24 = vmul.f32 0.5, %v2966_v60  ;;  %v3054_v58 = vmul.f32 0.044715, %v5440_v6 }
0x130e   :  { %v3069_v31 = vmul.f32 %v3053_v17, %v2966_v60  ;;  %v3071_v21 = vmul.f32 %v3055_v48, %v3019_v62  ;;  %v3057_v15 = vmul.f32 0.044715, %v2970_v32  ;;  %v3059_v45 = vmul.f32 0.044715, %v5444_v23 }
0x130f   :  { %v3058_v14 = vmul.f32 0.044715, %v5447_v9  ;;  %v5460_v42 = vmul.f32 0.5, %v3019_v62  ;;  %v3056_v1 = vmul.f32 0.044715, %v5450_v33  ;;  %v3070_v22 = vmul.f32 %v3054_v58, %v5440_v6 }
0x1310   :  { %v3085_v55 = vmul.f32 %v3069_v31, %v2966_v60  ;;  %v3087_v43 = vmul.f32 %v3071_v21, %v3019_v62  ;;  %v3073_v38 = vmul.f32 %v3057_v15, %v2970_v32  ;;  %v3075_v13 = vmul.f32 %v3059_v45, %v5444_v23 }
0x1311   :  { %v2975_v16 = vpop.f32.mrb[80].mxu0  ;;  %v3028_v50 = vpop.f32.mrb[72].mxu1  ;;  %v3060_v54 = vmul.f32 0.044715, %v5453_v5  ;;  %v3074_v51 = vmul.f32 %v3058_v14, %v5447_v9  ;;  %v3072_v56 = vmul.f32 %v3056_v1, %v5450_v33  ;;  %v3086_v19 = vmul.f32 %v3070_v22, %v5440_v6 }
0x1312   :  { %v3101_v59 = vadd.f32 %v3085_v55, %v2966_v60  ;;  %v3103_v18 = vadd.f32 %v3087_v43, %v3019_v62  ;;  %v2977_v20 = vpop.f32.mrb[81].mxu0  ;;  %v3030_v39 = vpop.f32.mrb[73].mxu1  ;;  %v3089_v11 = vmul.f32 %v3073_v38, %v2970_v32  ;;  %v5466_v36 = vadd.f32 %v2975_v16, %v5424_v7 }
0x1313   :  { %v2979_v41 = vpop.f32.mrb[82].mxu0  ;;  %v3032_v52 = vpop.f32.mrb[74].mxu1  ;;  %v3091_v46 = vmul.f32 %v3075_v13, %v5444_v23  ;;  %v5472_v44 = vadd.f32 %v3028_v50, %v5428_v53  ;;  %v5477_v8 = vadd.f32 %v2977_v20, %v5433_v34  ;;  %v3076_v28 = vmul.f32 %v3060_v54, %v5453_v5 }
0x1314   :  { %v3117_v30 = vmul.f32 0.7978846, %v3101_v59  ;;  %v3119_v35 = vmul.f32 0.7978846, %v3103_v18  ;;  %v2981_v40 = vpop.f32.mrb[83].mxu0  ;;  %v3034_v2 = vpop.f32.mrb[75].mxu1  ;;  %v3105_v57 = vadd.f32 %v3089_v11, %v2970_v32  ;;  %v5483_v62 = vadd.f32 %v3030_v39, %v5437_v61 }
0x1315   :  { %v3107_v10 = vadd.f32 %v3091_v46, %v5444_v23  ;;  %v3061_v49 = vmul.f32 0.044715, %v5466_v36  ;;  %v3062_v60 = vmul.f32 0.044715, %v5477_v8  ;;  %v5486_v63 = vadd.f32 %v2979_v41, %v5424_v7 }
0x1316   :  { %4372 = vtanh.f32 %v3117_v30  ;;  %v3121_v26 = vmul.f32 0.7978846, %v3105_v57  ;;  %v3090_v4 = vmul.f32 %v3074_v51, %v5447_v9  ;;  %v5491_v3 = vadd.f32 %v3032_v52, %v5428_v53 }
0x1317   :  { %4374 = vtanh.f32 %v3119_v35  ;;  %v3123_v25 = vmul.f32 0.7978846, %v3107_v10  ;;  %v3077_v17 = vmul.f32 %v3061_v49, %v5466_v36  ;;  %v3063_v48 = vmul.f32 0.044715, %v5472_v44 }
0x1318   :  { %4376 = vtanh.f32 %v3121_v26  ;;  %v3064_v12 = vmul.f32 0.044715, %v5483_v62  ;;  %v3041_v29 = vmul.f32 0.5, %v2970_v32  ;;  %v3078_v31 = vmul.f32 %v3062_v60, %v5477_v8 }
0x1319   :  { %4378 = vtanh.f32 %v3123_v25  ;;  %v5498_v7 = vadd.f32 %v2981_v40, %v5433_v34  ;;  %v5501_v21 = vadd.f32 %v3034_v2, %v5437_v61  ;;  %v3088_v15 = vmul.f32 %v3072_v56, %v5450_v33 }
0x131a   :  { %v3092_v53 = vmul.f32 %v3076_v28, %v5453_v5  ;;  %v3065_v55 = vmul.f32 0.044715, %v5486_v63  ;;  %v3067_v43 = vmul.f32 0.044715, %v5491_v3  ;;  %v3080_v45 = vmul.f32 %v3064_v12, %v5483_v62 }
0x131b   :  { %v3066_v32 = vmul.f32 0.044715, %v5498_v7  ;;  %v3068_v58 = vmul.f32 0.044715, %v5501_v21  ;;  %v3102_v34 = vadd.f32 %v3086_v19, %v5440_v6  ;;  %v3043_v38 = vmul.f32 0.5, %v5444_v23 }
0x131c   :  { %v3093_v61 = vmul.f32 %v3077_v17, %v5466_v36  ;;  %v3079_v14 = vmul.f32 %v3063_v48, %v5472_v44  ;;  %v3106_v16 = vadd.f32 %v3090_v4, %v5447_v9  ;;  %v3094_v50 = vmul.f32 %v3078_v31, %v5477_v8 }
0x131d   :  { %v3082_v59 = vmul.f32 %v3066_v32, %v5498_v7  ;;  %v3084_v18 = vmul.f32 %v3068_v58, %v5501_v21  ;;  %v3118_v13 = vmul.f32 0.7978846, %v3102_v34  ;;  %v3081_v39 = vmul.f32 %v3065_v55, %v5486_v63 }
0x131e   :  { %v3122_v1 = vmul.f32 0.7978846, %v3106_v16  ;;  %v3104_v11 = vadd.f32 %v3088_v15, %v5450_v33  ;;  %v3108_v23 = vadd.f32 %v3092_v53, %v5453_v5  ;;  %v3096_v41 = vmul.f32 %v3080_v45, %v5483_v62 }
0x131f   :  { %v3083_v52 = vmul.f32 %v3067_v43, %v5491_v3  ;;  %v3098_v30 = vmul.f32 %v3082_v59, %v5498_v7  ;;  %4380 = vtanh.f32 %v3118_v13  ;;  %v3095_v22 = vmul.f32 %v3079_v14, %v5472_v44 }
0x1320   :  { %v4373_v20 = vpop.eup %4372  ;;  %4382 = vtanh.f32 %v3122_v1  ;;  %v3120_v35 = vmul.f32 0.7978846, %v3104_v11  ;;  %v3124_v46 = vmul.f32 0.7978846, %v3108_v23  ;;  %v3100_v57 = vmul.f32 %v3084_v18, %v5501_v21 }
0x1321   :  { %v4375_v54 = vpop.eup %4374  ;;  %v3149_v40 = vadd.f32 1.0, %v4373_v20  ;;  %v3110_v10 = vadd.f32 %v3094_v50, %v5477_v8  ;;  %v3097_v56 = vmul.f32 %v3081_v39, %v5486_v63  ;;  %v3114_v28 = vadd.f32 %v3098_v30, %v5498_v7 }
0x1322   :  { %v4377_v2 = vpop.eup %4376  ;;  %v3151_v51 = vadd.f32 1.0, %v4375_v54  ;;  %4384 = vtanh.f32 %v3120_v35  ;;  %v3099_v25 = vmul.f32 %v3083_v52, %v5491_v3  ;;  %v3112_v12 = vadd.f32 %v3096_v41, %v5483_v62 }
0x1323   :  { %v4379_v49 = vpop.eup %4378  ;;  %v3153_v26 = vadd.f32 1.0, %v4377_v2  ;;  %4386 = vtanh.f32 %v3124_v46  ;;  %v3126_v19 = vmul.f32 0.7978846, %v3110_v10  ;;  %v3165_v4 = vmul.f32 %v3149_v40, %v5455_v24 }
0x1324   :  { %v3155_v60 = vadd.f32 1.0, %v4379_v49  ;;  %v3130_v48 = vmul.f32 0.7978846, %v3114_v28  ;;  %v3167_v31 = vmul.f32 %v3151_v51, %v5460_v42  ;;  %v3116_v53 = vadd.f32 %v3100_v57, %v5501_v21 }
0x1325   :  { %v3169_v17 = vmul.f32 %v3153_v26, %v3041_v29  ;;  %4388 = vtanh.f32 %v3126_v19  ;;  %v3128_v43 = vmul.f32 0.7978846, %v3112_v12  ;;  %v3109_v58 = vadd.f32 %v3093_v61, %v5466_v36 }
0x1326   :  { %v3171_v15 = vmul.f32 %v3155_v60, %v3043_v38  ;;  %4390 = vtanh.f32 %v3130_v48  ;;  %v3132_v32 = vmul.f32 0.7978846, %v3116_v53  ;;  %v3113_v34 = vadd.f32 %v3097_v56, %v5486_v63 }
0x1327   :  { %v3181_v55 = vpack.c.bf16 %v3169_v17, %v3165_v4  ;;  %4392 = vtanh.f32 %v3128_v43  ;;  %v3111_v24 = vadd.f32 %v3095_v22, %v5472_v44  ;;  %v3125_v14 = vmul.f32 0.7978846, %v3109_v58 }
0x1328   :  { %v3183_v45 = vpack.c.bf16 %v3171_v15, %v3167_v31  ;;  %4394 = vtanh.f32 %v3132_v32  ;;  %v3129_v42 = vmul.f32 0.7978846, %v3113_v34  ;;  %v3115_v38 = vadd.f32 %v3099_v25, %v5491_v3 }
0x1329   :  { %v4381_v29 = vpop.eup %4380  ;;  %v3038_v50 = vmul.f32 0.5, %v5440_v6  ;;  %v3127_v18 = vmul.f32 0.7978846, %v3111_v24  ;;  %v3042_v13 = vmul.f32 0.5, %v5447_v9  ;;  %4396 = vtanh.f32 %v3125_v14 }
0x132a   :  { %v4383_v16 = vpop.eup %4382  ;;  %v3150_v59 = vadd.f32 1.0, %v4381_v29  ;;  %v3131_v61 = vmul.f32 0.7978846, %v3115_v38  ;;  %4398 = vtanh.f32 %v3129_v42  ;;  %v3040_v41 = vmul.f32 0.5, %v5450_v33 }
0x132b   :  { %v3154_v20 = vadd.f32 1.0, %v4383_v16  ;;  %4400 = vtanh.f32 %v3127_v18  ;;  %v3044_v52 = vmul.f32 0.5, %v5453_v5  ;;  %v3046_v22 = vmul.f32 0.5, %v5477_v8 }
0x132c   :  { %v4385_v39 = vpop.eup %4384  ;;  %v3166_v11 = vmul.f32 %v3150_v59, %v3038_v50  ;;  %4402 = vtanh.f32 %v3131_v61  ;;  %v3050_v57 = vmul.f32 0.5, %v5498_v7  ;;  %v3048_v28 = vmul.f32 0.5, %v5483_v62 }
0x132d   :  { %v4387_v1 = vpop.eup %4386  ;;  %v3170_v23 = vmul.f32 %v3154_v20, %v3042_v13  ;;  %v3152_v54 = vadd.f32 1.0, %v4385_v39  ;;  %v3052_v25 = vmul.f32 0.5, %v5501_v21  ;;  %v3045_v31 = vmul.f32 0.5, %v5466_v36 }
0x132e   :  { %v3156_v30 = vadd.f32 1.0, %v4387_v1  ;;  %v3049_v15 = vmul.f32 0.5, %v5486_v63  ;;  %v3047_v62 = vmul.f32 0.5, %v5472_v44  ;;  %v3679_v63 = vld [vmem:[%s5584_s12] ss:$0 sm:$0xff]  ;;  %s4617_s12 = smov [#allocation15]  }
0x132f   :  { %v4389_v6 = vpop.eup %4388  ;;  %v3182_v35 = vpack.c.bf16 %v3170_v23, %v3166_v11  ;;  %v3168_v9 = vmul.f32 %v3152_v54, %v3040_v41  ;;  %s3563_s0 = sshll.u32 %s4617_s12, 4  ;;  %s3564_s0 = int_to_ptr.vmem [resolvable:$true] %s3563_s0 }
0x1330   :  { %v4391_v46 = vpop.eup %4390  ;;  %v3172_v40 = vmul.f32 %v3156_v30, %v3044_v52  ;;  %v3158_v2 = vadd.f32 1.0, %v4389_v6  ;;  %s4562_s1 = scalar_lea.vmem %s3564_s0, 512  ;;  %p4567_p1 = scmp.lt.s32.totalorder %s3564_s0, %s3564_s0 }
0x1331   :  { %3484 = vmatprep.mubr.bf16.mxu0 %v3182_v35  ;;  %v3162_v51 = vadd.f32 1.0, %v4391_v46  ;;  %v4393_v10 = vpop.eup %4392  ;;  %p4563_p0 = scmp.ne.s32.totalorder %s3564_s0, %s4562_s1  ;;  %p4568_p2 = scmp.lt.s32.totalorder %s4562_s1, %s4562_s1 }
0x1332   :  { %v3184_v49 = vpack.c.bf16 %v3172_v40, %v3168_v9  ;;  %3485 = vmatmul.mubr.bf16.vlgmr.msra.gmra.mrb[84].mxu0 %v3181_v55  ;;  %v4395_v33 = vpop.eup %4394  ;;  %v3174_v56 = vmul.f32 %v3158_v2, %v3046_v22  ;;  %v3160_v26 = vadd.f32 1.0, %v4393_v10 }
0x1333   :  { %v3178_v5 = vmul.f32 %v3162_v51, %v3050_v57  ;;  %v3164_v60 = vadd.f32 1.0, %v4395_v33  ;;  %v4397_v19 = vpop.eup %4396  ;;  %p4569_p3 = por %p4568_p2, %p4567_p1 }
0x1334   :  { %3533 = vmatprep.mubr.bf16.mxu1 %v3184_v49  ;;  %v4399_v8 = vpop.eup %4398  ;;  %v3176_v17 = vmul.f32 %v3160_v26, %v3048_v28  ;;  %v3157_v48 = vadd.f32 1.0, %v4397_v19 }
0x1335   :  { %3534 = vmatmul.mubr.bf16.vlgmr.msra.gmra.mrb[76].mxu1 %v3183_v45  ;;  %v3186_v4 = vpack.c.bf16 %v3178_v5, %v3174_v56  ;;  %v3180_v7 = vmul.f32 %v3164_v60, %v3052_v25  ;;  %v4401_v12 = vpop.eup %4400  ;;  %v3161_v53 = vadd.f32 1.0, %v4399_v8  ;;  %v3051_v45 = vmul.f32 0.5, %v5491_v3  ;;  %p4570_p4 = pnand %p4569_p3, %p4563_p0 }
0x1336   :  { %v4403_v55 = vpop.eup %4402  ;;  %v3159_v21 = vadd.f32 1.0, %v4401_v12  ;;  %v3173_v32 = vmul.f32 %v3157_v48, %v3045_v31 }
0x1337   :  { %3492 = vmatprep.mubr.bf16.mxu0 %v3186_v4  ;;  %v3188_v43 = vpack.c.bf16 %v3180_v7, %v3176_v17  ;;  %v3177_v58 = vmul.f32 %v3161_v53, %v3049_v15  ;;  %v3163_v34 = vadd.f32 1.0, %v4403_v55 }
0x1338   :  { %v3175_v29 = vmul.f32 %v3159_v21, %v3047_v62 }
0x1339   :  { %3541 = vmatprep.mubr.bf16.mxu1 %v3188_v43  ;;  %v3185_v24 = vpack.c.bf16 %v3177_v58, %v3173_v32  ;;  %v3179_v14 = vmul.f32 %v3163_v34, %v3051_v45 }
0x133b   :  { %3493 = vmatmul.mubr.bf16.gmra.mrb[88].mxu0 %v3185_v24  ;;  %v3187_v42 = vpack.c.bf16 %v3179_v14, %v3175_v29 }
0x133d   :  { %3542 = vmatmul.mubr.bf16.gmra.mrb[80].mxu1 %v3187_v42 }
0x1405   :  { %v3812_v36 = vpop.f32.mrb[84].mxu0 }
0x1406   :  { %v3813_v38 = vpop.f32.mrb[85].mxu0 }
0x1407   :  { %v3814_v44 = vadd.f32 %v3813_v38, %v3812_v36  ;;  %v3815_v16 = vpop.f32.mrb[86].mxu0 }
0x1408   :  { %v3840_v50 = vpop.f32.mrb[76].mxu1  ;;  %v3816_v59 = vpop.f32.mrb[87].mxu0 }
0x1409   :  { %v3487_v18 = vadd.f32 %v3814_v44, %v3679_v63  ;;  %v3841_v3 = vpop.f32.mrb[77].mxu1  ;;  %v3817_v13 = vadd.f32 %v3816_v59, %v3815_v16 }
0x140a   :  { %v3842_v20 = vadd.f32 %v3841_v3, %v3840_v50  ;;  %v3843_v61 = vpop.f32.mrb[78].mxu1 }
0x140b   :  { %v3490_v39 = vadd.f32 %v3817_v13, %v3679_v63  ;;  %v3844_v1 = vpop.f32.mrb[79].mxu1 }
0x140c   :  { %v3536_v11 = vadd.f32 %v3842_v20, %v3487_v18  ;;  %v3845_v23 = vadd.f32 %v3844_v1, %v3843_v61 }
0x140e   :  { %v3550_v54 = vadd.f32 %v3536_v11, %v5375_v47  ;;  %v3539_v41 = vadd.f32 %v3845_v23, %v3490_v39  ;;  %v3818_v30 = vpop.f32.mrb[88].mxu0 }
0x140f   :  { %v3819_v6 = vpop.f32.mrb[89].mxu0 }
0x1410   :  { %3554 = vst [vmem:[#allocation15] sm:$0xff] %v3550_v54  ;;  %v3551_v52 = vadd.f32 %v3539_v41, %v5377_v0  ;;  %v3846_v35 = vpop.f32.mrb[80].mxu1  ;;  %v3820_v46 = vadd.f32 %v3819_v6, %v3818_v30  ;;  %v3821_v9 = vpop.f32.mrb[90].mxu0 }
0x1411   :  { %v3847_v40 = vpop.f32.mrb[81].mxu1  ;;  %v3822_v2 = vpop.f32.mrb[91].mxu0 }
0x1412   :  { %3555 = vst [vmem:[#allocation15 + $0x8] sm:$0xff] %v3551_v52  ;;  %v3495_v22 = vadd.f32 %v3820_v46, %v3679_v63  ;;  %v3848_v57 = vadd.f32 %v3847_v40, %v3846_v35  ;;  %v3849_v51 = vpop.f32.mrb[82].mxu1  ;;  %v3823_v10 = vadd.f32 %v3822_v2, %v3821_v9 }
0x1413   :  { %v3850_v49 = vpop.f32.mrb[83].mxu1 }
0x1414   :  { %v3544_v33 = vadd.f32 %v3848_v57, %v3495_v22  ;;  %v3498_v56 = vadd.f32 %v3823_v10, %v3679_v63  ;;  %v3851_v47 = vadd.f32 %v3850_v49, %v3849_v51 }
0x1416   :  { %v3552_v0 = vadd.f32 %v3544_v33, %v5380_v27  ;;  %v3547_v5 = vadd.f32 %v3851_v47, %v3498_v56 }
0x1418   :  { %3556 = vst [vmem:[#allocation15 + $0x10] sm:$0xff] %v3552_v0  ;;  %v3553_v26 = vadd.f32 %v3547_v5, %v5384_v37 }
0x141a   :  { %3557 = vst [vmem:[#allocation15 + $0x18] sm:$0xff] %v3553_v26 }
0x141b   :  { %4573 = shalt.err (!%p4570_p4)
}
0x141c   :  { %s4574_s23 = scalar_lea.hbm %s5585_s13, 512 }
0x141d   :  { %p4575_p5 = scmp.ne.s32.totalorder %s5585_s13, %s4574_s23  ;;  %p4578_p6 = scmp.lt.u32.totalorder %s4574_s23, %s5585_s13 }
0x141f   :  { %p4580_p7 = pnand %p4578_p6, %p4575_p5 }
0x1421   :  { %4583 = shalt.err (!%p4580_p7)
}
0x1422   :  { %3569 = dma.vmem_to_hbm [thread:$0]  %s3564_s0, 512, %s5585_s13, [#allocation5], %s4602_s9, %s4602_s9, %s4603_s19  }
0x1423   :  { %4592 = dma.done.wait [#allocation5], 512  }
0x1424   :  { %4593 = vsyncadd [#allocation5], 4294966784 }
0x1425   :  { %3573 = vsyncpa [#allocation4], 1 }
0x1426   :  { %3574 = vsyncpa [#allocation7], 1 }
0x1427   :  { %3575 = vsyncpa [#allocation10], 1 }
0x1428   :  { %3576 = vsyncpa [#allocation13], 1 }
0x1429   :  { %3577 = vsyncpa [#allocation5], 1 }

// kernel: tpu_custom_call.1
= control target key start
LH: loop header
LB: loop body
LE: loop exit
PB: predicated region body
PF: predicated region fallthrough
CT: control target
= control target key end

     0   :  { %18 = vsyncpa [#allocation4], 0  ;;  %s5572_s0 = inlined_call_operand.hbm [shape: f32[2,16,128], index: 0, kind: input, shape index: {}]   ;;  %s5573_s1 = inlined_call_operand.hbm [shape: f32[1,128], index: 1, kind: input, shape index: {}]   ;;  %s5574_s2 = inlined_call_operand.hbm [shape: f32[1,128], index: 2, kind: input, shape index: {}]   ;;  %s5575_s3 = inlined_call_operand.hbm [shape: bf16[128,384], index: 3, kind: input, shape index: {}]   ;;  %s5576_s4 = inlined_call_operand.vmem [shape: f32[1,384], index: 4, kind: input, shape index: {}]   ;;  %s5577_s5 = inlined_call_operand.hbm [shape: bf16[128,128], index: 5, kind: input, shape index: {}]   ;;  %s5578_s6 = inlined_call_operand.vmem [shape: f32[1,128], index: 6, kind: input, shape index: {}]   ;;  %s5579_s7 = inlined_call_operand.vmem [shape: f32[1,128], index: 7, kind: input, shape index: {}]   ;;  %s5580_s8 = inlined_call_operand.vmem [shape: f32[1,128], index: 8, kind: input, shape index: {}]   ;;  %s5581_s9 = inlined_call_operand.hbm [shape: bf16[1,128,512], index: 9, kind: input, shape index: {}]   ;;  %s5582_s10 = inlined_call_operand.vmem [shape: f32[1,1,512], index: 10, kind: input, shape index: {}]   ;;  %s5583_s11 = inlined_call_operand.hbm [shape: bf16[1,512,128], index: 11, kind: input, shape index: {}]   ;;  %s5584_s12 = inlined_call_operand.vmem [shape: f32[1,128], index: 12, kind: input, shape index: {}]   ;;  %s5585_s13 = inlined_call_operand.hbm [shape: f32[2,16,128], index: 13, kind: output, shape index: {}]  }
   0x1   :  { %19 = vsyncpa [#allocation7], 0 }
   0x2   :  { %20 = vsyncpa [#allocation10], 0 }
   0x3   :  { %21 = vsyncpa [#allocation13], 0 }
   0x4   :  { %22 = vsyncpa [#allocation5], 0  ;;  %s4594_s25 = smov [#allocation6]   ;;  %s4595_s27 = smov [#allocation9]  }
   0x5   :  { %s41_s26 = sshll.u32 %s4594_s25, 4  ;;  %s60_s28 = sshll.u32 %s4595_s27, 4  ;;  %s42_s26 = int_to_ptr.vmem [resolvable:$true] %s41_s26  ;;  %s4688_s28 = int_to_ptr.vmem [resolvable:$true] %s60_s28 }
   0x6   :  { %s4408_s14 = scalar_lea.hbm %s5573_s1, 16 }
   0x7   :  { %p4409_p0 = scmp.ne.s32.totalorder %s5573_s1, %s4408_s14  ;;  %p4412_p1 = scmp.lt.u32.totalorder %s4408_s14, %s5573_s1 }
   0x9   :  { %p4414_p2 = pnand %p4412_p1, %p4409_p0 }
   0xb   :  { %4417 = shalt.err (!%p4414_p2)
}
   0xc   :  { %s4418_s19 = scalar_lea.vmem %s42_s26, 16  ;;  %s4422_s20 = scalar_lea.vmem %s42_s26, 32 }
   0xd   :  { %p4419_p3 = scmp.ne.s32.totalorder %s42_s26, %s4418_s19  ;;  %p4423_p4 = scmp.lt.s32.totalorder %s42_s26, %s42_s26 }
   0xe   :  { %p4424_p5 = scmp.lt.s32.totalorder %s4422_s20, %s4418_s19 }
  0x10   :  { %p4425_p6 = por %p4424_p5, %p4423_p4 }
  0x12   :  { %p4426_p7 = pnand %p4425_p6, %p4419_p3 }
  0x14   :  { %4429 = shalt.err (!%p4426_p7)
}
  0x15   :  { %44 = dma.hbm_to_vmem [thread:$0]  %s5573_s1, 16, %s42_s26, [#allocation7]  }
  0x16   :  { %s4430_s25 = scalar_lea.hbm %s5575_s3, 3072 }
  0x17   :  { %p4431_p8 = scmp.ne.s32.totalorder %s5575_s3, %s4430_s25  ;;  %p4434_p9 = scmp.lt.u32.totalorder %s4430_s25, %s5575_s3 }
  0x19   :  { %p4436_p10 = pnand %p4434_p9, %p4431_p8 }
  0x1b   :  { %4439 = shalt.err (!%p4436_p10)
}
  0x1c   :  { %s4440_s15 = scalar_lea.vmem %s4688_s28, 3072  ;;  %p4445_p12 = scmp.lt.s32.totalorder %s4688_s28, %s4688_s28 }
  0x1d   :  { %p4441_p11 = scmp.ne.s32.totalorder %s4688_s28, %s4440_s15  ;;  %p4446_p13 = scmp.lt.s32.totalorder %s4440_s15, %s4440_s15 }
  0x1f   :  { %p4447_p0 = por %p4446_p13, %p4445_p12 }
  0x21   :  { %p4448_p1 = pnand %p4447_p0, %p4441_p11 }
  0x23   :  { %4451 = shalt.err (!%p4448_p1)
}
  0x24   :  { %s4596_s1 = smov 192   ;;  %s4597_s26 = smov 12  }
  0x25   :  { %66 = dma.hbm_to_vmem [thread:$0]  %s5575_s3, 3072, %s4688_s28, [#allocation10], %s4596_s1, %s4596_s1, %s4597_s26  }
  0x26   :  { %s4598_s18 = smov [#allocation12]   ;;  %s4452_s22 = scalar_lea.hbm %s5581_s9, 4096 }
  0x27   :  { %s92_s19 = sshll.u32 %s4598_s18, 4  ;;  %p4453_p2 = scmp.ne.s32.totalorder %s5581_s9, %s4452_s22  ;;  %s93_s19 = int_to_ptr.vmem [resolvable:$true] %s92_s19 }
  0x28   :  { %p4456_p3 = scmp.lt.u32.totalorder %s4452_s22, %s5581_s9 }
  0x2a   :  { %p4458_p4 = pnand %p4456_p3, %p4453_p2 }
  0x2c   :  { %4461 = shalt.err (!%p4458_p4)
}
  0x2d   :  { %s4462_s29 = scalar_lea.vmem %s93_s19, 4096  ;;  %p4467_p6 = scmp.lt.s32.totalorder %s93_s19, %s93_s19 }
  0x2e   :  { %p4463_p5 = scmp.ne.s32.totalorder %s93_s19, %s4462_s29  ;;  %p4468_p7 = scmp.lt.s32.totalorder %s4462_s29, %s4462_s29 }
  0x30   :  { %p4469_p8 = por %p4468_p7, %p4467_p6 }
  0x32   :  { %p4470_p9 = pnand %p4469_p8, %p4463_p5 }
  0x34   :  { %4473 = shalt.err (!%p4470_p9)
}
  0x35   :  { %s4599_s3 = smov 256   ;;  %s4600_s28 = smov 16  }
  0x36   :  { %98 = dma.hbm_to_vmem [thread:$0]  %s5581_s9, 4096, %s93_s19, [#allocation13], %s4599_s3, %s4599_s3, %s4600_s28  }
  0x37   :  { %s4601_s15 = smov [#allocation3]   ;;  %s4474_s17 = scalar_lea.hbm %s5572_s0, 512 }
  0x38   :  { %s28_s1 = sshll.u32 %s4601_s15, 4  ;;  %p4475_p10 = scmp.ne.s32.totalorder %s5572_s0, %s4474_s17  ;;  %s29_s1 = int_to_ptr.vmem [resolvable:$true] %s28_s1 }
  0x39   :  { %p4478_p11 = scmp.lt.u32.totalorder %s4474_s17, %s5572_s0 }
  0x3b   :  { %p4480_p12 = pnand %p4478_p11, %p4475_p10 }
  0x3d   :  { %4483 = shalt.err (!%p4480_p12)
}
  0x3e   :  { %s4484_s23 = scalar_lea.vmem %s29_s1, 512  ;;  %p4489_p0 = scmp.lt.s32.totalorder %s29_s1, %s29_s1 }
  0x3f   :  { %p4485_p13 = scmp.ne.s32.totalorder %s29_s1, %s4484_s23  ;;  %p4490_p1 = scmp.lt.s32.totalorder %s4484_s23, %s4484_s23 }
  0x41   :  { %p4491_p2 = por %p4490_p1, %p4489_p0 }
  0x43   :  { %p4492_p3 = pnand %p4491_p2, %p4485_p13 }
  0x45   :  { %4495 = shalt.err (!%p4492_p3)
}
  0x46   :  { %s4602_s9 = smov 128   ;;  %s4603_s19 = smov 8  }
  0x47   :  { %34 = dma.hbm_to_vmem [thread:$0]  %s5572_s0, 512, %s29_s1, [#allocation4], %s4602_s9, %s4602_s9, %s4603_s19  }
  0x48   :  { %s4604_s27 = smov [#allocation8]   ;;  %s4605_s3 = smov [#allocation11]  }
  0x49   :  { %s51_s29 = sshll.u32 %s4604_s27, 4  ;;  %s74_s30 = sshll.u32 %s4605_s3, 4  ;;  %s52_s29 = int_to_ptr.vmem [resolvable:$true] %s51_s29  ;;  %s4747_s30 = int_to_ptr.vmem [resolvable:$true] %s74_s30 }
  0x4a   :  { %s4496_s26 = scalar_lea.hbm %s5574_s2, 16 }
  0x4b   :  { %p4497_p4 = scmp.ne.s32.totalorder %s5574_s2, %s4496_s26  ;;  %p4500_p5 = scmp.lt.u32.totalorder %s4496_s26, %s5574_s2 }
  0x4d   :  { %p4502_p6 = pnand %p4500_p5, %p4497_p4 }
  0x4f   :  { %4505 = shalt.err (!%p4502_p6)
}
  0x50   :  { %s4506_s0 = scalar_lea.vmem %s52_s29, 16  ;;  %s4510_s1 = scalar_lea.vmem %s52_s29, 32 }
  0x51   :  { %p4507_p7 = scmp.ne.s32.totalorder %s52_s29, %s4506_s0  ;;  %p4511_p8 = scmp.lt.s32.totalorder %s52_s29, %s52_s29 }
  0x52   :  { %p4512_p9 = scmp.lt.s32.totalorder %s4510_s1, %s4506_s0 }
  0x54   :  { %p4513_p10 = por %p4512_p9, %p4511_p8 }
  0x56   :  { %p4514_p11 = pnand %p4513_p10, %p4507_p7 }
  0x58   :  { %4517 = shalt.err (!%p4514_p11)
}
  0x59   :  { %54 = dma.hbm_to_vmem [thread:$0]  %s5574_s2, 16, %s52_s29, [#allocation7]  }
  0x5a   :  { %s4518_s25 = scalar_lea.hbm %s5577_s5, 1024 }
  0x5b   :  { %p4519_p12 = scmp.ne.s32.totalorder %s5577_s5, %s4518_s25  ;;  %p4522_p13 = scmp.lt.u32.totalorder %s4518_s25, %s5577_s5 }
  0x5d   :  { %p4524_p0 = pnand %p4522_p13, %p4519_p12 }
  0x5f   :  { %4527 = shalt.err (!%p4524_p0)
}
  0x60   :  { %s4528_s26 = scalar_lea.vmem %s4747_s30, 1024  ;;  %p4533_p2 = scmp.lt.s32.totalorder %s4747_s30, %s4747_s30 }
  0x61   :  { %p4529_p1 = scmp.ne.s32.totalorder %s4747_s30, %s4528_s26  ;;  %p4534_p3 = scmp.lt.s32.totalorder %s4528_s26, %s4528_s26 }
  0x63   :  { %p4535_p4 = por %p4534_p3, %p4533_p2 }
  0x65   :  { %p4536_p5 = pnand %p4535_p4, %p4529_p1 }
  0x67   :  { %4539 = shalt.err (!%p4536_p5)
}
  0x68   :  { %s4606_s2 = smov 64   ;;  %s4607_s29 = smov 4  }
  0x69   :  { %80 = dma.hbm_to_vmem [thread:$0]  %s5577_s5, 1024, %s4747_s30, [#allocation10], %s4606_s2, %s4606_s2, %s4607_s29  }
  0x6a   :  { %s4608_s18 = smov [#allocation14]   ;;  %s4540_s21 = scalar_lea.hbm %s5583_s11, 4096 }
  0x6b   :  { %s106_s20 = sshll.u32 %s4608_s18, 4  ;;  %p4541_p6 = scmp.ne.s32.totalorder %s5583_s11, %s4540_s21  ;;  %s107_s20 = int_to_ptr.vmem [resolvable:$true] %s106_s20 }
  0x6c   :  { %p4544_p7 = scmp.lt.u32.totalorder %s4540_s21, %s5583_s11 }
  0x6e   :  { %p4546_p8 = pnand %p4544_p7, %p4541_p6 }
  0x70   :  { %4549 = shalt.err (!%p4546_p8)
}
  0x71   :  { %s4550_s27 = scalar_lea.vmem %s107_s20, 4096  ;;  %p4555_p10 = scmp.lt.s32.totalorder %s107_s20, %s107_s20 }
  0x72   :  { %p4551_p9 = scmp.ne.s32.totalorder %s107_s20, %s4550_s27  ;;  %p4556_p11 = scmp.lt.s32.totalorder %s4550_s27, %s4550_s27 }
  0x74   :  { %p4557_p12 = por %p4556_p11, %p4555_p10 }
  0x76   :  { %p4558_p13 = pnand %p4557_p12, %p4551_p9 }
  0x78   :  { %4561 = shalt.err (!%p4558_p13)
}
  0x79   :  { %112 = dma.hbm_to_vmem [thread:$0]  %s5583_s11, 4096, %s107_s20, [#allocation13], %s4606_s2, %s4606_s2, %s4607_s29  }
  0x7a   :  { %4584 = dma.done.wait [#allocation4], 512  }
  0x7b   :  { %4585 = vsyncadd [#allocation4], 4294966784 }
  0x7c   :  { %4586 = dma.done.wait [#allocation7], 32  }
  0x7d   :  { %4587 = vsyncadd [#allocation7], 4294967264 }
  0x7e   :  { %4588 = dma.done.wait [#allocation10], 4096  }
  0x7f   :  { %4589 = vsyncadd [#allocation10], 4294963200 }
  0x80   :  { %4590 = dma.done.wait [#allocation13], 8192  }
  0x81   :  { %4591 = vsyncadd [#allocation13], 4294959104  ;;  %v137_v0 = vld [vmem:[#allocation3] sm:$0xff]  ;;  %v139_v1 = vld [vmem:[#allocation3 + $0x10] sm:$0xff]  ;;  %v5589_v39 = vmov 0   ;;  %vm4611_vm0 = vmmov 0  }
  0x82   :  { %v138_v2 = vld [vmem:[#allocation3 + $0x8] sm:$0xff]  ;;  %143 = vadd.xlane.f32.xlu0 %v137_v0  ;;  %147 = vadd.xlane.f32.xlu1 %v139_v1  ;;  %v140_v3 = vld [vmem:[#allocation3 + $0x18] sm:$0xff]  ;;  %v4110_v5 = vld [vmem:[#allocation9] ss:$12 sps:$4 sm:$0xff]   ;;  %vm499_vm1 = vcmask 130048   ;;  %s4613_s14 = smov 96  }
  0x83   :  { %v4108_v4 = vld [vmem:[#allocation9 + $0x4] ss:$12 sps:$4 sm:$0xff]   ;;  %v4111_v6 = vld [vmem:[#allocation9 + $0x1c] ss:$12 sps:$4 sm:$0xff]   ;;  %v4115_v25 = vld [vmem:[#allocation9 + $0x34] ss:$12 sps:$4 sm:$0xff]   ;;  %419 = vmatprep.mubr.bf16.mxu0 %v5589_v39 }
  0x84   :  { %v4113_v7 = vld [vmem:[#allocation9 + $0x8] ss:$12 sps:$4 sm:$0xff]   ;;  %387 = vmatprep.subr.bf16.mxu0 %v4108_v4  ;;  %v4114_v24 = vld [vmem:[#allocation9 + $0x18] ss:$12 sps:$4 sm:$0xff]   ;;  %v4117_v26 = vld [vmem:[#allocation9 + $0x20] ss:$12 sps:$4 sm:$0xff]  }
  0x85   :  { %388 = vmatpush1.bf16.msra.mxu0 %v4110_v5  ;;  %3852 = vmatprep.subr.bf16.mxu1 %v4113_v7  ;;  %v4118_v27 = vld [vmem:[#allocation9 + $0x30] ss:$12 sps:$4 sm:$0xff]   ;;  %v4119_v28 = vld [vmem:[#allocation9 + $0x4c] ss:$12 sps:$4 sm:$0xff]   ;;  %v4122_v30 = vld [vmem:[#allocation9 + $0x48] ss:$12 sps:$4 sm:$0xff]  }
  0x86   :  { %145 = vadd.xlane.f32.xlu0 %v138_v2  ;;  %149 = vadd.xlane.f32.xlu1 %v140_v3  ;;  %v4121_v29 = vld [vmem:[#allocation9 + $0x38] ss:$12 sps:$4 sm:$0xff]   ;;  %v4125_v32 = vld [vmem:[#allocation9 + $0x50] ss:$12 sps:$4 sm:$0xff]   ;;  %v4126_v33 = vld [vmem:[#allocation9 + $0x60] ss:$12 sps:$4 sm:$0xff]  }
  0x87   :  { %389 = vmatprep.subr.bf16.mxu0 %v4111_v6  ;;  %3853 = vmatpush3.bf16.msra.mxu1 %v4113_v7  ;;  %v4123_v31 = vld [vmem:[#allocation9 + $0x64] ss:$12 sps:$4 sm:$0xff]   ;;  %v4127_v34 = vld [vmem:[#allocation9 + $0x7c] ss:$12 sps:$4 sm:$0xff]   ;;  %v4131_v37 = vld [vmem:[#allocation9 + $0x94] ss:$12 sps:$4 sm:$0xff]  }
  0x88   :  { %3854 = vmatprep.subr.bf16.mxu1 %v4117_v26  ;;  %v4129_v35 = vld [vmem:[#allocation9 + $0x68] ss:$12 sps:$4 sm:$0xff]   ;;  %v4130_v36 = vld [vmem:[#allocation9 + $0x78] ss:$12 sps:$4 sm:$0xff]   ;;  %v4133_v38 = vld [vmem:[#allocation9 + $0x80] ss:$12 sps:$4 sm:$0xff]  }
  0x89   :  { %390 = vmatpush1.bf16.msra.mxu0 %v4114_v24  ;;  %v4134_v40 = vld [vmem:[#allocation9 + $0x90] ss:$12 sps:$4 sm:$0xff]   ;;  %v4135_v41 = vld [vmem:[#allocation9 + $0xac] ss:$12 sps:$4 sm:$0xff]   ;;  %v4138_v43 = vld [vmem:[#allocation9 + $0xa8] ss:$12 sps:$4 sm:$0xff]  }
  0x8a   :  { %391 = vmatprep.subr.bf16.mxu0 %v4115_v25  ;;  %v4137_v42 = vld [vmem:[#allocation9 + $0x98] ss:$12 sps:$4 sm:$0xff]   ;;  %v4139_v44 = vld [vmem:[#allocation9 + $0xb0] ss:$12 sps:$4 sm:$0xff]   ;;  %s4614_s15 = smov 80   ;;  %s4615_s26 = smov 48  }
  0x8b   :  { %3855 = vmatpush3.bf16.msra.mxu1 %v4117_v26  ;;  %v3578_v59 = vld [vmem:[#allocation6] ss:$0 sm:$0xff]  ;;  %s4616_s29 = smov 32   ;;  %vm990_vm2 = vcmask 261248   ;;  %vm1245_vm3 = vcmask 392448   ;;  %vm1500_vm4 = vcmask 523648  }
  0x8c   :  { %3856 = vmatprep.subr.bf16.mxu1 %v4121_v29  ;;  %vm1755_vm5 = vcmask 654848   ;;  %vm2010_vm6 = vcmask 786048   ;;  %vm2265_vm7 = vcmask 917248   ;;  %vm2520_vm8 = vcmask 1048448  }
  0x8d   :  { %392 = vmatpush1.bf16.msra.mxu0 %v4118_v27 }
  0x8e   :  { %393 = vmatprep.subr.bf16.mxu0 %v4119_v28 }
  0x8f   :  { %3857 = vmatpush3.bf16.msra.mxu1 %v4121_v29 }
  0x90   :  { %3858 = vmatprep.subr.bf16.mxu1 %v4125_v32 }
  0x91   :  { %394 = vmatpush1.bf16.msra.mxu0 %v4122_v30 }
  0x92   :  { %395 = vmatprep.subr.bf16.mxu0 %v4123_v31 }
  0x93   :  { %3859 = vmatpush3.bf16.msra.mxu1 %v4125_v32 }
  0x94   :  { %3860 = vmatprep.subr.bf16.mxu1 %v4129_v35 }
  0x95   :  { %396 = vmatpush1.bf16.msra.mxu0 %v4126_v33 }
  0x96   :  { %397 = vmatprep.subr.bf16.mxu0 %v4127_v34 }
  0x97   :  { %3861 = vmatpush3.bf16.msra.mxu1 %v4129_v35 }
  0x98   :  { %3862 = vmatprep.subr.bf16.mxu1 %v4133_v38 }
  0x99   :  { %398 = vmatpush1.bf16.msra.mxu0 %v4130_v36 }
  0x9a   :  { %399 = vmatprep.subr.bf16.mxu0 %v4131_v37 }
  0x9b   :  { %3863 = vmatpush3.bf16.msra.mxu1 %v4133_v38 }
  0x9c   :  { %3864 = vmatprep.subr.bf16.mxu1 %v4137_v42 }
  0x9d   :  { %400 = vmatpush1.bf16.msra.mxu0 %v4134_v40 }
  0x9e   :  { %401 = vmatprep.subr.bf16.mxu0 %v4135_v41 }
  0x9f   :  { %3865 = vmatpush3.bf16.msra.mxu1 %v4137_v42 }
  0xa0   :  { %3866 = vmatprep.subr.bf16.mxu1 %v4139_v44 }
  0xa1   :  { %402 = vmatpush1.bf16.msra.mxu0 %v4138_v43 }
  0xa3   :  { %3867 = vmatpush3.bf16.msra.mxu1 %v4139_v44 }
 0x10f   :  { %v144_v8 = vpop.xlane.xlu0 %143  ;;  %v148_v9 = vpop.xlane.xlu1 %147 }
 0x110   :  { %v152_v10 = vmul.f32 0.0078125, %v144_v8  ;;  %v154_v11 = vmul.f32 0.0078125, %v148_v9 }
 0x112   :  { %v4794_v12 = vsub.f32 %v137_v0, %v152_v10  ;;  %v4796_v13 = vsub.f32 %v139_v1, %v154_v11  ;;  %v3579_v0 = vld [vmem:[#allocation8] ss:$0 sm:$0xff] }
 0x113   :  { %v146_v14 = vpop.xlane.xlu0 %145  ;;  %v150_v15 = vpop.xlane.xlu1 %149 }
 0x114   :  { %v153_v16 = vmul.f32 0.0078125, %v146_v14  ;;  %v160_v17 = vmul.f32 %v4794_v12, %v4794_v12  ;;  %v155_v18 = vmul.f32 0.0078125, %v150_v15  ;;  %v162_v19 = vmul.f32 %v4796_v13, %v4796_v13 }
 0x115   :  { %v5593_v14 = vmov 0.0  }
 0x116   :  { %164 = vadd.xlane.f32.xlu0 %v160_v17  ;;  %v4802_v20 = vsub.f32 %v138_v2, %v153_v16  ;;  %v4804_v21 = vsub.f32 %v140_v3, %v155_v18  ;;  %3872 = vmatprep.subr.bf16.mxu0 %v5593_v14  ;;  %v242_v17 = vld [vmem:[%s5576_s4] sm:$0x7]  ;;  %s4612_s4 = smov 112  }
 0x117   :  { %3884 = vmatprep.subr.bf16.mxu1 %v5593_v14 }
 0x118   :  { %v161_v22 = vmul.f32 %v4802_v20, %v4802_v20  ;;  %v163_v23 = vmul.f32 %v4804_v21, %v4804_v21 }
 0x11a   :  { %168 = vadd.xlane.f32.xlu0 %v162_v19  ;;  %166 = vadd.xlane.f32.xlu1 %v161_v22 }
 0x11e   :  { %170 = vadd.xlane.f32.xlu1 %v163_v23 }
 0x1a3   :  { %v165_v45 = vpop.xlane.xlu0 %164 }
 0x1a4   :  { %v172_v46 = vmul.f32 0.0078125, %v165_v45 }
 0x1a6   :  { %v176_v47 = vadd.f32 1e-06, %v172_v46 }
 0x1a7   :  { %v167_v48 = vpop.xlane.xlu1 %166  ;;  %v169_v49 = vpop.xlane.xlu0 %168 }
 0x1a8   :  { %4228 = vrsqrt.f32 %v176_v47  ;;  %v173_v50 = vmul.f32 0.0078125, %v167_v48  ;;  %v174_v51 = vmul.f32 0.0078125, %v169_v49 }
 0x1aa   :  { %v177_v52 = vadd.f32 1e-06, %v173_v50  ;;  %v178_v53 = vadd.f32 1e-06, %v174_v51 }
 0x1ab   :  { %v171_v54 = vpop.xlane.xlu1 %170 }
 0x1ac   :  { %4230 = vrsqrt.f32 %v177_v52  ;;  %v175_v55 = vmul.f32 0.0078125, %v171_v54 }
 0x1ad   :  { %4232 = vrsqrt.f32 %v178_v53 }
 0x1ae   :  { %v179_v56 = vadd.f32 1e-06, %v175_v55 }
 0x1b0   :  { %4234 = vrsqrt.f32 %v179_v56 }
 0x1b2   :  { %v4229_v57 = vpop.eup %4228 }
 0x1b3   :  { %v184_v58 = vmul.f32 %v4229_v57, %v4794_v12 }
 0x1b5   :  { %v194_v63 = vmul.f32 %v3578_v59, %v184_v58 }
 0x1b6   :  { %v4231_v60 = vpop.eup %4230 }
 0x1b7   :  { %v4233_v61 = vpop.eup %4232  ;;  %v185_v62 = vmul.f32 %v4231_v60, %v4802_v20  ;;  %v204_v4 = vadd.f32 %v3579_v0, %v194_v63 }
 0x1b8   :  { %v186_v1 = vmul.f32 %v4233_v61, %v4796_v13  ;;  %v244_v13 = vlaneseq }
 0x1b9   :  { %v195_v2 = vmul.f32 %v3578_v59, %v185_v62 }
 0x1ba   :  { %v4235_v3 = vpop.eup %4234  ;;  %v196_v7 = vmul.f32 %v3578_v59, %v186_v1  ;;  %v4822_v15 = vshrl.u32 %v244_v13, 7 }
 0x1bb   :  { %v205_v5 = vadd.f32 %v3579_v0, %v195_v2  ;;  %v187_v6 = vmul.f32 %v4235_v3, %v4804_v21 }
 0x1bc   :  { %v206_v10 = vadd.f32 %v3579_v0, %v196_v7  ;;  %5595 = vst [vmem:[#allocation21_spill] sm:$0xff] %v4822_v15  ;;  %v5588_v16 = vsub.s32 0, %v4822_v15  ;;  %v5586_v18 = vsub.s32 1, %v4822_v15  ;;  %v5587_v20 = vsub.s32 2, %v4822_v15 }
 0x1bd   :  { %v208_v8 = vpack.c.bf16 %v205_v5, %v204_v4  ;;  %v197_v9 = vmul.f32 %v3578_v59, %v187_v6 }
 0x1be   :  { %v247_v19 = vrot.slane %v242_v17, %v5588_v16  ;;  %v251_v22 = vrot.slane %v242_v17, %v5586_v18  ;;  %v255_v28 = vrot.slane %v242_v17, %v5587_v20 }
 0x1bf   :  { %420 = vmatmul.mubr.bf16.vlgmr.msra.gmra.mrb[0].mxu0 %v208_v8  ;;  %3868 = vmatprep.mubr.bf16.mxu1 %v208_v8  ;;  %v207_v11 = vadd.f32 %v3579_v0, %v197_v9 }
 0x1c0   :  { %429 = vmatprep.mubr.bf16.mxu0 %v5589_v39 }
 0x1c1   :  { %v209_v12 = vpack.c.bf16 %v207_v11, %v206_v10 }
 0x1c3   :  { %3869 = vmatmul.mubr.bf16.vlgmr.msra.gmra.mrb[0].mxu1 %v209_v12 }
 0x1c4   :  { %3886 = vmatprep.mubr.msk.bf16.mxu1 %vm4611_vm0, %v5593_v14 }
 0x1c7   :  { %430 = vmatmul.mubr.bf16.gmra.mrb[4].mxu0 %v209_v12 }
 0x1c8   :  { %3874 = vmatprep.mubr.msk.bf16.mxu0 %vm4611_vm0, %v5593_v14 }
 0x292   :  { %v421_v21 = vpop.f32.mrb[0].mxu0 }
 0x293   :  { %v422_v23 = vadd.f32 %v421_v21, %v247_v19  ;;  %v423_v24 = vpop.f32.mrb[1].mxu0 }
 0x294   :  { %v425_v25 = vpop.f32.mrb[2].mxu0  ;;  %v424_v29 = vadd.f32 %v423_v24, %v251_v22 }
 0x295   :  { %v426_v26 = vadd.f32 %v425_v25, %v247_v19  ;;  %v427_v27 = vpop.f32.mrb[3].mxu0  ;;  %v489_v32 = vmul.f32 0.25, %v422_v23 }
 0x296   :  { %v428_v30 = vadd.f32 %v427_v27, %v251_v22  ;;  %v3870_v31 = vpop.f32.mrb[0].mxu1 }
 0x297   :  { %v490_v33 = vmul.f32 0.25, %v426_v26  ;;  %v474_v34 = vpop.f32.mrb[1].mxu1  ;;  %v483_v38 = vadd.f32 %v3870_v31, %v255_v28 }
 0x298   :  { %v4836_v35 = vpack.c.bf16 %v428_v30, %v424_v29  ;;  %v3871_v36 = vpop.f32.mrb[2].mxu1  ;;  %v475_v42 = vadd.f32 %v474_v34, %v255_v28 }
 0x299   :  { %v4838_v37 = vpack.c.bf16 %v490_v33, %v489_v32  ;;  %v486_v40 = vadd.f32 %v3871_v36, %v255_v28  ;;  %v477_v41 = vpop.f32.mrb[3].mxu1 }
 0x29a   :  { %v478_v43 = vadd.f32 %v477_v41, %v255_v28  ;;  %v431_v44 = vpop.f32.mrb[4].mxu0  ;;  %v504_v45 = vsel %vm499_vm1, %v4836_v35, 0 }
 0x29b   :  { %v4842_v46 = vpack.c.bf16 %v486_v40, %v483_v38  ;;  %v432_v47 = vadd.f32 %v431_v44, %v247_v19  ;;  %v433_v48 = vpop.f32.mrb[5].mxu0  ;;  %3873 = vmatpush3.bf16.xpose.msra.mxu0 %v504_v45 }
 0x29c   :  { %v4844_v49 = vpack.c.bf16 %v478_v43, %v475_v42  ;;  %v435_v50 = vpop.f32.mrb[6].mxu0  ;;  %3878 = vmatprep.subr.bf16.mxu0 %v5593_v14  ;;  %v434_v53 = vadd.f32 %v433_v48, %v251_v22 }
 0x29d   :  { %v436_v51 = vadd.f32 %v435_v50, %v247_v19  ;;  %v437_v52 = vpop.f32.mrb[7].mxu0  ;;  %v491_v55 = vmul.f32 0.25, %v432_v47 }
 0x29e   :  { %v438_v54 = vadd.f32 %v437_v52, %v251_v22  ;;  %3885 = vmatpush3.bf16.msra.mxu1 %v4844_v49 }
 0x29f   :  { %v492_v56 = vmul.f32 0.25, %v436_v51  ;;  %3896 = vmatprep.subr.bf16.mxu1 %v5593_v14 }
 0x2a0   :  { %v4849_v57 = vpack.c.bf16 %v438_v54, %v434_v53 }
 0x2a1   :  { %v4851_v58 = vpack.c.bf16 %v492_v56, %v491_v55 }
 0x2a2   :  { %3875 = vmatmul.mubr.msk.bf16.vlgmr.msra.gmra.mrb[8].mxu0 %vm499_vm1, %v4838_v37  ;;  %v551_v59 = vsel %vm499_vm1, %v4849_v57, 0 }
 0x2a3   :  { %3879 = vmatpush3.bf16.xpose.msra.mxu0 %v551_v59  ;;  %3880 = vmatprep.mubr.msk.bf16.mxu0 %vm4611_vm0, %v5593_v14 }
 0x2a4   :  { %3890 = vmatprep.subr.bf16.mxu0 %v5593_v14 }
 0x2aa   :  { %3881 = vmatmul.mubr.msk.bf16.vlgmr.msra.gmra.mrb[12].mxu0 %vm499_vm1, %v4851_v58 }
 0x2ab   :  { %3891 = vmatpush3.bf16.msra.mxu0 %v4842_v46  ;;  %3892 = vmatprep.mubr.msk.bf16.mxu0 %vm4611_vm0, %v5593_v14 }
 0x2ac   :  { %3902 = vmatprep.subr.bf16.mxu0 %v5593_v14 }
 0x375   :  { %v540_v60 = vpop.f32.mrb[8].mxu0 }
 0x376   :  { %v3876_v61 = vpop.f32.mrb[9].mxu0  ;;  %v594_v62 = vsel %vm499_vm1, %v540_v60, -inf }
 0x377   :  { %595 = vmax.xlane.f32.xlu0 %v594_v62  ;;  %v543_v63 = vpop.f32.mrb[10].mxu0 }
 0x378   :  { %v3877_v0 = vpop.f32.mrb[11].mxu0  ;;  %v597_v1 = vsel %vm499_vm1, %v543_v63, -inf }
 0x379   :  { %598 = vmax.xlane.f32.xlu1 %v597_v1 }
 0x37d   :  { %v587_v2 = vpop.f32.mrb[12].mxu0 }
 0x37e   :  { %v3882_v3 = vpop.f32.mrb[13].mxu0  ;;  %v600_v4 = vsel %vm499_vm1, %v587_v2, -inf }
 0x37f   :  { %601 = vmax.xlane.f32.xlu0 %v600_v4  ;;  %v590_v5 = vpop.f32.mrb[14].mxu0 }
 0x380   :  { %v3883_v6 = vpop.f32.mrb[15].mxu0  ;;  %v603_v7 = vsel %vm499_vm1, %v590_v5, -inf }
 0x38a   :  { %789 = vrot.lane.b32.xlu1 %v4849_v57, %s4612_s4 }
 0x395   :  { %736 = vrot.lane.b32.xlu0 %v4836_v35, %s4612_s4 }
 0x3ae   :  { %604 = vmax.xlane.f32.xlu1 %v603_v7 }
 0x3bf   :  { %733 = vrot.lane.b32.xlu1 %v4838_v37, %s4612_s4 }
 0x3c3   :  { %786 = vrot.lane.b32.xlu1 %v4851_v58, %s4612_s4 }
 0x404   :  { %v596_v8 = vpop.xlane.xlu0 %595 }
 0x405   :  { %v606_v9 = vsub.f32 %v540_v60, %v596_v8 }
 0x406   :  { %v599_v10 = vpop.xlane.xlu1 %598 }
 0x407   :  { %v610_v11 = vmul.f32 1.442695, %v606_v9  ;;  %v607_v12 = vsub.f32 %v543_v63, %v599_v10 }
 0x409   :  { %v612_v13 = vmul.f32 1.442695, %v607_v12  ;;  %4236 = vpow2.f32 %v610_v11 }
 0x40a   :  { %v790_v25 = vpop.permute.xlu1 %789 }
 0x40b   :  { %4238 = vpow2.f32 %v612_v13  ;;  %v795_v36 = vsel %vm499_vm1, %v790_v25, 0 }
 0x40c   :  { %v602_v17 = vpop.xlane.xlu0 %601 }
 0x40d   :  { %v608_v26 = vsub.f32 %v587_v2, %v602_v17 }
 0x40f   :  { %v614_v27 = vmul.f32 1.442695, %v608_v26 }
 0x410   :  { %v737_v22 = vpop.permute.xlu0 %736 }
 0x411   :  { %v742_v24 = vsel %vm499_vm1, %v737_v22, 0  ;;  %4240 = vpow2.f32 %v614_v27 }
 0x413   :  { %v4878_v19 = vpop.eup %4236 }
 0x415   :  { %v4880_v21 = vpop.eup %4238 }
 0x416   :  { %v634_v23 = vpack.c.bf16 %v4880_v21, %v4878_v19 }
 0x418   :  { %3887 = vmatmul.mubr.msk.bf16.vlgmr.msra.gmra.mrb[4].mxu1 %vm499_vm1, %v634_v23 }
 0x419   :  { %3897 = vmatpush3.bf16.xpose.msra.mxu1 %v742_v24  ;;  %3898 = vmatprep.mubr.msk.bf16.mxu1 %vm4611_vm0, %v5593_v14 }
 0x41a   :  { %3908 = vmatprep.subr.bf16.mxu1 %v5593_v14 }
 0x41b   :  { %v4892_v32 = vpop.eup %4240 }
 0x43b   :  { %v605_v28 = vpop.xlane.xlu1 %604 }
 0x43c   :  { %v609_v29 = vsub.f32 %v590_v5, %v605_v28 }
 0x43e   :  { %v616_v30 = vmul.f32 1.442695, %v609_v29 }
 0x43f   :  { %v734_v31 = vpop.permute.xlu1 %733 }
 0x440   :  { %4242 = vpow2.f32 %v616_v30  ;;  %3899 = vmatmul.mubr.msk.bf16.vlgmr.msra.gmra.mrb[8].mxu1 %vm499_vm1, %v734_v31 }
 0x441   :  { %3910 = vmatprep.mubr.msk.bf16.mxu1 %vm4611_vm0, %v5593_v14 }
 0x443   :  { %v787_v38 = vpop.permute.xlu1 %786 }
 0x44a   :  { %v4894_v33 = vpop.eup %4242 }
 0x44b   :  { %v635_v34 = vpack.c.bf16 %v4894_v33, %v4892_v32 }
 0x44d   :  { %3893 = vmatmul.mubr.msk.bf16.vlgmr.msra.gmra.mrb[16].mxu0 %vm499_vm1, %v635_v34 }
 0x44e   :  { %3903 = vmatpush3.bf16.xpose.msra.mxu0 %v795_v36  ;;  %3904 = vmatprep.mubr.msk.bf16.mxu0 %vm4611_vm0, %v5593_v14 }
 0x44f   :  { %3914 = vmatprep.subr.bf16.mxu0 %v5593_v14 }
 0x455   :  { %3905 = vmatmul.mubr.msk.bf16.vlgmr.msra.gmra.mrb[20].mxu0 %vm499_vm1, %v787_v38 }
 0x456   :  { %3916 = vmatprep.mubr.msk.bf16.mxu0 %vm4611_vm0, %v5593_v14 }
 0x4eb   :  { %v4906_v40 = vpop.f32.mrb[4].mxu1 }
 0x4ec   :  { %5596 = vst [vmem:[#allocation22_spill] sm:$0xff] %v4906_v40  ;;  %v3888_v41 = vpop.f32.mrb[5].mxu1 }
 0x4ed   :  { %v4908_v42 = vpop.f32.mrb[6].mxu1 }
 0x4ee   :  { %5597 = vst [vmem:[#allocation23_spill] sm:$0xff] %v4908_v42  ;;  %v3889_v43 = vpop.f32.mrb[7].mxu1 }
 0x513   :  { %v778_v44 = vpop.f32.mrb[8].mxu1 }
 0x514   :  { %v3900_v45 = vpop.f32.mrb[9].mxu1  ;;  %v838_v47 = vsel %vm499_vm1, %v778_v44, -inf }
 0x515   :  { %839 = vmax.xlane.f32.xlu0 %v838_v47  ;;  %v781_v48 = vpop.f32.mrb[10].mxu1 }
 0x516   :  { %v3901_v50 = vpop.f32.mrb[11].mxu1  ;;  %v841_v51 = vsel %vm499_vm1, %v781_v48, -inf }
 0x517   :  { %842 = vmax.xlane.f32.xlu1 %v841_v51 }
 0x520   :  { %v4912_v52 = vpop.f32.mrb[16].mxu0 }
 0x521   :  { %5598 = vst [vmem:[#allocation24_spill] sm:$0xff] %v4912_v52  ;;  %v3894_v53 = vpop.f32.mrb[17].mxu0 }
 0x522   :  { %v4914_v54 = vpop.f32.mrb[18].mxu0 }
 0x523   :  { %5599 = vst [vmem:[#allocation25_spill] sm:$0xff] %v4914_v54  ;;  %v3895_v55 = vpop.f32.mrb[19].mxu0 }
 0x528   :  { %929 = vrot.lane.b32.xlu1 %v4842_v46, %s4612_s4  ;;  %v831_v56 = vpop.f32.mrb[20].mxu0 }
 0x529   :  { %v3906_v59 = vpop.f32.mrb[21].mxu0  ;;  %v844_v60 = vsel %vm499_vm1, %v831_v56, -inf }
 0x52a   :  { %845 = vmax.xlane.f32.xlu0 %v844_v60  ;;  %v834_v61 = vpop.f32.mrb[22].mxu0 }
 0x52b   :  { %v3907_v62 = vpop.f32.mrb[23].mxu0  ;;  %v847_v63 = vsel %vm499_vm1, %v834_v61, -inf }
 0x52c   :  { %995 = vrot.lane.b32.xlu1 %v4836_v35, %s4613_s14 }
 0x52e   :  { %848 = vmax.xlane.f32.xlu0 %v847_v63 }
 0x530   :  { %1046 = vrot.lane.b32.xlu1 %v4849_v57, %s4613_s14 }
 0x534   :  { %1044 = vrot.lane.b32.xlu1 %v4851_v58, %s4613_s14 }
 0x544   :  { %881 = vrot.lane.b32.xlu0 %v4844_v49, %s4612_s4 }
 0x548   :  { %993 = vrot.lane.b32.xlu0 %v4838_v37, %s4613_s14 }
 0x5a2   :  { %v840_v0 = vpop.xlane.xlu0 %839 }
 0x5a3   :  { %v850_v1 = vsub.f32 %v778_v44, %v840_v0 }
 0x5a4   :  { %v843_v2 = vpop.xlane.xlu1 %842 }
 0x5a5   :  { %v854_v3 = vmul.f32 1.442695, %v850_v1  ;;  %v851_v4 = vsub.f32 %v781_v48, %v843_v2 }
 0x5a7   :  { %v856_v5 = vmul.f32 1.442695, %v851_v4  ;;  %4244 = vpow2.f32 %v854_v3 }
 0x5a8   :  { %v930_v6 = vpop.permute.xlu1 %929 }
 0x5a9   :  { %4246 = vpow2.f32 %v856_v5  ;;  %3915 = vmatpush3.bf16.msra.mxu0 %v930_v6 }
 0x5aa   :  { %3926 = vmatprep.subr.bf16.mxu0 %v5593_v14 }
 0x5ac   :  { %v996_v24 = vpop.permute.xlu1 %995 }
 0x5ad   :  { %v1001_v25 = vsel %vm499_vm1, %v996_v24, 0 }
 0x5b0   :  { %v1047_v28 = vpop.permute.xlu1 %1046 }
 0x5b1   :  { %v4931_v7 = vpop.eup %4244  ;;  %v1052_v30 = vsel %vm499_vm1, %v1047_v28, 0 }
 0x5b3   :  { %v4933_v8 = vpop.eup %4246 }
 0x5b4   :  { %v878_v9 = vpack.c.bf16 %v4933_v8, %v4931_v7  ;;  %v1045_v34 = vpop.permute.xlu1 %1044 }
 0x5b7   :  { %v846_v10 = vpop.xlane.xlu0 %845 }
 0x5b8   :  { %v852_v11 = vsub.f32 %v831_v56, %v846_v10 }
 0x5ba   :  { %v858_v12 = vmul.f32 1.442695, %v852_v11 }
 0x5bb   :  { %v849_v13 = vpop.xlane.xlu0 %848 }
 0x5bc   :  { %v853_v17 = vsub.f32 %v834_v61, %v849_v13  ;;  %4248 = vpow2.f32 %v858_v12 }
 0x5be   :  { %v860_v22 = vmul.f32 1.442695, %v853_v17 }
 0x5bf   :  { %v882_v23 = vpop.permute.xlu0 %881 }
 0x5c0   :  { %4250 = vpow2.f32 %v860_v22  ;;  %3909 = vmatpush3.bf16.msra.mxu1 %v882_v23 }
 0x5c1   :  { %3920 = vmatprep.subr.bf16.mxu1 %v5593_v14 }
 0x5c3   :  { %3911 = vmatmul.mubr.msk.bf16.vlgmr.msra.gmra.mrb[12].mxu1 %vm499_vm1, %v878_v9  ;;  %v994_v31 = vpop.permute.xlu0 %993 }
 0x5c4   :  { %3922 = vmatprep.mubr.msk.bf16.mxu1 %vm4611_vm0, %v5593_v14 }
 0x5c6   :  { %v4942_v26 = vpop.eup %4248 }
 0x5c9   :  { %3921 = vmatpush3.bf16.xpose.msra.mxu1 %v1001_v25 }
 0x5ca   :  { %v4944_v27 = vpop.eup %4250  ;;  %3932 = vmatprep.subr.bf16.mxu1 %v5593_v14 }
 0x5cb   :  { %v879_v29 = vpack.c.bf16 %v4944_v27, %v4942_v26 }
 0x5cd   :  { %3917 = vmatmul.mubr.msk.bf16.vlgmr.msra.gmra.mrb[24].mxu0 %vm499_vm1, %v879_v29 }
 0x5ce   :  { %3927 = vmatpush3.bf16.xpose.msra.mxu0 %v1052_v30  ;;  %3928 = vmatprep.mubr.msk.bf16.mxu0 %vm4611_vm0, %v5593_v14 }
 0x5cf   :  { %3938 = vmatprep.subr.bf16.mxu0 %v5593_v14 }
 0x5d0   :  { %3923 = vmatmul.mubr.msk.bf16.vlgmr.msra.gmra.mrb[16].mxu1 %vm499_vm1, %v994_v31 }
 0x5d1   :  { %3934 = vmatprep.mubr.msk.bf16.mxu1 %vm4611_vm0, %v5593_v14 }
 0x5d5   :  { %3929 = vmatmul.mubr.msk.bf16.vlgmr.msra.gmra.mrb[28].mxu0 %vm499_vm1, %v1045_v34 }
 0x5d6   :  { %3940 = vmatprep.mubr.msk.bf16.mxu0 %vm4611_vm0, %v5593_v14 }
 0x696   :  { %v4960_v36 = vpop.f32.mrb[12].mxu1 }
 0x697   :  { %v3912_v38 = vpop.f32.mrb[13].mxu1 }
 0x698   :  { %v4962_v41 = vpop.f32.mrb[14].mxu1 }
 0x699   :  { %v3913_v43 = vpop.f32.mrb[15].mxu1 }
 0x6a0   :  { %v4964_v44 = vpop.f32.mrb[24].mxu0 }
 0x6a1   :  { %v3918_v45 = vpop.f32.mrb[25].mxu0 }
 0x6a2   :  { %v4966_v47 = vpop.f32.mrb[26].mxu0 }
 0x6a3   :  { %v3919_v48 = vpop.f32.mrb[27].mxu0  ;;  %v1037_v50 = vpop.f32.mrb[16].mxu1 }
 0x6a4   :  { %v3924_v51 = vpop.f32.mrb[17].mxu1  ;;  %v1095_v53 = vsel %vm499_vm1, %v1037_v50, -inf }
 0x6a5   :  { %1096 = vmax.xlane.f32.xlu0 %v1095_v53  ;;  %v1040_v55 = vpop.f32.mrb[18].mxu1 }
 0x6a6   :  { %v3925_v56 = vpop.f32.mrb[19].mxu1  ;;  %v1098_v59 = vsel %vm499_vm1, %v1040_v55, -inf }
 0x6a7   :  { %1099 = vmax.xlane.f32.xlu1 %v1098_v59 }
 0x6a8   :  { %v1088_v60 = vpop.f32.mrb[28].mxu0 }
 0x6a9   :  { %v3930_v61 = vpop.f32.mrb[29].mxu0  ;;  %v1101_v62 = vsel %vm499_vm1, %v1088_v60, -inf }
 0x6aa   :  { %1102 = vmax.xlane.f32.xlu0 %v1101_v62  ;;  %v1091_v63 = vpop.f32.mrb[30].mxu0 }
 0x6ab   :  { %v3931_v0 = vpop.f32.mrb[31].mxu0  ;;  %v1104_v1 = vsel %vm499_vm1, %v1091_v63, -inf }
 0x6ae   :  { %1105 = vmax.xlane.f32.xlu0 %v1104_v1 }
 0x6b8   :  { %1184 = vrot.lane.b32.xlu1 %v4842_v46, %s4613_s14 }
 0x6bc   :  { %1250 = vrot.lane.b32.xlu1 %v4836_v35, %s4614_s15 }
 0x6c0   :  { %1301 = vrot.lane.b32.xlu1 %v4849_v57, %s4614_s15 }
 0x6c4   :  { %1299 = vrot.lane.b32.xlu1 %v4851_v58, %s4614_s15  ;;  %1137 = vrot.lane.b32.xlu0 %v4844_v49, %s4613_s14 }
 0x6c8   :  { %1248 = vrot.lane.b32.xlu0 %v4838_v37, %s4614_s15 }
 0x732   :  { %v1097_v2 = vpop.xlane.xlu0 %1096 }
 0x733   :  { %v1107_v3 = vsub.f32 %v1037_v50, %v1097_v2 }
 0x734   :  { %v1100_v4 = vpop.xlane.xlu1 %1099 }
 0x735   :  { %v1111_v5 = vmul.f32 1.442695, %v1107_v3  ;;  %v1108_v6 = vsub.f32 %v1040_v55, %v1100_v4 }
 0x737   :  { %v1113_v9 = vmul.f32 1.442695, %v1108_v6  ;;  %v1103_v10 = vpop.xlane.xlu0 %1102  ;;  %4252 = vpow2.f32 %v1111_v5 }
 0x738   :  { %v1109_v11 = vsub.f32 %v1088_v60, %v1103_v10  ;;  %v1185_v12 = vpop.permute.xlu1 %1184 }
 0x739   :  { %4254 = vpow2.f32 %v1113_v9  ;;  %3939 = vmatpush3.bf16.msra.mxu0 %v1185_v12 }
 0x73a   :  { %3950 = vmatprep.subr.bf16.mxu0 %v5593_v14  ;;  %v1115_v13 = vmul.f32 1.442695, %v1109_v11 }
 0x73b   :  { %v1106_v17 = vpop.xlane.xlu0 %1105 }
 0x73c   :  { %v1110_v22 = vsub.f32 %v1091_v63, %v1106_v17  ;;  %4256 = vpow2.f32 %v1115_v13  ;;  %v1251_v29 = vpop.permute.xlu1 %1250 }
 0x73d   :  { %v1256_v31 = vsel %vm499_vm1, %v1251_v29, 0 }
 0x73e   :  { %v1117_v23 = vmul.f32 1.442695, %v1110_v22 }
 0x73f   :  { %v1138_v24 = vpop.permute.xlu0 %1137 }
 0x740   :  { %4258 = vpow2.f32 %v1117_v23  ;;  %3933 = vmatpush3.bf16.msra.mxu1 %v1138_v24  ;;  %v1302_v43 = vpop.permute.xlu1 %1301 }
 0x741   :  { %3944 = vmatprep.subr.bf16.mxu1 %v5593_v14  ;;  %v4986_v25 = vpop.eup %4252  ;;  %v1307_v48 = vsel %vm499_vm1, %v1302_v43, 0 }
 0x743   :  { %v4988_v28 = vpop.eup %4254  ;;  %v1249_v50 = vpop.permute.xlu0 %1248 }
 0x744   :  { %v1135_v30 = vpack.c.bf16 %v4988_v28, %v4986_v25  ;;  %v1300_v51 = vpop.permute.xlu1 %1299 }
 0x746   :  { %3935 = vmatmul.mubr.msk.bf16.vlgmr.msra.gmra.mrb[20].mxu1 %vm499_vm1, %v1135_v30  ;;  %v4996_v34 = vpop.eup %4256 }
 0x747   :  { %3946 = vmatprep.mubr.msk.bf16.mxu1 %vm4611_vm0, %v5593_v14 }
 0x749   :  { %3945 = vmatpush3.bf16.xpose.msra.mxu1 %v1256_v31 }
 0x74a   :  { %v4998_v38 = vpop.eup %4258  ;;  %3956 = vmatprep.subr.bf16.mxu1 %v5593_v14 }
 0x74b   :  { %v1136_v45 = vpack.c.bf16 %v4998_v38, %v4996_v34 }
 0x74d   :  { %3941 = vmatmul.mubr.msk.bf16.vlgmr.msra.gmra.mrb[32].mxu0 %vm499_vm1, %v1136_v45 }
 0x74e   :  { %3951 = vmatpush3.bf16.xpose.msra.mxu0 %v1307_v48  ;;  %3952 = vmatprep.mubr.msk.bf16.mxu0 %vm4611_vm0, %v5593_v14 }
 0x74f   :  { %3962 = vmatprep.subr.bf16.mxu0 %v5593_v14 }
 0x750   :  { %3947 = vmatmul.mubr.msk.bf16.vlgmr.msra.gmra.mrb[24].mxu1 %vm499_vm1, %v1249_v50 }
 0x751   :  { %3958 = vmatprep.mubr.msk.bf16.mxu1 %vm4611_vm0, %v5593_v14 }
 0x755   :  { %3953 = vmatmul.mubr.msk.bf16.vlgmr.msra.gmra.mrb[36].mxu0 %vm499_vm1, %v1300_v51 }
 0x756   :  { %3964 = vmatprep.mubr.msk.bf16.mxu0 %vm4611_vm0, %v5593_v14 }
 0x819   :  { %v5014_v53 = vpop.f32.mrb[20].mxu1 }
 0x81a   :  { %v3936_v55 = vpop.f32.mrb[21].mxu1 }
 0x81b   :  { %v5016_v56 = vpop.f32.mrb[22].mxu1 }
 0x81c   :  { %v3937_v59 = vpop.f32.mrb[23].mxu1 }
 0x820   :  { %v5018_v60 = vpop.f32.mrb[32].mxu0 }
 0x821   :  { %v3942_v61 = vpop.f32.mrb[33].mxu0 }
 0x822   :  { %v5020_v62 = vpop.f32.mrb[34].mxu0 }
 0x823   :  { %v3943_v63 = vpop.f32.mrb[35].mxu0  ;;  %v1292_v0 = vpop.f32.mrb[24].mxu1 }
 0x824   :  { %v3948_v1 = vpop.f32.mrb[25].mxu1  ;;  %v1350_v2 = vsel %vm499_vm1, %v1292_v0, -inf }
 0x825   :  { %1351 = vmax.xlane.f32.xlu0 %v1350_v2  ;;  %v1295_v3 = vpop.f32.mrb[26].mxu1 }
 0x826   :  { %v3949_v4 = vpop.f32.mrb[27].mxu1  ;;  %v1353_v5 = vsel %vm499_vm1, %v1295_v3, -inf }
 0x827   :  { %1354 = vmax.xlane.f32.xlu1 %v1353_v5 }
 0x828   :  { %v1343_v6 = vpop.f32.mrb[36].mxu0 }
 0x829   :  { %v3954_v9 = vpop.f32.mrb[37].mxu0  ;;  %v1356_v10 = vsel %vm499_vm1, %v1343_v6, -inf }
 0x82a   :  { %1357 = vmax.xlane.f32.xlu0 %v1356_v10  ;;  %v1346_v11 = vpop.f32.mrb[38].mxu0 }
 0x82b   :  { %v3955_v12 = vpop.f32.mrb[39].mxu0  ;;  %v1359_v13 = vsel %vm499_vm1, %v1346_v11, -inf }
 0x82e   :  { %1360 = vmax.xlane.f32.xlu0 %v1359_v13 }
 0x838   :  { %1439 = vrot.lane.b32.xlu1 %v4842_v46, %s4614_s15 }
 0x83c   :  { %1505 = vrot.lane.b32.xlu1 %v4836_v35, %s4606_s2 }
 0x840   :  { %1556 = vrot.lane.b32.xlu1 %v4849_v57, %s4606_s2 }
 0x844   :  { %1554 = vrot.lane.b32.xlu1 %v4851_v58, %s4606_s2  ;;  %1392 = vrot.lane.b32.xlu0 %v4844_v49, %s4614_s15 }
 0x848   :  { %1503 = vrot.lane.b32.xlu0 %v4838_v37, %s4606_s2 }
 0x8b2   :  { %v1352_v17 = vpop.xlane.xlu0 %1351 }
 0x8b3   :  { %v1362_v22 = vsub.f32 %v1292_v0, %v1352_v17 }
 0x8b4   :  { %v1355_v23 = vpop.xlane.xlu1 %1354 }
 0x8b5   :  { %v1366_v24 = vmul.f32 1.442695, %v1362_v22  ;;  %v1363_v29 = vsub.f32 %v1295_v3, %v1355_v23 }
 0x8b7   :  { %v1368_v30 = vmul.f32 1.442695, %v1363_v29  ;;  %v1358_v31 = vpop.xlane.xlu0 %1357  ;;  %4260 = vpow2.f32 %v1366_v24 }
 0x8b8   :  { %v1364_v43 = vsub.f32 %v1343_v6, %v1358_v31  ;;  %v1440_v45 = vpop.permute.xlu1 %1439 }
 0x8b9   :  { %4262 = vpow2.f32 %v1368_v30  ;;  %3963 = vmatpush3.bf16.msra.mxu0 %v1440_v45 }
 0x8ba   :  { %3974 = vmatprep.subr.bf16.mxu0 %v5593_v14  ;;  %v1370_v48 = vmul.f32 1.442695, %v1364_v43 }
 0x8bb   :  { %v1361_v50 = vpop.xlane.xlu0 %1360 }
 0x8bc   :  { %v1365_v51 = vsub.f32 %v1346_v11, %v1361_v50  ;;  %4264 = vpow2.f32 %v1370_v48  ;;  %v1506_v0 = vpop.permute.xlu1 %1505 }
 0x8bd   :  { %v1511_v2 = vsel %vm499_vm1, %v1506_v0, 0 }
 0x8be   :  { %v1372_v55 = vmul.f32 1.442695, %v1365_v51 }
 0x8bf   :  { %v1393_v59 = vpop.permute.xlu0 %1392 }
 0x8c0   :  { %4266 = vpow2.f32 %v1372_v55  ;;  %3957 = vmatpush3.bf16.msra.mxu1 %v1393_v59  ;;  %v1557_v5 = vpop.permute.xlu1 %1556 }
 0x8c1   :  { %3968 = vmatprep.subr.bf16.mxu1 %v5593_v14  ;;  %v5040_v61 = vpop.eup %4260  ;;  %v1562_v9 = vsel %vm499_vm1, %v1557_v5, 0 }
 0x8c3   :  { %v5042_v63 = vpop.eup %4262  ;;  %v1504_v10 = vpop.permute.xlu0 %1503 }
 0x8c4   :  { %v1390_v1 = vpack.c.bf16 %v5042_v63, %v5040_v61  ;;  %v1555_v11 = vpop.permute.xlu1 %1554 }
 0x8c6   :  { %3959 = vmatmul.mubr.msk.bf16.vlgmr.msra.gmra.mrb[28].mxu1 %vm499_vm1, %v1390_v1  ;;  %v5050_v3 = vpop.eup %4264 }
 0x8c7   :  { %3970 = vmatprep.mubr.msk.bf16.mxu1 %vm4611_vm0, %v5593_v14 }
 0x8c9   :  { %3969 = vmatpush3.bf16.xpose.msra.mxu1 %v1511_v2 }
 0x8ca   :  { %v5052_v4 = vpop.eup %4266  ;;  %3980 = vmatprep.subr.bf16.mxu1 %v5593_v14 }
 0x8cb   :  { %v1391_v6 = vpack.c.bf16 %v5052_v4, %v5050_v3 }
 0x8cd   :  { %3965 = vmatmul.mubr.msk.bf16.vlgmr.msra.gmra.mrb[40].mxu0 %vm499_vm1, %v1391_v6 }
 0x8ce   :  { %3975 = vmatpush3.bf16.xpose.msra.mxu0 %v1562_v9  ;;  %3976 = vmatprep.mubr.msk.bf16.mxu0 %vm4611_vm0, %v5593_v14 }
 0x8cf   :  { %3986 = vmatprep.subr.bf16.mxu0 %v5593_v14 }
 0x8d0   :  { %3971 = vmatmul.mubr.msk.bf16.vlgmr.msra.gmra.mrb[32].mxu1 %vm499_vm1, %v1504_v10 }
 0x8d1   :  { %3982 = vmatprep.mubr.msk.bf16.mxu1 %vm4611_vm0, %v5593_v14 }
 0x8d5   :  { %3977 = vmatmul.mubr.msk.bf16.vlgmr.msra.gmra.mrb[44].mxu0 %vm499_vm1, %v1555_v11 }
 0x8d6   :  { %3988 = vmatprep.mubr.msk.bf16.mxu0 %vm4611_vm0, %v5593_v14 }
 0x999   :  { %v5068_v12 = vpop.f32.mrb[28].mxu1 }
 0x99a   :  { %v3960_v13 = vpop.f32.mrb[29].mxu1 }
 0x99b   :  { %v5070_v17 = vpop.f32.mrb[30].mxu1 }
 0x99c   :  { %v3961_v22 = vpop.f32.mrb[31].mxu1 }
 0x9a0   :  { %v5072_v23 = vpop.f32.mrb[40].mxu0 }
 0x9a1   :  { %v3966_v24 = vpop.f32.mrb[41].mxu0 }
 0x9a2   :  { %v5074_v29 = vpop.f32.mrb[42].mxu0 }
 0x9a3   :  { %v3967_v30 = vpop.f32.mrb[43].mxu0  ;;  %v1547_v31 = vpop.f32.mrb[32].mxu1 }
 0x9a4   :  { %v3972_v43 = vpop.f32.mrb[33].mxu1  ;;  %v1605_v45 = vsel %vm499_vm1, %v1547_v31, -inf }
 0x9a5   :  { %1606 = vmax.xlane.f32.xlu0 %v1605_v45  ;;  %v1550_v48 = vpop.f32.mrb[34].mxu1 }
 0x9a6   :  { %v3973_v50 = vpop.f32.mrb[35].mxu1  ;;  %v1608_v51 = vsel %vm499_vm1, %v1550_v48, -inf }
 0x9a7   :  { %1609 = vmax.xlane.f32.xlu1 %v1608_v51 }
 0x9a8   :  { %v1598_v55 = vpop.f32.mrb[44].mxu0 }
 0x9a9   :  { %v3978_v59 = vpop.f32.mrb[45].mxu0  ;;  %v1611_v0 = vsel %vm499_vm1, %v1598_v55, -inf }
 0x9aa   :  { %1612 = vmax.xlane.f32.xlu0 %v1611_v0  ;;  %v1601_v1 = vpop.f32.mrb[46].mxu0 }
 0x9ab   :  { %v3979_v2 = vpop.f32.mrb[47].mxu0  ;;  %v1614_v5 = vsel %vm499_vm1, %v1601_v1, -inf }
 0x9ae   :  { %1615 = vmax.xlane.f32.xlu0 %v1614_v5 }
 0x9b8   :  { %1694 = vrot.lane.b32.xlu1 %v4842_v46, %s4606_s2 }
 0x9bc   :  { %1760 = vrot.lane.b32.xlu1 %v4836_v35, %s4615_s26 }
 0x9c0   :  { %1811 = vrot.lane.b32.xlu1 %v4849_v57, %s4615_s26 }
 0x9c4   :  { %1809 = vrot.lane.b32.xlu1 %v4851_v58, %s4615_s26  ;;  %1647 = vrot.lane.b32.xlu0 %v4844_v49, %s4606_s2 }
 0x9c8   :  { %1758 = vrot.lane.b32.xlu0 %v4838_v37, %s4615_s26 }
 0xa32   :  { %v1607_v6 = vpop.xlane.xlu0 %1606 }
 0xa33   :  { %v1617_v9 = vsub.f32 %v1547_v31, %v1607_v6 }
 0xa34   :  { %v1610_v10 = vpop.xlane.xlu1 %1609 }
 0xa35   :  { %v1621_v11 = vmul.f32 1.442695, %v1617_v9  ;;  %v1618_v13 = vsub.f32 %v1550_v48, %v1610_v10 }
 0xa37   :  { %v1623_v22 = vmul.f32 1.442695, %v1618_v13  ;;  %v1613_v24 = vpop.xlane.xlu0 %1612  ;;  %4268 = vpow2.f32 %v1621_v11 }
 0xa38   :  { %v1619_v30 = vsub.f32 %v1598_v55, %v1613_v24  ;;  %v1695_v43 = vpop.permute.xlu1 %1694 }
 0xa39   :  { %4270 = vpow2.f32 %v1623_v22  ;;  %3987 = vmatpush3.bf16.msra.mxu0 %v1695_v43 }
 0xa3a   :  { %3998 = vmatprep.subr.bf16.mxu0 %v5593_v14  ;;  %v1625_v45 = vmul.f32 1.442695, %v1619_v30 }
 0xa3b   :  { %v1616_v50 = vpop.xlane.xlu0 %1615 }
 0xa3c   :  { %v1620_v51 = vsub.f32 %v1601_v1, %v1616_v50  ;;  %4272 = vpow2.f32 %v1625_v45  ;;  %v1761_v55 = vpop.permute.xlu1 %1760 }
 0xa3d   :  { %v1766_v1 = vsel %vm499_vm1, %v1761_v55, 0 }
 0xa3e   :  { %v1627_v59 = vmul.f32 1.442695, %v1620_v51 }
 0xa3f   :  { %v1648_v0 = vpop.permute.xlu0 %1647 }
 0xa40   :  { %4274 = vpow2.f32 %v1627_v59  ;;  %3981 = vmatpush3.bf16.msra.mxu1 %v1648_v0  ;;  %v1812_v9 = vpop.permute.xlu1 %1811 }
 0xa41   :  { %3992 = vmatprep.subr.bf16.mxu1 %v5593_v14  ;;  %v5094_v31 = vpop.eup %4268  ;;  %v1817_v11 = vsel %vm499_vm1, %v1812_v9, 0 }
 0xa43   :  { %v5096_v48 = vpop.eup %4270  ;;  %v1759_v13 = vpop.permute.xlu0 %1758 }
 0xa44   :  { %v1645_v2 = vpack.c.bf16 %v5096_v48, %v5094_v31  ;;  %v1810_v22 = vpop.permute.xlu1 %1809 }
 0xa46   :  { %3983 = vmatmul.mubr.msk.bf16.vlgmr.msra.gmra.mrb[36].mxu1 %vm499_vm1, %v1645_v2  ;;  %v5104_v5 = vpop.eup %4272 }
 0xa47   :  { %3994 = vmatprep.mubr.msk.bf16.mxu1 %vm4611_vm0, %v5593_v14 }
 0xa49   :  { %3993 = vmatpush3.bf16.xpose.msra.mxu1 %v1766_v1 }
 0xa4a   :  { %v5106_v6 = vpop.eup %4274  ;;  %4004 = vmatprep.subr.bf16.mxu1 %v5593_v14 }
 0xa4b   :  { %v1646_v10 = vpack.c.bf16 %v5106_v6, %v5104_v5 }
 0xa4d   :  { %3989 = vmatmul.mubr.msk.bf16.vlgmr.msra.gmra.mrb[48].mxu0 %vm499_vm1, %v1646_v10 }
 0xa4e   :  { %3999 = vmatpush3.bf16.xpose.msra.mxu0 %v1817_v11  ;;  %4000 = vmatprep.mubr.msk.bf16.mxu0 %vm4611_vm0, %v5593_v14 }
 0xa4f   :  { %4010 = vmatprep.subr.bf16.mxu0 %v5593_v14 }
 0xa50   :  { %3995 = vmatmul.mubr.msk.bf16.vlgmr.msra.gmra.mrb[40].mxu1 %vm499_vm1, %v1759_v13 }
 0xa51   :  { %4006 = vmatprep.mubr.msk.bf16.mxu1 %vm4611_vm0, %v5593_v14 }
 0xa55   :  { %4001 = vmatmul.mubr.msk.bf16.vlgmr.msra.gmra.mrb[52].mxu0 %vm499_vm1, %v1810_v22 }
 0xa56   :  { %4012 = vmatprep.mubr.msk.bf16.mxu0 %vm4611_vm0, %v5593_v14 }
 0xb19   :  { %v5122_v24 = vpop.f32.mrb[36].mxu1 }
 0xb1a   :  { %v3984_v30 = vpop.f32.mrb[37].mxu1 }
 0xb1b   :  { %v5124_v43 = vpop.f32.mrb[38].mxu1 }
 0xb1c   :  { %v3985_v45 = vpop.f32.mrb[39].mxu1 }
 0xb20   :  { %v5126_v50 = vpop.f32.mrb[48].mxu0 }
 0xb21   :  { %v3990_v51 = vpop.f32.mrb[49].mxu0 }
 0xb22   :  { %v5128_v59 = vpop.f32.mrb[50].mxu0 }
 0xb23   :  { %v3991_v0 = vpop.f32.mrb[51].mxu0  ;;  %v1802_v55 = vpop.f32.mrb[40].mxu1 }
 0xb24   :  { %v3996_v2 = vpop.f32.mrb[41].mxu1  ;;  %v1860_v1 = vsel %vm499_vm1, %v1802_v55, -inf }
 0xb25   :  { %1861 = vmax.xlane.f32.xlu0 %v1860_v1  ;;  %v1805_v9 = vpop.f32.mrb[42].mxu1 }
 0xb26   :  { %v3997_v10 = vpop.f32.mrb[43].mxu1  ;;  %v1863_v11 = vsel %vm499_vm1, %v1805_v9, -inf }
 0xb27   :  { %1864 = vmax.xlane.f32.xlu1 %v1863_v11 }
 0xb28   :  { %v1853_v13 = vpop.f32.mrb[52].mxu0 }
 0xb29   :  { %v4002_v22 = vpop.f32.mrb[53].mxu0  ;;  %v1866_v30 = vsel %vm499_vm1, %v1853_v13, -inf }
 0xb2a   :  { %1867 = vmax.xlane.f32.xlu0 %v1866_v30  ;;  %v1856_v45 = vpop.f32.mrb[54].mxu0 }
 0xb2b   :  { %v4003_v51 = vpop.f32.mrb[55].mxu0  ;;  %v1869_v18 = vsel %vm499_vm1, %v1856_v45, -inf }
 0xb2e   :  { %1870 = vmax.xlane.f32.xlu0 %v1869_v18 }
 0xb38   :  { %1949 = vrot.lane.b32.xlu1 %v4842_v46, %s4615_s26 }
 0xb3c   :  { %2015 = vrot.lane.b32.xlu1 %v4836_v35, %s4616_s29 }
 0xb40   :  { %2066 = vrot.lane.b32.xlu1 %v4849_v57, %s4616_s29 }
 0xb44   :  { %2064 = vrot.lane.b32.xlu1 %v4851_v58, %s4616_s29  ;;  %1902 = vrot.lane.b32.xlu0 %v4844_v49, %s4615_s26 }
 0xb48   :  { %2013 = vrot.lane.b32.xlu0 %v4838_v37, %s4616_s29 }
 0xbb2   :  { %v1862_v18 = vpop.xlane.xlu0 %1861 }
 0xbb3   :  { %v1872_v0 = vsub.f32 %v1802_v55, %v1862_v18 }
 0xbb4   :  { %v1865_v2 = vpop.xlane.xlu1 %1864 }
 0xbb5   :  { %v1876_v1 = vmul.f32 1.442695, %v1872_v0  ;;  %v1873_v10 = vsub.f32 %v1805_v9, %v1865_v2 }
 0xbb7   :  { %v1878_v11 = vmul.f32 1.442695, %v1873_v10  ;;  %v1868_v22 = vpop.xlane.xlu0 %1867  ;;  %4276 = vpow2.f32 %v1876_v1 }
 0xbb8   :  { %v1874_v30 = vsub.f32 %v1853_v13, %v1868_v22  ;;  %v1950_v51 = vpop.permute.xlu1 %1949 }
 0xbb9   :  { %4278 = vpow2.f32 %v1878_v11  ;;  %4011 = vmatpush3.bf16.msra.mxu0 %v1950_v51 }
 0xbba   :  { %4022 = vmatprep.subr.bf16.mxu0 %v5593_v14  ;;  %v1880_v20 = vmul.f32 1.442695, %v1874_v30 }
 0xbbb   :  { %v1871_v16 = vpop.xlane.xlu0 %1870 }
 0xbbc   :  { %v1875_v39 = vsub.f32 %v1856_v45, %v1871_v16  ;;  %4280 = vpow2.f32 %v1880_v20  ;;  %v2016_v13 = vpop.permute.xlu1 %2015 }
 0xbbe   :  { %v1882_v15 = vmul.f32 1.442695, %v1875_v39  ;;  %v2021_v39 = vsel %vm499_vm1, %v2016_v13, 0 }
 0xbbf   :  { %v1903_v54 = vpop.permute.xlu0 %1902 }
 0xbc0   :  { %4282 = vpow2.f32 %v1882_v15  ;;  %4005 = vmatpush3.bf16.msra.mxu1 %v1903_v54  ;;  %v2067_v20 = vpop.permute.xlu1 %2066 }
 0xbc1   :  { %4016 = vmatprep.subr.bf16.mxu1 %v5593_v14  ;;  %v5148_v55 = vpop.eup %4276  ;;  %v2072_v45 = vsel %vm499_vm1, %v2067_v20, 0 }
 0xbc3   :  { %v5150_v9 = vpop.eup %4278  ;;  %v2014_v0 = vpop.permute.xlu0 %2013 }
 0xbc4   :  { %v1900_v18 = vpack.c.bf16 %v5150_v9, %v5148_v55  ;;  %v2065_v2 = vpop.permute.xlu1 %2064 }
 0xbc6   :  { %4007 = vmatmul.mubr.msk.bf16.vlgmr.msra.gmra.mrb[44].mxu1 %vm499_vm1, %v1900_v18  ;;  %v5158_v16 = vpop.eup %4280 }
 0xbc7   :  { %4018 = vmatprep.mubr.msk.bf16.mxu1 %vm4611_vm0, %v5593_v14 }
 0xbc9   :  { %4017 = vmatpush3.bf16.xpose.msra.mxu1 %v2021_v39 }
 0xbca   :  { %v5160_v15 = vpop.eup %4282  ;;  %4028 = vmatprep.subr.bf16.mxu1 %v5593_v14 }
 0xbcb   :  { %v1901_v54 = vpack.c.bf16 %v5160_v15, %v5158_v16 }
 0xbcd   :  { %4013 = vmatmul.mubr.msk.bf16.vlgmr.msra.gmra.mrb[56].mxu0 %vm499_vm1, %v1901_v54 }
 0xbce   :  { %4023 = vmatpush3.bf16.xpose.msra.mxu0 %v2072_v45  ;;  %4024 = vmatprep.mubr.msk.bf16.mxu0 %vm4611_vm0, %v5593_v14 }
 0xbcf   :  { %4034 = vmatprep.subr.bf16.mxu0 %v5593_v14 }
 0xbd0   :  { %4019 = vmatmul.mubr.msk.bf16.vlgmr.msra.gmra.mrb[48].mxu1 %vm499_vm1, %v2014_v0 }
 0xbd1   :  { %4030 = vmatprep.mubr.msk.bf16.mxu1 %vm4611_vm0, %v5593_v14 }
 0xbd5   :  { %4025 = vmatmul.mubr.msk.bf16.vlgmr.msra.gmra.mrb[60].mxu0 %vm499_vm1, %v2065_v2 }
 0xbd6   :  { %4036 = vmatprep.mubr.msk.bf16.mxu0 %vm4611_vm0, %v5593_v14 }
 0xc99   :  { %v5176_v1 = vpop.f32.mrb[44].mxu1 }
 0xc9a   :  { %v4008_v10 = vpop.f32.mrb[45].mxu1 }
 0xc9b   :  { %v5178_v11 = vpop.f32.mrb[46].mxu1 }
 0xc9c   :  { %v4009_v22 = vpop.f32.mrb[47].mxu1 }
 0xca0   :  { %v5180_v30 = vpop.f32.mrb[56].mxu0 }
 0xca1   :  { %v4014_v51 = vpop.f32.mrb[57].mxu0 }
 0xca2   :  { %v5182_v13 = vpop.f32.mrb[58].mxu0 }
 0xca3   :  { %5600 = vst [vmem:[#allocation26_spill] sm:$0xff] %v5182_v13  ;;  %v4015_v18 = vpop.f32.mrb[59].mxu0  ;;  %v2057_v39 = vpop.f32.mrb[48].mxu1 }
 0xca4   :  { %v4020_v20 = vpop.f32.mrb[49].mxu1  ;;  %v2115_v54 = vsel %vm499_vm1, %v2057_v39, -inf }
 0xca5   :  { %2116 = vmax.xlane.f32.xlu0 %v2115_v54  ;;  %v2060_v45 = vpop.f32.mrb[50].mxu1 }
 0xca6   :  { %v4021_v0 = vpop.f32.mrb[51].mxu1  ;;  %v2118_v2 = vsel %vm499_vm1, %v2060_v45, -inf }
 0xca7   :  { %2119 = vmax.xlane.f32.xlu1 %v2118_v2 }
 0xca8   :  { %v2108_v10 = vpop.f32.mrb[60].mxu0 }
 0xca9   :  { %v4026_v14 = vpop.f32.mrb[61].mxu0  ;;  %v2121_v22 = vsel %vm499_vm1, %v2108_v10, -inf }
 0xcaa   :  { %2122 = vmax.xlane.f32.xlu0 %v2121_v22  ;;  %v2111_v52 = vpop.f32.mrb[62].mxu0 }
 0xcab   :  { %v4027_v51 = vpop.f32.mrb[63].mxu0  ;;  %v2124_v42 = vsel %vm499_vm1, %v2111_v52, -inf }
 0xcae   :  { %2125 = vmax.xlane.f32.xlu0 %v2124_v42 }
 0xcb8   :  { %2204 = vrot.lane.b32.xlu1 %v4842_v46, %s4616_s29 }
 0xcbc   :  { %2270 = vrot.lane.b32.xlu1 %v4836_v35, %s4600_s28 }
 0xcc0   :  { %2321 = vrot.lane.b32.xlu1 %v4849_v57, %s4600_s28  ;;  %v5601_v57 = vmov 0.0  }
 0xcc4   :  { %2319 = vrot.lane.b32.xlu1 %v4851_v58, %s4600_s28  ;;  %2157 = vrot.lane.b32.xlu0 %v4844_v49, %s4616_s29 }
 0xcc8   :  { %2268 = vrot.lane.b32.xlu0 %v4838_v37, %s4600_s28 }
 0xd32   :  { %v2117_v14 = vpop.xlane.xlu0 %2116 }
 0xd33   :  { %v2127_v42 = vsub.f32 %v2057_v39, %v2117_v14 }
 0xd34   :  { %v2120_v18 = vpop.xlane.xlu1 %2119 }
 0xd35   :  { %v2131_v20 = vmul.f32 1.442695, %v2127_v42  ;;  %v2128_v54 = vsub.f32 %v2060_v45, %v2120_v18 }
 0xd37   :  { %v2133_v0 = vmul.f32 1.442695, %v2128_v54  ;;  %v2123_v2 = vpop.xlane.xlu0 %2122  ;;  %4284 = vpow2.f32 %v2131_v20 }
 0xd38   :  { %v2129_v35 = vsub.f32 %v2108_v10, %v2123_v2  ;;  %v2205_v22 = vpop.permute.xlu1 %2204 }
 0xd39   :  { %4286 = vpow2.f32 %v2133_v0  ;;  %4035 = vmatpush3.bf16.msra.mxu0 %v2205_v22 }
 0xd3a   :  { %4046 = vmatprep.subr.bf16.mxu0 %v5601_v57  ;;  %v2135_v58 = vmul.f32 1.442695, %v2129_v35 }
 0xd3b   :  { %v2126_v51 = vpop.xlane.xlu0 %2125 }
 0xd3c   :  { %v2130_v40 = vsub.f32 %v2111_v52, %v2126_v51  ;;  %4288 = vpow2.f32 %v2135_v58  ;;  %v2271_v10 = vpop.permute.xlu1 %2270 }
 0xd3e   :  { %v2137_v13 = vmul.f32 1.442695, %v2130_v40  ;;  %v2276_v40 = vsel %vm499_vm1, %v2271_v10, 0 }
 0xd3f   :  { %v2158_v37 = vpop.permute.xlu0 %2157 }
 0xd40   :  { %4290 = vpow2.f32 %v2137_v13  ;;  %4029 = vmatpush3.bf16.msra.mxu1 %v2158_v37  ;;  %v2322_v42 = vpop.permute.xlu1 %2321 }
 0xd41   :  { %4040 = vmatprep.subr.bf16.mxu1 %v5601_v57  ;;  %v5202_v39 = vpop.eup %4284  ;;  %v2327_v20 = vsel %vm499_vm1, %v2322_v42, 0 }
 0xd43   :  { %v5204_v45 = vpop.eup %4286  ;;  %v2269_v54 = vpop.permute.xlu0 %2268 }
 0xd44   :  { %v2155_v14 = vpack.c.bf16 %v5204_v45, %v5202_v39  ;;  %v2320_v0 = vpop.permute.xlu1 %2319 }
 0xd46   :  { %4031 = vmatmul.mubr.msk.bf16.vlgmr.msra.gmra.mrb[52].mxu1 %vm499_vm1, %v2155_v14  ;;  %v5212_v52 = vpop.eup %4288 }
 0xd47   :  { %4042 = vmatprep.mubr.msk.bf16.mxu1 %vm4611_vm0, %v5601_v57 }
 0xd49   :  { %4041 = vmatpush3.bf16.xpose.msra.mxu1 %v2276_v40 }
 0xd4a   :  { %v5214_v13 = vpop.eup %4290  ;;  %4052 = vmatprep.subr.bf16.mxu1 %v5601_v57 }
 0xd4b   :  { %v2156_v18 = vpack.c.bf16 %v5214_v13, %v5212_v52 }
 0xd4d   :  { %4037 = vmatmul.mubr.msk.bf16.vlgmr.msra.gmra.mrb[64].mxu0 %vm499_vm1, %v2156_v18 }
 0xd4e   :  { %4047 = vmatpush3.bf16.xpose.msra.mxu0 %v2327_v20  ;;  %4048 = vmatprep.mubr.msk.bf16.mxu0 %vm4611_vm0, %v5601_v57 }
 0xd4f   :  { %4058 = vmatprep.subr.bf16.mxu0 %v5601_v57 }
 0xd50   :  { %4043 = vmatmul.mubr.msk.bf16.vlgmr.msra.gmra.mrb[56].mxu1 %vm499_vm1, %v2269_v54 }
 0xd51   :  { %4054 = vmatprep.mubr.msk.bf16.mxu1 %vm4611_vm0, %v5601_v57 }
 0xd55   :  { %4049 = vmatmul.mubr.msk.bf16.vlgmr.msra.gmra.mrb[68].mxu0 %vm499_vm1, %v2320_v0 }
 0xd56   :  { %4060 = vmatprep.mubr.msk.bf16.mxu0 %vm4611_vm0, %v5601_v57 }
 0xe19   :  { %v5230_v2 = vpop.f32.mrb[52].mxu1 }
 0xe1a   :  { %v4032_v35 = vpop.f32.mrb[53].mxu1 }
 0xe1b   :  { %v5232_v22 = vpop.f32.mrb[54].mxu1 }
 0xe1c   :  { %v4033_v58 = vpop.f32.mrb[55].mxu1 }
 0xe20   :  { %v5234_v51 = vpop.f32.mrb[64].mxu0 }
 0xe21   :  { %v4038_v37 = vpop.f32.mrb[65].mxu0 }
 0xe22   :  { %v5236_v10 = vpop.f32.mrb[66].mxu0 }
 0xe23   :  { %v4039_v14 = vpop.f32.mrb[67].mxu0  ;;  %v5238_v40 = vpop.f32.mrb[56].mxu1 }
 0xe24   :  { %v4044_v42 = vpop.f32.mrb[57].mxu1  ;;  %v2370_v18 = vsel %vm499_vm1, %v5238_v40, -inf }
 0xe25   :  { %2371 = vmax.xlane.f32.xlu0 %v2370_v18  ;;  %v5242_v57 = vpop.f32.mrb[58].mxu1  ;;  %v862_v18 = vsel %vm499_vm1, %v4931_v7, 0.0  ;;  %v1119_v7 = vsel %vm499_vm1, %v4986_v25, 0.0  ;;  %v1632_v25 = vsel %vm499_vm1, %v5096_v48, 0.0  ;;  %v1884_v48 = vsel %vm499_vm1, %v5148_v55, 0.0 }
 0xe26   :  { %v4045_v20 = vpop.f32.mrb[59].mxu1  ;;  %v2373_v54 = vsel %vm499_vm1, %v5242_v57, -inf  ;;  %v2145_v55 = vsel %vm499_vm1, %v5212_v52, 0.0 }
 0xe27   :  { %2374 = vmax.xlane.f32.xlu1 %v2373_v54  ;;  %v871_v20 = vsel %vm499_vm1, %v4944_v27, 0.0  ;;  %v865_v54 = vsel %vm499_vm1, %v4933_v8, 0.0  ;;  %v1377_v8 = vsel %vm499_vm1, %v5042_v63, 0.0  ;;  %v1125_v27 = vsel %vm499_vm1, %v4996_v34, 0.0 }
 0xe28   :  { %v5246_v0 = vpop.f32.mrb[68].mxu0  ;;  %v1638_v34 = vsel %vm499_vm1, %v5106_v6, 0.0  ;;  %v1629_v63 = vsel %vm499_vm1, %v5094_v31, 0.0  ;;  %v2142_v31 = vsel %vm499_vm1, %v5204_v45, 0.0  ;;  %v1890_v6 = vsel %vm499_vm1, %v5158_v16, 0.0 }
 0xe29   :  { %v4050_v35 = vpop.f32.mrb[69].mxu0  ;;  %v2376_v58 = vsel %vm499_vm1, %v5246_v0, -inf }
 0xe2a   :  { %2377 = vmax.xlane.f32.xlu0 %v2376_v58  ;;  %v5250_v37 = vpop.f32.mrb[70].mxu0  ;;  %v1122_v35 = vsel %vm499_vm1, %v4988_v28, 0.0  ;;  %v1374_v28 = vsel %vm499_vm1, %v5040_v61, 0.0  ;;  %v1887_v61 = vsel %vm499_vm1, %v5150_v9, 0.0  ;;  %v2139_v9 = vsel %vm499_vm1, %v5202_v39, 0.0 }
 0xe2b   :  { %v4051_v14 = vpop.f32.mrb[71].mxu0  ;;  %v2379_v42 = vsel %vm499_vm1, %v5250_v37, -inf }
 0xe2e   :  { %2380 = vmax.xlane.f32.xlu0 %v2379_v42 }
 0xe38   :  { %2459 = vrot.lane.b32.xlu1 %v4842_v46, %s4600_s28  ;;  %v868_v46 = vsel %vm499_vm1, %v4942_v26, 0.0  ;;  %v1383_v26 = vsel %vm499_vm1, %v5052_v4, 0.0  ;;  %v1635_v4 = vsel %vm499_vm1, %v5104_v5, 0.0  ;;  %v2148_v5 = vsel %vm499_vm1, %v5214_v13, 0.0 }
 0xe44   :  { %2412 = vrot.lane.b32.xlu0 %v4844_v49, %s4600_s28  ;;  %v1128_v49 = vsel %vm499_vm1, %v4998_v38, 0.0  ;;  %v1380_v38 = vsel %vm499_vm1, %v5050_v3, 0.0  ;;  %v1893_v3 = vsel %vm499_vm1, %v5160_v15, 0.0 }
 0xe5c   :  { %863 = vadd.xlane.f32.xlu1 %v862_v18 }
 0xe60   :  { %872 = vadd.xlane.f32.xlu1 %v871_v20 }
 0xe63   :  { %866 = vadd.xlane.f32.xlu0 %v865_v54 }
 0xe64   :  { %1123 = vadd.xlane.f32.xlu1 %v1122_v35 }
 0xe67   :  { %869 = vadd.xlane.f32.xlu0 %v868_v46 }
 0xe68   :  { %1129 = vadd.xlane.f32.xlu1 %v1128_v49 }
 0xe6b   :  { %1120 = vadd.xlane.f32.xlu0 %v1119_v7 }
 0xe6c   :  { %1378 = vadd.xlane.f32.xlu1 %v1377_v8 }
 0xe6f   :  { %1126 = vadd.xlane.f32.xlu0 %v1125_v27 }
 0xe70   :  { %1384 = vadd.xlane.f32.xlu1 %v1383_v26  ;;  %v618_v26 = vsel %vm499_vm1, %v4878_v19, 0.0  ;;  %v627_v19 = vsel %vm499_vm1, %v4894_v33, 0.0 }
 0xe73   :  { %1375 = vadd.xlane.f32.xlu0 %v1374_v28 }
 0xe74   :  { %1633 = vadd.xlane.f32.xlu1 %v1632_v25 }
 0xe77   :  { %1381 = vadd.xlane.f32.xlu0 %v1380_v38  ;;  %v5602_v38 = vmov 0  }
 0xe78   :  { %1639 = vadd.xlane.f32.xlu1 %v1638_v34  ;;  %v624_v34 = vsel %vm499_vm1, %v4892_v32, 0.0 }
 0xe7b   :  { %1630 = vadd.xlane.f32.xlu0 %v1629_v63  ;;  %v621_v63 = vsel %vm499_vm1, %v4880_v21, 0.0 }
 0xe7c   :  { %1888 = vadd.xlane.f32.xlu1 %v1887_v61 }
 0xe7f   :  { %1636 = vadd.xlane.f32.xlu0 %v1635_v4 }
 0xe80   :  { %1894 = vadd.xlane.f32.xlu1 %v1893_v3 }
 0xe83   :  { %1885 = vadd.xlane.f32.xlu0 %v1884_v48 }
 0xe84   :  { %2143 = vadd.xlane.f32.xlu1 %v2142_v31 }
 0xe87   :  { %1891 = vadd.xlane.f32.xlu0 %v1890_v6 }
 0xe88   :  { %2149 = vadd.xlane.f32.xlu1 %v2148_v5 }
 0xe8b   :  { %2140 = vadd.xlane.f32.xlu0 %v2139_v9 }
 0xe8f   :  { %2146 = vadd.xlane.f32.xlu0 %v2145_v55 }
 0xeb2   :  { %v2372_v15 = vpop.xlane.xlu0 %2371 }
 0xeb3   :  { %v2382_v45 = vsub.f32 %v5238_v40, %v2372_v15 }
 0xeb4   :  { %v2375_v58 = vpop.xlane.xlu1 %2374 }
 0xeb5   :  { %v2386_v14 = vmul.f32 1.442695, %v2382_v45  ;;  %v2383_v16 = vsub.f32 %v5242_v57, %v2375_v58 }
 0xeb7   :  { %4292 = vpow2.f32 %v2386_v14  ;;  %v2388_v42 = vmul.f32 1.442695, %v2383_v16  ;;  %v2378_v18 = vpop.xlane.xlu0 %2377 }
 0xeb8   :  { %v2384_v13 = vsub.f32 %v5246_v0, %v2378_v18  ;;  %v2460_v20 = vpop.permute.xlu1 %2459 }
 0xeb9   :  { %4294 = vpow2.f32 %v2388_v42  ;;  %4059 = vmatpush3.bf16.msra.mxu0 %v2460_v20 }
 0xeba   :  { %v2390_v39 = vmul.f32 1.442695, %v2384_v13 }
 0xebb   :  { %v2381_v54 = vpop.xlane.xlu0 %2380 }
 0xebc   :  { %4296 = vpow2.f32 %v2390_v39  ;;  %v2385_v52 = vsub.f32 %v5250_v37, %v2381_v54 }
 0xebe   :  { %v2392_v35 = vmul.f32 1.442695, %v2385_v52 }
 0xebf   :  { %v2413_v46 = vpop.permute.xlu0 %2412 }
 0xec0   :  { %4298 = vpow2.f32 %v2392_v35  ;;  %4053 = vmatpush3.bf16.msra.mxu1 %v2413_v46 }
 0xec1   :  { %v4293_v40 = vpop.eup %4292 }
 0xec2   :  { %v2394_v57 = vsel %vm499_vm1, %v4293_v40, 0.0 }
 0xec3   :  { %v4295_v49 = vpop.eup %4294  ;;  %2395 = vadd.xlane.f32.xlu0 %v2394_v57 }
 0xec4   :  { %v2397_v7 = vsel %vm499_vm1, %v4295_v49, 0.0  ;;  %v2410_v0 = vpack.c.bf16 %v4295_v49, %v4293_v40 }
 0xec5   :  { %2398 = vadd.xlane.f32.xlu1 %v2397_v7 }
 0xec6   :  { %v4297_v8 = vpop.eup %4296  ;;  %4055 = vmatmul.mubr.msk.bf16.vlgmr.msra.gmra.mrb[60].mxu1 %vm499_vm1, %v2410_v0 }
 0xec7   :  { %v2400_v27 = vsel %vm499_vm1, %v4297_v8, 0.0 }
 0xec8   :  { %2401 = vadd.xlane.f32.xlu0 %v2400_v27 }
 0xeca   :  { %v4299_v37 = vpop.eup %4298 }
 0xecb   :  { %v2403_v28 = vsel %vm499_vm1, %v4299_v37, 0.0  ;;  %v2411_v25 = vpack.c.bf16 %v4299_v37, %v4297_v8 }
 0xecc   :  { %619 = vadd.xlane.f32.xlu0 %v618_v26  ;;  %2404 = vadd.xlane.f32.xlu1 %v2403_v28 }
 0xecd   :  { %4061 = vmatmul.mubr.msk.bf16.vlgmr.msra.gmra.mrb[72].mxu0 %vm499_vm1, %v2411_v25 }
 0xece   :  { %2963 = vmatprep.mubr.bf16.mxu0 %v5602_v38 }
 0xed0   :  { %625 = vadd.xlane.f32.xlu0 %v624_v34  ;;  %622 = vadd.xlane.f32.xlu1 %v621_v63 }
 0xed4   :  { %628 = vadd.xlane.f32.xlu1 %v627_v19 }
 0xee9   :  { %v864_v61 = vpop.xlane.xlu1 %863 }
 0xeea   :  { %4300 = vrcp.f32 %v864_v61 }
 0xeed   :  { %v873_v4 = vpop.xlane.xlu1 %872 }
 0xef0   :  { %v867_v3 = vpop.xlane.xlu0 %866 }
 0xef1   :  { %4302 = vrcp.f32 %v867_v3  ;;  %v1124_v48 = vpop.xlane.xlu1 %1123 }
 0xef2   :  { %4304 = vrcp.f32 %v873_v4 }
 0xef4   :  { %v870_v31 = vpop.xlane.xlu0 %869  ;;  %v4301_v5 = vpop.eup %4300 }
 0xef5   :  { %4306 = vrcp.f32 %v870_v31  ;;  %v1130_v6 = vpop.xlane.xlu1 %1129  ;;  %v976_v33 = vmul.f32 %v4301_v5, %v4960_v36 }
 0xef6   :  { %4308 = vrcp.f32 %v1124_v48 }
 0xef8   :  { %v1121_v32 = vpop.xlane.xlu0 %1120 }
 0xef9   :  { %4310 = vrcp.f32 %v1121_v32  ;;  %v1379_v21 = vpop.xlane.xlu1 %1378 }
 0xefa   :  { %4312 = vrcp.f32 %v1130_v6 }
 0xefb   :  { %v4303_v9 = vpop.eup %4302 }
 0xefc   :  { %v1127_v55 = vpop.xlane.xlu0 %1126  ;;  %v977_v15 = vmul.f32 %v4303_v9, %v4962_v41  ;;  %v4305_v45 = vpop.eup %4304 }
 0xefd   :  { %4314 = vrcp.f32 %v1127_v55  ;;  %v1385_v58 = vpop.xlane.xlu1 %1384  ;;  %v979_v13 = vmul.f32 %v4305_v45, %v4966_v47 }
 0xefe   :  { %v980_v14 = vpack.c.bf16 %v977_v15, %v976_v33  ;;  %4316 = vrcp.f32 %v1379_v21 }
 0xeff   :  { %v4307_v16 = vpop.eup %4306 }
 0xf00   :  { %984 = vrot.lane.b32.xlu0 %v980_v14, %s4600_s28  ;;  %v1376_v42 = vpop.xlane.xlu0 %1375  ;;  %v978_v18 = vmul.f32 %v4307_v16, %v4964_v44  ;;  %v4309_v20 = vpop.eup %4308 }
 0xf01   :  { %4318 = vrcp.f32 %v1376_v42  ;;  %v1634_v39 = vpop.xlane.xlu1 %1633  ;;  %v1232_v35 = vmul.f32 %v4309_v20, %v5016_v56 }
 0xf02   :  { %v981_v54 = vpack.c.bf16 %v979_v13, %v978_v18  ;;  %4320 = vrcp.f32 %v1385_v58 }
 0xf03   :  { %v4311_v36 = vpop.eup %4310 }
 0xf04   :  { %986 = vrot.lane.b32.xlu1 %v981_v54, %s4600_s28  ;;  %v1382_v41 = vpop.xlane.xlu0 %1381  ;;  %v1231_v52 = vmul.f32 %v4311_v36, %v5014_v53  ;;  %v4313_v46 = vpop.eup %4312 }
 0xf05   :  { %4322 = vrcp.f32 %v1382_v41  ;;  %v1640_v40 = vpop.xlane.xlu1 %1639  ;;  %v1234_v7 = vmul.f32 %v4313_v46, %v5020_v62  ;;  %v4140_v41 = vld [vmem:[#allocation11] sm:$0xff]  }
 0xf06   :  { %v1235_v57 = vpack.c.bf16 %v1232_v35, %v1231_v52  ;;  %4324 = vrcp.f32 %v1634_v39  ;;  %v4141_v52 = vld [vmem:[#allocation11 + $0x8] sm:$0xff]   ;;  %4064 = vmatprep.subr.bf16.mxu1 %v4140_v41 }
 0xf07   :  { %v4315_v44 = vpop.eup %4314  ;;  %4065 = vmatpush3.bf16.msra.mxu1 %v4140_v41 }
 0xf08   :  { %1239 = vrot.lane.b32.xlu1 %v1235_v57, %s4616_s29  ;;  %v1631_v47 = vpop.xlane.xlu0 %1630  ;;  %v1233_v49 = vmul.f32 %v4315_v44, %v5018_v60  ;;  %v4317_v0 = vpop.eup %4316  ;;  %4066 = vmatprep.subr.bf16.mxu1 %v4141_v52 }
 0xf09   :  { %4326 = vrcp.f32 %v1631_v47  ;;  %v1889_v8 = vpop.xlane.xlu1 %1888  ;;  %v1487_v26 = vmul.f32 %v4317_v0, %v5070_v17 }
 0xf0a   :  { %v1236_v27 = vpack.c.bf16 %v1234_v7, %v1233_v49  ;;  %4328 = vrcp.f32 %v1640_v40  ;;  %v4142_v40 = vld [vmem:[#allocation11 + $0x10] sm:$0xff]  }
 0xf0b   :  { %v4319_v53 = vpop.eup %4318  ;;  %4067 = vmatpush3.bf16.msra.mxu1 %v4141_v52 }
 0xf0c   :  { %1241 = vrot.lane.b32.xlu1 %v1236_v27, %s4616_s29  ;;  %v1637_v56 = vpop.xlane.xlu0 %1636  ;;  %v1486_v37 = vmul.f32 %v4319_v53, %v5068_v12  ;;  %v4321_v28 = vpop.eup %4320  ;;  %4068 = vmatprep.subr.bf16.mxu1 %v4142_v40  ;;  %v5604_v53 = vld [vmem:[#allocation22_spill] sm:$0xff] }
 0xf0d   :  { %4330 = vrcp.f32 %v1637_v56  ;;  %v1895_v25 = vpop.xlane.xlu1 %1894  ;;  %v1489_v19 = vmul.f32 %v4321_v28, %v5074_v29 }
 0xf0e   :  { %v1490_v34 = vpack.c.bf16 %v1487_v26, %v1486_v37  ;;  %4332 = vrcp.f32 %v1889_v8  ;;  %v5605_v37 = vld [vmem:[#allocation23_spill] sm:$0xff] }
 0xf0f   :  { %v4323_v60 = vpop.eup %4322  ;;  %4069 = vmatpush3.bf16.msra.mxu1 %v4142_v40 }
 0xf10   :  { %1494 = vrot.lane.b32.xlu0 %v1490_v34, %s4615_s26  ;;  %v1886_v62 = vpop.xlane.xlu0 %1885  ;;  %v1488_v63 = vmul.f32 %v4323_v60, %v5072_v23  ;;  %v4325_v61 = vpop.eup %4324  ;;  %v5606_v60 = vld [vmem:[#allocation24_spill] sm:$0xff] }
 0xf11   :  { %4334 = vrcp.f32 %v1886_v62  ;;  %v2144_v4 = vpop.xlane.xlu1 %2143  ;;  %v1742_v31 = vmul.f32 %v4325_v61, %v5124_v43 }
 0xf12   :  { %v1491_v3 = vpack.c.bf16 %v1489_v19, %v1488_v63  ;;  %4336 = vrcp.f32 %v1895_v25  ;;  %v5607_v63 = vld [vmem:[#allocation25_spill] sm:$0xff] }
 0xf13   :  { %v4327_v12 = vpop.eup %4326 }
 0xf14   :  { %1496 = vrot.lane.b32.xlu1 %v1491_v3, %s4615_s26  ;;  %v1892_v17 = vpop.xlane.xlu0 %1891  ;;  %v1741_v48 = vmul.f32 %v4327_v12, %v5122_v24  ;;  %v4329_v6 = vpop.eup %4328 }
 0xf15   :  { %4338 = vrcp.f32 %v1892_v17  ;;  %v2150_v23 = vpop.xlane.xlu1 %2149  ;;  %v1744_v9 = vmul.f32 %v4329_v6, %v5128_v59  ;;  %v5603_v59 = vld [vmem:[#allocation26_spill] sm:$0xff] }
 0xf16   :  { %v1745_v32 = vpack.c.bf16 %v1742_v31, %v1741_v48  ;;  %4340 = vrcp.f32 %v2144_v4 }
 0xf17   :  { %v4331_v5 = vpop.eup %4330 }
 0xf18   :  { %1749 = vrot.lane.b32.xlu0 %v1745_v32, %s4606_s2  ;;  %v2141_v29 = vpop.xlane.xlu0 %2140  ;;  %v1743_v21 = vmul.f32 %v4331_v5, %v5126_v50  ;;  %v4333_v55 = vpop.eup %4332 }
 0xf19   :  { %4342 = vrcp.f32 %v2141_v29  ;;  %v1997_v45 = vmul.f32 %v4333_v55, %v5178_v11 }
 0xf1a   :  { %v1746_v33 = vpack.c.bf16 %v1744_v9, %v1743_v21  ;;  %4344 = vrcp.f32 %v2150_v23  ;;  %v4145_v23 = vld [vmem:[#allocation11 + $0x28] sm:$0xff]   ;;  %v4146_v9 = vld [vmem:[#allocation11 + $0x30] sm:$0xff]  }
 0xf1b   :  { %v4335_v15 = vpop.eup %4334 }
 0xf1c   :  { %1751 = vrot.lane.b32.xlu1 %v1746_v33, %s4606_s2  ;;  %v2147_v24 = vpop.xlane.xlu0 %2146  ;;  %v1996_v43 = vmul.f32 %v4335_v15, %v5176_v1  ;;  %v4337_v58 = vpop.eup %4336 }
 0xf1d   :  { %4346 = vrcp.f32 %v2147_v24  ;;  %v1999_v42 = vmul.f32 %v4337_v58, %v5603_v59 }
 0xf1e   :  { %v2000_v14 = vpack.c.bf16 %v1997_v45, %v1996_v43  ;;  %v4147_v45 = vld [vmem:[#allocation11 + $0x38] sm:$0xff]  }
 0xf1f   :  { %v4339_v16 = vpop.eup %4338 }
 0xf20   :  { %2004 = vrot.lane.b32.xlu0 %v2000_v14, %s4614_s15  ;;  %v1998_v50 = vmul.f32 %v4339_v16, %v5180_v30  ;;  %v4341_v18 = vpop.eup %4340 }
 0xf21   :  { %v2252_v1 = vmul.f32 %v4341_v18, %v5232_v22  ;;  %v4144_v22 = vld [vmem:[#allocation11 + $0x20] sm:$0xff]  }
 0xf22   :  { %v2001_v13 = vpack.c.bf16 %v1999_v42, %v1998_v50 }
 0xf23   :  { %v4343_v20 = vpop.eup %4342 }
 0xf24   :  { %2006 = vrot.lane.b32.xlu1 %v2001_v13, %s4614_s15  ;;  %v2251_v39 = vmul.f32 %v4343_v20, %v5230_v2  ;;  %v4345_v11 = vpop.eup %4344  ;;  %v4143_v2 = vld [vmem:[#allocation11 + $0x18] sm:$0xff]  }
 0xf25   :  { %v2254_v35 = vmul.f32 %v4345_v11, %v5236_v10  ;;  %4070 = vmatprep.subr.bf16.mxu1 %v4143_v2 }
 0xf26   :  { %v2255_v54 = vpack.c.bf16 %v2252_v1, %v2251_v39  ;;  %4071 = vmatpush3.bf16.msra.mxu1 %v4143_v2 }
 0xf27   :  { %v4347_v36 = vpop.eup %4346  ;;  %4072 = vmatprep.subr.bf16.mxu1 %v4144_v22 }
 0xf28   :  { %2259 = vrot.lane.b32.xlu0 %v2255_v54, %s4613_s14  ;;  %v2253_v30 = vmul.f32 %v4347_v36, %v5234_v51 }
 0xf2a   :  { %v2256_v46 = vpack.c.bf16 %v2254_v35, %v2253_v30  ;;  %4073 = vmatpush3.bf16.msra.mxu1 %v4144_v22 }
 0xf2b   :  { %4074 = vmatprep.subr.bf16.mxu1 %v4145_v23 }
 0xf2c   :  { %2261 = vrot.lane.b32.xlu1 %v2256_v46, %s4613_s14  ;;  %v3636_v46 = vld [vmem:[%s5578_s6] ss:$0 sm:$0xff] }
 0xf2e   :  { %4075 = vmatpush3.bf16.msra.mxu1 %v4145_v23 }
 0xf2f   :  { %4076 = vmatprep.subr.bf16.mxu1 %v4146_v9 }
 0xf32   :  { %4077 = vmatpush3.bf16.msra.mxu1 %v4146_v9 }
 0xf33   :  { %4078 = vmatprep.subr.bf16.mxu1 %v4147_v45 }
 0xf36   :  { %4079 = vmatpush3.bf16.msra.mxu1 %v4147_v45  ;;  %v4163_v45 = vld [vmem:[#allocation12 + $0x48] ss:$16 sps:$4 sm:$0xff]  }
 0xf50   :  { %v2396_v57 = vpop.xlane.xlu0 %2395 }
 0xf52   :  { %v2399_v51 = vpop.xlane.xlu1 %2398 }
 0xf55   :  { %v2402_v44 = vpop.xlane.xlu0 %2401 }
 0xf59   :  { %v2405_v10 = vpop.xlane.xlu1 %2404  ;;  %v620_v47 = vpop.xlane.xlu0 %619 }
 0xf5a   :  { %4348 = vrcp.f32 %v620_v47 }
 0xf5d   :  { %v623_v49 = vpop.xlane.xlu1 %622  ;;  %v626_v7 = vpop.xlane.xlu0 %625 }
 0xf5e   :  { %4350 = vrcp.f32 %v623_v49 }
 0xf5f   :  { %4352 = vrcp.f32 %v626_v7  ;;  %v4405_v7 = vld [vmem:[#allocation3 + $0x8] sm:$0xff] }
 0xf61   :  { %v629_v0 = vpop.xlane.xlu1 %628 }
 0xf62   :  { %4354 = vrcp.f32 %v629_v0 }
 0xf63   :  { %4356 = vrcp.f32 %v2396_v57 }
 0xf64   :  { %v4349_v8 = vpop.eup %4348  ;;  %4358 = vrcp.f32 %v2399_v51 }
 0xf65   :  { %v724_v56 = vmul.f32 %v4349_v8, %v5604_v53  ;;  %4360 = vrcp.f32 %v2402_v44  ;;  %v4406_v8 = vld [vmem:[#allocation3 + $0x10] sm:$0xff] }
 0xf66   :  { %4362 = vrcp.f32 %v2405_v10  ;;  %v4404_v10 = vld [vmem:[#allocation3] sm:$0xff] }
 0xf68   :  { %v4351_v27 = vpop.eup %4350 }
 0xf69   :  { %v725_v26 = vmul.f32 %v4351_v27, %v5605_v37  ;;  %v4353_v28 = vpop.eup %4352 }
 0xf6a   :  { %v726_v62 = vmul.f32 %v4353_v28, %v5606_v60  ;;  %v4150_v28 = vld [vmem:[#allocation12 + $0x4] ss:$16 sps:$4 sm:$0xff]  }
 0xf6b   :  { %v728_v25 = vpack.c.bf16 %v725_v26, %v724_v56  ;;  %v4407_v56 = vld [vmem:[#allocation3 + $0x18] sm:$0xff]  ;;  %v4148_v26 = vld [vmem:[#allocation12] ss:$16 sps:$4 sm:$0xff]   ;;  %2931 = vmatprep.subr.bf16.mxu0 %v4150_v28 }
 0xf6c   :  { %v4355_v34 = vpop.eup %4354  ;;  %v4156_v60 = vld [vmem:[#allocation12 + $0x24] ss:$16 sps:$4 sm:$0xff]   ;;  %2932 = vmatpush1.bf16.msra.mxu0 %v4148_v26 }
 0xf6d   :  { %v727_v19 = vmul.f32 %v4355_v34, %v5607_v63  ;;  %730 = vst.msk [vmem:[#allocation2] sm:$0xff] %vm499_vm1, %v728_v25  ;;  %v4357_v55 = vpop.eup %4356  ;;  %v4151_v25 = vld [vmem:[#allocation12 + $0x8] ss:$16 sps:$4 sm:$0xff]   ;;  %v4153_v34 = vld [vmem:[#allocation12 + $0xc] ss:$16 sps:$4 sm:$0xff]   ;;  %2933 = vmatprep.subr.bf16.mxu0 %v4156_v60 }
 0xf6e   :  { %v4359_v24 = vpop.eup %4358  ;;  %2984 = vmatprep.subr.bf16.mxu1 %v4153_v34  ;;  %v4154_v63 = vld [vmem:[#allocation12 + $0x20] ss:$16 sps:$4 sm:$0xff]  }
 0xf6f   :  { %v729_v61 = vpack.c.bf16 %v727_v19, %v726_v62  ;;  %v4361_v18 = vpop.eup %4360  ;;  %v4159_v62 = vld [vmem:[#allocation12 + $0x2c] ss:$16 sps:$4 sm:$0xff]   ;;  %v4157_v19 = vld [vmem:[#allocation12 + $0x28] ss:$16 sps:$4 sm:$0xff]  }
 0xf70   :  { %v4363_v20 = vpop.eup %4362  ;;  %2934 = vmatpush1.bf16.msra.mxu0 %v4154_v63 }
 0xf71   :  { %731 = vst.msk [vmem:[#allocation2 + $0x8] sm:$0xff] %vm499_vm1, %v729_v61 }
 0xf72   :  { %v985_v4 = vpop.permute.xlu0 %984 }
 0xf73   :  { %991 = vst.msk [vmem:[#allocation2] sm:$0xff] %vm990_vm2, %v985_v4 }
 0xf76   :  { %v987_v3 = vpop.permute.xlu1 %986 }
 0xf77   :  { %992 = vst.msk [vmem:[#allocation2 + $0x8] sm:$0xff] %vm990_vm2, %v987_v3 }
 0xf7a   :  { %v1240_v12 = vpop.permute.xlu1 %1239 }
 0xf7b   :  { %1246 = vst.msk [vmem:[#allocation2] sm:$0xff] %vm1245_vm3, %v1240_v12 }
 0xf7e   :  { %v1242_v17 = vpop.permute.xlu1 %1241 }
 0xf7f   :  { %1247 = vst.msk [vmem:[#allocation2 + $0x8] sm:$0xff] %vm1245_vm3, %v1242_v17 }
 0xf82   :  { %v1495_v48 = vpop.permute.xlu0 %1494 }
 0xf83   :  { %1501 = vst.msk [vmem:[#allocation2] sm:$0xff] %vm1500_vm4, %v1495_v48 }
 0xf86   :  { %v1497_v31 = vpop.permute.xlu1 %1496 }
 0xf87   :  { %1502 = vst.msk [vmem:[#allocation2 + $0x8] sm:$0xff] %vm1500_vm4, %v1497_v31 }
 0xf8a   :  { %v1750_v6 = vpop.permute.xlu0 %1749 }
 0xf8b   :  { %1756 = vst.msk [vmem:[#allocation2] sm:$0xff] %vm1755_vm5, %v1750_v6 }
 0xf8e   :  { %v1752_v32 = vpop.permute.xlu1 %1751 }
 0xf8f   :  { %1757 = vst.msk [vmem:[#allocation2 + $0x8] sm:$0xff] %vm1755_vm5, %v1752_v32 }
 0xf92   :  { %v2005_v5 = vpop.permute.xlu0 %2004 }
 0xf93   :  { %2011 = vst.msk [vmem:[#allocation2] sm:$0xff] %vm2010_vm6, %v2005_v5 }
 0xf96   :  { %v2007_v29 = vpop.permute.xlu1 %2006 }
 0xf97   :  { %2012 = vst.msk [vmem:[#allocation2 + $0x8] sm:$0xff] %vm2010_vm6, %v2007_v29 }
 0xf99   :  { %v2452_v21 = vpop.f32.mrb[60].mxu1 }
 0xf9a   :  { %v4056_v33 = vpop.f32.mrb[61].mxu1  ;;  %v2260_v15 = vpop.permute.xlu0 %2259  ;;  %v2506_v58 = vmul.f32 %v4357_v55, %v2452_v21 }
 0xf9b   :  { %2266 = vst.msk [vmem:[#allocation2] sm:$0xff] %vm2265_vm7, %v2260_v15  ;;  %v2455_v43 = vpop.f32.mrb[62].mxu1  ;;  %v4162_v15 = vld [vmem:[#allocation12 + $0x44] ss:$16 sps:$4 sm:$0xff]  }
 0xf9c   :  { %v2507_v14 = vmul.f32 %v4359_v24, %v2455_v43  ;;  %v4057_v16 = vpop.f32.mrb[63].mxu1  ;;  %v4165_v24 = vld [vmem:[#allocation12 + $0x4c] ss:$16 sps:$4 sm:$0xff]   ;;  %v4160_v43 = vld [vmem:[#allocation12 + $0x40] ss:$16 sps:$4 sm:$0xff]   ;;  %2935 = vmatprep.subr.bf16.mxu0 %v4162_v15 }
 0xf9d   :  { %2936 = vmatpush1.bf16.msra.mxu0 %v4160_v43  ;;  %v4166_v16 = vld [vmem:[#allocation12 + $0x60] ss:$16 sps:$4 sm:$0xff]   ;;  %v4201_v43 = vld [vmem:[#allocation14 + $0xc8] sm:$0xff]  }
 0xf9e   :  { %v2510_v50 = vpack.c.bf16 %v2507_v14, %v2506_v58  ;;  %v2262_v59 = vpop.permute.xlu1 %2261  ;;  %v4168_v58 = vld [vmem:[#allocation12 + $0x64] ss:$16 sps:$4 sm:$0xff]   ;;  %v4171_v14 = vld [vmem:[#allocation12 + $0x6c] ss:$16 sps:$4 sm:$0xff]  }
 0xf9f   :  { %2267 = vst.msk [vmem:[#allocation2 + $0x8] sm:$0xff] %vm2265_vm7, %v2262_v59  ;;  %2937 = vmatprep.subr.bf16.mxu0 %v4168_v58  ;;  %v4174_v59 = vld [vmem:[#allocation12 + $0x84] ss:$16 sps:$4 sm:$0xff]   ;;  %v4203_v58 = vld [vmem:[#allocation14 + $0x88] sm:$0xff]  }
 0xfa0   :  { %2514 = vrot.lane.b32.xlu0 %v2510_v50, %s4612_s4  ;;  %v2499_v42 = vpop.f32.mrb[72].mxu0  ;;  %v4169_v50 = vld [vmem:[#allocation12 + $0x68] ss:$16 sps:$4 sm:$0xff]   ;;  %v4197_v15 = vld [vmem:[#allocation14 + $0xc0] sm:$0xff]  }
 0xfa1   :  { %v4062_v13 = vpop.f32.mrb[73].mxu0  ;;  %v2508_v1 = vmul.f32 %v4361_v18, %v2499_v42  ;;  %2938 = vmatpush1.bf16.msra.mxu0 %v4166_v16  ;;  %v4177_v42 = vld [vmem:[#allocation12 + $0x8c] ss:$16 sps:$4 sm:$0xff]   ;;  %v4172_v18 = vld [vmem:[#allocation12 + $0x80] ss:$16 sps:$4 sm:$0xff]  }
 0xfa2   :  { %v2502_v39 = vpop.f32.mrb[74].mxu0  ;;  %v4175_v13 = vld [vmem:[#allocation12 + $0x88] ss:$16 sps:$4 sm:$0xff]   ;;  %2939 = vmatprep.subr.bf16.mxu0 %v4174_v59  ;;  %v4206_v16 = vld [vmem:[#allocation14 + $0x10] sm:$0xff]  }
 0xfa3   :  { %v2509_v11 = vmul.f32 %v4363_v20, %v2502_v39  ;;  %v4063_v54 = vpop.f32.mrb[75].mxu0  ;;  %v4180_v20 = vld [vmem:[#allocation12 + $0xa4] ss:$16 sps:$4 sm:$0xff]   ;;  %v4183_v39 = vld [vmem:[#allocation12 + $0xac] ss:$16 sps:$4 sm:$0xff]  }
 0xfa4   :  { %v4186_v54 = vld [vmem:[#allocation12 + $0xc4] ss:$16 sps:$4 sm:$0xff]   ;;  %v4208_v59 = vld [vmem:[#allocation14 + $0x58] sm:$0xff]  }
 0xfa5   :  { %v2511_v36 = vpack.c.bf16 %v2509_v11, %v2508_v1  ;;  %2940 = vmatpush1.bf16.msra.mxu0 %v4172_v18  ;;  %v4178_v1 = vld [vmem:[#allocation12 + $0xa0] ss:$16 sps:$4 sm:$0xff]   ;;  %v4181_v11 = vld [vmem:[#allocation12 + $0xa8] ss:$16 sps:$4 sm:$0xff]  }
 0xfa6   :  { %2941 = vmatprep.subr.bf16.mxu0 %v4180_v20  ;;  %v4210_v18 = vld [vmem:[#allocation14 + $0x18] sm:$0xff]   ;;  %v4212_v20 = vld [vmem:[#allocation14 + $0x60] sm:$0xff]  }
 0xfa7   :  { %2516 = vrot.lane.b32.xlu1 %v2511_v36, %s4612_s4  ;;  %v4189_v36 = vld [vmem:[#allocation12 + $0xcc] ss:$16 sps:$4 sm:$0xff]  }
 0xfa9   :  { %2942 = vmatpush1.bf16.msra.mxu0 %v4178_v1  ;;  %v4214_v1 = vld [vmem:[#allocation14 + $0x20] sm:$0xff]  }
 0xfaa   :  { %2943 = vmatprep.subr.bf16.mxu0 %v4186_v54  ;;  %v4216_v54 = vld [vmem:[#allocation14 + $0x68] sm:$0xff]  }
0x1012   :  { %v2515_v41 = vpop.permute.xlu0 %2514 }
0x1013   :  { %2521 = vst.msk [vmem:[#allocation2] sm:$0xff] %vm2520_vm8, %v2515_v41  ;;  %v4184_v41 = vld [vmem:[#allocation12 + $0xc0] ss:$16 sps:$4 sm:$0xff]  }
0x1014   :  { %2944 = vmatpush1.bf16.msra.mxu0 %v4184_v41  ;;  %v4218_v41 = vld [vmem:[#allocation14 + $0x28] sm:$0xff]  }
0x1019   :  { %v2517_v52 = vpop.permute.xlu1 %2516 }
0x101a   :  { %2522 = vst.msk [vmem:[#allocation2 + $0x8] sm:$0xff] %vm2520_vm8, %v2517_v52  ;;  %v2523_v30 = vld [vmem:[#allocation2] sm:$0xff]  ;;  %v4187_v52 = vld [vmem:[#allocation12 + $0xc8] ss:$16 sps:$4 sm:$0xff]  }
0x101b   :  { %4080 = vmatprep.mubr.bf16.mxu1 %v2523_v30  ;;  %v4192_v30 = vld [vmem:[#allocation12 + $0xe4] ss:$16 sps:$4 sm:$0xff]  }
0x101c   :  { %2945 = vmatprep.subr.bf16.mxu0 %v4192_v30  ;;  %v4220_v30 = vld [vmem:[#allocation14 + $0x70] sm:$0xff]  }
0x1021   :  { %v2524_v35 = vld [vmem:[#allocation2 + $0x8] sm:$0xff] }
0x1022   :  { %4081 = vmatmul.mubr.bf16.vlgmr.msra.gmra.mrb[64].mxu1 %v2524_v35  ;;  %v4195_v35 = vld [vmem:[#allocation12 + $0xec] ss:$16 sps:$4 sm:$0xff]  }
0x1023   :  { %3016 = vmatprep.mubr.bf16.mxu1 %v5602_v38  ;;  %2985 = vmatpush1.bf16.msra.mxu1 %v4151_v25  ;;  %v3645_v25 = vld [vmem:[%s5579_s7] ss:$0 sm:$0xff] }
0x1024   :  { %2986 = vmatprep.subr.bf16.mxu1 %v4159_v62 }
0x1027   :  { %2987 = vmatpush1.bf16.msra.mxu1 %v4157_v19 }
0x1028   :  { %2988 = vmatprep.subr.bf16.mxu1 %v4165_v24  ;;  %v4199_v24 = vld [vmem:[#allocation14 + $0x80] sm:$0xff]  }
0x102b   :  { %2989 = vmatpush1.bf16.msra.mxu1 %v4163_v45  ;;  %v4202_v45 = vld [vmem:[#allocation14 + $0x8] sm:$0xff]  }
0x102c   :  { %2990 = vmatprep.subr.bf16.mxu1 %v4171_v14  ;;  %v4205_v14 = vld [vmem:[#allocation14 + $0xd0] sm:$0xff]  }
0x102f   :  { %2991 = vmatpush1.bf16.msra.mxu1 %v4169_v50  ;;  %v4207_v50 = vld [vmem:[#allocation14 + $0x90] sm:$0xff]  }
0x1030   :  { %2992 = vmatprep.subr.bf16.mxu1 %v4177_v42  ;;  %v4209_v42 = vld [vmem:[#allocation14 + $0xd8] sm:$0xff]  }
0x1033   :  { %2993 = vmatpush1.bf16.msra.mxu1 %v4175_v13  ;;  %v4211_v13 = vld [vmem:[#allocation14 + $0x98] sm:$0xff]  }
0x1034   :  { %2994 = vmatprep.subr.bf16.mxu1 %v4183_v39  ;;  %v4213_v39 = vld [vmem:[#allocation14 + $0xe0] sm:$0xff]  }
0x1037   :  { %2995 = vmatpush1.bf16.msra.mxu1 %v4181_v11  ;;  %v4215_v11 = vld [vmem:[#allocation14 + $0xa0] sm:$0xff]  }
0x1038   :  { %2996 = vmatprep.subr.bf16.mxu1 %v4189_v36  ;;  %v4217_v36 = vld [vmem:[#allocation14 + $0xe8] sm:$0xff]  }
0x103b   :  { %2997 = vmatpush1.bf16.msra.mxu1 %v4187_v52  ;;  %v4219_v52 = vld [vmem:[#allocation14 + $0xa8] sm:$0xff]  }
0x103c   :  { %2998 = vmatprep.subr.bf16.mxu1 %v4195_v35  ;;  %v4221_v35 = vld [vmem:[#allocation14 + $0xf0] sm:$0xff]  }
0x10f5   :  { %v4082_v40 = vpop.f32.mrb[64].mxu1 }
0x10f6   :  { %v2630_v2 = vpop.f32.mrb[65].mxu1  ;;  %v2639_v44 = vadd.f32 %v4082_v40, %v3636_v46  ;;  %v4193_v40 = vld [vmem:[#allocation12 + $0xe8] ss:$16 sps:$4 sm:$0xff]  }
0x10f7   :  { %v2631_v22 = vadd.f32 %v3636_v46, %v2630_v2  ;;  %v4083_v57 = vpop.f32.mrb[66].mxu1  ;;  %2999 = vmatpush1.bf16.msra.mxu1 %v4193_v40  ;;  %v4223_v40 = vld [vmem:[#allocation14 + $0xb0] sm:$0xff]  }
0x10f8   :  { %v2633_v51 = vpop.f32.mrb[67].mxu1  ;;  %v5380_v27 = vadd.f32 %v4406_v8, %v2639_v44  ;;  %v2642_v53 = vadd.f32 %v4083_v57, %v3636_v46  ;;  %3824 = vmatprep.subr.bf16.mxu1 %v4197_v15 }
0x10f9   :  { %v5375_v47 = vadd.f32 %v4404_v10, %v2631_v22  ;;  %v2634_v49 = vadd.f32 %v3636_v46, %v2633_v51  ;;  %v4190_v46 = vld [vmem:[#allocation12 + $0xe0] ss:$16 sps:$4 sm:$0xff]  }
0x10fa   :  { %v5384_v37 = vadd.f32 %v4407_v56, %v2642_v53  ;;  %2946 = vmatpush1.bf16.msra.mxu0 %v4190_v46  ;;  %v4222_v46 = vld [vmem:[#allocation14 + $0x30] sm:$0xff]  }
0x10fb   :  { %v5377_v0 = vadd.f32 %v4405_v7, %v2634_v49  ;;  %2651 = vadd.xlane.f32.xlu0 %v5375_v47 }
0x10fd   :  { %2653 = vadd.xlane.f32.xlu1 %v5377_v0 }
0x10ff   :  { %2655 = vadd.xlane.f32.xlu0 %v5380_v27 }
0x1103   :  { %2657 = vadd.xlane.f32.xlu0 %v5384_v37 }
0x1188   :  { %v2652_v61 = vpop.xlane.xlu0 %2651 }
0x1189   :  { %v2659_v4 = vmul.f32 0.0078125, %v2652_v61  ;;  %v3646_v61 = vld [vmem:[%s5580_s8] ss:$0 sm:$0xff] }
0x118a   :  { %v2654_v3 = vpop.xlane.xlu1 %2653 }
0x118b   :  { %v5388_v12 = vsub.f32 %v5375_v47, %v2659_v4  ;;  %v2660_v17 = vmul.f32 0.0078125, %v2654_v3 }
0x118c   :  { %v2656_v48 = vpop.xlane.xlu0 %2655 }
0x118d   :  { %v5391_v31 = vsub.f32 %v5377_v0, %v2660_v17  ;;  %v2661_v6 = vmul.f32 0.0078125, %v2656_v48  ;;  %v2667_v32 = vmul.f32 %v5388_v12, %v5388_v12 }
0x118f   :  { %v5396_v5 = vsub.f32 %v5380_v27, %v2661_v6  ;;  %2671 = vadd.xlane.f32.xlu0 %v2667_v32  ;;  %v2668_v23 = vmul.f32 %v5391_v31, %v5391_v31 }
0x1190   :  { %v2658_v29 = vpop.xlane.xlu0 %2657 }
0x1191   :  { %v2662_v21 = vmul.f32 0.0078125, %v2658_v29  ;;  %2673 = vadd.xlane.f32.xlu1 %v2668_v23  ;;  %v2669_v9 = vmul.f32 %v5396_v5, %v5396_v5 }
0x1193   :  { %v5403_v55 = vsub.f32 %v5384_v37, %v2662_v21  ;;  %2675 = vadd.xlane.f32.xlu0 %v2669_v9 }
0x1195   :  { %v2670_v33 = vmul.f32 %v5403_v55, %v5403_v55 }
0x1197   :  { %2677 = vadd.xlane.f32.xlu1 %v2670_v33  ;;  %v4196_v33 = vld [vmem:[#allocation14 + $0x40] sm:$0xff]  }
0x1198   :  { %3796 = vmatprep.subr.bf16.mxu0 %v4196_v33 }
0x121c   :  { %v2672_v2 = vpop.xlane.xlu0 %2671 }
0x121d   :  { %v2679_v22 = vmul.f32 0.0078125, %v2672_v2  ;;  %v4224_v2 = vld [vmem:[#allocation14 + $0x78] sm:$0xff]  }
0x121e   :  { %v2674_v57 = vpop.xlane.xlu1 %2673 }
0x121f   :  { %v2683_v51 = vadd.f32 1e-05, %v2679_v22  ;;  %v2680_v44 = vmul.f32 0.0078125, %v2674_v57  ;;  %v4225_v22 = vld [vmem:[#allocation14 + $0xf8] sm:$0xff]  }
0x1220   :  { %v2676_v10 = vpop.xlane.xlu0 %2675  ;;  %v4226_v57 = vld [vmem:[#allocation14 + $0x38] sm:$0xff]  }
0x1221   :  { %4364 = vrsqrt.f32 %v2683_v51  ;;  %v2684_v49 = vadd.f32 1e-05, %v2680_v44  ;;  %v2681_v7 = vmul.f32 0.0078125, %v2676_v10  ;;  %v4227_v51 = vld [vmem:[#allocation14 + $0xb8] sm:$0xff]   ;;  %v2749_v44 = vld [vmem:[%s5582_s10] sm:$0xf] }
0x1222   :  { %v5608_v10 = vld [vmem:[#allocation21_spill] sm:$0xff] }
0x1223   :  { %4366 = vrsqrt.f32 %v2684_v49  ;;  %v2685_v8 = vadd.f32 1e-05, %v2681_v7  ;;  %v5609_v49 = vsub.s32 0, %v5608_v10 }
0x1224   :  { %v2678_v53 = vpop.xlane.xlu1 %2677 }
0x1225   :  { %4368 = vrsqrt.f32 %v2685_v8  ;;  %v2682_v56 = vmul.f32 0.0078125, %v2678_v53  ;;  %v5424_v7 = vrot.slane %v2749_v44, %v5609_v49  ;;  %v5610_v8 = vsub.s32 2, %v5608_v10 }
0x1227   :  { %v2686_v26 = vadd.f32 1e-05, %v2682_v56  ;;  %v5428_v53 = vrot.slane %v2749_v44, %v5610_v8  ;;  %v2765_v56 = vsub.s32 3, %v5608_v10 }
0x1229   :  { %4370 = vrsqrt.f32 %v2686_v26 }
0x122b   :  { %v4365_v28 = vpop.eup %4364 }
0x122c   :  { %v2691_v34 = vmul.f32 %v4365_v28, %v5388_v12 }
0x122d   :  { %v4367_v60 = vpop.eup %4366 }
0x122e   :  { %v2692_v62 = vmul.f32 %v4367_v60, %v5391_v31  ;;  %v2701_v63 = vmul.f32 %v3645_v25, %v2691_v34 }
0x122f   :  { %v4369_v19 = vpop.eup %4368 }
0x1230   :  { %v2702_v4 = vmul.f32 %v3645_v25, %v2692_v62  ;;  %v2711_v3 = vadd.f32 %v3646_v61, %v2701_v63  ;;  %v2693_v48 = vmul.f32 %v4369_v19, %v5396_v5  ;;  %v4198_v5 = vld [vmem:[#allocation14] sm:$0xff]  }
0x1232   :  { %v2712_v17 = vadd.f32 %v3646_v61, %v2702_v4  ;;  %v2703_v12 = vmul.f32 %v3645_v25, %v2693_v48 }
0x1233   :  { %v4371_v6 = vpop.eup %4370 }
0x1234   :  { %v2715_v32 = vpack.c.bf16 %v2712_v17, %v2711_v3  ;;  %v2694_v23 = vmul.f32 %v4371_v6, %v5403_v55  ;;  %v2713_v21 = vadd.f32 %v3646_v61, %v2703_v12  ;;  %v4200_v55 = vld [vmem:[#allocation14 + $0x48] sm:$0xff]  }
0x1236   :  { %2964 = vmatmul.mubr.bf16.vlgmr.msra.gmra.mrb[76].mxu0 %v2715_v32  ;;  %3017 = vmatmul.mubr.bf16.vlgmr.msra.gmra.mrb[68].mxu1 %v2715_v32  ;;  %v2704_v29 = vmul.f32 %v3645_v25, %v2694_v23  ;;  %v5611_v25 = vsub.s32 1, %v5608_v10 }
0x1237   :  { %2973 = vmatprep.mubr.bf16.mxu0 %v5602_v38  ;;  %3026 = vmatprep.mubr.bf16.mxu1 %v5602_v38  ;;  %v4204_v38 = vld [vmem:[#allocation14 + $0x50] sm:$0xff]  }
0x1238   :  { %v2714_v31 = vadd.f32 %v3646_v61, %v2704_v29  ;;  %3797 = vmatpush3.bf16.msra.mxu0 %v4198_v5  ;;  %3825 = vmatpush3.bf16.msra.mxu1 %v4199_v24  ;;  %v5433_v34 = vrot.slane %v2749_v44, %v5611_v25  ;;  %v5437_v61 = vrot.slane %v2749_v44, %v2765_v56 }
0x1239   :  { %3798 = vmatprep.subr.bf16.mxu0 %v4200_v55  ;;  %3826 = vmatprep.subr.bf16.mxu1 %v4201_v43 }
0x123a   :  { %v2716_v9 = vpack.c.bf16 %v2714_v31, %v2713_v21 }
0x123c   :  { %3799 = vmatpush3.bf16.msra.mxu0 %v4202_v45  ;;  %3827 = vmatpush3.bf16.msra.mxu1 %v4203_v58 }
0x123d   :  { %3800 = vmatprep.subr.bf16.mxu0 %v4204_v38  ;;  %3828 = vmatprep.subr.bf16.mxu1 %v4205_v14 }
0x123e   :  { %2974 = vmatmul.mubr.bf16.gmra.mrb[80].mxu0 %v2716_v9  ;;  %3027 = vmatmul.mubr.bf16.gmra.mrb[72].mxu1 %v2716_v9 }
0x1240   :  { %3801 = vmatpush3.bf16.msra.mxu0 %v4206_v16  ;;  %3829 = vmatpush3.bf16.msra.mxu1 %v4207_v50 }
0x1241   :  { %3802 = vmatprep.subr.bf16.mxu0 %v4208_v59  ;;  %3830 = vmatprep.subr.bf16.mxu1 %v4209_v42 }
0x1244   :  { %3803 = vmatpush3.bf16.msra.mxu0 %v4210_v18  ;;  %3831 = vmatpush3.bf16.msra.mxu1 %v4211_v13 }
0x1245   :  { %3804 = vmatprep.subr.bf16.mxu0 %v4212_v20  ;;  %3832 = vmatprep.subr.bf16.mxu1 %v4213_v39 }
0x1248   :  { %3805 = vmatpush3.bf16.msra.mxu0 %v4214_v1  ;;  %3833 = vmatpush3.bf16.msra.mxu1 %v4215_v11 }
0x1249   :  { %3806 = vmatprep.subr.bf16.mxu0 %v4216_v54  ;;  %3834 = vmatprep.subr.bf16.mxu1 %v4217_v36 }
0x124c   :  { %3807 = vmatpush3.bf16.msra.mxu0 %v4218_v41  ;;  %3835 = vmatpush3.bf16.msra.mxu1 %v4219_v52 }
0x124d   :  { %3808 = vmatprep.subr.bf16.mxu0 %v4220_v30  ;;  %3836 = vmatprep.subr.bf16.mxu1 %v4221_v35 }
0x1250   :  { %3809 = vmatpush3.bf16.msra.mxu0 %v4222_v46  ;;  %3837 = vmatpush3.bf16.msra.mxu1 %v4223_v40 }
0x1251   :  { %3810 = vmatprep.subr.bf16.mxu0 %v4224_v2  ;;  %3838 = vmatprep.subr.bf16.mxu1 %v4225_v22 }
0x1254   :  { %3811 = vmatpush3.bf16.msra.mxu0 %v4226_v57  ;;  %3839 = vmatpush3.bf16.msra.mxu1 %v4227_v51 }
0x1309   :  { %v2965_v26 = vpop.f32.mrb[76].mxu0  ;;  %v3018_v28 = vpop.f32.mrb[68].mxu1 }
0x130a   :  { %v2966_v60 = vadd.f32 %v2965_v26, %v5424_v7  ;;  %v3019_v62 = vadd.f32 %v3018_v28, %v5428_v53  ;;  %v2967_v63 = vpop.f32.mrb[77].mxu0  ;;  %v3020_v19 = vpop.f32.mrb[69].mxu1 }
0x130b   :  { %v2969_v4 = vpop.f32.mrb[78].mxu0  ;;  %v3022_v3 = vpop.f32.mrb[70].mxu1  ;;  %v5440_v6 = vadd.f32 %v2967_v63, %v5433_v34  ;;  %v5450_v33 = vadd.f32 %v3020_v19, %v5437_v61 }
0x130c   :  { %v3053_v17 = vmul.f32 0.044715, %v2966_v60  ;;  %v3055_v48 = vmul.f32 0.044715, %v3019_v62  ;;  %v2970_v32 = vadd.f32 %v2969_v4, %v5424_v7  ;;  %v5444_v23 = vadd.f32 %v3022_v3, %v5428_v53  ;;  %v2971_v12 = vpop.f32.mrb[79].mxu0  ;;  %v3024_v29 = vpop.f32.mrb[71].mxu1 }
0x130d   :  { %v5447_v9 = vadd.f32 %v2971_v12, %v5433_v34  ;;  %v5453_v5 = vadd.f32 %v3024_v29, %v5437_v61  ;;  %v5455_v24 = vmul.f32 0.5, %v2966_v60  ;;  %v3054_v58 = vmul.f32 0.044715, %v5440_v6 }
0x130e   :  { %v3069_v31 = vmul.f32 %v3053_v17, %v2966_v60  ;;  %v3071_v21 = vmul.f32 %v3055_v48, %v3019_v62  ;;  %v3057_v15 = vmul.f32 0.044715, %v2970_v32  ;;  %v3059_v45 = vmul.f32 0.044715, %v5444_v23 }
0x130f   :  { %v3058_v14 = vmul.f32 0.044715, %v5447_v9  ;;  %v5460_v42 = vmul.f32 0.5, %v3019_v62  ;;  %v3056_v1 = vmul.f32 0.044715, %v5450_v33  ;;  %v3070_v22 = vmul.f32 %v3054_v58, %v5440_v6 }
0x1310   :  { %v3085_v55 = vmul.f32 %v3069_v31, %v2966_v60  ;;  %v3087_v43 = vmul.f32 %v3071_v21, %v3019_v62  ;;  %v3073_v38 = vmul.f32 %v3057_v15, %v2970_v32  ;;  %v3075_v13 = vmul.f32 %v3059_v45, %v5444_v23 }
0x1311   :  { %v2975_v16 = vpop.f32.mrb[80].mxu0  ;;  %v3028_v50 = vpop.f32.mrb[72].mxu1  ;;  %v3060_v54 = vmul.f32 0.044715, %v5453_v5  ;;  %v3074_v51 = vmul.f32 %v3058_v14, %v5447_v9  ;;  %v3072_v56 = vmul.f32 %v3056_v1, %v5450_v33  ;;  %v3086_v19 = vmul.f32 %v3070_v22, %v5440_v6 }
0x1312   :  { %v3101_v59 = vadd.f32 %v3085_v55, %v2966_v60  ;;  %v3103_v18 = vadd.f32 %v3087_v43, %v3019_v62  ;;  %v2977_v20 = vpop.f32.mrb[81].mxu0  ;;  %v3030_v39 = vpop.f32.mrb[73].mxu1  ;;  %v3089_v11 = vmul.f32 %v3073_v38, %v2970_v32  ;;  %v5466_v36 = vadd.f32 %v2975_v16, %v5424_v7 }
0x1313   :  { %v2979_v41 = vpop.f32.mrb[82].mxu0  ;;  %v3032_v52 = vpop.f32.mrb[74].mxu1  ;;  %v3091_v46 = vmul.f32 %v3075_v13, %v5444_v23  ;;  %v5472_v44 = vadd.f32 %v3028_v50, %v5428_v53  ;;  %v5477_v8 = vadd.f32 %v2977_v20, %v5433_v34  ;;  %v3076_v28 = vmul.f32 %v3060_v54, %v5453_v5 }
0x1314   :  { %v3117_v30 = vmul.f32 0.7978846, %v3101_v59  ;;  %v3119_v35 = vmul.f32 0.7978846, %v3103_v18  ;;  %v2981_v40 = vpop.f32.mrb[83].mxu0  ;;  %v3034_v2 = vpop.f32.mrb[75].mxu1  ;;  %v3105_v57 = vadd.f32 %v3089_v11, %v2970_v32  ;;  %v5483_v62 = vadd.f32 %v3030_v39, %v5437_v61 }
0x1315   :  { %v3107_v10 = vadd.f32 %v3091_v46, %v5444_v23  ;;  %v3061_v49 = vmul.f32 0.044715, %v5466_v36  ;;  %v3062_v60 = vmul.f32 0.044715, %v5477_v8  ;;  %v5486_v63 = vadd.f32 %v2979_v41, %v5424_v7 }
0x1316   :  { %4372 = vtanh.f32 %v3117_v30  ;;  %v3121_v26 = vmul.f32 0.7978846, %v3105_v57  ;;  %v3090_v4 = vmul.f32 %v3074_v51, %v5447_v9  ;;  %v5491_v3 = vadd.f32 %v3032_v52, %v5428_v53 }
0x1317   :  { %4374 = vtanh.f32 %v3119_v35  ;;  %v3123_v25 = vmul.f32 0.7978846, %v3107_v10  ;;  %v3077_v17 = vmul.f32 %v3061_v49, %v5466_v36  ;;  %v3063_v48 = vmul.f32 0.044715, %v5472_v44 }
0x1318   :  { %4376 = vtanh.f32 %v3121_v26  ;;  %v3064_v12 = vmul.f32 0.044715, %v5483_v62  ;;  %v3041_v29 = vmul.f32 0.5, %v2970_v32  ;;  %v3078_v31 = vmul.f32 %v3062_v60, %v5477_v8 }
0x1319   :  { %4378 = vtanh.f32 %v3123_v25  ;;  %v5498_v7 = vadd.f32 %v2981_v40, %v5433_v34  ;;  %v5501_v21 = vadd.f32 %v3034_v2, %v5437_v61  ;;  %v3088_v15 = vmul.f32 %v3072_v56, %v5450_v33 }
0x131a   :  { %v3092_v53 = vmul.f32 %v3076_v28, %v5453_v5  ;;  %v3065_v55 = vmul.f32 0.044715, %v5486_v63  ;;  %v3067_v43 = vmul.f32 0.044715, %v5491_v3  ;;  %v3080_v45 = vmul.f32 %v3064_v12, %v5483_v62 }
0x131b   :  { %v3066_v32 = vmul.f32 0.044715, %v5498_v7  ;;  %v3068_v58 = vmul.f32 0.044715, %v5501_v21  ;;  %v3102_v34 = vadd.f32 %v3086_v19, %v5440_v6  ;;  %v3043_v38 = vmul.f32 0.5, %v5444_v23 }
0x131c   :  { %v3093_v61 = vmul.f32 %v3077_v17, %v5466_v36  ;;  %v3079_v14 = vmul.f32 %v3063_v48, %v5472_v44  ;;  %v3106_v16 = vadd.f32 %v3090_v4, %v5447_v9  ;;  %v3094_v50 = vmul.f32 %v3078_v31, %v5477_v8 }
0x131d   :  { %v3082_v59 = vmul.f32 %v3066_v32, %v5498_v7  ;;  %v3084_v18 = vmul.f32 %v3068_v58, %v5501_v21  ;;  %v3118_v13 = vmul.f32 0.7978846, %v3102_v34  ;;  %v3081_v39 = vmul.f32 %v3065_v55, %v5486_v63 }
0x131e   :  { %v3122_v1 = vmul.f32 0.7978846, %v3106_v16  ;;  %v3104_v11 = vadd.f32 %v3088_v15, %v5450_v33  ;;  %v3108_v23 = vadd.f32 %v3092_v53, %v5453_v5  ;;  %v3096_v41 = vmul.f32 %v3080_v45, %v5483_v62 }
0x131f   :  { %v3083_v52 = vmul.f32 %v3067_v43, %v5491_v3  ;;  %v3098_v30 = vmul.f32 %v3082_v59, %v5498_v7  ;;  %4380 = vtanh.f32 %v3118_v13  ;;  %v3095_v22 = vmul.f32 %v3079_v14, %v5472_v44 }
0x1320   :  { %v4373_v20 = vpop.eup %4372  ;;  %4382 = vtanh.f32 %v3122_v1  ;;  %v3120_v35 = vmul.f32 0.7978846, %v3104_v11  ;;  %v3124_v46 = vmul.f32 0.7978846, %v3108_v23  ;;  %v3100_v57 = vmul.f32 %v3084_v18, %v5501_v21 }
0x1321   :  { %v4375_v54 = vpop.eup %4374  ;;  %v3149_v40 = vadd.f32 1.0, %v4373_v20  ;;  %v3110_v10 = vadd.f32 %v3094_v50, %v5477_v8  ;;  %v3097_v56 = vmul.f32 %v3081_v39, %v5486_v63  ;;  %v3114_v28 = vadd.f32 %v3098_v30, %v5498_v7 }
0x1322   :  { %v4377_v2 = vpop.eup %4376  ;;  %v3151_v51 = vadd.f32 1.0, %v4375_v54  ;;  %4384 = vtanh.f32 %v3120_v35  ;;  %v3099_v25 = vmul.f32 %v3083_v52, %v5491_v3  ;;  %v3112_v12 = vadd.f32 %v3096_v41, %v5483_v62 }
0x1323   :  { %v4379_v49 = vpop.eup %4378  ;;  %v3153_v26 = vadd.f32 1.0, %v4377_v2  ;;  %4386 = vtanh.f32 %v3124_v46  ;;  %v3126_v19 = vmul.f32 0.7978846, %v3110_v10  ;;  %v3165_v4 = vmul.f32 %v3149_v40, %v5455_v24 }
0x1324   :  { %v3155_v60 = vadd.f32 1.0, %v4379_v49  ;;  %v3130_v48 = vmul.f32 0.7978846, %v3114_v28  ;;  %v3167_v31 = vmul.f32 %v3151_v51, %v5460_v42  ;;  %v3116_v53 = vadd.f32 %v3100_v57, %v5501_v21 }
0x1325   :  { %v3169_v17 = vmul.f32 %v3153_v26, %v3041_v29  ;;  %4388 = vtanh.f32 %v3126_v19  ;;  %v3128_v43 = vmul.f32 0.7978846, %v3112_v12  ;;  %v3109_v58 = vadd.f32 %v3093_v61, %v5466_v36 }
0x1326   :  { %v3171_v15 = vmul.f32 %v3155_v60, %v3043_v38  ;;  %4390 = vtanh.f32 %v3130_v48  ;;  %v3132_v32 = vmul.f32 0.7978846, %v3116_v53  ;;  %v3113_v34 = vadd.f32 %v3097_v56, %v5486_v63 }
0x1327   :  { %v3181_v55 = vpack.c.bf16 %v3169_v17, %v3165_v4  ;;  %4392 = vtanh.f32 %v3128_v43  ;;  %v3111_v24 = vadd.f32 %v3095_v22, %v5472_v44  ;;  %v3125_v14 = vmul.f32 0.7978846, %v3109_v58 }
0x1328   :  { %v3183_v45 = vpack.c.bf16 %v3171_v15, %v3167_v31  ;;  %4394 = vtanh.f32 %v3132_v32  ;;  %v3129_v42 = vmul.f32 0.7978846, %v3113_v34  ;;  %v3115_v38 = vadd.f32 %v3099_v25, %v5491_v3 }
0x1329   :  { %v4381_v29 = vpop.eup %4380  ;;  %v3038_v50 = vmul.f32 0.5, %v5440_v6  ;;  %v3127_v18 = vmul.f32 0.7978846, %v3111_v24  ;;  %v3042_v13 = vmul.f32 0.5, %v5447_v9  ;;  %4396 = vtanh.f32 %v3125_v14 }
0x132a   :  { %v4383_v16 = vpop.eup %4382  ;;  %v3150_v59 = vadd.f32 1.0, %v4381_v29  ;;  %v3131_v61 = vmul.f32 0.7978846, %v3115_v38  ;;  %4398 = vtanh.f32 %v3129_v42  ;;  %v3040_v41 = vmul.f32 0.5, %v5450_v33 }
0x132b   :  { %v3154_v20 = vadd.f32 1.0, %v4383_v16  ;;  %4400 = vtanh.f32 %v3127_v18  ;;  %v3044_v52 = vmul.f32 0.5, %v5453_v5  ;;  %v3046_v22 = vmul.f32 0.5, %v5477_v8 }
0x132c   :  { %v4385_v39 = vpop.eup %4384  ;;  %v3166_v11 = vmul.f32 %v3150_v59, %v3038_v50  ;;  %4402 = vtanh.f32 %v3131_v61  ;;  %v3050_v57 = vmul.f32 0.5, %v5498_v7  ;;  %v3048_v28 = vmul.f32 0.5, %v5483_v62 }
0x132d   :  { %v4387_v1 = vpop.eup %4386  ;;  %v3170_v23 = vmul.f32 %v3154_v20, %v3042_v13  ;;  %v3152_v54 = vadd.f32 1.0, %v4385_v39  ;;  %v3052_v25 = vmul.f32 0.5, %v5501_v21  ;;  %v3045_v31 = vmul.f32 0.5, %v5466_v36 }
0x132e   :  { %v3156_v30 = vadd.f32 1.0, %v4387_v1  ;;  %v3049_v15 = vmul.f32 0.5, %v5486_v63  ;;  %v3047_v62 = vmul.f32 0.5, %v5472_v44  ;;  %v3679_v63 = vld [vmem:[%s5584_s12] ss:$0 sm:$0xff]  ;;  %s4617_s12 = smov [#allocation15]  }
0x132f   :  { %v4389_v6 = vpop.eup %4388  ;;  %v3182_v35 = vpack.c.bf16 %v3170_v23, %v3166_v11  ;;  %v3168_v9 = vmul.f32 %v3152_v54, %v3040_v41  ;;  %s3563_s0 = sshll.u32 %s4617_s12, 4  ;;  %s3564_s0 = int_to_ptr.vmem [resolvable:$true] %s3563_s0 }
0x1330   :  { %v4391_v46 = vpop.eup %4390  ;;  %v3172_v40 = vmul.f32 %v3156_v30, %v3044_v52  ;;  %v3158_v2 = vadd.f32 1.0, %v4389_v6  ;;  %s4562_s1 = scalar_lea.vmem %s3564_s0, 512  ;;  %p4567_p1 = scmp.lt.s32.totalorder %s3564_s0, %s3564_s0 }
0x1331   :  { %3484 = vmatprep.mubr.bf16.mxu0 %v3182_v35  ;;  %v3162_v51 = vadd.f32 1.0, %v4391_v46  ;;  %v4393_v10 = vpop.eup %4392  ;;  %p4563_p0 = scmp.ne.s32.totalorder %s3564_s0, %s4562_s1  ;;  %p4568_p2 = scmp.lt.s32.totalorder %s4562_s1, %s4562_s1 }
0x1332   :  { %v3184_v49 = vpack.c.bf16 %v3172_v40, %v3168_v9  ;;  %3485 = vmatmul.mubr.bf16.vlgmr.msra.gmra.mrb[84].mxu0 %v3181_v55  ;;  %v4395_v33 = vpop.eup %4394  ;;  %v3174_v56 = vmul.f32 %v3158_v2, %v3046_v22  ;;  %v3160_v26 = vadd.f32 1.0, %v4393_v10 }
0x1333   :  { %v3178_v5 = vmul.f32 %v3162_v51, %v3050_v57  ;;  %v3164_v60 = vadd.f32 1.0, %v4395_v33  ;;  %v4397_v19 = vpop.eup %4396  ;;  %p4569_p3 = por %p4568_p2, %p4567_p1 }
0x1334   :  { %3533 = vmatprep.mubr.bf16.mxu1 %v3184_v49  ;;  %v4399_v8 = vpop.eup %4398  ;;  %v3176_v17 = vmul.f32 %v3160_v26, %v3048_v28  ;;  %v3157_v48 = vadd.f32 1.0, %v4397_v19 }
0x1335   :  { %3534 = vmatmul.mubr.bf16.vlgmr.msra.gmra.mrb[76].mxu1 %v3183_v45  ;;  %v3186_v4 = vpack.c.bf16 %v3178_v5, %v3174_v56  ;;  %v3180_v7 = vmul.f32 %v3164_v60, %v3052_v25  ;;  %v4401_v12 = vpop.eup %4400  ;;  %v3161_v53 = vadd.f32 1.0, %v4399_v8  ;;  %v3051_v45 = vmul.f32 0.5, %v5491_v3  ;;  %p4570_p4 = pnand %p4569_p3, %p4563_p0 }
0x1336   :  { %v4403_v55 = vpop.eup %4402  ;;  %v3159_v21 = vadd.f32 1.0, %v4401_v12  ;;  %v3173_v32 = vmul.f32 %v3157_v48, %v3045_v31 }
0x1337   :  { %3492 = vmatprep.mubr.bf16.mxu0 %v3186_v4  ;;  %v3188_v43 = vpack.c.bf16 %v3180_v7, %v3176_v17  ;;  %v3177_v58 = vmul.f32 %v3161_v53, %v3049_v15  ;;  %v3163_v34 = vadd.f32 1.0, %v4403_v55 }
0x1338   :  { %v3175_v29 = vmul.f32 %v3159_v21, %v3047_v62 }
0x1339   :  { %3541 = vmatprep.mubr.bf16.mxu1 %v3188_v43  ;;  %v3185_v24 = vpack.c.bf16 %v3177_v58, %v3173_v32  ;;  %v3179_v14 = vmul.f32 %v3163_v34, %v3051_v45 }
0x133b   :  { %3493 = vmatmul.mubr.bf16.gmra.mrb[88].mxu0 %v3185_v24  ;;  %v3187_v42 = vpack.c.bf16 %v3179_v14, %v3175_v29 }
0x133d   :  { %3542 = vmatmul.mubr.bf16.gmra.mrb[80].mxu1 %v3187_v42 }
0x1405   :  { %v3812_v36 = vpop.f32.mrb[84].mxu0 }
0x1406   :  { %v3813_v38 = vpop.f32.mrb[85].mxu0 }
0x1407   :  { %v3814_v44 = vadd.f32 %v3813_v38, %v3812_v36  ;;  %v3815_v16 = vpop.f32.mrb[86].mxu0 }
0x1408   :  { %v3840_v50 = vpop.f32.mrb[76].mxu1  ;;  %v3816_v59 = vpop.f32.mrb[87].mxu0 }
0x1409   :  { %v3487_v18 = vadd.f32 %v3814_v44, %v3679_v63  ;;  %v3841_v3 = vpop.f32.mrb[77].mxu1  ;;  %v3817_v13 = vadd.f32 %v3816_v59, %v3815_v16 }
0x140a   :  { %v3842_v20 = vadd.f32 %v3841_v3, %v3840_v50  ;;  %v3843_v61 = vpop.f32.mrb[78].mxu1 }
0x140b   :  { %v3490_v39 = vadd.f32 %v3817_v13, %v3679_v63  ;;  %v3844_v1 = vpop.f32.mrb[79].mxu1 }
0x140c   :  { %v3536_v11 = vadd.f32 %v3842_v20, %v3487_v18  ;;  %v3845_v23 = vadd.f32 %v3844_v1, %v3843_v61 }
0x140e   :  { %v3550_v54 = vadd.f32 %v3536_v11, %v5375_v47  ;;  %v3539_v41 = vadd.f32 %v3845_v23, %v3490_v39  ;;  %v3818_v30 = vpop.f32.mrb[88].mxu0 }
0x140f   :  { %v3819_v6 = vpop.f32.mrb[89].mxu0 }
0x1410   :  { %3554 = vst [vmem:[#allocation15] sm:$0xff] %v3550_v54  ;;  %v3551_v52 = vadd.f32 %v3539_v41, %v5377_v0  ;;  %v3846_v35 = vpop.f32.mrb[80].mxu1  ;;  %v3820_v46 = vadd.f32 %v3819_v6, %v3818_v30  ;;  %v3821_v9 = vpop.f32.mrb[90].mxu0 }
0x1411   :  { %v3847_v40 = vpop.f32.mrb[81].mxu1  ;;  %v3822_v2 = vpop.f32.mrb[91].mxu0 }
0x1412   :  { %3555 = vst [vmem:[#allocation15 + $0x8] sm:$0xff] %v3551_v52  ;;  %v3495_v22 = vadd.f32 %v3820_v46, %v3679_v63  ;;  %v3848_v57 = vadd.f32 %v3847_v40, %v3846_v35  ;;  %v3849_v51 = vpop.f32.mrb[82].mxu1  ;;  %v3823_v10 = vadd.f32 %v3822_v2, %v3821_v9 }
0x1413   :  { %v3850_v49 = vpop.f32.mrb[83].mxu1 }
0x1414   :  { %v3544_v33 = vadd.f32 %v3848_v57, %v3495_v22  ;;  %v3498_v56 = vadd.f32 %v3823_v10, %v3679_v63  ;;  %v3851_v47 = vadd.f32 %v3850_v49, %v3849_v51 }
0x1416   :  { %v3552_v0 = vadd.f32 %v3544_v33, %v5380_v27  ;;  %v3547_v5 = vadd.f32 %v3851_v47, %v3498_v56 }
0x1418   :  { %3556 = vst [vmem:[#allocation15 + $0x10] sm:$0xff] %v3552_v0  ;;  %v3553_v26 = vadd.f32 %v3547_v5, %v5384_v37 }
0x141a   :  { %3557 = vst [vmem:[#allocation15 + $0x18] sm:$0xff] %v3553_v26 }
0x141b   :  { %4573 = shalt.err (!%p4570_p4)
}
0x141c   :  { %s4574_s23 = scalar_lea.hbm %s5585_s13, 512 }
0x141d   :  { %p4575_p5 = scmp.ne.s32.totalorder %s5585_s13, %s4574_s23  ;;  %p4578_p6 = scmp.lt.u32.totalorder %s4574_s23, %s5585_s13 }
0x141f   :  { %p4580_p7 = pnand %p4578_p6, %p4575_p5 }
0x1421   :  { %4583 = shalt.err (!%p4580_p7)
}
0x1422   :  { %3569 = dma.vmem_to_hbm [thread:$0]  %s3564_s0, 512, %s5585_s13, [#allocation5], %s4602_s9, %s4602_s9, %s4603_s19  }
0x1423   :  { %4592 = dma.done.wait [#allocation5], 512  }
0x1424   :  { %4593 = vsyncadd [#allocation5], 4294966784 }
0x1425   :  { %3573 = vsyncpa [#allocation4], 1 }
0x1426   :  { %3574 = vsyncpa [#allocation7], 1 }
0x1427   :  { %3575 = vsyncpa [#allocation10], 1 }
0x1428   :  { %3576 = vsyncpa [#allocation13], 1 }
0x1429   :  { %3577 = vsyncpa [#allocation5], 1 }

</bundles_post_ra>
